<compile_context>
chip_gen: v5e
topology: v5e:2x2
jax: 0.10.0
libtpu: 0.0.40
codegen_flags: <defaults>
</compile_context>

<pallas_src>
import functools
import numpy as np

import jax
import jax.numpy as jnp
from jax import lax
from jax.experimental import pallas as pl
from jax.experimental.pallas import tpu as pltpu


# ---------------------------------------------------------------------------
# padding helpers
# ---------------------------------------------------------------------------
def _ceil_to(x, m):
    return ((x + m - 1) // m) * m


def _pad_to(x, shape):
    pads = [(0, t - s) for s, t in zip(x.shape, shape)]
    return jnp.pad(x, pads)


def _pad_gate_cols(w, nhid, nhid_p):
    """(..., 4*nhid) -> (..., 4*nhid_p) with each gate block placed at g*nhid_p."""
    lead = w.shape[:-1]
    w4 = w.reshape(lead + (4, nhid))
    w4 = jnp.pad(w4, [(0, 0)] * len(lead) + [(0, 0), (0, nhid_p - nhid)])
    return w4.reshape(lead + (4 * nhid_p,))


def _tile_bytes(shape, dtype):
    """Approx VMEM footprint of one block, accounting for (8,128) tile padding."""
    shape = tuple(shape)
    if len(shape) < 2:
        shape = (1,) * (2 - len(shape)) + shape
    lead = 1
    for d in shape[:-2]:
        lead *= int(d)
    return lead * _ceil_to(int(shape[-2]), 8) * _ceil_to(int(shape[-1]), 128) \
        * jnp.dtype(dtype).itemsize


# ---------------------------------------------------------------------------
# kernel
# ---------------------------------------------------------------------------
def _rnn_kernel(seq_len_ref, inv_len_ref, emb_ref, h0_ref, c0_ref,
                w_ih_ref, w_hh_ref, b_ref, w1_ref, b1_ref, w2_ref, b2_ref,
                logp_ref, hx_ref, cx_ref,
                sum_s,
                *, t_chunk, seq_total):
    """One grid step == one (batch-tile, time-chunk).

    h/c are carried in the (VMEM-resident) hx/cx output refs; the masked pooling sum
    is carried in a single scratch buffer. Inside a chunk everything is value-carried.
    """
    ti = pl.program_id(1)                       # time-chunk index ("arbitrary" axis)
    nhid = hx_ref.shape[-1]                     # padded hidden size (multiple of 128)
    bt = emb_ref.shape[1]
    ninp = emb_ref.shape[2]
    seq_rem = seq_total % t_chunk               # static: 0 => no time padding anywhere

    @pl.when(ti == 0)
    def _init():
        hx_ref[...] = h0_ref[...]
        cx_ref[...] = c0_ref[...]
        sum_s[...] = jnp.zeros_like(sum_s)

    # ---- hoisted input projection: one chunk-wide bf16 MXU matmul, kept as a value --
    x_all = emb_ref[...].reshape(t_chunk * bt, ninp)          # bf16
    xg = jnp.dot(x_all, w_ih_ref[...],
                 preferred_element_type=jnp.float32) + b_ref[...]   # f32 (t*bt, 4*nhid)

    w_hh = w_hh_ref[...]                        # bf16
    seq_len = seq_len_ref[...]                  # (bt, 1) int32

    h = hx_ref[...]                             # f32 carries
    c = cx_ref[...]
    s = sum_s[...]

    # Static unroll: fine at toy sizes. At production (large BT*NHID) switch to
    # lax.fori_loop(..., unroll=2..4) with a bf16 xg scratch to bound vreg live ranges.
    for lt in range(t_chunk):
        gt = ti * t_chunk + lt                  # global timestep (traced i32 scalar)
        gates = xg[lt * bt:(lt + 1) * bt, :] + jnp.dot(
            h.astype(w_hh.dtype), w_hh, preferred_element_type=jnp.float32)
        # PyTorch LSTMCell gate order: i, f, g, o  (slices are 128-lane aligned)
        i_g = jax.nn.sigmoid(gates[:, 0 * nhid:1 * nhid])
        f_g = jax.nn.sigmoid(gates[:, 1 * nhid:2 * nhid])
        g_g = jnp.tanh(gates[:, 2 * nhid:3 * nhid])
        o_g = jax.nn.sigmoid(gates[:, 3 * nhid:4 * nhid])
        c_new = f_g * c + i_g * g_g
        h_new = o_g * jnp.tanh(c_new)
        if seq_rem != 0 and lt >= seq_rem:      # only genuinely padded steps pay this
            valid = gt < seq_total
            h_new = jnp.where(valid, h_new, h)
            c_new = jnp.where(valid, c_new, c)
        # masked accumulation for the per-example mean pool (int32 compare)
        mask = (gt < seq_len).astype(jnp.float32)            # (bt, 1)
        s = s + mask * h_new
        h, c = h_new, c_new

    hx_ref[...] = h                             # one resident-output write per chunk
    cx_ref[...] = c
    sum_s[...] = s

    @pl.when(ti == pl.num_programs(1) - 1)
    def _finalize():
        feat = s * inv_len_ref[...]             # masked mean pool (1/len precomputed)
        fc1 = jnp.dot(feat, w1_ref[...],
                      preferred_element_type=jnp.float32) + b1_ref[...]
        fc2 = jnp.dot(fc1, w2_ref[...],
                      preferred_element_type=jnp.float32) + b2_ref[...]
        # padded class columns carry a -1e9 bias -> exp() underflows to 0, so the
        # log_softmax over the lane-padded (BT, 128) output matches the 2-class one.
        z = fc2 - jnp.max(fc2, axis=-1, keepdims=True)
        logp_ref[...] = z - jnp.log(jnp.sum(jnp.exp(z), axis=-1, keepdims=True))


# ---------------------------------------------------------------------------
# wrapper
# ---------------------------------------------------------------------------
def rnn_vanilla_forward(tokens, hidden, seq_len, params, *, max_chunk=16):
    """Pallas implementation of RNNvanilla.forward."""
    h0, c0 = hidden
    batch, seq = tokens.shape
    nhid = h0.shape[-1]
    ntoken, ninp = params["embed"].shape
    nh1 = params["w_fc1"].shape[-1]
    ncls = params["w_fc2"].shape[-1]

    # ---- (8,128)-aligned padded sizes (batch to 16 for clean bf16 sublane packing) --
    B = _ceil_to(batch, 16)
    NINP = _ceil_to(ninp, 128)
    NHID = _ceil_to(nhid, 128)
    NH1 = _ceil_to(nh1, 128)
    NCLS = _ceil_to(ncls, 128)

    # ---- time chunking: prefer a divisor of seq so the padding guard disappears -----
    t_chunk = 1
    for d in range(1, min(seq, max_chunk) + 1):
        if seq % d == 0:
            t_chunk = d
    if seq > max_chunk and t_chunk == 1:
        t_chunk = max_chunk                     # no good divisor: accept padded tail
    n_chunks = (seq + t_chunk - 1) // t_chunk
    seq_pad = n_chunks * t_chunk

    # ---- batch tiling: single tile at toy sizes; >=2 tiles at large batch so the
    # "parallel" axis actually shards across v7x's two TensorCores, and BT fills the
    # MXU M dimension of the serial h @ W_hh matmul.
    n_btiles = 2 if B >= 512 else 1
    BT = B // n_btiles

    bf16, f32, i32 = jnp.bfloat16, jnp.float32, jnp.int32

    # ---- embedding: gather directly into the padded (seq_pad, B, NINP) bf16 layout --
    embed_p = _pad_to(params["embed"], (ntoken, NINP)).astype(bf16)
    tokens_p = jnp.zeros((B, seq_pad), i32).at[:batch, :seq].set(tokens.astype(i32))
    emb_p = embed_p[tokens_p.T]                 # (seq_pad, B, NINP), single gather

    h0_p = _pad_to(h0.astype(f32), (B, NHID))
    c0_p = _pad_to(c0.astype(f32), (B, NHID))

    seq_len_i = _pad_to(seq_len.astype(i32).reshape(batch, 1), (B, 1))
    inv_len = _pad_to(
        (1.0 / jnp.maximum(seq_len.astype(f32), 1.0)).reshape(batch, 1), (B, 1))

    # weights: bf16 on the recurrent-path matmul inputs, f32 elsewhere
    w_ih_p = _pad_gate_cols(_pad_to(params["w_ih"], (NINP, 4 * nhid)),
                            nhid, NHID).astype(bf16)
    w_hh_p = _pad_gate_cols(_pad_to(params["w_hh"], (NHID, 4 * nhid)),
                            nhid, NHID).astype(bf16)
    b_p = _pad_gate_cols(params["b"], nhid, NHID)            # f32 (1, 4*NHID)
    w1_p = _pad_to(params["w_fc1"], (NHID, NH1))
    b1_p = _pad_to(params["b_fc1"], (1, NH1))
    w2_p = _pad_to(params["w_fc2"], (NH1, NCLS))
    b2_p = jnp.full((1, NCLS), -1e9, f32).at[:, :ncls].set(params["b_fc2"])

    # ---- VMEM residency -> explicit vmem_limit_bytes ---------------------------------
    stream_blocks = [((BT, 1), i32), ((BT, 1), f32),
                     ((t_chunk, BT, NINP), bf16),
                     ((BT, NHID), f32), ((BT, NHID), f32),            # h0, c0
                     ((BT, NCLS), f32), ((BT, NHID), f32), ((BT, NHID), f32)]  # outs
    weight_blocks = [((NINP, 4 * NHID), bf16), ((NHID, 4 * NHID), bf16),
                     ((1, 4 * NHID), f32),
                     ((NHID, NH1), f32), ((1, NH1), f32),
                     ((NH1, NCLS), f32), ((1, NCLS), f32)]
    scratch_bytes = _tile_bytes((BT, NHID), f32)

    def _vmem_limit(weight_bufs):
        total = (2 * sum(_tile_bytes(s, d) for s, d in stream_blocks)
                 + weight_bufs * sum(_tile_bytes(s, d) for s, d in weight_blocks)
                 + scratch_bytes)
        total = int(total * 1.25) + (2 << 20)          # compiler temps / headroom
        return max(min(total, 64 << 20), 8 << 20)      # <= v7x physical 64 MiB

    kernel = functools.partial(_rnn_kernel, t_chunk=t_chunk, seq_total=seq)

    def _build(buffered_weights):
        wkw = {"pipeline_mode": pl.Buffered(1)} if buffered_weights else {}
        const = lambda bi, ti: (0, 0)
        w_spec = lambda shape: pl.BlockSpec(shape, const, **wkw)
        grid_spec = pltpu.PrefetchScalarGridSpec(
            num_scalar_prefetch=0,
            grid=(n_btiles, n_chunks),
            in_specs=[
                pl.BlockSpec((BT, 1), lambda bi, ti: (bi, 0)),                 # seq_len
                pl.BlockSpec((BT, 1), lambda bi, ti: (bi, 0)),                 # 1/seq_len
                pl.BlockSpec((t_chunk, BT, NINP), lambda bi, ti: (ti, bi, 0)),  # emb chunk
                pl.BlockSpec((BT, NHID), lambda bi, ti: (bi, 0)),              # h0
                pl.BlockSpec((BT, NHID), lambda bi, ti: (bi, 0)),              # c0
                w_spec((NINP, 4 * NHID)),                                      # W_ih^T
                w_spec((NHID, 4 * NHID)),                                      # W_hh^T
                w_spec((1, 4 * NHID)),                                         # b_ih+b_hh
                w_spec((NHID, NH1)),                                           # fc1 W^T
                w_spec((1, NH1)),                                              # fc1 b
                w_spec((NH1, NCLS)),                                           # fc2 W^T
                w_spec((1, NCLS)),                                             # fc2 b
            ],
            out_specs=[
                pl.BlockSpec((BT, NCLS), lambda bi, ti: (bi, 0)),              # log_softmax
                pl.BlockSpec((BT, NHID), lambda bi, ti: (bi, 0)),              # final hx
                pl.BlockSpec((BT, NHID), lambda bi, ti: (bi, 0)),              # final cx
            ],
            scratch_shapes=[
                pltpu.VMEM((BT, NHID), jnp.float32),   # masked sum of h (pooling)
            ],
        )
        return pl.pallas_call(
            kernel,
            out_shape=(
                jax.ShapeDtypeStruct((B, NCLS), jnp.float32),
                jax.ShapeDtypeStruct((B, NHID), jnp.float32),
                jax.ShapeDtypeStruct((B, NHID), jnp.float32),
            ),
            grid_spec=grid_spec,
            compiler_params=pltpu.CompilerParams(
                dimension_semantics=("parallel", "arbitrary"),
                vmem_limit_bytes=_vmem_limit(1 if buffered_weights else 2)),
        )

    args = (seq_len_i, inv_len, emb_p, h0_p, c0_p,
            w_ih_p, w_hh_p, b_p, w1_p, b1_p, w2_p, b2_p)
    try:
        logp, hx, cx = _build(buffered_weights=True)(*args)
        jax.block_until_ready(logp)
    except Exception:
        # Some jax builds don't honor pipeline_mode on the top-level TPU pipeliner;
        # fall back to default double-buffered weight blocks (correctness identical).
        logp, hx, cx = _build(buffered_weights=False)(*args)

    return logp[:batch, :ncls], (hx[:batch, :nhid], cx[:batch, :nhid])


# ---------------------------------------------------------------------------
# pure-JAX reference (mirrors the PyTorch forward)
# ---------------------------------------------------------------------------
def rnn_vanilla_ref(tokens, hidden, seq_len, params):
    h, c = hidden
    emb = params["embed"][tokens.T]
    seq = emb.shape[0]
    nhid = h.shape[-1]
    hs = []
    for t in range(seq):
        gates = emb[t] @ params["w_ih"] + h @ params["w_hh"] + params["b"][0]
        i = jax.nn.sigmoid(gates[:, :nhid])
        f = jax.nn.sigmoid(gates[:, nhid:2 * nhid])
        g = jnp.tanh(gates[:, 2 * nhid:3 * nhid])
        o = jax.nn.sigmoid(gates[:, 3 * nhid:])
        c = f * c + i * g
        h = o * jnp.tanh(c)
        hs.append(h)
    output = jnp.stack(hs)                                  # (seq, batch, nhid)
    feats = []
    for b in range(tokens.shape[0]):
        L = int(seq_len[b])
        feats.append(jnp.mean(output[:L, b, :], axis=0))
    feature = jnp.stack(feats)
    fc = feature @ params["w_fc1"] + params["b_fc1"][0]
    fc = fc @ params["w_fc2"] + params["b_fc2"][0]
    return jax.nn.log_softmax(fc, axis=-1), (h, c)


def make_params(key, ntoken, ninp, nhid):
    nh1 = nhid // 3
    ks = jax.random.split(key, 10)
    stdv = 1.0 / np.sqrt(nhid)
    u = lambda k, shape, r: jax.random.uniform(k, shape, jnp.float32, -r, r)
    return {
        "embed": u(ks[0], (ntoken, ninp), 0.1),                 # init_weights: U(-0.1, 0.1)
        "w_ih": u(ks[1], (ninp, 4 * nhid), stdv),               # stored transposed
        "w_hh": u(ks[2], (nhid, 4 * nhid), stdv),
        "b": u(ks[3], (1, 4 * nhid), stdv) + u(ks[4], (1, 4 * nhid), stdv),  # b_ih + b_hh
        "w_fc1": u(ks[5], (nhid, nh1), 1.0 / np.sqrt(nhid)),
        "b_fc1": u(ks[6], (1, nh1), 1.0 / np.sqrt(nhid)),
        "w_fc2": u(ks[7], (nh1, 2), 1.0 / np.sqrt(nh1)),
        "b_fc2": u(ks[8], (1, 2), 1.0 / np.sqrt(nh1)),
    }


if __name__ == "__main__":
    ntoken, ninp, nhid = 50, 16, 32
    batch, seq = 4, 8

    key = jax.random.PRNGKey(0)
    kp, kt = jax.random.split(key)
    params = make_params(kp, ntoken, ninp, nhid)

    tokens = jax.random.randint(kt, (batch, seq), 0, ntoken, dtype=jnp.int32)
    seq_len = jnp.array([8, 5, 8, 3], dtype=jnp.int32)          # per-example valid lengths
    hidden = (jnp.zeros((batch, nhid), jnp.float32),
              jnp.zeros((batch, nhid), jnp.float32))            # init_hidden(bsz)

    (logp, (hx, cx)) = rnn_vanilla_forward(tokens, hidden, seq_len, params)
    jax.block_until_ready((logp, hx, cx))

    (logp_ref, (hx_ref, cx_ref)) = rnn_vanilla_ref(tokens, hidden, seq_len, params)
    # bf16 MXU inputs on the recurrent path -> bf16-level tolerance vs the f32 reference
    np.testing.assert_allclose(np.asarray(logp), np.asarray(logp_ref), atol=2e-2, rtol=2e-2)
    np.testing.assert_allclose(np.asarray(hx), np.asarray(hx_ref), atol=2e-2, rtol=2e-2)
    np.testing.assert_allclose(np.asarray(cx), np.asarray(cx_ref), atol=2e-2, rtol=2e-2)

    print("KERNEL_OK")
</pallas_src>

<mosaic_0001>
module attributes {stable_mosaic.version = 11 : i64} {
  func.func @_rnn_kernel(%arg0: i32, %arg1: i32, %arg2: memref<16x1xi32, #tpu.memory_space<vmem>>, %arg3: memref<16x1xf32, #tpu.memory_space<vmem>>, %arg4: memref<8x16x128xbf16, #tpu.memory_space<vmem>>, %arg5: memref<16x128xf32, #tpu.memory_space<vmem>>, %arg6: memref<16x128xf32, #tpu.memory_space<vmem>>, %arg7: memref<128x512xbf16, #tpu.memory_space<vmem>>, %arg8: memref<128x512xbf16, #tpu.memory_space<vmem>>, %arg9: memref<1x512xf32, #tpu.memory_space<vmem>>, %arg10: memref<128x128xf32, #tpu.memory_space<vmem>>, %arg11: memref<1x128xf32, #tpu.memory_space<vmem>>, %arg12: memref<128x128xf32, #tpu.memory_space<vmem>>, %arg13: memref<1x128xf32, #tpu.memory_space<vmem>>, %arg14: memref<16x128xf32, #tpu.memory_space<vmem>>, %arg15: memref<16x128xf32, #tpu.memory_space<vmem>>, %arg16: memref<16x128xf32, #tpu.memory_space<vmem>>, %arg17: memref<16x128xf32, #tpu.memory_space<vmem>>) attributes {dimension_semantics = [#tpu.dimension_semantics<parallel>, #tpu.dimension_semantics<arbitrary>], iteration_bounds = array<i64: 1, 1>, scalar_prefetch = 0 : i64, scratch_operands = 1 : i64, tpu.core_type = #tpu.core_type<tc>, window_params = [{transform_indices = @transform_0, window_bounds = array<i64: 16, 1>}, {transform_indices = @transform_1, window_bounds = array<i64: 16, 1>}, {transform_indices = @transform_2, window_bounds = array<i64: 8, 16, 128>}, {transform_indices = @transform_3, window_bounds = array<i64: 16, 128>}, {transform_indices = @transform_4, window_bounds = array<i64: 16, 128>}, {pipeline_mode = #tpu.pipeline_mode<synchronous>, transform_indices = @transform_5, window_bounds = array<i64: 128, 512>}, {pipeline_mode = #tpu.pipeline_mode<synchronous>, transform_indices = @transform_6, window_bounds = array<i64: 128, 512>}, {pipeline_mode = #tpu.pipeline_mode<synchronous>, transform_indices = @transform_7, window_bounds = array<i64: 1, 512>}, {pipeline_mode = #tpu.pipeline_mode<synchronous>, transform_indices = @transform_8, window_bounds = array<i64: 128, 128>}, {pipeline_mode = #tpu.pipeline_mode<synchronous>, transform_indices = @transform_9, window_bounds = array<i64: 1, 128>}, {pipeline_mode = #tpu.pipeline_mode<synchronous>, transform_indices = @transform_10, window_bounds = array<i64: 128, 128>}, {pipeline_mode = #tpu.pipeline_mode<synchronous>, transform_indices = @transform_11, window_bounds = array<i64: 1, 128>}, {transform_indices = @transform_12, window_bounds = array<i64: 16, 128>}, {transform_indices = @transform_13, window_bounds = array<i64: 16, 128>}, {transform_indices = @transform_14, window_bounds = array<i64: 16, 128>}]} {
    %c0_i32 = arith.constant 0 : i32
    %0 = arith.cmpi eq, %arg1, %c0_i32 : i32
    %1 = arith.extui %0 : i1 to i32
    %c0_i32_0 = arith.constant 0 : i32
    %2 = arith.cmpi ne, %1, %c0_i32_0 : i32
    scf.if %2 {
      %c0_65 = arith.constant 0 : index
      %c0_66 = arith.constant 0 : index
      %325 = vector.load %arg5[%c0_65, %c0_66] : memref<16x128xf32, #tpu.memory_space<vmem>>, vector<16x128xf32>
      %c0_67 = arith.constant 0 : index
      %c0_68 = arith.constant 0 : index
      %326 = vector.load %arg15[%c0_67, %c0_68] : memref<16x128xf32, #tpu.memory_space<vmem>>, vector<16x128xf32>
      tpu.vector_store %arg15[%c0_67, %c0_68], %325 {strides = array<i32>} : memref<16x128xf32, #tpu.memory_space<vmem>>, vector<16x128xf32>,
      %c0_69 = arith.constant 0 : index
      %c0_70 = arith.constant 0 : index
      %327 = vector.load %arg6[%c0_69, %c0_70] : memref<16x128xf32, #tpu.memory_space<vmem>>, vector<16x128xf32>
      %c0_71 = arith.constant 0 : index
      %c0_72 = arith.constant 0 : index
      %328 = vector.load %arg16[%c0_71, %c0_72] : memref<16x128xf32, #tpu.memory_space<vmem>>, vector<16x128xf32>
      tpu.vector_store %arg16[%c0_71, %c0_72], %327 {strides = array<i32>} : memref<16x128xf32, #tpu.memory_space<vmem>>, vector<16x128xf32>,
      %cst_73 = arith.constant 0.000000e+00 : f32
      %329 = vector.broadcast %cst_73 : f32 to vector<16x128xf32>
      %c0_74 = arith.constant 0 : index
      %c0_75 = arith.constant 0 : index
      %330 = vector.load %arg17[%c0_74, %c0_75] : memref<16x128xf32, #tpu.memory_space<vmem>>, vector<16x128xf32>
      tpu.vector_store %arg17[%c0_74, %c0_75], %329 {strides = array<i32>} : memref<16x128xf32, #tpu.memory_space<vmem>>, vector<16x128xf32>,
    } else {
    }
    %c0 = arith.constant 0 : index
    %c0_1 = arith.constant 0 : index
    %c0_2 = arith.constant 0 : index
    %3 = vector.load %arg4[%c0, %c0_1, %c0_2] : memref<8x16x128xbf16, #tpu.memory_space<vmem>>, vector<8x16x128xbf16>
    %4 = vector.shape_cast %3 : vector<8x16x128xbf16> to vector<128x128xbf16>
    %c0_3 = arith.constant 0 : index
    %c0_4 = arith.constant 0 : index
    %5 = vector.load %arg7[%c0_3, %c0_4] : memref<128x512xbf16, #tpu.memory_space<vmem>>, vector<128x512xbf16>
    %cst = arith.constant dense<0.000000e+00> : vector<128x512xf32>
    %6 = tpu.matmul %4, %5, %cst {dimension_numbers = #tpu.dot_dimension_numbers<[1], [0], [0], [1], [0, 0, 1, 1], [], []>} : vector<128x128xbf16>, vector<128x512xbf16>, vector<128x512xf32> -> vector<128x512xf32>
    %c0_5 = arith.constant 0 : index
    %c0_6 = arith.constant 0 : index
    %7 = vector.load %arg9[%c0_5, %c0_6] : memref<1x512xf32, #tpu.memory_space<vmem>>, vector<1x512xf32>
    %8 = vector.broadcast %7 : vector<1x512xf32> to vector<128x512xf32>
    %9 = arith.addf %6, %8 : vector<128x512xf32>
    %c0_7 = arith.constant 0 : index
    %c0_8 = arith.constant 0 : index
    %10 = vector.load %arg8[%c0_7, %c0_8] : memref<128x512xbf16, #tpu.memory_space<vmem>>, vector<128x512xbf16>
    %c0_9 = arith.constant 0 : index
    %c0_10 = arith.constant 0 : index
    %11 = vector.load %arg2[%c0_9, %c0_10] : memref<16x1xi32, #tpu.memory_space<vmem>>, vector<16x1xi32>
    %c0_11 = arith.constant 0 : index
    %c0_12 = arith.constant 0 : index
    %12 = vector.load %arg15[%c0_11, %c0_12] : memref<16x128xf32, #tpu.memory_space<vmem>>, vector<16x128xf32>
    %c0_13 = arith.constant 0 : index
    %c0_14 = arith.constant 0 : index
    %13 = vector.load %arg16[%c0_13, %c0_14] : memref<16x128xf32, #tpu.memory_space<vmem>>, vector<16x128xf32>
    %c0_15 = arith.constant 0 : index
    %c0_16 = arith.constant 0 : index
    %14 = vector.load %arg17[%c0_15, %c0_16] : memref<16x128xf32, #tpu.memory_space<vmem>>, vector<16x128xf32>
    %c8_i32 = arith.constant 8 : i32
    %15 = arith.muli %arg1, %c8_i32 : i32
    %c0_i32_17 = arith.constant 0 : i32
    %16 = arith.addi %15, %c0_i32_17 : i32
    %17 = vector.extract_strided_slice %9 {offsets = [0, 0], sizes = [16, 512], strides = [1, 1]} : vector<128x512xf32> to vector<16x512xf32>
    %18 = arith.truncf %12 : vector<16x128xf32> to vector<16x128xbf16>
    %cst_18 = arith.constant dense<0.000000e+00> : vector<16x512xf32>
    %19 = tpu.matmul %18, %10, %cst_18 {dimension_numbers = #tpu.dot_dimension_numbers<[1], [0], [0], [1], [0, 0, 1, 1], [], []>} : vector<16x128xbf16>, vector<128x512xbf16>, vector<16x512xf32> -> vector<16x512xf32>
    %20 = arith.addf %17, %19 : vector<16x512xf32>
    %21 = vector.extract_strided_slice %20 {offsets = [0, 0], sizes = [16, 128], strides = [1, 1]} : vector<16x512xf32> to vector<16x128xf32>
    %22 = arith.negf %21 : vector<16x128xf32>
    %23 = math.exp %22 : vector<16x128xf32>
    %cst_19 = arith.constant 1.000000e+00 : f32
    %24 = vector.broadcast %cst_19 : f32 to vector<16x128xf32>
    %25 = arith.addf %24, %23 : vector<16x128xf32>
    %26 = arith.divf %24, %25 : vector<16x128xf32>
    %27 = vector.extract_strided_slice %20 {offsets = [0, 128], sizes = [16, 128], strides = [1, 1]} : vector<16x512xf32> to vector<16x128xf32>
    %28 = arith.negf %27 : vector<16x128xf32>
    %29 = math.exp %28 : vector<16x128xf32>
    %cst_20 = arith.constant 1.000000e+00 : f32
    %30 = vector.broadcast %cst_20 : f32 to vector<16x128xf32>
    %31 = arith.addf %30, %29 : vector<16x128xf32>
    %32 = arith.divf %30, %31 : vector<16x128xf32>
    %33 = vector.extract_strided_slice %20 {offsets = [0, 256], sizes = [16, 128], strides = [1, 1]} : vector<16x512xf32> to vector<16x128xf32>
    %34 = math.tanh %33 : vector<16x128xf32>
    %35 = vector.extract_strided_slice %20 {offsets = [0, 384], sizes = [16, 128], strides = [1, 1]} : vector<16x512xf32> to vector<16x128xf32>
    %36 = arith.negf %35 : vector<16x128xf32>
    %37 = math.exp %36 : vector<16x128xf32>
    %cst_21 = arith.constant 1.000000e+00 : f32
    %38 = vector.broadcast %cst_21 : f32 to vector<16x128xf32>
    %39 = arith.addf %38, %37 : vector<16x128xf32>
    %40 = arith.divf %38, %39 : vector<16x128xf32>
    %41 = arith.mulf %32, %13 : vector<16x128xf32>
    %42 = arith.mulf %26, %34 : vector<16x128xf32>
    %43 = arith.addf %41, %42 : vector<16x128xf32>
    %44 = math.tanh %43 : vector<16x128xf32>
    %45 = arith.mulf %40, %44 : vector<16x128xf32>
    %46 = vector.broadcast %16 : i32 to vector<16x1xi32>
    %47 = arith.cmpi slt, %46, %11 : vector<16x1xi32>
    %48 = arith.extui %47 : vector<16x1xi1> to vector<16x1xi32>
    %49 = arith.sitofp %48 : vector<16x1xi32> to vector<16x1xf32>
    %50 = vector.broadcast %49 : vector<16x1xf32> to vector<16x128xf32>
    %51 = arith.mulf %50, %45 : vector<16x128xf32>
    %52 = arith.addf %14, %51 : vector<16x128xf32>
    %c8_i32_22 = arith.constant 8 : i32
    %53 = arith.muli %arg1, %c8_i32_22 : i32
    %c1_i32 = arith.constant 1 : i32
    %54 = arith.addi %53, %c1_i32 : i32
    %55 = vector.extract_strided_slice %9 {offsets = [16, 0], sizes = [16, 512], strides = [1, 1]} : vector<128x512xf32> to vector<16x512xf32>
    %56 = arith.truncf %45 : vector<16x128xf32> to vector<16x128xbf16>
    %cst_23 = arith.constant dense<0.000000e+00> : vector<16x512xf32>
    %57 = tpu.matmul %56, %10, %cst_23 {dimension_numbers = #tpu.dot_dimension_numbers<[1], [0], [0], [1], [0, 0, 1, 1], [], []>} : vector<16x128xbf16>, vector<128x512xbf16>, vector<16x512xf32> -> vector<16x512xf32>
    %58 = arith.addf %55, %57 : vector<16x512xf32>
    %59 = vector.extract_strided_slice %58 {offsets = [0, 0], sizes = [16, 128], strides = [1, 1]} : vector<16x512xf32> to vector<16x128xf32>
    %60 = arith.negf %59 : vector<16x128xf32>
    %61 = math.exp %60 : vector<16x128xf32>
    %cst_24 = arith.constant 1.000000e+00 : f32
    %62 = vector.broadcast %cst_24 : f32 to vector<16x128xf32>
    %63 = arith.addf %62, %61 : vector<16x128xf32>
    %64 = arith.divf %62, %63 : vector<16x128xf32>
    %65 = vector.extract_strided_slice %58 {offsets = [0, 128], sizes = [16, 128], strides = [1, 1]} : vector<16x512xf32> to vector<16x128xf32>
    %66 = arith.negf %65 : vector<16x128xf32>
    %67 = math.exp %66 : vector<16x128xf32>
    %cst_25 = arith.constant 1.000000e+00 : f32
    %68 = vector.broadcast %cst_25 : f32 to vector<16x128xf32>
    %69 = arith.addf %68, %67 : vector<16x128xf32>
    %70 = arith.divf %68, %69 : vector<16x128xf32>
    %71 = vector.extract_strided_slice %58 {offsets = [0, 256], sizes = [16, 128], strides = [1, 1]} : vector<16x512xf32> to vector<16x128xf32>
    %72 = math.tanh %71 : vector<16x128xf32>
    %73 = vector.extract_strided_slice %58 {offsets = [0, 384], sizes = [16, 128], strides = [1, 1]} : vector<16x512xf32> to vector<16x128xf32>
    %74 = arith.negf %73 : vector<16x128xf32>
    %75 = math.exp %74 : vector<16x128xf32>
    %cst_26 = arith.constant 1.000000e+00 : f32
    %76 = vector.broadcast %cst_26 : f32 to vector<16x128xf32>
    %77 = arith.addf %76, %75 : vector<16x128xf32>
    %78 = arith.divf %76, %77 : vector<16x128xf32>
    %79 = arith.mulf %70, %43 : vector<16x128xf32>
    %80 = arith.mulf %64, %72 : vector<16x128xf32>
    %81 = arith.addf %79, %80 : vector<16x128xf32>
    %82 = math.tanh %81 : vector<16x128xf32>
    %83 = arith.mulf %78, %82 : vector<16x128xf32>
    %84 = vector.broadcast %54 : i32 to vector<16x1xi32>
    %85 = arith.cmpi slt, %84, %11 : vector<16x1xi32>
    %86 = arith.extui %85 : vector<16x1xi1> to vector<16x1xi32>
    %87 = arith.sitofp %86 : vector<16x1xi32> to vector<16x1xf32>
    %88 = vector.broadcast %87 : vector<16x1xf32> to vector<16x128xf32>
    %89 = arith.mulf %88, %83 : vector<16x128xf32>
    %90 = arith.addf %52, %89 : vector<16x128xf32>
    %c8_i32_27 = arith.constant 8 : i32
    %91 = arith.muli %arg1, %c8_i32_27 : i32
    %c2_i32 = arith.constant 2 : i32
    %92 = arith.addi %91, %c2_i32 : i32
    %93 = vector.extract_strided_slice %9 {offsets = [32, 0], sizes = [16, 512], strides = [1, 1]} : vector<128x512xf32> to vector<16x512xf32>
    %94 = arith.truncf %83 : vector<16x128xf32> to vector<16x128xbf16>
    %cst_28 = arith.constant dense<0.000000e+00> : vector<16x512xf32>
    %95 = tpu.matmul %94, %10, %cst_28 {dimension_numbers = #tpu.dot_dimension_numbers<[1], [0], [0], [1], [0, 0, 1, 1], [], []>} : vector<16x128xbf16>, vector<128x512xbf16>, vector<16x512xf32> -> vector<16x512xf32>
    %96 = arith.addf %93, %95 : vector<16x512xf32>
    %97 = vector.extract_strided_slice %96 {offsets = [0, 0], sizes = [16, 128], strides = [1, 1]} : vector<16x512xf32> to vector<16x128xf32>
    %98 = arith.negf %97 : vector<16x128xf32>
    %99 = math.exp %98 : vector<16x128xf32>
    %cst_29 = arith.constant 1.000000e+00 : f32
    %100 = vector.broadcast %cst_29 : f32 to vector<16x128xf32>
    %101 = arith.addf %100, %99 : vector<16x128xf32>
    %102 = arith.divf %100, %101 : vector<16x128xf32>
    %103 = vector.extract_strided_slice %96 {offsets = [0, 128], sizes = [16, 128], strides = [1, 1]} : vector<16x512xf32> to vector<16x128xf32>
    %104 = arith.negf %103 : vector<16x128xf32>
    %105 = math.exp %104 : vector<16x128xf32>
    %cst_30 = arith.constant 1.000000e+00 : f32
    %106 = vector.broadcast %cst_30 : f32 to vector<16x128xf32>
    %107 = arith.addf %106, %105 : vector<16x128xf32>
    %108 = arith.divf %106, %107 : vector<16x128xf32>
    %109 = vector.extract_strided_slice %96 {offsets = [0, 256], sizes = [16, 128], strides = [1, 1]} : vector<16x512xf32> to vector<16x128xf32>
    %110 = math.tanh %109 : vector<16x128xf32>
    %111 = vector.extract_strided_slice %96 {offsets = [0, 384], sizes = [16, 128], strides = [1, 1]} : vector<16x512xf32> to vector<16x128xf32>
    %112 = arith.negf %111 : vector<16x128xf32>
    %113 = math.exp %112 : vector<16x128xf32>
    %cst_31 = arith.constant 1.000000e+00 : f32
    %114 = vector.broadcast %cst_31 : f32 to vector<16x128xf32>
    %115 = arith.addf %114, %113 : vector<16x128xf32>
    %116 = arith.divf %114, %115 : vector<16x128xf32>
    %117 = arith.mulf %108, %81 : vector<16x128xf32>
    %118 = arith.mulf %102, %110 : vector<16x128xf32>
    %119 = arith.addf %117, %118 : vector<16x128xf32>
    %120 = math.tanh %119 : vector<16x128xf32>
    %121 = arith.mulf %116, %120 : vector<16x128xf32>
    %122 = vector.broadcast %92 : i32 to vector<16x1xi32>
    %123 = arith.cmpi slt, %122, %11 : vector<16x1xi32>
    %124 = arith.extui %123 : vector<16x1xi1> to vector<16x1xi32>
    %125 = arith.sitofp %124 : vector<16x1xi32> to vector<16x1xf32>
    %126 = vector.broadcast %125 : vector<16x1xf32> to vector<16x128xf32>
    %127 = arith.mulf %126, %121 : vector<16x128xf32>
    %128 = arith.addf %90, %127 : vector<16x128xf32>
    %c8_i32_32 = arith.constant 8 : i32
    %129 = arith.muli %arg1, %c8_i32_32 : i32
    %c3_i32 = arith.constant 3 : i32
    %130 = arith.addi %129, %c3_i32 : i32
    %131 = vector.extract_strided_slice %9 {offsets = [48, 0], sizes = [16, 512], strides = [1, 1]} : vector<128x512xf32> to vector<16x512xf32>
    %132 = arith.truncf %121 : vector<16x128xf32> to vector<16x128xbf16>
    %cst_33 = arith.constant dense<0.000000e+00> : vector<16x512xf32>
    %133 = tpu.matmul %132, %10, %cst_33 {dimension_numbers = #tpu.dot_dimension_numbers<[1], [0], [0], [1], [0, 0, 1, 1], [], []>} : vector<16x128xbf16>, vector<128x512xbf16>, vector<16x512xf32> -> vector<16x512xf32>
    %134 = arith.addf %131, %133 : vector<16x512xf32>
    %135 = vector.extract_strided_slice %134 {offsets = [0, 0], sizes = [16, 128], strides = [1, 1]} : vector<16x512xf32> to vector<16x128xf32>
    %136 = arith.negf %135 : vector<16x128xf32>
    %137 = math.exp %136 : vector<16x128xf32>
    %cst_34 = arith.constant 1.000000e+00 : f32
    %138 = vector.broadcast %cst_34 : f32 to vector<16x128xf32>
    %139 = arith.addf %138, %137 : vector<16x128xf32>
    %140 = arith.divf %138, %139 : vector<16x128xf32>
    %141 = vector.extract_strided_slice %134 {offsets = [0, 128], sizes = [16, 128], strides = [1, 1]} : vector<16x512xf32> to vector<16x128xf32>
    %142 = arith.negf %141 : vector<16x128xf32>
    %143 = math.exp %142 : vector<16x128xf32>
    %cst_35 = arith.constant 1.000000e+00 : f32
    %144 = vector.broadcast %cst_35 : f32 to vector<16x128xf32>
    %145 = arith.addf %144, %143 : vector<16x128xf32>
    %146 = arith.divf %144, %145 : vector<16x128xf32>
    %147 = vector.extract_strided_slice %134 {offsets = [0, 256], sizes = [16, 128], strides = [1, 1]} : vector<16x512xf32> to vector<16x128xf32>
    %148 = math.tanh %147 : vector<16x128xf32>
    %149 = vector.extract_strided_slice %134 {offsets = [0, 384], sizes = [16, 128], strides = [1, 1]} : vector<16x512xf32> to vector<16x128xf32>
    %150 = arith.negf %149 : vector<16x128xf32>
    %151 = math.exp %150 : vector<16x128xf32>
    %cst_36 = arith.constant 1.000000e+00 : f32
    %152 = vector.broadcast %cst_36 : f32 to vector<16x128xf32>
    %153 = arith.addf %152, %151 : vector<16x128xf32>
    %154 = arith.divf %152, %153 : vector<16x128xf32>
    %155 = arith.mulf %146, %119 : vector<16x128xf32>
    %156 = arith.mulf %140, %148 : vector<16x128xf32>
    %157 = arith.addf %155, %156 : vector<16x128xf32>
    %158 = math.tanh %157 : vector<16x128xf32>
    %159 = arith.mulf %154, %158 : vector<16x128xf32>
    %160 = vector.broadcast %130 : i32 to vector<16x1xi32>
    %161 = arith.cmpi slt, %160, %11 : vector<16x1xi32>
    %162 = arith.extui %161 : vector<16x1xi1> to vector<16x1xi32>
    %163 = arith.sitofp %162 : vector<16x1xi32> to vector<16x1xf32>
    %164 = vector.broadcast %163 : vector<16x1xf32> to vector<16x128xf32>
    %165 = arith.mulf %164, %159 : vector<16x128xf32>
    %166 = arith.addf %128, %165 : vector<16x128xf32>
    %c8_i32_37 = arith.constant 8 : i32
    %167 = arith.muli %arg1, %c8_i32_37 : i32
    %c4_i32 = arith.constant 4 : i32
    %168 = arith.addi %167, %c4_i32 : i32
    %169 = vector.extract_strided_slice %9 {offsets = [64, 0], sizes = [16, 512], strides = [1, 1]} : vector<128x512xf32> to vector<16x512xf32>
    %170 = arith.truncf %159 : vector<16x128xf32> to vector<16x128xbf16>
    %cst_38 = arith.constant dense<0.000000e+00> : vector<16x512xf32>
    %171 = tpu.matmul %170, %10, %cst_38 {dimension_numbers = #tpu.dot_dimension_numbers<[1], [0], [0], [1], [0, 0, 1, 1], [], []>} : vector<16x128xbf16>, vector<128x512xbf16>, vector<16x512xf32> -> vector<16x512xf32>
    %172 = arith.addf %169, %171 : vector<16x512xf32>
    %173 = vector.extract_strided_slice %172 {offsets = [0, 0], sizes = [16, 128], strides = [1, 1]} : vector<16x512xf32> to vector<16x128xf32>
    %174 = arith.negf %173 : vector<16x128xf32>
    %175 = math.exp %174 : vector<16x128xf32>
    %cst_39 = arith.constant 1.000000e+00 : f32
    %176 = vector.broadcast %cst_39 : f32 to vector<16x128xf32>
    %177 = arith.addf %176, %175 : vector<16x128xf32>
    %178 = arith.divf %176, %177 : vector<16x128xf32>
    %179 = vector.extract_strided_slice %172 {offsets = [0, 128], sizes = [16, 128], strides = [1, 1]} : vector<16x512xf32> to vector<16x128xf32>
    %180 = arith.negf %179 : vector<16x128xf32>
    %181 = math.exp %180 : vector<16x128xf32>
    %cst_40 = arith.constant 1.000000e+00 : f32
    %182 = vector.broadcast %cst_40 : f32 to vector<16x128xf32>
    %183 = arith.addf %182, %181 : vector<16x128xf32>
    %184 = arith.divf %182, %183 : vector<16x128xf32>
    %185 = vector.extract_strided_slice %172 {offsets = [0, 256], sizes = [16, 128], strides = [1, 1]} : vector<16x512xf32> to vector<16x128xf32>
    %186 = math.tanh %185 : vector<16x128xf32>
    %187 = vector.extract_strided_slice %172 {offsets = [0, 384], sizes = [16, 128], strides = [1, 1]} : vector<16x512xf32> to vector<16x128xf32>
    %188 = arith.negf %187 : vector<16x128xf32>
    %189 = math.exp %188 : vector<16x128xf32>
    %cst_41 = arith.constant 1.000000e+00 : f32
    %190 = vector.broadcast %cst_41 : f32 to vector<16x128xf32>
    %191 = arith.addf %190, %189 : vector<16x128xf32>
    %192 = arith.divf %190, %191 : vector<16x128xf32>
    %193 = arith.mulf %184, %157 : vector<16x128xf32>
    %194 = arith.mulf %178, %186 : vector<16x128xf32>
    %195 = arith.addf %193, %194 : vector<16x128xf32>
    %196 = math.tanh %195 : vector<16x128xf32>
    %197 = arith.mulf %192, %196 : vector<16x128xf32>
    %198 = vector.broadcast %168 : i32 to vector<16x1xi32>
    %199 = arith.cmpi slt, %198, %11 : vector<16x1xi32>
    %200 = arith.extui %199 : vector<16x1xi1> to vector<16x1xi32>
    %201 = arith.sitofp %200 : vector<16x1xi32> to vector<16x1xf32>
    %202 = vector.broadcast %201 : vector<16x1xf32> to vector<16x128xf32>
    %203 = arith.mulf %202, %197 : vector<16x128xf32>
    %204 = arith.addf %166, %203 : vector<16x128xf32>
    %c8_i32_42 = arith.constant 8 : i32
    %205 = arith.muli %arg1, %c8_i32_42 : i32
    %c5_i32 = arith.constant 5 : i32
    %206 = arith.addi %205, %c5_i32 : i32
    %207 = vector.extract_strided_slice %9 {offsets = [80, 0], sizes = [16, 512], strides = [1, 1]} : vector<128x512xf32> to vector<16x512xf32>
    %208 = arith.truncf %197 : vector<16x128xf32> to vector<16x128xbf16>
    %cst_43 = arith.constant dense<0.000000e+00> : vector<16x512xf32>
    %209 = tpu.matmul %208, %10, %cst_43 {dimension_numbers = #tpu.dot_dimension_numbers<[1], [0], [0], [1], [0, 0, 1, 1], [], []>} : vector<16x128xbf16>, vector<128x512xbf16>, vector<16x512xf32> -> vector<16x512xf32>
    %210 = arith.addf %207, %209 : vector<16x512xf32>
    %211 = vector.extract_strided_slice %210 {offsets = [0, 0], sizes = [16, 128], strides = [1, 1]} : vector<16x512xf32> to vector<16x128xf32>
    %212 = arith.negf %211 : vector<16x128xf32>
    %213 = math.exp %212 : vector<16x128xf32>
    %cst_44 = arith.constant 1.000000e+00 : f32
    %214 = vector.broadcast %cst_44 : f32 to vector<16x128xf32>
    %215 = arith.addf %214, %213 : vector<16x128xf32>
    %216 = arith.divf %214, %215 : vector<16x128xf32>
    %217 = vector.extract_strided_slice %210 {offsets = [0, 128], sizes = [16, 128], strides = [1, 1]} : vector<16x512xf32> to vector<16x128xf32>
    %218 = arith.negf %217 : vector<16x128xf32>
    %219 = math.exp %218 : vector<16x128xf32>
    %cst_45 = arith.constant 1.000000e+00 : f32
    %220 = vector.broadcast %cst_45 : f32 to vector<16x128xf32>
    %221 = arith.addf %220, %219 : vector<16x128xf32>
    %222 = arith.divf %220, %221 : vector<16x128xf32>
    %223 = vector.extract_strided_slice %210 {offsets = [0, 256], sizes = [16, 128], strides = [1, 1]} : vector<16x512xf32> to vector<16x128xf32>
    %224 = math.tanh %223 : vector<16x128xf32>
    %225 = vector.extract_strided_slice %210 {offsets = [0, 384], sizes = [16, 128], strides = [1, 1]} : vector<16x512xf32> to vector<16x128xf32>
    %226 = arith.negf %225 : vector<16x128xf32>
    %227 = math.exp %226 : vector<16x128xf32>
    %cst_46 = arith.constant 1.000000e+00 : f32
    %228 = vector.broadcast %cst_46 : f32 to vector<16x128xf32>
    %229 = arith.addf %228, %227 : vector<16x128xf32>
    %230 = arith.divf %228, %229 : vector<16x128xf32>
    %231 = arith.mulf %222, %195 : vector<16x128xf32>
    %232 = arith.mulf %216, %224 : vector<16x128xf32>
    %233 = arith.addf %231, %232 : vector<16x128xf32>
    %234 = math.tanh %233 : vector<16x128xf32>
    %235 = arith.mulf %230, %234 : vector<16x128xf32>
    %236 = vector.broadcast %206 : i32 to vector<16x1xi32>
    %237 = arith.cmpi slt, %236, %11 : vector<16x1xi32>
    %238 = arith.extui %237 : vector<16x1xi1> to vector<16x1xi32>
    %239 = arith.sitofp %238 : vector<16x1xi32> to vector<16x1xf32>
    %240 = vector.broadcast %239 : vector<16x1xf32> to vector<16x128xf32>
    %241 = arith.mulf %240, %235 : vector<16x128xf32>
    %242 = arith.addf %204, %241 : vector<16x128xf32>
    %c8_i32_47 = arith.constant 8 : i32
    %243 = arith.muli %arg1, %c8_i32_47 : i32
    %c6_i32 = arith.constant 6 : i32
    %244 = arith.addi %243, %c6_i32 : i32
    %245 = vector.extract_strided_slice %9 {offsets = [96, 0], sizes = [16, 512], strides = [1, 1]} : vector<128x512xf32> to vector<16x512xf32>
    %246 = arith.truncf %235 : vector<16x128xf32> to vector<16x128xbf16>
    %cst_48 = arith.constant dense<0.000000e+00> : vector<16x512xf32>
    %247 = tpu.matmul %246, %10, %cst_48 {dimension_numbers = #tpu.dot_dimension_numbers<[1], [0], [0], [1], [0, 0, 1, 1], [], []>} : vector<16x128xbf16>, vector<128x512xbf16>, vector<16x512xf32> -> vector<16x512xf32>
    %248 = arith.addf %245, %247 : vector<16x512xf32>
    %249 = vector.extract_strided_slice %248 {offsets = [0, 0], sizes = [16, 128], strides = [1, 1]} : vector<16x512xf32> to vector<16x128xf32>
    %250 = arith.negf %249 : vector<16x128xf32>
    %251 = math.exp %250 : vector<16x128xf32>
    %cst_49 = arith.constant 1.000000e+00 : f32
    %252 = vector.broadcast %cst_49 : f32 to vector<16x128xf32>
    %253 = arith.addf %252, %251 : vector<16x128xf32>
    %254 = arith.divf %252, %253 : vector<16x128xf32>
    %255 = vector.extract_strided_slice %248 {offsets = [0, 128], sizes = [16, 128], strides = [1, 1]} : vector<16x512xf32> to vector<16x128xf32>
    %256 = arith.negf %255 : vector<16x128xf32>
    %257 = math.exp %256 : vector<16x128xf32>
    %cst_50 = arith.constant 1.000000e+00 : f32
    %258 = vector.broadcast %cst_50 : f32 to vector<16x128xf32>
    %259 = arith.addf %258, %257 : vector<16x128xf32>
    %260 = arith.divf %258, %259 : vector<16x128xf32>
    %261 = vector.extract_strided_slice %248 {offsets = [0, 256], sizes = [16, 128], strides = [1, 1]} : vector<16x512xf32> to vector<16x128xf32>
    %262 = math.tanh %261 : vector<16x128xf32>
    %263 = vector.extract_strided_slice %248 {offsets = [0, 384], sizes = [16, 128], strides = [1, 1]} : vector<16x512xf32> to vector<16x128xf32>
    %264 = arith.negf %263 : vector<16x128xf32>
    %265 = math.exp %264 : vector<16x128xf32>
    %cst_51 = arith.constant 1.000000e+00 : f32
    %266 = vector.broadcast %cst_51 : f32 to vector<16x128xf32>
    %267 = arith.addf %266, %265 : vector<16x128xf32>
    %268 = arith.divf %266, %267 : vector<16x128xf32>
    %269 = arith.mulf %260, %233 : vector<16x128xf32>
    %270 = arith.mulf %254, %262 : vector<16x128xf32>
    %271 = arith.addf %269, %270 : vector<16x128xf32>
    %272 = math.tanh %271 : vector<16x128xf32>
    %273 = arith.mulf %268, %272 : vector<16x128xf32>
    %274 = vector.broadcast %244 : i32 to vector<16x1xi32>
    %275 = arith.cmpi slt, %274, %11 : vector<16x1xi32>
    %276 = arith.extui %275 : vector<16x1xi1> to vector<16x1xi32>
    %277 = arith.sitofp %276 : vector<16x1xi32> to vector<16x1xf32>
    %278 = vector.broadcast %277 : vector<16x1xf32> to vector<16x128xf32>
    %279 = arith.mulf %278, %273 : vector<16x128xf32>
    %280 = arith.addf %242, %279 : vector<16x128xf32>
    %c8_i32_52 = arith.constant 8 : i32
    %281 = arith.muli %arg1, %c8_i32_52 : i32
    %c7_i32 = arith.constant 7 : i32
    %282 = arith.addi %281, %c7_i32 : i32
    %283 = vector.extract_strided_slice %9 {offsets = [112, 0], sizes = [16, 512], strides = [1, 1]} : vector<128x512xf32> to vector<16x512xf32>
    %284 = arith.truncf %273 : vector<16x128xf32> to vector<16x128xbf16>
    %cst_53 = arith.constant dense<0.000000e+00> : vector<16x512xf32>
    %285 = tpu.matmul %284, %10, %cst_53 {dimension_numbers = #tpu.dot_dimension_numbers<[1], [0], [0], [1], [0, 0, 1, 1], [], []>} : vector<16x128xbf16>, vector<128x512xbf16>, vector<16x512xf32> -> vector<16x512xf32>
    %286 = arith.addf %283, %285 : vector<16x512xf32>
    %287 = vector.extract_strided_slice %286 {offsets = [0, 0], sizes = [16, 128], strides = [1, 1]} : vector<16x512xf32> to vector<16x128xf32>
    %288 = arith.negf %287 : vector<16x128xf32>
    %289 = math.exp %288 : vector<16x128xf32>
    %cst_54 = arith.constant 1.000000e+00 : f32
    %290 = vector.broadcast %cst_54 : f32 to vector<16x128xf32>
    %291 = arith.addf %290, %289 : vector<16x128xf32>
    %292 = arith.divf %290, %291 : vector<16x128xf32>
    %293 = vector.extract_strided_slice %286 {offsets = [0, 128], sizes = [16, 128], strides = [1, 1]} : vector<16x512xf32> to vector<16x128xf32>
    %294 = arith.negf %293 : vector<16x128xf32>
    %295 = math.exp %294 : vector<16x128xf32>
    %cst_55 = arith.constant 1.000000e+00 : f32
    %296 = vector.broadcast %cst_55 : f32 to vector<16x128xf32>
    %297 = arith.addf %296, %295 : vector<16x128xf32>
    %298 = arith.divf %296, %297 : vector<16x128xf32>
    %299 = vector.extract_strided_slice %286 {offsets = [0, 256], sizes = [16, 128], strides = [1, 1]} : vector<16x512xf32> to vector<16x128xf32>
    %300 = math.tanh %299 : vector<16x128xf32>
    %301 = vector.extract_strided_slice %286 {offsets = [0, 384], sizes = [16, 128], strides = [1, 1]} : vector<16x512xf32> to vector<16x128xf32>
    %302 = arith.negf %301 : vector<16x128xf32>
    %303 = math.exp %302 : vector<16x128xf32>
    %cst_56 = arith.constant 1.000000e+00 : f32
    %304 = vector.broadcast %cst_56 : f32 to vector<16x128xf32>
    %305 = arith.addf %304, %303 : vector<16x128xf32>
    %306 = arith.divf %304, %305 : vector<16x128xf32>
    %307 = arith.mulf %298, %271 : vector<16x128xf32>
    %308 = arith.mulf %292, %300 : vector<16x128xf32>
    %309 = arith.addf %307, %308 : vector<16x128xf32>
    %310 = math.tanh %309 : vector<16x128xf32>
    %311 = arith.mulf %306, %310 : vector<16x128xf32>
    %312 = vector.broadcast %282 : i32 to vector<16x1xi32>
    %313 = arith.cmpi slt, %312, %11 : vector<16x1xi32>
    %314 = arith.extui %313 : vector<16x1xi1> to vector<16x1xi32>
    %315 = arith.sitofp %314 : vector<16x1xi32> to vector<16x1xf32>
    %316 = vector.broadcast %315 : vector<16x1xf32> to vector<16x128xf32>
    %317 = arith.mulf %316, %311 : vector<16x128xf32>
    %318 = arith.addf %280, %317 : vector<16x128xf32>
    %c0_57 = arith.constant 0 : index
    %c0_58 = arith.constant 0 : index
    %319 = vector.load %arg15[%c0_57, %c0_58] : memref<16x128xf32, #tpu.memory_space<vmem>>, vector<16x128xf32>
    tpu.vector_store %arg15[%c0_57, %c0_58], %311 {strides = array<i32>} : memref<16x128xf32, #tpu.memory_space<vmem>>, vector<16x128xf32>,
    %c0_59 = arith.constant 0 : index
    %c0_60 = arith.constant 0 : index
    %320 = vector.load %arg16[%c0_59, %c0_60] : memref<16x128xf32, #tpu.memory_space<vmem>>, vector<16x128xf32>
    tpu.vector_store %arg16[%c0_59, %c0_60], %309 {strides = array<i32>} : memref<16x128xf32, #tpu.memory_space<vmem>>, vector<16x128xf32>,
    %c0_61 = arith.constant 0 : index
    %c0_62 = arith.constant 0 : index
    %321 = vector.load %arg17[%c0_61, %c0_62] : memref<16x128xf32, #tpu.memory_space<vmem>>, vector<16x128xf32>
    tpu.vector_store %arg17[%c0_61, %c0_62], %318 {strides = array<i32>} : memref<16x128xf32, #tpu.memory_space<vmem>>, vector<16x128xf32>,
    %c0_i32_63 = arith.constant 0 : i32
    %322 = arith.cmpi eq, %arg1, %c0_i32_63 : i32
    %323 = arith.extui %322 : i1 to i32
    %c0_i32_64 = arith.constant 0 : i32
    %324 = arith.cmpi ne, %323, %c0_i32_64 : i32
    scf.if %324 {
      %c0_65 = arith.constant 0 : index
      %c0_66 = arith.constant 0 : index
      %325 = vector.load %arg3[%c0_65, %c0_66] : memref<16x1xf32, #tpu.memory_space<vmem>>, vector<16x1xf32>
      %326 = vector.broadcast %325 : vector<16x1xf32> to vector<16x128xf32>
      %327 = arith.mulf %318, %326 : vector<16x128xf32>
      %c0_67 = arith.constant 0 : index
      %c0_68 = arith.constant 0 : index
      %328 = vector.load %arg10[%c0_67, %c0_68] : memref<128x128xf32, #tpu.memory_space<vmem>>, vector<128x128xf32>
      %cst_69 = arith.constant dense<0.000000e+00> : vector<16x128xf32>
      %329 = tpu.matmul %327, %328, %cst_69 {dimension_numbers = #tpu.dot_dimension_numbers<[1], [0], [0], [1], [0, 0, 1, 1], [], []>} : vector<16x128xf32>, vector<128x128xf32>, vector<16x128xf32> -> vector<16x128xf32>
      %c0_70 = arith.constant 0 : index
      %c0_71 = arith.constant 0 : index
      %330 = vector.load %arg11[%c0_70, %c0_71] : memref<1x128xf32, #tpu.memory_space<vmem>>, vector<1x128xf32>
      %331 = vector.broadcast %330 : vector<1x128xf32> to vector<16x128xf32>
      %332 = arith.addf %329, %331 : vector<16x128xf32>
      %c0_72 = arith.constant 0 : index
      %c0_73 = arith.constant 0 : index
      %333 = vector.load %arg12[%c0_72, %c0_73] : memref<128x128xf32, #tpu.memory_space<vmem>>, vector<128x128xf32>
      %cst_74 = arith.constant dense<0.000000e+00> : vector<16x128xf32>
      %334 = tpu.matmul %332, %333, %cst_74 {dimension_numbers = #tpu.dot_dimension_numbers<[1], [0], [0], [1], [0, 0, 1, 1], [], []>} : vector<16x128xf32>, vector<128x128xf32>, vector<16x128xf32> -> vector<16x128xf32>
      %c0_75 = arith.constant 0 : index
      %c0_76 = arith.constant 0 : index
      %335 = vector.load %arg13[%c0_75, %c0_76] : memref<1x128xf32, #tpu.memory_space<vmem>>, vector<1x128xf32>
      %336 = vector.broadcast %335 : vector<1x128xf32> to vector<16x128xf32>
      %337 = arith.addf %334, %336 : vector<16x128xf32>
      %cst_77 = arith.constant dense<0xFF800000> : vector<16xf32>
      %338 = vector.multi_reduction <maximumf>, %337, %cst_77 [1] : vector<16x128xf32> to vector<16xf32>
      %339 = vector.shape_cast %338 : vector<16xf32> to vector<16x1xf32>
      %340 = vector.broadcast %339 : vector<16x1xf32> to vector<16x128xf32>
      %341 = arith.subf %337, %340 : vector<16x128xf32>
      %342 = math.exp %341 : vector<16x128xf32>
      %cst_78 = arith.constant dense<0.000000e+00> : vector<16xf32>
      %343 = vector.multi_reduction <add>, %342, %cst_78 [1] : vector<16x128xf32> to vector<16xf32>
      %344 = vector.shape_cast %343 : vector<16xf32> to vector<16x1xf32>
      %345 = math.log %344 : vector<16x1xf32>
      %346 = vector.broadcast %345 : vector<16x1xf32> to vector<16x128xf32>
      %347 = arith.subf %341, %346 : vector<16x128xf32>
      %c0_79 = arith.constant 0 : index
      %c0_80 = arith.constant 0 : index
      %348 = vector.load %arg14[%c0_79, %c0_80] : memref<16x128xf32, #tpu.memory_space<vmem>>, vector<16x128xf32>
      tpu.vector_store %arg14[%c0_79, %c0_80], %347 {strides = array<i32>} : memref<16x128xf32, #tpu.memory_space<vmem>>, vector<16x128xf32>,
    } else {
    }
    return
  }
  func.func @transform_0(%arg0: i32, %arg1: i32) -> (i32, i32) {
    %c0_i32 = arith.constant 0 : i32
    %c0_i32_0 = arith.constant 0 : i32
    return %arg0, %c0_i32 : i32, i32
  }
  func.func @transform_1(%arg0: i32, %arg1: i32) -> (i32, i32) {
    %c0_i32 = arith.constant 0 : i32
    %c0_i32_0 = arith.constant 0 : i32
    return %arg0, %c0_i32 : i32, i32
  }
  func.func @transform_2(%arg0: i32, %arg1: i32) -> (i32, i32, i32) {
    %c0_i32 = arith.constant 0 : i32
    %c0_i32_0 = arith.constant 0 : i32
    return %arg1, %arg0, %c0_i32 : i32, i32, i32
  }
  func.func @transform_3(%arg0: i32, %arg1: i32) -> (i32, i32) {
    %c0_i32 = arith.constant 0 : i32
    %c0_i32_0 = arith.constant 0 : i32
    return %arg0, %c0_i32 : i32, i32
  }
  func.func @transform_4(%arg0: i32, %arg1: i32) -> (i32, i32) {
    %c0_i32 = arith.constant 0 : i32
    %c0_i32_0 = arith.constant 0 : i32
    return %arg0, %c0_i32 : i32, i32
  }
  func.func @transform_5(%arg0: i32, %arg1: i32) -> (i32, i32) {
    %c0_i32 = arith.constant 0 : i32
    %c0_i32_0 = arith.constant 0 : i32
    %c0_i32_1 = arith.constant 0 : i32
    return %c0_i32, %c0_i32_0 : i32, i32
  }
  func.func @transform_6(%arg0: i32, %arg1: i32) -> (i32, i32) {
    %c0_i32 = arith.constant 0 : i32
    %c0_i32_0 = arith.constant 0 : i32
    %c0_i32_1 = arith.constant 0 : i32
    return %c0_i32, %c0_i32_0 : i32, i32
  }
  func.func @transform_7(%arg0: i32, %arg1: i32) -> (i32, i32) {
    %c0_i32 = arith.constant 0 : i32
    %c0_i32_0 = arith.constant 0 : i32
    %c0_i32_1 = arith.constant 0 : i32
    return %c0_i32, %c0_i32_0 : i32, i32
  }
  func.func @transform_8(%arg0: i32, %arg1: i32) -> (i32, i32) {
    %c0_i32 = arith.constant 0 : i32
    %c0_i32_0 = arith.constant 0 : i32
    %c0_i32_1 = arith.constant 0 : i32
    return %c0_i32, %c0_i32_0 : i32, i32
  }
  func.func @transform_9(%arg0: i32, %arg1: i32) -> (i32, i32) {
    %c0_i32 = arith.constant 0 : i32
    %c0_i32_0 = arith.constant 0 : i32
    %c0_i32_1 = arith.constant 0 : i32
    return %c0_i32, %c0_i32_0 : i32, i32
  }
  func.func @transform_10(%arg0: i32, %arg1: i32) -> (i32, i32) {
    %c0_i32 = arith.constant 0 : i32
    %c0_i32_0 = arith.constant 0 : i32
    %c0_i32_1 = arith.constant 0 : i32
    return %c0_i32, %c0_i32_0 : i32, i32
  }
  func.func @transform_11(%arg0: i32, %arg1: i32) -> (i32, i32) {
    %c0_i32 = arith.constant 0 : i32
    %c0_i32_0 = arith.constant 0 : i32
    %c0_i32_1 = arith.constant 0 : i32
    return %c0_i32, %c0_i32_0 : i32, i32
  }
  func.func @transform_12(%arg0: i32, %arg1: i32) -> (i32, i32) {
    %c0_i32 = arith.constant 0 : i32
    %c0_i32_0 = arith.constant 0 : i32
    return %arg0, %c0_i32 : i32, i32
  }
  func.func @transform_13(%arg0: i32, %arg1: i32) -> (i32, i32) {
    %c0_i32 = arith.constant 0 : i32
    %c0_i32_0 = arith.constant 0 : i32
    return %arg0, %c0_i32 : i32, i32
  }
  func.func @transform_14(%arg0: i32, %arg1: i32) -> (i32, i32) {
    %c0_i32 = arith.constant 0 : i32
    %c0_i32_0 = arith.constant 0 : i32
    return %arg0, %c0_i32 : i32, i32
  }
}

module attributes {stable_mosaic.version = 11 : i64} {
  func.func @_rnn_kernel(%arg0: i32, %arg1: i32, %arg2: memref<16x1xi32, #tpu.memory_space<vmem>>, %arg3: memref<16x1xf32, #tpu.memory_space<vmem>>, %arg4: memref<8x16x128xbf16, #tpu.memory_space<vmem>>, %arg5: memref<16x128xf32, #tpu.memory_space<vmem>>, %arg6: memref<16x128xf32, #tpu.memory_space<vmem>>, %arg7: memref<128x512xbf16, #tpu.memory_space<vmem>>, %arg8: memref<128x512xbf16, #tpu.memory_space<vmem>>, %arg9: memref<1x512xf32, #tpu.memory_space<vmem>>, %arg10: memref<128x128xf32, #tpu.memory_space<vmem>>, %arg11: memref<1x128xf32, #tpu.memory_space<vmem>>, %arg12: memref<128x128xf32, #tpu.memory_space<vmem>>, %arg13: memref<1x128xf32, #tpu.memory_space<vmem>>, %arg14: memref<16x128xf32, #tpu.memory_space<vmem>>, %arg15: memref<16x128xf32, #tpu.memory_space<vmem>>, %arg16: memref<16x128xf32, #tpu.memory_space<vmem>>, %arg17: memref<16x128xf32, #tpu.memory_space<vmem>>) attributes {dimension_semantics = [#tpu.dimension_semantics<parallel>, #tpu.dimension_semantics<arbitrary>], iteration_bounds = array<i64: 1, 1>, scalar_prefetch = 0 : i64, scratch_operands = 1 : i64, tpu.core_type = #tpu.core_type<tc>, window_params = [{transform_indices = @transform_0, window_bounds = array<i64: 16, 1>}, {transform_indices = @transform_1, window_bounds = array<i64: 16, 1>}, {transform_indices = @transform_2, window_bounds = array<i64: 8, 16, 128>}, {transform_indices = @transform_3, window_bounds = array<i64: 16, 128>}, {transform_indices = @transform_4, window_bounds = array<i64: 16, 128>}, {pipeline_mode = #tpu.pipeline_mode<synchronous>, transform_indices = @transform_5, window_bounds = array<i64: 128, 512>}, {pipeline_mode = #tpu.pipeline_mode<synchronous>, transform_indices = @transform_6, window_bounds = array<i64: 128, 512>}, {pipeline_mode = #tpu.pipeline_mode<synchronous>, transform_indices = @transform_7, window_bounds = array<i64: 1, 512>}, {pipeline_mode = #tpu.pipeline_mode<synchronous>, transform_indices = @transform_8, window_bounds = array<i64: 128, 128>}, {pipeline_mode = #tpu.pipeline_mode<synchronous>, transform_indices = @transform_9, window_bounds = array<i64: 1, 128>}, {pipeline_mode = #tpu.pipeline_mode<synchronous>, transform_indices = @transform_10, window_bounds = array<i64: 128, 128>}, {pipeline_mode = #tpu.pipeline_mode<synchronous>, transform_indices = @transform_11, window_bounds = array<i64: 1, 128>}, {transform_indices = @transform_12, window_bounds = array<i64: 16, 128>}, {transform_indices = @transform_13, window_bounds = array<i64: 16, 128>}, {transform_indices = @transform_14, window_bounds = array<i64: 16, 128>}]} {
    %c0_i32 = arith.constant 0 : i32
    %0 = arith.cmpi eq, %arg1, %c0_i32 : i32
    %1 = arith.extui %0 : i1 to i32
    %c0_i32_0 = arith.constant 0 : i32
    %2 = arith.cmpi ne, %1, %c0_i32_0 : i32
    scf.if %2 {
      %c0_65 = arith.constant 0 : index
      %c0_66 = arith.constant 0 : index
      %325 = vector.load %arg5[%c0_65, %c0_66] : memref<16x128xf32, #tpu.memory_space<vmem>>, vector<16x128xf32>
      %c0_67 = arith.constant 0 : index
      %c0_68 = arith.constant 0 : index
      %326 = vector.load %arg15[%c0_67, %c0_68] : memref<16x128xf32, #tpu.memory_space<vmem>>, vector<16x128xf32>
      tpu.vector_store %arg15[%c0_67, %c0_68], %325 {strides = array<i32>} : memref<16x128xf32, #tpu.memory_space<vmem>>, vector<16x128xf32>,
      %c0_69 = arith.constant 0 : index
      %c0_70 = arith.constant 0 : index
      %327 = vector.load %arg6[%c0_69, %c0_70] : memref<16x128xf32, #tpu.memory_space<vmem>>, vector<16x128xf32>
      %c0_71 = arith.constant 0 : index
      %c0_72 = arith.constant 0 : index
      %328 = vector.load %arg16[%c0_71, %c0_72] : memref<16x128xf32, #tpu.memory_space<vmem>>, vector<16x128xf32>
      tpu.vector_store %arg16[%c0_71, %c0_72], %327 {strides = array<i32>} : memref<16x128xf32, #tpu.memory_space<vmem>>, vector<16x128xf32>,
      %cst_73 = arith.constant 0.000000e+00 : f32
      %329 = vector.broadcast %cst_73 : f32 to vector<16x128xf32>
      %c0_74 = arith.constant 0 : index
      %c0_75 = arith.constant 0 : index
      %330 = vector.load %arg17[%c0_74, %c0_75] : memref<16x128xf32, #tpu.memory_space<vmem>>, vector<16x128xf32>
      tpu.vector_store %arg17[%c0_74, %c0_75], %329 {strides = array<i32>} : memref<16x128xf32, #tpu.memory_space<vmem>>, vector<16x128xf32>,
    } else {
    }
    %c0 = arith.constant 0 : index
    %c0_1 = arith.constant 0 : index
    %c0_2 = arith.constant 0 : index
    %3 = vector.load %arg4[%c0, %c0_1, %c0_2] : memref<8x16x128xbf16, #tpu.memory_space<vmem>>, vector<8x16x128xbf16>
    %4 = vector.shape_cast %3 : vector<8x16x128xbf16> to vector<128x128xbf16>
    %c0_3 = arith.constant 0 : index
    %c0_4 = arith.constant 0 : index
    %5 = vector.load %arg7[%c0_3, %c0_4] : memref<128x512xbf16, #tpu.memory_space<vmem>>, vector<128x512xbf16>
    %cst = arith.constant dense<0.000000e+00> : vector<128x512xf32>
    %6 = tpu.matmul %4, %5, %cst {dimension_numbers = #tpu.dot_dimension_numbers<[1], [0], [0], [1], [0, 0, 1, 1], [], []>} : vector<128x128xbf16>, vector<128x512xbf16>, vector<128x512xf32> -> vector<128x512xf32>
    %c0_5 = arith.constant 0 : index
    %c0_6 = arith.constant 0 : index
    %7 = vector.load %arg9[%c0_5, %c0_6] : memref<1x512xf32, #tpu.memory_space<vmem>>, vector<1x512xf32>
    %8 = vector.broadcast %7 : vector<1x512xf32> to vector<128x512xf32>
    %9 = arith.addf %6, %8 : vector<128x512xf32>
    %c0_7 = arith.constant 0 : index
    %c0_8 = arith.constant 0 : index
    %10 = vector.load %arg8[%c0_7, %c0_8] : memref<128x512xbf16, #tpu.memory_space<vmem>>, vector<128x512xbf16>
    %c0_9 = arith.constant 0 : index
    %c0_10 = arith.constant 0 : index
    %11 = vector.load %arg2[%c0_9, %c0_10] : memref<16x1xi32, #tpu.memory_space<vmem>>, vector<16x1xi32>
    %c0_11 = arith.constant 0 : index
    %c0_12 = arith.constant 0 : index
    %12 = vector.load %arg15[%c0_11, %c0_12] : memref<16x128xf32, #tpu.memory_space<vmem>>, vector<16x128xf32>
    %c0_13 = arith.constant 0 : index
    %c0_14 = arith.constant 0 : index
    %13 = vector.load %arg16[%c0_13, %c0_14] : memref<16x128xf32, #tpu.memory_space<vmem>>, vector<16x128xf32>
    %c0_15 = arith.constant 0 : index
    %c0_16 = arith.constant 0 : index
    %14 = vector.load %arg17[%c0_15, %c0_16] : memref<16x128xf32, #tpu.memory_space<vmem>>, vector<16x128xf32>
    %c8_i32 = arith.constant 8 : i32
    %15 = arith.muli %arg1, %c8_i32 : i32
    %c0_i32_17 = arith.constant 0 : i32
    %16 = arith.addi %15, %c0_i32_17 : i32
    %17 = vector.extract_strided_slice %9 {offsets = [0, 0], sizes = [16, 512], strides = [1, 1]} : vector<128x512xf32> to vector<16x512xf32>
    %18 = arith.truncf %12 : vector<16x128xf32> to vector<16x128xbf16>
    %cst_18 = arith.constant dense<0.000000e+00> : vector<16x512xf32>
    %19 = tpu.matmul %18, %10, %cst_18 {dimension_numbers = #tpu.dot_dimension_numbers<[1], [0], [0], [1], [0, 0, 1, 1], [], []>} : vector<16x128xbf16>, vector<128x512xbf16>, vector<16x512xf32> -> vector<16x512xf32>
    %20 = arith.addf %17, %19 : vector<16x512xf32>
    %21 = vector.extract_strided_slice %20 {offsets = [0, 0], sizes = [16, 128], strides = [1, 1]} : vector<16x512xf32> to vector<16x128xf32>
    %22 = arith.negf %21 : vector<16x128xf32>
    %23 = math.exp %22 : vector<16x128xf32>
    %cst_19 = arith.constant 1.000000e+00 : f32
    %24 = vector.broadcast %cst_19 : f32 to vector<16x128xf32>
    %25 = arith.addf %24, %23 : vector<16x128xf32>
    %26 = arith.divf %24, %25 : vector<16x128xf32>
    %27 = vector.extract_strided_slice %20 {offsets = [0, 128], sizes = [16, 128], strides = [1, 1]} : vector<16x512xf32> to vector<16x128xf32>
    %28 = arith.negf %27 : vector<16x128xf32>
    %29 = math.exp %28 : vector<16x128xf32>
    %cst_20 = arith.constant 1.000000e+00 : f32
    %30 = vector.broadcast %cst_20 : f32 to vector<16x128xf32>
    %31 = arith.addf %30, %29 : vector<16x128xf32>
    %32 = arith.divf %30, %31 : vector<16x128xf32>
    %33 = vector.extract_strided_slice %20 {offsets = [0, 256], sizes = [16, 128], strides = [1, 1]} : vector<16x512xf32> to vector<16x128xf32>
    %34 = math.tanh %33 : vector<16x128xf32>
    %35 = vector.extract_strided_slice %20 {offsets = [0, 384], sizes = [16, 128], strides = [1, 1]} : vector<16x512xf32> to vector<16x128xf32>
    %36 = arith.negf %35 : vector<16x128xf32>
    %37 = math.exp %36 : vector<16x128xf32>
    %cst_21 = arith.constant 1.000000e+00 : f32
    %38 = vector.broadcast %cst_21 : f32 to vector<16x128xf32>
    %39 = arith.addf %38, %37 : vector<16x128xf32>
    %40 = arith.divf %38, %39 : vector<16x128xf32>
    %41 = arith.mulf %32, %13 : vector<16x128xf32>
    %42 = arith.mulf %26, %34 : vector<16x128xf32>
    %43 = arith.addf %41, %42 : vector<16x128xf32>
    %44 = math.tanh %43 : vector<16x128xf32>
    %45 = arith.mulf %40, %44 : vector<16x128xf32>
    %46 = vector.broadcast %16 : i32 to vector<16x1xi32>
    %47 = arith.cmpi slt, %46, %11 : vector<16x1xi32>
    %48 = arith.extui %47 : vector<16x1xi1> to vector<16x1xi32>
    %49 = arith.sitofp %48 : vector<16x1xi32> to vector<16x1xf32>
    %50 = vector.broadcast %49 : vector<16x1xf32> to vector<16x128xf32>
    %51 = arith.mulf %50, %45 : vector<16x128xf32>
    %52 = arith.addf %14, %51 : vector<16x128xf32>
    %c8_i32_22 = arith.constant 8 : i32
    %53 = arith.muli %arg1, %c8_i32_22 : i32
    %c1_i32 = arith.constant 1 : i32
    %54 = arith.addi %53, %c1_i32 : i32
    %55 = vector.extract_strided_slice %9 {offsets = [16, 0], sizes = [16, 512], strides = [1, 1]} : vector<128x512xf32> to vector<16x512xf32>
    %56 = arith.truncf %45 : vector<16x128xf32> to vector<16x128xbf16>
    %cst_23 = arith.constant dense<0.000000e+00> : vector<16x512xf32>
    %57 = tpu.matmul %56, %10, %cst_23 {dimension_numbers = #tpu.dot_dimension_numbers<[1], [0], [0], [1], [0, 0, 1, 1], [], []>} : vector<16x128xbf16>, vector<128x512xbf16>, vector<16x512xf32> -> vector<16x512xf32>
    %58 = arith.addf %55, %57 : vector<16x512xf32>
    %59 = vector.extract_strided_slice %58 {offsets = [0, 0], sizes = [16, 128], strides = [1, 1]} : vector<16x512xf32> to vector<16x128xf32>
    %60 = arith.negf %59 : vector<16x128xf32>
    %61 = math.exp %60 : vector<16x128xf32>
    %cst_24 = arith.constant 1.000000e+00 : f32
    %62 = vector.broadcast %cst_24 : f32 to vector<16x128xf32>
    %63 = arith.addf %62, %61 : vector<16x128xf32>
    %64 = arith.divf %62, %63 : vector<16x128xf32>
    %65 = vector.extract_strided_slice %58 {offsets = [0, 128], sizes = [16, 128], strides = [1, 1]} : vector<16x512xf32> to vector<16x128xf32>
    %66 = arith.negf %65 : vector<16x128xf32>
    %67 = math.exp %66 : vector<16x128xf32>
    %cst_25 = arith.constant 1.000000e+00 : f32
    %68 = vector.broadcast %cst_25 : f32 to vector<16x128xf32>
    %69 = arith.addf %68, %67 : vector<16x128xf32>
    %70 = arith.divf %68, %69 : vector<16x128xf32>
    %71 = vector.extract_strided_slice %58 {offsets = [0, 256], sizes = [16, 128], strides = [1, 1]} : vector<16x512xf32> to vector<16x128xf32>
    %72 = math.tanh %71 : vector<16x128xf32>
    %73 = vector.extract_strided_slice %58 {offsets = [0, 384], sizes = [16, 128], strides = [1, 1]} : vector<16x512xf32> to vector<16x128xf32>
    %74 = arith.negf %73 : vector<16x128xf32>
    %75 = math.exp %74 : vector<16x128xf32>
    %cst_26 = arith.constant 1.000000e+00 : f32
    %76 = vector.broadcast %cst_26 : f32 to vector<16x128xf32>
    %77 = arith.addf %76, %75 : vector<16x128xf32>
    %78 = arith.divf %76, %77 : vector<16x128xf32>
    %79 = arith.mulf %70, %43 : vector<16x128xf32>
    %80 = arith.mulf %64, %72 : vector<16x128xf32>
    %81 = arith.addf %79, %80 : vector<16x128xf32>
    %82 = math.tanh %81 : vector<16x128xf32>
    %83 = arith.mulf %78, %82 : vector<16x128xf32>
    %84 = vector.broadcast %54 : i32 to vector<16x1xi32>
    %85 = arith.cmpi slt, %84, %11 : vector<16x1xi32>
    %86 = arith.extui %85 : vector<16x1xi1> to vector<16x1xi32>
    %87 = arith.sitofp %86 : vector<16x1xi32> to vector<16x1xf32>
    %88 = vector.broadcast %87 : vector<16x1xf32> to vector<16x128xf32>
    %89 = arith.mulf %88, %83 : vector<16x128xf32>
    %90 = arith.addf %52, %89 : vector<16x128xf32>
    %c8_i32_27 = arith.constant 8 : i32
    %91 = arith.muli %arg1, %c8_i32_27 : i32
    %c2_i32 = arith.constant 2 : i32
    %92 = arith.addi %91, %c2_i32 : i32
    %93 = vector.extract_strided_slice %9 {offsets = [32, 0], sizes = [16, 512], strides = [1, 1]} : vector<128x512xf32> to vector<16x512xf32>
    %94 = arith.truncf %83 : vector<16x128xf32> to vector<16x128xbf16>
    %cst_28 = arith.constant dense<0.000000e+00> : vector<16x512xf32>
    %95 = tpu.matmul %94, %10, %cst_28 {dimension_numbers = #tpu.dot_dimension_numbers<[1], [0], [0], [1], [0, 0, 1, 1], [], []>} : vector<16x128xbf16>, vector<128x512xbf16>, vector<16x512xf32> -> vector<16x512xf32>
    %96 = arith.addf %93, %95 : vector<16x512xf32>
    %97 = vector.extract_strided_slice %96 {offsets = [0, 0], sizes = [16, 128], strides = [1, 1]} : vector<16x512xf32> to vector<16x128xf32>
    %98 = arith.negf %97 : vector<16x128xf32>
    %99 = math.exp %98 : vector<16x128xf32>
    %cst_29 = arith.constant 1.000000e+00 : f32
    %100 = vector.broadcast %cst_29 : f32 to vector<16x128xf32>
    %101 = arith.addf %100, %99 : vector<16x128xf32>
    %102 = arith.divf %100, %101 : vector<16x128xf32>
    %103 = vector.extract_strided_slice %96 {offsets = [0, 128], sizes = [16, 128], strides = [1, 1]} : vector<16x512xf32> to vector<16x128xf32>
    %104 = arith.negf %103 : vector<16x128xf32>
    %105 = math.exp %104 : vector<16x128xf32>
    %cst_30 = arith.constant 1.000000e+00 : f32
    %106 = vector.broadcast %cst_30 : f32 to vector<16x128xf32>
    %107 = arith.addf %106, %105 : vector<16x128xf32>
    %108 = arith.divf %106, %107 : vector<16x128xf32>
    %109 = vector.extract_strided_slice %96 {offsets = [0, 256], sizes = [16, 128], strides = [1, 1]} : vector<16x512xf32> to vector<16x128xf32>
    %110 = math.tanh %109 : vector<16x128xf32>
    %111 = vector.extract_strided_slice %96 {offsets = [0, 384], sizes = [16, 128], strides = [1, 1]} : vector<16x512xf32> to vector<16x128xf32>
    %112 = arith.negf %111 : vector<16x128xf32>
    %113 = math.exp %112 : vector<16x128xf32>
    %cst_31 = arith.constant 1.000000e+00 : f32
    %114 = vector.broadcast %cst_31 : f32 to vector<16x128xf32>
    %115 = arith.addf %114, %113 : vector<16x128xf32>
    %116 = arith.divf %114, %115 : vector<16x128xf32>
    %117 = arith.mulf %108, %81 : vector<16x128xf32>
    %118 = arith.mulf %102, %110 : vector<16x128xf32>
    %119 = arith.addf %117, %118 : vector<16x128xf32>
    %120 = math.tanh %119 : vector<16x128xf32>
    %121 = arith.mulf %116, %120 : vector<16x128xf32>
    %122 = vector.broadcast %92 : i32 to vector<16x1xi32>
    %123 = arith.cmpi slt, %122, %11 : vector<16x1xi32>
    %124 = arith.extui %123 : vector<16x1xi1> to vector<16x1xi32>
    %125 = arith.sitofp %124 : vector<16x1xi32> to vector<16x1xf32>
    %126 = vector.broadcast %125 : vector<16x1xf32> to vector<16x128xf32>
    %127 = arith.mulf %126, %121 : vector<16x128xf32>
    %128 = arith.addf %90, %127 : vector<16x128xf32>
    %c8_i32_32 = arith.constant 8 : i32
    %129 = arith.muli %arg1, %c8_i32_32 : i32
    %c3_i32 = arith.constant 3 : i32
    %130 = arith.addi %129, %c3_i32 : i32
    %131 = vector.extract_strided_slice %9 {offsets = [48, 0], sizes = [16, 512], strides = [1, 1]} : vector<128x512xf32> to vector<16x512xf32>
    %132 = arith.truncf %121 : vector<16x128xf32> to vector<16x128xbf16>
    %cst_33 = arith.constant dense<0.000000e+00> : vector<16x512xf32>
    %133 = tpu.matmul %132, %10, %cst_33 {dimension_numbers = #tpu.dot_dimension_numbers<[1], [0], [0], [1], [0, 0, 1, 1], [], []>} : vector<16x128xbf16>, vector<128x512xbf16>, vector<16x512xf32> -> vector<16x512xf32>
    %134 = arith.addf %131, %133 : vector<16x512xf32>
    %135 = vector.extract_strided_slice %134 {offsets = [0, 0], sizes = [16, 128], strides = [1, 1]} : vector<16x512xf32> to vector<16x128xf32>
    %136 = arith.negf %135 : vector<16x128xf32>
    %137 = math.exp %136 : vector<16x128xf32>
    %cst_34 = arith.constant 1.000000e+00 : f32
    %138 = vector.broadcast %cst_34 : f32 to vector<16x128xf32>
    %139 = arith.addf %138, %137 : vector<16x128xf32>
    %140 = arith.divf %138, %139 : vector<16x128xf32>
    %141 = vector.extract_strided_slice %134 {offsets = [0, 128], sizes = [16, 128], strides = [1, 1]} : vector<16x512xf32> to vector<16x128xf32>
    %142 = arith.negf %141 : vector<16x128xf32>
    %143 = math.exp %142 : vector<16x128xf32>
    %cst_35 = arith.constant 1.000000e+00 : f32
    %144 = vector.broadcast %cst_35 : f32 to vector<16x128xf32>
    %145 = arith.addf %144, %143 : vector<16x128xf32>
    %146 = arith.divf %144, %145 : vector<16x128xf32>
    %147 = vector.extract_strided_slice %134 {offsets = [0, 256], sizes = [16, 128], strides = [1, 1]} : vector<16x512xf32> to vector<16x128xf32>
    %148 = math.tanh %147 : vector<16x128xf32>
    %149 = vector.extract_strided_slice %134 {offsets = [0, 384], sizes = [16, 128], strides = [1, 1]} : vector<16x512xf32> to vector<16x128xf32>
    %150 = arith.negf %149 : vector<16x128xf32>
    %151 = math.exp %150 : vector<16x128xf32>
    %cst_36 = arith.constant 1.000000e+00 : f32
    %152 = vector.broadcast %cst_36 : f32 to vector<16x128xf32>
    %153 = arith.addf %152, %151 : vector<16x128xf32>
    %154 = arith.divf %152, %153 : vector<16x128xf32>
    %155 = arith.mulf %146, %119 : vector<16x128xf32>
    %156 = arith.mulf %140, %148 : vector<16x128xf32>
    %157 = arith.addf %155, %156 : vector<16x128xf32>
    %158 = math.tanh %157 : vector<16x128xf32>
    %159 = arith.mulf %154, %158 : vector<16x128xf32>
    %160 = vector.broadcast %130 : i32 to vector<16x1xi32>
    %161 = arith.cmpi slt, %160, %11 : vector<16x1xi32>
    %162 = arith.extui %161 : vector<16x1xi1> to vector<16x1xi32>
    %163 = arith.sitofp %162 : vector<16x1xi32> to vector<16x1xf32>
    %164 = vector.broadcast %163 : vector<16x1xf32> to vector<16x128xf32>
    %165 = arith.mulf %164, %159 : vector<16x128xf32>
    %166 = arith.addf %128, %165 : vector<16x128xf32>
    %c8_i32_37 = arith.constant 8 : i32
    %167 = arith.muli %arg1, %c8_i32_37 : i32
    %c4_i32 = arith.constant 4 : i32
    %168 = arith.addi %167, %c4_i32 : i32
    %169 = vector.extract_strided_slice %9 {offsets = [64, 0], sizes = [16, 512], strides = [1, 1]} : vector<128x512xf32> to vector<16x512xf32>
    %170 = arith.truncf %159 : vector<16x128xf32> to vector<16x128xbf16>
    %cst_38 = arith.constant dense<0.000000e+00> : vector<16x512xf32>
    %171 = tpu.matmul %170, %10, %cst_38 {dimension_numbers = #tpu.dot_dimension_numbers<[1], [0], [0], [1], [0, 0, 1, 1], [], []>} : vector<16x128xbf16>, vector<128x512xbf16>, vector<16x512xf32> -> vector<16x512xf32>
    %172 = arith.addf %169, %171 : vector<16x512xf32>
    %173 = vector.extract_strided_slice %172 {offsets = [0, 0], sizes = [16, 128], strides = [1, 1]} : vector<16x512xf32> to vector<16x128xf32>
    %174 = arith.negf %173 : vector<16x128xf32>
    %175 = math.exp %174 : vector<16x128xf32>
    %cst_39 = arith.constant 1.000000e+00 : f32
    %176 = vector.broadcast %cst_39 : f32 to vector<16x128xf32>
    %177 = arith.addf %176, %175 : vector<16x128xf32>
    %178 = arith.divf %176, %177 : vector<16x128xf32>
    %179 = vector.extract_strided_slice %172 {offsets = [0, 128], sizes = [16, 128], strides = [1, 1]} : vector<16x512xf32> to vector<16x128xf32>
    %180 = arith.negf %179 : vector<16x128xf32>
    %181 = math.exp %180 : vector<16x128xf32>
    %cst_40 = arith.constant 1.000000e+00 : f32
    %182 = vector.broadcast %cst_40 : f32 to vector<16x128xf32>
    %183 = arith.addf %182, %181 : vector<16x128xf32>
    %184 = arith.divf %182, %183 : vector<16x128xf32>
    %185 = vector.extract_strided_slice %172 {offsets = [0, 256], sizes = [16, 128], strides = [1, 1]} : vector<16x512xf32> to vector<16x128xf32>
    %186 = math.tanh %185 : vector<16x128xf32>
    %187 = vector.extract_strided_slice %172 {offsets = [0, 384], sizes = [16, 128], strides = [1, 1]} : vector<16x512xf32> to vector<16x128xf32>
    %188 = arith.negf %187 : vector<16x128xf32>
    %189 = math.exp %188 : vector<16x128xf32>
    %cst_41 = arith.constant 1.000000e+00 : f32
    %190 = vector.broadcast %cst_41 : f32 to vector<16x128xf32>
    %191 = arith.addf %190, %189 : vector<16x128xf32>
    %192 = arith.divf %190, %191 : vector<16x128xf32>
    %193 = arith.mulf %184, %157 : vector<16x128xf32>
    %194 = arith.mulf %178, %186 : vector<16x128xf32>
    %195 = arith.addf %193, %194 : vector<16x128xf32>
    %196 = math.tanh %195 : vector<16x128xf32>
    %197 = arith.mulf %192, %196 : vector<16x128xf32>
    %198 = vector.broadcast %168 : i32 to vector<16x1xi32>
    %199 = arith.cmpi slt, %198, %11 : vector<16x1xi32>
    %200 = arith.extui %199 : vector<16x1xi1> to vector<16x1xi32>
    %201 = arith.sitofp %200 : vector<16x1xi32> to vector<16x1xf32>
    %202 = vector.broadcast %201 : vector<16x1xf32> to vector<16x128xf32>
    %203 = arith.mulf %202, %197 : vector<16x128xf32>
    %204 = arith.addf %166, %203 : vector<16x128xf32>
    %c8_i32_42 = arith.constant 8 : i32
    %205 = arith.muli %arg1, %c8_i32_42 : i32
    %c5_i32 = arith.constant 5 : i32
    %206 = arith.addi %205, %c5_i32 : i32
    %207 = vector.extract_strided_slice %9 {offsets = [80, 0], sizes = [16, 512], strides = [1, 1]} : vector<128x512xf32> to vector<16x512xf32>
    %208 = arith.truncf %197 : vector<16x128xf32> to vector<16x128xbf16>
    %cst_43 = arith.constant dense<0.000000e+00> : vector<16x512xf32>
    %209 = tpu.matmul %208, %10, %cst_43 {dimension_numbers = #tpu.dot_dimension_numbers<[1], [0], [0], [1], [0, 0, 1, 1], [], []>} : vector<16x128xbf16>, vector<128x512xbf16>, vector<16x512xf32> -> vector<16x512xf32>
    %210 = arith.addf %207, %209 : vector<16x512xf32>
    %211 = vector.extract_strided_slice %210 {offsets = [0, 0], sizes = [16, 128], strides = [1, 1]} : vector<16x512xf32> to vector<16x128xf32>
    %212 = arith.negf %211 : vector<16x128xf32>
    %213 = math.exp %212 : vector<16x128xf32>
    %cst_44 = arith.constant 1.000000e+00 : f32
    %214 = vector.broadcast %cst_44 : f32 to vector<16x128xf32>
    %215 = arith.addf %214, %213 : vector<16x128xf32>
    %216 = arith.divf %214, %215 : vector<16x128xf32>
    %217 = vector.extract_strided_slice %210 {offsets = [0, 128], sizes = [16, 128], strides = [1, 1]} : vector<16x512xf32> to vector<16x128xf32>
    %218 = arith.negf %217 : vector<16x128xf32>
    %219 = math.exp %218 : vector<16x128xf32>
    %cst_45 = arith.constant 1.000000e+00 : f32
    %220 = vector.broadcast %cst_45 : f32 to vector<16x128xf32>
    %221 = arith.addf %220, %219 : vector<16x128xf32>
    %222 = arith.divf %220, %221 : vector<16x128xf32>
    %223 = vector.extract_strided_slice %210 {offsets = [0, 256], sizes = [16, 128], strides = [1, 1]} : vector<16x512xf32> to vector<16x128xf32>
    %224 = math.tanh %223 : vector<16x128xf32>
    %225 = vector.extract_strided_slice %210 {offsets = [0, 384], sizes = [16, 128], strides = [1, 1]} : vector<16x512xf32> to vector<16x128xf32>
    %226 = arith.negf %225 : vector<16x128xf32>
    %227 = math.exp %226 : vector<16x128xf32>
    %cst_46 = arith.constant 1.000000e+00 : f32
    %228 = vector.broadcast %cst_46 : f32 to vector<16x128xf32>
    %229 = arith.addf %228, %227 : vector<16x128xf32>
    %230 = arith.divf %228, %229 : vector<16x128xf32>
    %231 = arith.mulf %222, %195 : vector<16x128xf32>
    %232 = arith.mulf %216, %224 : vector<16x128xf32>
    %233 = arith.addf %231, %232 : vector<16x128xf32>
    %234 = math.tanh %233 : vector<16x128xf32>
    %235 = arith.mulf %230, %234 : vector<16x128xf32>
    %236 = vector.broadcast %206 : i32 to vector<16x1xi32>
    %237 = arith.cmpi slt, %236, %11 : vector<16x1xi32>
    %238 = arith.extui %237 : vector<16x1xi1> to vector<16x1xi32>
    %239 = arith.sitofp %238 : vector<16x1xi32> to vector<16x1xf32>
    %240 = vector.broadcast %239 : vector<16x1xf32> to vector<16x128xf32>
    %241 = arith.mulf %240, %235 : vector<16x128xf32>
    %242 = arith.addf %204, %241 : vector<16x128xf32>
    %c8_i32_47 = arith.constant 8 : i32
    %243 = arith.muli %arg1, %c8_i32_47 : i32
    %c6_i32 = arith.constant 6 : i32
    %244 = arith.addi %243, %c6_i32 : i32
    %245 = vector.extract_strided_slice %9 {offsets = [96, 0], sizes = [16, 512], strides = [1, 1]} : vector<128x512xf32> to vector<16x512xf32>
    %246 = arith.truncf %235 : vector<16x128xf32> to vector<16x128xbf16>
    %cst_48 = arith.constant dense<0.000000e+00> : vector<16x512xf32>
    %247 = tpu.matmul %246, %10, %cst_48 {dimension_numbers = #tpu.dot_dimension_numbers<[1], [0], [0], [1], [0, 0, 1, 1], [], []>} : vector<16x128xbf16>, vector<128x512xbf16>, vector<16x512xf32> -> vector<16x512xf32>
    %248 = arith.addf %245, %247 : vector<16x512xf32>
    %249 = vector.extract_strided_slice %248 {offsets = [0, 0], sizes = [16, 128], strides = [1, 1]} : vector<16x512xf32> to vector<16x128xf32>
    %250 = arith.negf %249 : vector<16x128xf32>
    %251 = math.exp %250 : vector<16x128xf32>
    %cst_49 = arith.constant 1.000000e+00 : f32
    %252 = vector.broadcast %cst_49 : f32 to vector<16x128xf32>
    %253 = arith.addf %252, %251 : vector<16x128xf32>
    %254 = arith.divf %252, %253 : vector<16x128xf32>
    %255 = vector.extract_strided_slice %248 {offsets = [0, 128], sizes = [16, 128], strides = [1, 1]} : vector<16x512xf32> to vector<16x128xf32>
    %256 = arith.negf %255 : vector<16x128xf32>
    %257 = math.exp %256 : vector<16x128xf32>
    %cst_50 = arith.constant 1.000000e+00 : f32
    %258 = vector.broadcast %cst_50 : f32 to vector<16x128xf32>
    %259 = arith.addf %258, %257 : vector<16x128xf32>
    %260 = arith.divf %258, %259 : vector<16x128xf32>
    %261 = vector.extract_strided_slice %248 {offsets = [0, 256], sizes = [16, 128], strides = [1, 1]} : vector<16x512xf32> to vector<16x128xf32>
    %262 = math.tanh %261 : vector<16x128xf32>
    %263 = vector.extract_strided_slice %248 {offsets = [0, 384], sizes = [16, 128], strides = [1, 1]} : vector<16x512xf32> to vector<16x128xf32>
    %264 = arith.negf %263 : vector<16x128xf32>
    %265 = math.exp %264 : vector<16x128xf32>
    %cst_51 = arith.constant 1.000000e+00 : f32
    %266 = vector.broadcast %cst_51 : f32 to vector<16x128xf32>
    %267 = arith.addf %266, %265 : vector<16x128xf32>
    %268 = arith.divf %266, %267 : vector<16x128xf32>
    %269 = arith.mulf %260, %233 : vector<16x128xf32>
    %270 = arith.mulf %254, %262 : vector<16x128xf32>
    %271 = arith.addf %269, %270 : vector<16x128xf32>
    %272 = math.tanh %271 : vector<16x128xf32>
    %273 = arith.mulf %268, %272 : vector<16x128xf32>
    %274 = vector.broadcast %244 : i32 to vector<16x1xi32>
    %275 = arith.cmpi slt, %274, %11 : vector<16x1xi32>
    %276 = arith.extui %275 : vector<16x1xi1> to vector<16x1xi32>
    %277 = arith.sitofp %276 : vector<16x1xi32> to vector<16x1xf32>
    %278 = vector.broadcast %277 : vector<16x1xf32> to vector<16x128xf32>
    %279 = arith.mulf %278, %273 : vector<16x128xf32>
    %280 = arith.addf %242, %279 : vector<16x128xf32>
    %c8_i32_52 = arith.constant 8 : i32
    %281 = arith.muli %arg1, %c8_i32_52 : i32
    %c7_i32 = arith.constant 7 : i32
    %282 = arith.addi %281, %c7_i32 : i32
    %283 = vector.extract_strided_slice %9 {offsets = [112, 0], sizes = [16, 512], strides = [1, 1]} : vector<128x512xf32> to vector<16x512xf32>
    %284 = arith.truncf %273 : vector<16x128xf32> to vector<16x128xbf16>
    %cst_53 = arith.constant dense<0.000000e+00> : vector<16x512xf32>
    %285 = tpu.matmul %284, %10, %cst_53 {dimension_numbers = #tpu.dot_dimension_numbers<[1], [0], [0], [1], [0, 0, 1, 1], [], []>} : vector<16x128xbf16>, vector<128x512xbf16>, vector<16x512xf32> -> vector<16x512xf32>
    %286 = arith.addf %283, %285 : vector<16x512xf32>
    %287 = vector.extract_strided_slice %286 {offsets = [0, 0], sizes = [16, 128], strides = [1, 1]} : vector<16x512xf32> to vector<16x128xf32>
    %288 = arith.negf %287 : vector<16x128xf32>
    %289 = math.exp %288 : vector<16x128xf32>
    %cst_54 = arith.constant 1.000000e+00 : f32
    %290 = vector.broadcast %cst_54 : f32 to vector<16x128xf32>
    %291 = arith.addf %290, %289 : vector<16x128xf32>
    %292 = arith.divf %290, %291 : vector<16x128xf32>
    %293 = vector.extract_strided_slice %286 {offsets = [0, 128], sizes = [16, 128], strides = [1, 1]} : vector<16x512xf32> to vector<16x128xf32>
    %294 = arith.negf %293 : vector<16x128xf32>
    %295 = math.exp %294 : vector<16x128xf32>
    %cst_55 = arith.constant 1.000000e+00 : f32
    %296 = vector.broadcast %cst_55 : f32 to vector<16x128xf32>
    %297 = arith.addf %296, %295 : vector<16x128xf32>
    %298 = arith.divf %296, %297 : vector<16x128xf32>
    %299 = vector.extract_strided_slice %286 {offsets = [0, 256], sizes = [16, 128], strides = [1, 1]} : vector<16x512xf32> to vector<16x128xf32>
    %300 = math.tanh %299 : vector<16x128xf32>
    %301 = vector.extract_strided_slice %286 {offsets = [0, 384], sizes = [16, 128], strides = [1, 1]} : vector<16x512xf32> to vector<16x128xf32>
    %302 = arith.negf %301 : vector<16x128xf32>
    %303 = math.exp %302 : vector<16x128xf32>
    %cst_56 = arith.constant 1.000000e+00 : f32
    %304 = vector.broadcast %cst_56 : f32 to vector<16x128xf32>
    %305 = arith.addf %304, %303 : vector<16x128xf32>
    %306 = arith.divf %304, %305 : vector<16x128xf32>
    %307 = arith.mulf %298, %271 : vector<16x128xf32>
    %308 = arith.mulf %292, %300 : vector<16x128xf32>
    %309 = arith.addf %307, %308 : vector<16x128xf32>
    %310 = math.tanh %309 : vector<16x128xf32>
    %311 = arith.mulf %306, %310 : vector<16x128xf32>
    %312 = vector.broadcast %282 : i32 to vector<16x1xi32>
    %313 = arith.cmpi slt, %312, %11 : vector<16x1xi32>
    %314 = arith.extui %313 : vector<16x1xi1> to vector<16x1xi32>
    %315 = arith.sitofp %314 : vector<16x1xi32> to vector<16x1xf32>
    %316 = vector.broadcast %315 : vector<16x1xf32> to vector<16x128xf32>
    %317 = arith.mulf %316, %311 : vector<16x128xf32>
    %318 = arith.addf %280, %317 : vector<16x128xf32>
    %c0_57 = arith.constant 0 : index
    %c0_58 = arith.constant 0 : index
    %319 = vector.load %arg15[%c0_57, %c0_58] : memref<16x128xf32, #tpu.memory_space<vmem>>, vector<16x128xf32>
    tpu.vector_store %arg15[%c0_57, %c0_58], %311 {strides = array<i32>} : memref<16x128xf32, #tpu.memory_space<vmem>>, vector<16x128xf32>,
    %c0_59 = arith.constant 0 : index
    %c0_60 = arith.constant 0 : index
    %320 = vector.load %arg16[%c0_59, %c0_60] : memref<16x128xf32, #tpu.memory_space<vmem>>, vector<16x128xf32>
    tpu.vector_store %arg16[%c0_59, %c0_60], %309 {strides = array<i32>} : memref<16x128xf32, #tpu.memory_space<vmem>>, vector<16x128xf32>,
    %c0_61 = arith.constant 0 : index
    %c0_62 = arith.constant 0 : index
    %321 = vector.load %arg17[%c0_61, %c0_62] : memref<16x128xf32, #tpu.memory_space<vmem>>, vector<16x128xf32>
    tpu.vector_store %arg17[%c0_61, %c0_62], %318 {strides = array<i32>} : memref<16x128xf32, #tpu.memory_space<vmem>>, vector<16x128xf32>,
    %c0_i32_63 = arith.constant 0 : i32
    %322 = arith.cmpi eq, %arg1, %c0_i32_63 : i32
    %323 = arith.extui %322 : i1 to i32
    %c0_i32_64 = arith.constant 0 : i32
    %324 = arith.cmpi ne, %323, %c0_i32_64 : i32
    scf.if %324 {
      %c0_65 = arith.constant 0 : index
      %c0_66 = arith.constant 0 : index
      %325 = vector.load %arg3[%c0_65, %c0_66] : memref<16x1xf32, #tpu.memory_space<vmem>>, vector<16x1xf32>
      %326 = vector.broadcast %325 : vector<16x1xf32> to vector<16x128xf32>
      %327 = arith.mulf %318, %326 : vector<16x128xf32>
      %c0_67 = arith.constant 0 : index
      %c0_68 = arith.constant 0 : index
      %328 = vector.load %arg10[%c0_67, %c0_68] : memref<128x128xf32, #tpu.memory_space<vmem>>, vector<128x128xf32>
      %cst_69 = arith.constant dense<0.000000e+00> : vector<16x128xf32>
      %329 = tpu.matmul %327, %328, %cst_69 {dimension_numbers = #tpu.dot_dimension_numbers<[1], [0], [0], [1], [0, 0, 1, 1], [], []>} : vector<16x128xf32>, vector<128x128xf32>, vector<16x128xf32> -> vector<16x128xf32>
      %c0_70 = arith.constant 0 : index
      %c0_71 = arith.constant 0 : index
      %330 = vector.load %arg11[%c0_70, %c0_71] : memref<1x128xf32, #tpu.memory_space<vmem>>, vector<1x128xf32>
      %331 = vector.broadcast %330 : vector<1x128xf32> to vector<16x128xf32>
      %332 = arith.addf %329, %331 : vector<16x128xf32>
      %c0_72 = arith.constant 0 : index
      %c0_73 = arith.constant 0 : index
      %333 = vector.load %arg12[%c0_72, %c0_73] : memref<128x128xf32, #tpu.memory_space<vmem>>, vector<128x128xf32>
      %cst_74 = arith.constant dense<0.000000e+00> : vector<16x128xf32>
      %334 = tpu.matmul %332, %333, %cst_74 {dimension_numbers = #tpu.dot_dimension_numbers<[1], [0], [0], [1], [0, 0, 1, 1], [], []>} : vector<16x128xf32>, vector<128x128xf32>, vector<16x128xf32> -> vector<16x128xf32>
      %c0_75 = arith.constant 0 : index
      %c0_76 = arith.constant 0 : index
      %335 = vector.load %arg13[%c0_75, %c0_76] : memref<1x128xf32, #tpu.memory_space<vmem>>, vector<1x128xf32>
      %336 = vector.broadcast %335 : vector<1x128xf32> to vector<16x128xf32>
      %337 = arith.addf %334, %336 : vector<16x128xf32>
      %cst_77 = arith.constant dense<0xFF800000> : vector<16xf32>
      %338 = vector.multi_reduction <maximumf>, %337, %cst_77 [1] : vector<16x128xf32> to vector<16xf32>
      %339 = vector.shape_cast %338 : vector<16xf32> to vector<16x1xf32>
      %340 = vector.broadcast %339 : vector<16x1xf32> to vector<16x128xf32>
      %341 = arith.subf %337, %340 : vector<16x128xf32>
      %342 = math.exp %341 : vector<16x128xf32>
      %cst_78 = arith.constant dense<0.000000e+00> : vector<16xf32>
      %343 = vector.multi_reduction <add>, %342, %cst_78 [1] : vector<16x128xf32> to vector<16xf32>
      %344 = vector.shape_cast %343 : vector<16xf32> to vector<16x1xf32>
      %345 = math.log %344 : vector<16x1xf32>
      %346 = vector.broadcast %345 : vector<16x1xf32> to vector<16x128xf32>
      %347 = arith.subf %341, %346 : vector<16x128xf32>
      %c0_79 = arith.constant 0 : index
      %c0_80 = arith.constant 0 : index
      %348 = vector.load %arg14[%c0_79, %c0_80] : memref<16x128xf32, #tpu.memory_space<vmem>>, vector<16x128xf32>
      tpu.vector_store %arg14[%c0_79, %c0_80], %347 {strides = array<i32>} : memref<16x128xf32, #tpu.memory_space<vmem>>, vector<16x128xf32>,
    } else {
    }
    return
  }
  func.func @transform_0(%arg0: i32, %arg1: i32) -> (i32, i32) {
    %c0_i32 = arith.constant 0 : i32
    %c0_i32_0 = arith.constant 0 : i32
    return %arg0, %c0_i32 : i32, i32
  }
  func.func @transform_1(%arg0: i32, %arg1: i32) -> (i32, i32) {
    %c0_i32 = arith.constant 0 : i32
    %c0_i32_0 = arith.constant 0 : i32
    return %arg0, %c0_i32 : i32, i32
  }
  func.func @transform_2(%arg0: i32, %arg1: i32) -> (i32, i32, i32) {
    %c0_i32 = arith.constant 0 : i32
    %c0_i32_0 = arith.constant 0 : i32
    return %arg1, %arg0, %c0_i32 : i32, i32, i32
  }
  func.func @transform_3(%arg0: i32, %arg1: i32) -> (i32, i32) {
    %c0_i32 = arith.constant 0 : i32
    %c0_i32_0 = arith.constant 0 : i32
    return %arg0, %c0_i32 : i32, i32
  }
  func.func @transform_4(%arg0: i32, %arg1: i32) -> (i32, i32) {
    %c0_i32 = arith.constant 0 : i32
    %c0_i32_0 = arith.constant 0 : i32
    return %arg0, %c0_i32 : i32, i32
  }
  func.func @transform_5(%arg0: i32, %arg1: i32) -> (i32, i32) {
    %c0_i32 = arith.constant 0 : i32
    %c0_i32_0 = arith.constant 0 : i32
    %c0_i32_1 = arith.constant 0 : i32
    return %c0_i32, %c0_i32_0 : i32, i32
  }
  func.func @transform_6(%arg0: i32, %arg1: i32) -> (i32, i32) {
    %c0_i32 = arith.constant 0 : i32
    %c0_i32_0 = arith.constant 0 : i32
    %c0_i32_1 = arith.constant 0 : i32
    return %c0_i32, %c0_i32_0 : i32, i32
  }
  func.func @transform_7(%arg0: i32, %arg1: i32) -> (i32, i32) {
    %c0_i32 = arith.constant 0 : i32
    %c0_i32_0 = arith.constant 0 : i32
    %c0_i32_1 = arith.constant 0 : i32
    return %c0_i32, %c0_i32_0 : i32, i32
  }
  func.func @transform_8(%arg0: i32, %arg1: i32) -> (i32, i32) {
    %c0_i32 = arith.constant 0 : i32
    %c0_i32_0 = arith.constant 0 : i32
    %c0_i32_1 = arith.constant 0 : i32
    return %c0_i32, %c0_i32_0 : i32, i32
  }
  func.func @transform_9(%arg0: i32, %arg1: i32) -> (i32, i32) {
    %c0_i32 = arith.constant 0 : i32
    %c0_i32_0 = arith.constant 0 : i32
    %c0_i32_1 = arith.constant 0 : i32
    return %c0_i32, %c0_i32_0 : i32, i32
  }
  func.func @transform_10(%arg0: i32, %arg1: i32) -> (i32, i32) {
    %c0_i32 = arith.constant 0 : i32
    %c0_i32_0 = arith.constant 0 : i32
    %c0_i32_1 = arith.constant 0 : i32
    return %c0_i32, %c0_i32_0 : i32, i32
  }
  func.func @transform_11(%arg0: i32, %arg1: i32) -> (i32, i32) {
    %c0_i32 = arith.constant 0 : i32
    %c0_i32_0 = arith.constant 0 : i32
    %c0_i32_1 = arith.constant 0 : i32
    return %c0_i32, %c0_i32_0 : i32, i32
  }
  func.func @transform_12(%arg0: i32, %arg1: i32) -> (i32, i32) {
    %c0_i32 = arith.constant 0 : i32
    %c0_i32_0 = arith.constant 0 : i32
    return %arg0, %c0_i32 : i32, i32
  }
  func.func @transform_13(%arg0: i32, %arg1: i32) -> (i32, i32) {
    %c0_i32 = arith.constant 0 : i32
    %c0_i32_0 = arith.constant 0 : i32
    return %arg0, %c0_i32 : i32, i32
  }
  func.func @transform_14(%arg0: i32, %arg1: i32) -> (i32, i32) {
    %c0_i32 = arith.constant 0 : i32
    %c0_i32_0 = arith.constant 0 : i32
    return %arg0, %c0_i32 : i32, i32
  }
}

</mosaic_0001>

<bundles_post_ra>
// kernel: tpu_custom_call.1
= control target key start
LH: loop header
LB: loop body
LE: loop exit
PB: predicated region body
PF: predicated region fallthrough
CT: control target
= control target key end

     0   :  { %s5030_s0 = inlined_call_operand.vmem [shape: s32[16,1], index: 0, kind: input, shape index: {}]   ;;  %s5031_s1 = inlined_call_operand.vmem [shape: f32[16,1], index: 1, kind: input, shape index: {}]   ;;  %s5032_s2 = inlined_call_operand.hbm [shape: bf16[8,16,128], index: 2, kind: input, shape index: {}]   ;;  %s5033_s3 = inlined_call_operand.vmem [shape: f32[16,128], index: 3, kind: input, shape index: {}]   ;;  %s5034_s4 = inlined_call_operand.vmem [shape: f32[16,128], index: 4, kind: input, shape index: {}]   ;;  %s5035_s5 = inlined_call_operand.hbm [shape: bf16[128,512], index: 5, kind: input, shape index: {}]   ;;  %s5036_s6 = inlined_call_operand.hbm [shape: bf16[128,512], index: 6, kind: input, shape index: {}]   ;;  %s5037_s7 = inlined_call_operand.vmem [shape: f32[1,512], index: 7, kind: input, shape index: {}]   ;;  %s5038_s8 = inlined_call_operand.hbm [shape: f32[128,128], index: 8, kind: input, shape index: {}]   ;;  %s5039_s9 = inlined_call_operand.vmem [shape: f32[1,128], index: 9, kind: input, shape index: {}]   ;;  %s5040_s10 = inlined_call_operand.hbm [shape: f32[128,128], index: 10, kind: input, shape index: {}]   ;;  %s5041_s11 = inlined_call_operand.vmem [shape: f32[1,128], index: 11, kind: input, shape index: {}]   ;;  %s5042_s12 = inlined_call_operand.hbm [shape: f32[16,128], index: 12, kind: output, shape index: {0}]   ;;  %s5043_s13 = inlined_call_operand.hbm [shape: f32[16,128], index: 13, kind: output, shape index: {1}]   ;;  %s5044_s14 = inlined_call_operand.hbm [shape: f32[16,128], index: 14, kind: output, shape index: {2}]  }
   0x1   :  { %5090 = sst [smem:[#allocation85_spill]] %s5042_s12 }
   0x2   :  { %20 = vsyncpa [#allocation4], 0 }
   0x3   :  { %21 = vsyncpa [#allocation7], 0 }
   0x4   :  { %22 = vsyncpa [#allocation10], 0 }
   0x5   :  { %23 = vsyncpa [#allocation5], 0  ;;  %s50_s15 = sshll.u32 %s5035_s5, 4  ;;  %s51_s15 = int_to_ptr.hbm [resolvable:$true] %s50_s15 }
   0x6   :  { %24 = vsyncpa [#allocation14], 0  ;;  %s3691_s16 = smov [#allocation6]   ;;  %s78_s20 = sshll.u32 %s5038_s8, 4  ;;  %s79_s20 = int_to_ptr.hbm [resolvable:$true] %s78_s20 }
   0x7   :  { %s52_s17 = sshll.u32 %s3691_s16, 4  ;;  %s3692_s21 = smov 256   ;;  %s53_s17 = int_to_ptr.vmem [resolvable:$true] %s52_s17 }
   0x8   :  { %s3693_s22 = smov 16   ;;  %s3694_s23 = smov [#allocation9]  }
   0x9   :  { %58 = dma.hbm_to_vmem [thread:$0]  %s51_s15, 4096, %s53_s17, [#allocation7], %s3692_s21, %s3692_s21, %s3693_s22  }
   0xa   :  { %s80_s24 = sshll.u32 %s3694_s23, 4  ;;  %s3695_s25 = smov 128   ;;  %s81_s24 = int_to_ptr.vmem [resolvable:$true] %s80_s24 }
   0xb   :  { %s3696_s26 = smov 8   ;;  %s33_s28 = sshll.u32 %s5032_s2, 4  ;;  %s34_s28 = int_to_ptr.hbm [resolvable:$true] %s33_s28 }
   0xc   :  { %86 = dma.hbm_to_vmem [thread:$0]  %s79_s20, 2048, %s81_s24, [#allocation10], %s3695_s25, %s3695_s25, %s3696_s26  }
   0xd   :  { %s3697_s29 = smov [#allocation3]   ;;  %s63_s16 = sshll.u32 %s5036_s6, 4  ;;  %s64_s16 = int_to_ptr.hbm [resolvable:$true] %s63_s16 }
   0xe   :  { %s35_s8 = sshll.u32 %s3697_s29, 4  ;;  %s3698_s17 = smov 64   ;;  %s36_s8 = int_to_ptr.vmem [resolvable:$true] %s35_s8 }
   0xf   :  { %s3699_s18 = smov 4   ;;  %s3700_s19 = smov [#allocation8]  }
  0x10   :  { %41 = dma.hbm_to_vmem [thread:$0]  %s34_s28, 1024, %s36_s8, [#allocation4], %s3698_s17, %s3698_s17, %s3699_s18  }
  0x11   :  { %s65_s23 = sshll.u32 %s3700_s19, 4  ;;  %s93_s24 = sshll.u32 %s5040_s10, 4  ;;  %s66_s23 = int_to_ptr.vmem [resolvable:$true] %s65_s23  ;;  %s94_s24 = int_to_ptr.hbm [resolvable:$true] %s93_s24 }
  0x12   :  { %71 = dma.hbm_to_vmem [thread:$0]  %s64_s16, 4096, %s66_s23, [#allocation7], %s3692_s21, %s3692_s21, %s3693_s22  }
  0x13   :  { %s3701_s2 = smov [#allocation11]  }
  0x14   :  { %s95_s5 = sshll.u32 %s3701_s2, 4  ;;  %s96_s5 = int_to_ptr.vmem [resolvable:$true] %s95_s5 }
  0x15   :  { %101 = dma.hbm_to_vmem [thread:$0]  %s94_s24, 2048, %s96_s5, [#allocation10], %s3695_s25, %s3695_s25, %s3696_s26  }
  0x16   :  { %3681 = dma.done.wait [#allocation4], 1024  }
  0x17   :  { %3682 = vsyncadd [#allocation4], 4294966272 }
  0x18   :  { %3683 = dma.done.wait [#allocation7], 8192  }
  0x19   :  { %3684 = vsyncadd [#allocation7], 4294959104 }
  0x1a   :  { %3685 = dma.done.wait [#allocation10], 4096  }
  0x1b   :  { %3686 = vsyncadd [#allocation10], 4294963200  ;;  %v2837_v0 = vld [vmem:[#allocation6 + $0xe0] sm:$0xf]  ;;  %v3097_v1 = vld [vmem:[#allocation6 + $0xec] sm:$0xf0] }
  0x1c   :  { %v3095_v2 = vld [vmem:[#allocation6 + $0xe4] sm:$0xf]  ;;  %v2838_v3 = vor.u32 %v3097_v1, %v2837_v0  ;;  %v2839_v4 = vld [vmem:[#allocation6 + $0xf0] sm:$0xf0]  ;;  %v2845_v5 = vld [vmem:[#allocation6 + $0xe8] sm:$0xf] }
  0x1d   :  { %v3098_v6 = vld [vmem:[#allocation6 + $0xf4] sm:$0xf0]  ;;  %v2842_v7 = vor.u32 %v3095_v2, %v2839_v4  ;;  %v3096_v9 = vld [vmem:[#allocation6 + $0xec] sm:$0xf]  ;;  %v2847_v10 = vld [vmem:[#allocation6 + $0xf8] sm:$0xf0] }
  0x1e   :  { %v2846_v8 = vor.u32 %v3098_v6, %v2845_v5  ;;  %v2821_v11 = vld [vmem:[#allocation6 + $0xc0] sm:$0xf]  ;;  %404 = vmatpush.bf16.msra.mxu0 %v2838_v3  ;;  %v2850_v12 = vor.u32 %v3096_v9, %v2847_v10  ;;  %v3093_v13 = vld [vmem:[#allocation6 + $0xcc] sm:$0xf0]  ;;  %v3091_v14 = vld [vmem:[#allocation6 + $0xc4] sm:$0xf] }
  0x1f   :  { %v2823_v15 = vld [vmem:[#allocation6 + $0xd0] sm:$0xf0]  ;;  %453 = vmatpush.bf16.msra.mxu1 %v2842_v7  ;;  %v2822_v16 = vor.u32 %v3093_v13, %v2821_v11  ;;  %v2829_v18 = vld [vmem:[#allocation6 + $0xc8] sm:$0xf]  ;;  %v3094_v19 = vld [vmem:[#allocation6 + $0xd4] sm:$0xf0] }
  0x20   :  { %502 = vmatpush.bf16.msra.mxu2 %v2846_v8  ;;  %v2826_v17 = vor.u32 %v3091_v14, %v2823_v15  ;;  %v3092_v20 = vld [vmem:[#allocation6 + $0xcc] sm:$0xf]  ;;  %551 = vmatpush.bf16.msra.mxu3 %v2850_v12  ;;  %v2830_v21 = vor.u32 %v3094_v19, %v2829_v18  ;;  %v2831_v22 = vld [vmem:[#allocation6 + $0xd8] sm:$0xf0]  ;;  %v2805_v23 = vld [vmem:[#allocation6 + $0xa0] sm:$0xf] }
  0x21   :  { %v3089_v24 = vld [vmem:[#allocation6 + $0xac] sm:$0xf0]  ;;  %v2834_v25 = vor.u32 %v3092_v20, %v2831_v22  ;;  %v3087_v26 = vld [vmem:[#allocation6 + $0xa4] sm:$0xf]  ;;  %v2807_v27 = vld [vmem:[#allocation6 + $0xb0] sm:$0xf0] }
  0x22   :  { %v2813_v28 = vld [vmem:[#allocation6 + $0xa8] sm:$0xf]  ;;  %405 = vmatpush.bf16.msra.mxu0 %v2822_v16  ;;  %v2806_v29 = vor.u32 %v3089_v24, %v2805_v23  ;;  %v3090_v30 = vld [vmem:[#allocation6 + $0xb4] sm:$0xf0]  ;;  %v3088_v31 = vld [vmem:[#allocation6 + $0xac] sm:$0xf]  ;;  %v2810_v33 = vor.u32 %v3087_v26, %v2807_v27 }
  0x23   :  { %v2815_v32 = vld [vmem:[#allocation6 + $0xb8] sm:$0xf0]  ;;  %454 = vmatpush.bf16.msra.mxu1 %v2826_v17  ;;  %v2814_v34 = vor.u32 %v3090_v30, %v2813_v28  ;;  %v2789_v35 = vld [vmem:[#allocation6 + $0x80] sm:$0xf]  ;;  %v3085_v36 = vld [vmem:[#allocation6 + $0x8c] sm:$0xf0] }
  0x24   :  { %503 = vmatpush.bf16.msra.mxu2 %v2830_v21  ;;  %v3083_v37 = vld [vmem:[#allocation6 + $0x84] sm:$0xf]  ;;  %552 = vmatpush.bf16.msra.mxu3 %v2834_v25  ;;  %v2818_v38 = vor.u32 %v3088_v31, %v2815_v32  ;;  %v2791_v39 = vld [vmem:[#allocation6 + $0x90] sm:$0xf0]  ;;  %v2797_v40 = vld [vmem:[#allocation6 + $0x88] sm:$0xf]  ;;  %v2790_v44 = vor.u32 %v3085_v36, %v2789_v35 }
  0x25   :  { %v3086_v41 = vld [vmem:[#allocation6 + $0x94] sm:$0xf0]  ;;  %v3084_v42 = vld [vmem:[#allocation6 + $0x8c] sm:$0xf]  ;;  %v2799_v43 = vld [vmem:[#allocation6 + $0x98] sm:$0xf0]  ;;  %v2794_v45 = vor.u32 %v3083_v37, %v2791_v39 }
  0x26   :  { %406 = vmatpush.bf16.msra.mxu0 %v2806_v29  ;;  %v2798_v46 = vor.u32 %v3086_v41, %v2797_v40  ;;  %v2773_v47 = vld [vmem:[#allocation6 + $0x60] sm:$0xf]  ;;  %v3081_v48 = vld [vmem:[#allocation6 + $0x6c] sm:$0xf0]  ;;  %v3079_v49 = vld [vmem:[#allocation6 + $0x64] sm:$0xf]  ;;  %v2802_v50 = vor.u32 %v3084_v42, %v2799_v43 }
  0x27   :  { %455 = vmatpush.bf16.msra.mxu1 %v2810_v33  ;;  %v2775_v51 = vld [vmem:[#allocation6 + $0x70] sm:$0xf0]  ;;  %v2781_v52 = vld [vmem:[#allocation6 + $0x68] sm:$0xf]  ;;  %v3082_v53 = vld [vmem:[#allocation6 + $0x74] sm:$0xf0]  ;;  %v2774_v56 = vor.u32 %v3081_v48, %v2773_v47 }
  0x28   :  { %504 = vmatpush.bf16.msra.mxu2 %v2814_v34  ;;  %553 = vmatpush.bf16.msra.mxu3 %v2818_v38  ;;  %v3080_v54 = vld [vmem:[#allocation6 + $0x6c] sm:$0xf]  ;;  %v2783_v55 = vld [vmem:[#allocation6 + $0x78] sm:$0xf0]  ;;  %v2778_v57 = vor.u32 %v3079_v49, %v2775_v51  ;;  %v2782_v58 = vor.u32 %v3082_v53, %v2781_v52  ;;  %v2757_v59 = vld [vmem:[#allocation6 + $0x40] sm:$0xf] }
  0x29   :  { %v3077_v60 = vld [vmem:[#allocation6 + $0x4c] sm:$0xf0]  ;;  %v3075_v61 = vld [vmem:[#allocation6 + $0x44] sm:$0xf]  ;;  %v2786_v62 = vor.u32 %v3080_v54, %v2783_v55  ;;  %v2759_v63 = vld [vmem:[#allocation6 + $0x50] sm:$0xf0] }
  0x2a   :  { %407 = vmatpush.bf16.msra.mxu0 %v2790_v44  ;;  %v2765_v0 = vld [vmem:[#allocation6 + $0x48] sm:$0xf]  ;;  %v3078_v1 = vld [vmem:[#allocation6 + $0x54] sm:$0xf0]  ;;  %v3076_v2 = vld [vmem:[#allocation6 + $0x4c] sm:$0xf]  ;;  %v2758_v4 = vor.u32 %v3077_v60, %v2757_v59  ;;  %v2762_v5 = vor.u32 %v3075_v61, %v2759_v63 }
  0x2b   :  { %456 = vmatpush.bf16.msra.mxu1 %v2794_v45  ;;  %v2767_v3 = vld [vmem:[#allocation6 + $0x58] sm:$0xf0]  ;;  %v2766_v6 = vor.u32 %v3078_v1, %v2765_v0  ;;  %v2741_v7 = vld [vmem:[#allocation6 + $0x20] sm:$0xf]  ;;  %v3073_v8 = vld [vmem:[#allocation6 + $0x2c] sm:$0xf0] }
  0x2c   :  { %505 = vmatpush.bf16.msra.mxu2 %v2798_v46  ;;  %554 = vmatpush.bf16.msra.mxu3 %v2802_v50  ;;  %v3071_v9 = vld [vmem:[#allocation6 + $0x24] sm:$0xf]  ;;  %v2770_v10 = vor.u32 %v3076_v2, %v2767_v3  ;;  %v2743_v11 = vld [vmem:[#allocation6 + $0x30] sm:$0xf0]  ;;  %v2749_v12 = vld [vmem:[#allocation6 + $0x28] sm:$0xf]  ;;  %v2742_v16 = vor.u32 %v3073_v8, %v2741_v7 }
  0x2d   :  { %v3074_v13 = vld [vmem:[#allocation6 + $0x34] sm:$0xf0]  ;;  %v3072_v14 = vld [vmem:[#allocation6 + $0x2c] sm:$0xf]  ;;  %v2751_v15 = vld [vmem:[#allocation6 + $0x38] sm:$0xf0]  ;;  %v2746_v18 = vor.u32 %v3071_v9, %v2743_v11 }
  0x2e   :  { %408 = vmatpush.bf16.msra.mxu0 %v2774_v56  ;;  %v2725_v17 = vld [vmem:[#allocation6] sm:$0xf]  ;;  %v2750_v19 = vor.u32 %v3074_v13, %v2749_v12  ;;  %v3069_v20 = vld [vmem:[#allocation6 + $0xc] sm:$0xf0]  ;;  %v3067_v21 = vld [vmem:[#allocation6 + $0x4] sm:$0xf]  ;;  %v2754_v23 = vor.u32 %v3072_v14, %v2751_v15 }
  0x2f   :  { %457 = vmatpush.bf16.msra.mxu1 %v2778_v57  ;;  %v2727_v22 = vld [vmem:[#allocation6 + $0x10] sm:$0xf0]  ;;  %v2733_v24 = vld [vmem:[#allocation6 + $0x8] sm:$0xf]  ;;  %v3070_v25 = vld [vmem:[#allocation6 + $0x14] sm:$0xf0]  ;;  %v2726_v30 = vor.u32 %v3069_v20, %v2725_v17 }
  0x30   :  { %506 = vmatpush.bf16.msra.mxu2 %v2782_v58  ;;  %555 = vmatpush.bf16.msra.mxu3 %v2786_v62  ;;  %v3068_v26 = vld [vmem:[#allocation6 + $0xc] sm:$0xf]  ;;  %v2735_v27 = vld [vmem:[#allocation6 + $0x18] sm:$0xf0]  ;;  %v2965_v28 = vld [vmem:[#allocation8 + $0xe0] sm:$0xf]  ;;  %v2730_v33 = vor.u32 %v3067_v21, %v2727_v22  ;;  %v2734_v34 = vor.u32 %v3070_v25, %v2733_v24 }
  0x31   :  { %v3129_v29 = vld [vmem:[#allocation8 + $0xec] sm:$0xf0]  ;;  %v3127_v31 = vld [vmem:[#allocation8 + $0xe4] sm:$0xf]  ;;  %v2967_v32 = vld [vmem:[#allocation8 + $0xf0] sm:$0xf0]  ;;  %v2738_v36 = vor.u32 %v3068_v26, %v2735_v27 }
  0x32   :  { %409 = vmatpush.bf16.msra.mxu0 %v2758_v4  ;;  %v3059_v35 = vld [vmem:[#allocation3] sm:$0xff]  ;;  %v3803_v37 = vor.u32 %v3129_v29, %v2965_v28  ;;  %v3128_v38 = vld [vmem:[#allocation8 + $0xec] sm:$0xf]  ;;  %v2973_v39 = vld [vmem:[#allocation8 + $0xe8] sm:$0xf]  ;;  %v3805_v41 = vor.u32 %v3127_v31, %v2967_v32  ;;  %s3704_s6 = smov [#allocation13]  }
  0x33   :  { %458 = vmatpush.bf16.msra.mxu1 %v2762_v5  ;;  %v3130_v40 = vld [vmem:[#allocation8 + $0xf4] sm:$0xf0]  ;;  %v2975_v42 = vld [vmem:[#allocation8 + $0xf8] sm:$0xf0]  ;;  %v2949_v43 = vld [vmem:[#allocation8 + $0xc0] sm:$0xf] }
  0x34   :  { %507 = vmatpush.bf16.msra.mxu2 %v2766_v6  ;;  %556 = vmatpush.bf16.msra.mxu3 %v2770_v10  ;;  %v3125_v44 = vld [vmem:[#allocation8 + $0xcc] sm:$0xf0]  ;;  %v3123_v45 = vld [vmem:[#allocation8 + $0xc4] sm:$0xf]  ;;  %v2951_v46 = vld [vmem:[#allocation8 + $0xd0] sm:$0xf0]  ;;  %v3807_v47 = vor.u32 %v3130_v40, %v2973_v39  ;;  %v3810_v48 = vor.u32 %v3128_v38, %v2975_v42 }
  0x35   :  { %v3812_v49 = vor.u32 %v3125_v44, %v2949_v43  ;;  %v2957_v50 = vld [vmem:[#allocation8 + $0xc8] sm:$0xf]  ;;  %v3126_v51 = vld [vmem:[#allocation8 + $0xd4] sm:$0xf0]  ;;  %v3815_v52 = vor.u32 %v3123_v45, %v2951_v46  ;;  %v3124_v53 = vld [vmem:[#allocation8 + $0xcc] sm:$0xf] }
  0x36   :  { %410 = vmatpush.bf16.msra.mxu0 %v2742_v16  ;;  %v2959_v54 = vld [vmem:[#allocation8 + $0xd8] sm:$0xf0]  ;;  %v3818_v55 = vor.u32 %v3126_v51, %v2957_v50  ;;  %v2933_v56 = vld [vmem:[#allocation8 + $0xa0] sm:$0xf]  ;;  %v3121_v57 = vld [vmem:[#allocation8 + $0xac] sm:$0xf0] }
  0x37   :  { %459 = vmatpush.bf16.msra.mxu1 %v2746_v18  ;;  %v3119_v58 = vld [vmem:[#allocation8 + $0xa4] sm:$0xf]  ;;  %v3822_v59 = vor.u32 %v3124_v53, %v2959_v54  ;;  %v3824_v60 = vor.u32 %v3121_v57, %v2933_v56  ;;  %v2935_v61 = vld [vmem:[#allocation8 + $0xb0] sm:$0xf0]  ;;  %v3120_v62 = vld [vmem:[#allocation8 + $0xac] sm:$0xf] }
  0x38   :  { %508 = vmatpush.bf16.msra.mxu2 %v2750_v19  ;;  %557 = vmatpush.bf16.msra.mxu3 %v2754_v23  ;;  %v3827_v63 = vor.u32 %v3119_v58, %v2935_v61  ;;  %v2943_v0 = vld [vmem:[#allocation8 + $0xb8] sm:$0xf0]  ;;  %v2941_v1 = vld [vmem:[#allocation8 + $0xa8] sm:$0xf]  ;;  %v3122_v2 = vld [vmem:[#allocation8 + $0xb4] sm:$0xf0] }
  0x39   :  { %v3830_v3 = vor.u32 %v3122_v2, %v2941_v1  ;;  %v3834_v4 = vor.u32 %v3120_v62, %v2943_v0  ;;  %v3060_v5 = vld [vmem:[#allocation3 + $0x8] sm:$0xff]  ;;  %v2917_v6 = vld [vmem:[#allocation8 + $0x80] sm:$0xf]  ;;  %v3117_v7 = vld [vmem:[#allocation8 + $0x8c] sm:$0xf0]  ;;  %s2652_s10 = sshll.u32 %s3704_s6, 4  ;;  %s2653_s10 = int_to_ptr.vmem [resolvable:$true] %s2652_s10 }
  0x3a   :  { %411 = vmatpush.bf16.msra.mxu0 %v2726_v30  ;;  %v3115_v8 = vld [vmem:[#allocation8 + $0x84] sm:$0xf]  ;;  %v3839_v9 = vor.u32 %v3117_v7, %v2917_v6  ;;  %v2919_v10 = vld [vmem:[#allocation8 + $0x90] sm:$0xf0]  ;;  %v3116_v11 = vld [vmem:[#allocation8 + $0x8c] sm:$0xf] }
  0x3b   :  { %460 = vmatpush.bf16.msra.mxu1 %v2730_v33  ;;  %v2927_v12 = vld [vmem:[#allocation8 + $0x98] sm:$0xf0]  ;;  %v3841_v13 = vor.u32 %v3115_v8, %v2919_v10  ;;  %v2925_v15 = vld [vmem:[#allocation8 + $0x88] sm:$0xf]  ;;  %v3118_v16 = vld [vmem:[#allocation8 + $0x94] sm:$0xf0] }
  0x3c   :  { %509 = vmatpush.bf16.msra.mxu2 %v2734_v34  ;;  %558 = vmatpush.bf16.msra.mxu3 %v2738_v36  ;;  %v3843_v14 = vor.u32 %v3116_v11, %v2927_v12  ;;  %v3846_v17 = vor.u32 %v3118_v16, %v2925_v15  ;;  %v3061_v18 = vld [vmem:[#allocation3 + $0x10] sm:$0xff]  ;;  %v2901_v19 = vld [vmem:[#allocation8 + $0x60] sm:$0xf]  ;;  %v3111_v21 = vld [vmem:[#allocation8 + $0x64] sm:$0xf]  ;;  %s3705_s22 = smov [#allocation15]  }
  0x3d   :  { %412 = vmatmul.bf16.vlgmr.msra.gmra.mxu0 %v3059_v35  ;;  %v3113_v20 = vld [vmem:[#allocation8 + $0x6c] sm:$0xf0]  ;;  %v2903_v23 = vld [vmem:[#allocation8 + $0x70] sm:$0xf0]  ;;  %v3112_v24 = vld [vmem:[#allocation8 + $0x6c] sm:$0xf] }
  0x3e   :  { %802 = vmatpush.bf16.msrb.mxu0 %v3803_v37  ;;  %461 = vmatmul.bf16.vlgmr.msra.gmra.mxu1 %v3059_v35  ;;  %v3851_v22 = vor.u32 %v3113_v20, %v2901_v19  ;;  %v2911_v25 = vld [vmem:[#allocation8 + $0x78] sm:$0xf0]  ;;  %v3853_v26 = vor.u32 %v3111_v21, %v2903_v23  ;;  %v2909_v28 = vld [vmem:[#allocation8 + $0x68] sm:$0xf]  ;;  %v3114_v29 = vld [vmem:[#allocation8 + $0x74] sm:$0xf0] }
  0x3f   :  { %816 = vmatpush.bf16.msrb.mxu1 %v3805_v41  ;;  %510 = vmatmul.bf16.vlgmr.msra.gmra.mxu2 %v3059_v35  ;;  %v3855_v27 = vor.u32 %v3112_v24, %v2911_v25  ;;  %v3858_v30 = vor.u32 %v3114_v29, %v2909_v28  ;;  %v3062_v31 = vld [vmem:[#allocation3 + $0x18] sm:$0xff]  ;;  %v2885_v32 = vld [vmem:[#allocation8 + $0x40] sm:$0xf]  ;;  %v3109_v33 = vld [vmem:[#allocation8 + $0x4c] sm:$0xf0]  ;;  %s2665_s27 = sshll.u32 %s3705_s22, 4  ;;  %s2666_s27 = int_to_ptr.vmem [resolvable:$true] %s2665_s27 }
  0x40   :  { %559 = vmatmul.bf16.vlgmr.msra.gmra.mxu3 %v3059_v35  ;;  %830 = vmatpush.bf16.msrb.mxu2 %v3807_v47  ;;  %v3107_v34 = vld [vmem:[#allocation8 + $0x44] sm:$0xf]  ;;  %v3863_v35 = vor.u32 %v3109_v33, %v2885_v32  ;;  %v2887_v36 = vld [vmem:[#allocation8 + $0x50] sm:$0xf0]  ;;  %v3108_v38 = vld [vmem:[#allocation8 + $0x4c] sm:$0xf] }
  0x41   :  { %844 = vmatpush.bf16.msrb.mxu3 %v3810_v48  ;;  %v2895_v39 = vld [vmem:[#allocation8 + $0x58] sm:$0xf0]  ;;  %v3865_v40 = vor.u32 %v3107_v34, %v2887_v36  ;;  %v2893_v43 = vld [vmem:[#allocation8 + $0x48] sm:$0xf]  ;;  %v3110_v44 = vld [vmem:[#allocation8 + $0x54] sm:$0xf0] }
  0x42   :  { %803 = vmatpush.bf16.msrb.mxu0 %v3812_v49  ;;  %v3867_v42 = vor.u32 %v3108_v38, %v2895_v39  ;;  %v3870_v45 = vor.u32 %v3110_v44, %v2893_v43  ;;  %v3063_v46 = vld [vmem:[#allocation3 + $0x20] sm:$0xff]  ;;  %v3105_v51 = vld [vmem:[#allocation8 + $0x2c] sm:$0xf0]  ;;  %v2871_v56 = vld [vmem:[#allocation8 + $0x30] sm:$0xf0]  ;;  %v3702_v39 = vmov 0  }
  0x43   :  { %817 = vmatpush.bf16.msrb.mxu1 %v3815_v52  ;;  %v2869_v50 = vld [vmem:[#allocation8 + $0x20] sm:$0xf]  ;;  %v3103_v53 = vld [vmem:[#allocation8 + $0x24] sm:$0xf]  ;;  %v3104_v57 = vld [vmem:[#allocation8 + $0x2c] sm:$0xf]  ;;  %3190 = vset.pattern.permute.xlu1 %v3702_v39 }
  0x44   :  { %831 = vmatpush.bf16.msrb.mxu2 %v3818_v55  ;;  %v3875_v54 = vor.u32 %v3105_v51, %v2869_v50  ;;  %v2879_v58 = vld [vmem:[#allocation8 + $0x38] sm:$0xf0]  ;;  %v3877_v61 = vor.u32 %v3103_v53, %v2871_v56  ;;  %v2877_v0 = vld [vmem:[#allocation8 + $0x28] sm:$0xf]  ;;  %v3106_v1 = vld [vmem:[#allocation8 + $0x34] sm:$0xf0]  ;;  %3179 = vset.pattern.permute.xlu0 %v3702_v39 }
  0x45   :  { %845 = vmatpush.bf16.msrb.mxu3 %v3822_v59  ;;  %v3879_v62 = vor.u32 %v3104_v57, %v2879_v58  ;;  %v3882_v2 = vor.u32 %v3106_v1, %v2877_v0  ;;  %v2853_v6 = vld [vmem:[#allocation8] sm:$0xf]  ;;  %v3101_v7 = vld [vmem:[#allocation8 + $0xc] sm:$0xf0]  ;;  %v3099_v8 = vld [vmem:[#allocation8 + $0x4] sm:$0xf]  ;;  %3201 = vset.pattern.permute.xlu2 %v3702_v39 }
  0x46   :  { %804 = vmatpush.bf16.msrb.mxu0 %v3824_v60  ;;  %v3887_v10 = vor.u32 %v3101_v7, %v2853_v6  ;;  %v2855_v11 = vld [vmem:[#allocation8 + $0x10] sm:$0xf0]  ;;  %v3100_v12 = vld [vmem:[#allocation8 + $0xc] sm:$0xf]  ;;  %v2863_v15 = vld [vmem:[#allocation8 + $0x18] sm:$0xf0] }
  0x47   :  { %818 = vmatpush.bf16.msrb.mxu1 %v3827_v63  ;;  %v3889_v16 = vor.u32 %v3099_v8, %v2855_v11  ;;  %v3065_v19 = vld [vmem:[#allocation3 + $0x30] sm:$0xff]  ;;  %v2861_v20 = vld [vmem:[#allocation8 + $0x8] sm:$0xf]  ;;  %v3102_v21 = vld [vmem:[#allocation8 + $0x14] sm:$0xf0]  ;;  %v5045_v44 = vmov 0.0  }
  0x48   :  { %832 = vmatpush.bf16.msrb.mxu2 %v3830_v3  ;;  %v3902_v23 = vor.u32 %v3102_v21, %v2861_v20  ;;  %v3066_v24 = vld [vmem:[#allocation3 + $0x38] sm:$0xff]  ;;  %v128_v25 = vld [vmem:[%s5033_s3] sm:$0xff]  ;;  %v129_v28 = vld [vmem:[%s5033_s3 + $0x8] sm:$0xff]  ;;  %s2667_s3 = sshll.u32 %s5044_s14, 4  ;;  %s5275_s8 = sld [smem:[#allocation85_spill]]  ;;  %s2668_s3 = int_to_ptr.hbm [resolvable:$true] %s2667_s3 }
  0x49   :  { %846 = vmatpush.bf16.msrb.mxu3 %v3834_v4  ;;  %5091 = vst [vmem:[#allocation21_spill] sm:$0xff] %v3889_v16  ;;  %v641_v29 = vpack.c.bf16 %v129_v28, %v128_v25  ;;  %v3959_v43 = vld [vmem:[%s5030_s0 + $0x8] sm:$0xff]  ;;  %v3984_v0 = vld [vmem:[%s5030_s0] sm:$0xff] }
  0x4a   :  { %805 = vmatpush.bf16.msrb.mxu0 %v3839_v9  ;;  %5093 = vst [vmem:[#allocation23_spill] sm:$0xff] %v3902_v23  ;;  %vm3026_vm0 = vcmp.gt.s32.totalorder %v3959_v43, 4  ;;  %vm3036_vm1 = vcmp.gt.s32.totalorder %v3959_v43, 5  ;;  %vm2985_vm2 = vcmp.gt.s32.totalorder %v3984_v0, 0  ;;  %vm3046_vm3 = vcmp.gt.s32.totalorder %v3959_v43, 6 }
  0x4b   :  { %819 = vmatpush.bf16.msrb.mxu1 %v3841_v13  ;;  %5094 = vst [vmem:[#allocation24_spill] sm:$0xff] %v3959_v43  ;;  %v3038_v50 = vsel %vm3036_vm1, 1.0, %v5045_v44  ;;  %v2987_v1 = vsel %vm2985_vm2, 1.0, %v5045_v44  ;;  %vm2986_vm4 = vcmp.gt.s32.totalorder %v3959_v43, 0  ;;  %vm2996_vm5 = vcmp.gt.s32.totalorder %v3959_v43, 1 }
  0x4c   :  { %833 = vmatpush.bf16.msrb.mxu2 %v3846_v17  ;;  %5096 = vst [vmem:[#allocation26_spill] sm:$0xff] %v3984_v0  ;;  %vm2995_vm15 = vcmp.gt.s32.totalorder %v3984_v0, 1  ;;  %vm3056_vm1 = vcmp.gt.s32.totalorder %v3959_v43, 7  ;;  %v133_v0 = vld [vmem:[%s5034_s4 + $0x8] sm:$0xff] }
  0x4d   :  { %417 = vmatmul.bf16.gmra.mxu0 %v3060_v5  ;;  %847 = vmatpush.bf16.msrb.mxu3 %v3843_v14 }
  0x4e   :  { %466 = vmatmul.bf16.gmra.mxu1 %v3060_v5  ;;  %806 = vmatpush.bf16.msrb.mxu0 %v3851_v22 }
  0x4f   :  { %515 = vmatmul.bf16.gmra.mxu2 %v3060_v5  ;;  %820 = vmatpush.bf16.msrb.mxu1 %v3853_v26 }
  0x50   :  { %564 = vmatmul.bf16.gmra.mxu3 %v3060_v5  ;;  %834 = vmatpush.bf16.msrb.mxu2 %v3858_v30  ;;  %v3064_v5 = vld [vmem:[#allocation3 + $0x28] sm:$0xff] }
  0x51   :  { %848 = vmatpush.bf16.msrb.mxu3 %v3855_v27 }
  0x52   :  { %807 = vmatpush.bf16.msrb.mxu0 %v3863_v35 }
  0x53   :  { %821 = vmatpush.bf16.msrb.mxu1 %v3865_v40 }
  0x54   :  { %835 = vmatpush.bf16.msrb.mxu2 %v3870_v45 }
  0x55   :  { %849 = vmatpush.bf16.msrb.mxu3 %v3867_v42 }
  0x56   :  { %808 = vmatpush.bf16.msrb.mxu0 %v3875_v54 }
  0x57   :  { %822 = vmatpush.bf16.msrb.mxu1 %v3877_v61 }
  0x58   :  { %836 = vmatpush.bf16.msrb.mxu2 %v3882_v2 }
  0x59   :  { %850 = vmatpush.bf16.msrb.mxu3 %v3879_v62 }
  0x5a   :  { %809 = vmatpush.bf16.msrb.mxu0 %v3887_v10 }
  0x5b   :  { %823 = vmatpush.bf16.msrb.mxu1 %v3889_v16 }
  0x5c   :  { %837 = vmatpush.bf16.msrb.mxu2 %v3902_v23 }
  0x5d   :  { %422 = vmatmul.bf16.gmra.mxu0 %v3061_v18 }
  0x5e   :  { %471 = vmatmul.bf16.gmra.mxu1 %v3061_v18  ;;  %1015 = vmatpush.bf16.msra.mxu0 %v3803_v37 }
  0x5f   :  { %520 = vmatmul.bf16.gmra.mxu2 %v3061_v18  ;;  %1029 = vmatpush.bf16.msra.mxu1 %v3805_v41 }
  0x60   :  { %569 = vmatmul.bf16.gmra.mxu3 %v3061_v18  ;;  %v3891_v18 = vor.u32 %v3100_v12, %v2863_v15  ;;  %1043 = vmatpush.bf16.msra.mxu2 %v3807_v47  ;;  %v2988_v15 = vsel %vm2986_vm4, 1.0, %v5045_v44 }
  0x62   :  { %5092 = vst [vmem:[#allocation22_spill] sm:$0xff] %v3891_v18  ;;  %851 = vmatpush.bf16.msrb.mxu3 %v3891_v18  ;;  %1016 = vmatpush.bf16.msra.mxu0 %v3812_v49 }
  0x63   :  { %1030 = vmatpush.bf16.msra.mxu1 %v3815_v52 }
  0x64   :  { %1044 = vmatpush.bf16.msra.mxu2 %v3818_v55 }
  0x66   :  { %1057 = vmatpush.bf16.msra.mxu3 %v3810_v48  ;;  %1017 = vmatpush.bf16.msra.mxu0 %v3824_v60 }
  0x67   :  { %1031 = vmatpush.bf16.msra.mxu1 %v3827_v63 }
  0x68   :  { %1045 = vmatpush.bf16.msra.mxu2 %v3830_v3 }
  0x6a   :  { %1058 = vmatpush.bf16.msra.mxu3 %v3822_v59  ;;  %1018 = vmatpush.bf16.msra.mxu0 %v3839_v9 }
  0x6b   :  { %1032 = vmatpush.bf16.msra.mxu1 %v3841_v13 }
  0x6c   :  { %1046 = vmatpush.bf16.msra.mxu2 %v3846_v17 }
  0x6d   :  { %427 = vmatmul.bf16.gmra.mxu0 %v3062_v31 }
  0x6e   :  { %476 = vmatmul.bf16.gmra.mxu1 %v3062_v31  ;;  %1059 = vmatpush.bf16.msra.mxu3 %v3834_v4 }
  0x6f   :  { %525 = vmatmul.bf16.gmra.mxu2 %v3062_v31  ;;  %1019 = vmatpush.bf16.msra.mxu0 %v3851_v22 }
  0x70   :  { %574 = vmatmul.bf16.gmra.mxu3 %v3062_v31  ;;  %1033 = vmatpush.bf16.msra.mxu1 %v3853_v26 }
  0x71   :  { %1047 = vmatpush.bf16.msra.mxu2 %v3858_v30 }
  0x72   :  { %1060 = vmatpush.bf16.msra.mxu3 %v3843_v14 }
  0x73   :  { %1020 = vmatpush.bf16.msra.mxu0 %v3863_v35 }
  0x74   :  { %1034 = vmatpush.bf16.msra.mxu1 %v3865_v40 }
  0x75   :  { %1048 = vmatpush.bf16.msra.mxu2 %v3870_v45 }
  0x76   :  { %1061 = vmatpush.bf16.msra.mxu3 %v3855_v27 }
  0x77   :  { %1021 = vmatpush.bf16.msra.mxu0 %v3875_v54 }
  0x78   :  { %1035 = vmatpush.bf16.msra.mxu1 %v3877_v61 }
  0x79   :  { %1049 = vmatpush.bf16.msra.mxu2 %v3882_v2 }
  0x7a   :  { %1062 = vmatpush.bf16.msra.mxu3 %v3867_v42 }
  0x7b   :  { %1022 = vmatpush.bf16.msra.mxu0 %v3887_v10 }
  0x7c   :  { %1036 = vmatpush.bf16.msra.mxu1 %v3889_v16 }
  0x7d   :  { %432 = vmatmul.bf16.gmra.mxu0 %v3063_v46  ;;  %1050 = vmatpush.bf16.msra.mxu2 %v3902_v23 }
  0x7e   :  { %481 = vmatmul.bf16.gmra.mxu1 %v3063_v46  ;;  %1063 = vmatpush.bf16.msra.mxu3 %v3879_v62 }
  0x7f   :  { %530 = vmatmul.bf16.gmra.mxu2 %v3063_v46 }
  0x80   :  { %579 = vmatmul.bf16.gmra.mxu3 %v3063_v46  ;;  %v3028_v46 = vsel %vm3026_vm0, 1.0, %v5045_v44 }
  0x81   :  { %v3191_v53 = vpack.i.bf16 %v3038_v50, %v3028_v46 }
  0x82   :  { %1064 = vmatpush.bf16.msra.mxu3 %v3891_v18 }
  0x83   :  { %3192 = vperm.xlu1 %3190, %v3191_v53  }
  0x8d   :  { %437 = vmatmul.bf16.gmra.mxu0 %v3064_v5 }
  0x8e   :  { %486 = vmatmul.bf16.gmra.mxu1 %v3064_v5 }
  0x8f   :  { %535 = vmatmul.bf16.gmra.mxu2 %v3064_v5 }
  0x90   :  { %584 = vmatmul.bf16.gmra.mxu3 %v3064_v5  ;;  %v3048_v5 = vsel %vm3046_vm3, 1.0, %v5045_v44 }
  0x91   :  { %v3196_v7 = vpack.i.bf16 %v2987_v1, %v3048_v5 }
  0x93   :  { %3197 = vperm.xlu1 %3190, %v3196_v7  }
  0x9d   :  { %442 = vmatmul.bf16.gmra.mxu0 %v3065_v19 }
  0x9e   :  { %491 = vmatmul.bf16.gmra.mxu1 %v3065_v19 }
  0x9f   :  { %540 = vmatmul.bf16.gmra.mxu2 %v3065_v19 }
  0xa0   :  { %589 = vmatmul.bf16.gmra.mxu3 %v3065_v19  ;;  %v2998_v19 = vsel %vm2996_vm5, 1.0, %v5045_v44 }
  0xa1   :  { %v3180_v21 = vpack.i.bf16 %v2998_v19, %v2988_v15 }
  0xa3   :  { %3181 = vperm.xlu0 %3179, %v3180_v21  }
  0xad   :  { %447 = vmatmul.bf16.gmra.mxu0 %v3066_v24 }
  0xae   :  { %496 = vmatmul.bf16.gmra.mxu1 %v3066_v24 }
  0xaf   :  { %545 = vmatmul.bf16.gmra.mxu2 %v3066_v24 }
  0xb0   :  { %594 = vmatmul.bf16.gmra.mxu3 %v3066_v24 }
  0xba   :  { %v3937_v31 = vpop.f32.mrf.mxu0 }
  0xbb   :  { %v3939_v32 = vpop.f32.mrf.mxu1 }
  0xbd   :  { %810 = vmatmul.bf16.vlgmr.msrb.gmra.mxu0 %v641_v29 }
  0xbe   :  { %824 = vmatmul.bf16.vlgmr.msrb.gmra.mxu1 %v641_v29  ;;  %1228 = vmatpush.bf16.msrb.mxu0 %v3803_v37 }
  0xbf   :  { %838 = vmatmul.bf16.vlgmr.msrb.gmra.mxu2 %v641_v29  ;;  %1242 = vmatpush.bf16.msrb.mxu1 %v3805_v41 }
  0xc0   :  { %852 = vmatmul.bf16.vlgmr.msrb.gmra.mxu3 %v641_v29  ;;  %1256 = vmatpush.bf16.msrb.mxu2 %v3807_v47 }
  0xc1   :  { %1270 = vmatpush.bf16.msrb.mxu3 %v3810_v48 }
  0xc2   :  { %v3944_v33 = vpop.f32.mrf.mxu2  ;;  %v3949_v36 = vpop.f32.mrf.mxu0  ;;  %1229 = vmatpush.bf16.msrb.mxu0 %v3812_v49 }
  0xc3   :  { %v3947_v34 = vpop.f32.mrf.mxu3  ;;  %v3951_v38 = vpop.f32.mrf.mxu1  ;;  %1243 = vmatpush.bf16.msrb.mxu1 %v3815_v52 }
  0xc4   :  { %1257 = vmatpush.bf16.msrb.mxu2 %v3818_v55 }
  0xc5   :  { %1271 = vmatpush.bf16.msrb.mxu3 %v3822_v59 }
  0xc6   :  { %1230 = vmatpush.bf16.msrb.mxu0 %v3824_v60 }
  0xc7   :  { %1244 = vmatpush.bf16.msrb.mxu1 %v3827_v63 }
  0xc8   :  { %1258 = vmatpush.bf16.msrb.mxu2 %v3830_v3 }
  0xc9   :  { %1272 = vmatpush.bf16.msrb.mxu3 %v3834_v4 }
  0xca   :  { %v3969_v51 = vpop.f32.mrf.mxu2  ;;  %v3973_v57 = vpop.f32.mrf.mxu0  ;;  %1231 = vmatpush.bf16.msrb.mxu0 %v3839_v9 }
  0xcb   :  { %v3971_v56 = vpop.f32.mrf.mxu3  ;;  %v3976_v58 = vpop.f32.mrf.mxu1  ;;  %1245 = vmatpush.bf16.msrb.mxu1 %v3841_v13 }
  0xcc   :  { %5095 = vst [vmem:[#allocation25_spill] sm:$0xff] %v3976_v58  ;;  %1259 = vmatpush.bf16.msrb.mxu2 %v3846_v17 }
  0xcd   :  { %1273 = vmatpush.bf16.msrb.mxu3 %v3843_v14 }
  0xce   :  { %1232 = vmatpush.bf16.msrb.mxu0 %v3851_v22 }
  0xcf   :  { %1246 = vmatpush.bf16.msrb.mxu1 %v3853_v26 }
  0xd0   :  { %1260 = vmatpush.bf16.msrb.mxu2 %v3858_v30 }
  0xd1   :  { %1274 = vmatpush.bf16.msrb.mxu3 %v3855_v27 }
  0xd2   :  { %v3994_v6 = vpop.f32.mrf.mxu2  ;;  %v3998_v11 = vpop.f32.mrf.mxu0  ;;  %1233 = vmatpush.bf16.msrb.mxu0 %v3863_v35 }
  0xd3   :  { %5097 = vst [vmem:[#allocation27_spill] sm:$0xff] %v3994_v6  ;;  %v3996_v8 = vpop.f32.mrf.mxu3  ;;  %v4001_v12 = vpop.f32.mrf.mxu1  ;;  %1247 = vmatpush.bf16.msrb.mxu1 %v3865_v40 }
  0xd4   :  { %5098 = vst [vmem:[#allocation28_spill] sm:$0xff] %v3996_v8  ;;  %1261 = vmatpush.bf16.msrb.mxu2 %v3870_v45  ;;  %v132_v8 = vld [vmem:[%s5034_s4] sm:$0xff] }
  0xd5   :  { %5099 = vst [vmem:[#allocation29_spill] sm:$0xff] %v3998_v11  ;;  %1275 = vmatpush.bf16.msrb.mxu3 %v3867_v42 }
  0xd6   :  { %5100 = vst [vmem:[#allocation30_spill] sm:$0xff] %v4001_v12  ;;  %1234 = vmatpush.bf16.msrb.mxu0 %v3875_v54 }
  0xd7   :  { %1248 = vmatpush.bf16.msrb.mxu1 %v3877_v61 }
  0xd8   :  { %1262 = vmatpush.bf16.msrb.mxu2 %v3882_v2 }
  0xd9   :  { %1276 = vmatpush.bf16.msrb.mxu3 %v3879_v62 }
  0xda   :  { %v4014_v20 = vpop.f32.mrf.mxu2  ;;  %v4018_v25 = vpop.f32.mrf.mxu0  ;;  %1235 = vmatpush.bf16.msrb.mxu0 %v3887_v10 }
  0xdb   :  { %5101 = vst [vmem:[#allocation31_spill] sm:$0xff] %v4014_v20  ;;  %v4016_v24 = vpop.f32.mrf.mxu3  ;;  %v4021_v28 = vpop.f32.mrf.mxu1  ;;  %1249 = vmatpush.bf16.msrb.mxu1 %v3889_v16 }
  0xdc   :  { %5102 = vst [vmem:[#allocation32_spill] sm:$0xff] %v4016_v24  ;;  %1263 = vmatpush.bf16.msrb.mxu2 %v3902_v23 }
  0xdd   :  { %5103 = vst [vmem:[#allocation33_spill] sm:$0xff] %v4018_v25  ;;  %1277 = vmatpush.bf16.msrb.mxu3 %v3891_v18 }
  0xde   :  { %5104 = vst [vmem:[#allocation34_spill] sm:$0xff] %v4021_v28 }
  0xe2   :  { %v4027_v29 = vpop.f32.mrf.mxu2  ;;  %v4031_v46 = vpop.f32.mrf.mxu0 }
  0xe3   :  { %5105 = vst [vmem:[#allocation35_spill] sm:$0xff] %v4027_v29  ;;  %v4029_v39 = vpop.f32.mrf.mxu3  ;;  %v4033_v50 = vpop.f32.mrf.mxu1 }
  0xe4   :  { %5106 = vst [vmem:[#allocation36_spill] sm:$0xff] %v4029_v39 }
  0xe5   :  { %5107 = vst [vmem:[#allocation37_spill] sm:$0xff] %v4031_v46 }
  0xe6   :  { %5108 = vst [vmem:[#allocation38_spill] sm:$0xff] %v4033_v50 }
  0xea   :  { %v4035_v53 = vpop.f32.mrf.mxu2  ;;  %v4039_v5 = vpop.f32.mrf.mxu0 }
  0xeb   :  { %5109 = vst [vmem:[#allocation39_spill] sm:$0xff] %v4035_v53  ;;  %v4037_v1 = vpop.f32.mrf.mxu3  ;;  %v4041_v7 = vpop.f32.mrf.mxu1 }
  0xec   :  { %5110 = vst [vmem:[#allocation40_spill] sm:$0xff] %v4037_v1 }
  0xed   :  { %5111 = vst [vmem:[#allocation41_spill] sm:$0xff] %v4039_v5 }
  0xee   :  { %5112 = vst [vmem:[#allocation42_spill] sm:$0xff] %v4041_v7 }
  0xf2   :  { %v4043_v15 = vpop.f32.mrf.mxu2  ;;  %v4047_v21 = vpop.f32.mrf.mxu0 }
  0xf3   :  { %5113 = vst [vmem:[#allocation43_spill] sm:$0xff] %v4043_v15  ;;  %v4045_v19 = vpop.f32.mrf.mxu3  ;;  %v4049_v44 = vpop.f32.mrf.mxu1 }
  0xf4   :  { %5114 = vst [vmem:[#allocation44_spill] sm:$0xff] %v4045_v19 }
  0xf5   :  { %5115 = vst [vmem:[#allocation45_spill] sm:$0xff] %v4047_v21 }
  0xf6   :  { %5116 = vst [vmem:[#allocation46_spill] sm:$0xff] %v4049_v44 }
  0xfa   :  { %v4051_v29 = vpop.f32.mrf.mxu2  ;;  %v4055_v50 = vpop.f32.mrf.mxu0 }
  0xfb   :  { %5117 = vst [vmem:[#allocation47_spill] sm:$0xff] %v4051_v29  ;;  %v4053_v46 = vpop.f32.mrf.mxu3  ;;  %v4057_v53 = vpop.f32.mrf.mxu1 }
  0xfc   :  { %5118 = vst [vmem:[#allocation48_spill] sm:$0xff] %v4053_v46 }
  0xfd   :  { %5119 = vst [vmem:[#allocation49_spill] sm:$0xff] %v4055_v50 }
  0xfe   :  { %5120 = vst [vmem:[#allocation50_spill] sm:$0xff] %v4057_v53 }
 0x102   :  { %v4059_v1 = vpop.f32.mrf.mxu2  ;;  %v4063_v7 = vpop.f32.mrf.mxu0 }
 0x103   :  { %5121 = vst [vmem:[#allocation51_spill] sm:$0xff] %v4059_v1  ;;  %v4061_v5 = vpop.f32.mrf.mxu3  ;;  %v4065_v15 = vpop.f32.mrf.mxu1 }
 0x104   :  { %5122 = vst [vmem:[#allocation52_spill] sm:$0xff] %v4061_v5 }
 0x105   :  { %5123 = vst [vmem:[#allocation53_spill] sm:$0xff] %v4063_v7 }
 0x106   :  { %5124 = vst [vmem:[#allocation54_spill] sm:$0xff] %v4065_v15 }
 0x10a   :  { %v4067_v19 = vpop.f32.mrf.mxu2  ;;  %v4071_v44 = vpop.f32.mrf.mxu0 }
 0x10b   :  { %5125 = vst [vmem:[#allocation55_spill] sm:$0xff] %v4067_v19  ;;  %v4069_v21 = vpop.f32.mrf.mxu3  ;;  %v4073_v29 = vpop.f32.mrf.mxu1 }
 0x10c   :  { %5126 = vst [vmem:[#allocation56_spill] sm:$0xff] %v4069_v21 }
 0x10d   :  { %5127 = vst [vmem:[#allocation57_spill] sm:$0xff] %v4071_v44 }
 0x10e   :  { %5128 = vst [vmem:[#allocation58_spill] sm:$0xff] %v4073_v29 }
 0x112   :  { %v4075_v46 = vpop.f32.mrf.mxu2  ;;  %v4079_v53 = vpop.f32.mrf.mxu0 }
 0x113   :  { %5129 = vst [vmem:[#allocation59_spill] sm:$0xff] %v4075_v46  ;;  %v4077_v50 = vpop.f32.mrf.mxu3  ;;  %v4081_v1 = vpop.f32.mrf.mxu1 }
 0x114   :  { %5130 = vst [vmem:[#allocation60_spill] sm:$0xff] %v4077_v50 }
 0x115   :  { %5131 = vst [vmem:[#allocation61_spill] sm:$0xff] %v4079_v53 }
 0x116   :  { %5132 = vst [vmem:[#allocation62_spill] sm:$0xff] %v4081_v1 }
 0x11a   :  { %v4083_v5 = vpop.f32.mrf.mxu2  ;;  %v4087_v15 = vpop.f32.mrf.mxu0 }
 0x11b   :  { %5133 = vst [vmem:[#allocation63_spill] sm:$0xff] %v4083_v5  ;;  %v4085_v7 = vpop.f32.mrf.mxu3  ;;  %v4089_v19 = vpop.f32.mrf.mxu1 }
 0x11c   :  { %5134 = vst [vmem:[#allocation64_spill] sm:$0xff] %v4085_v7 }
 0x11d   :  { %5135 = vst [vmem:[#allocation65_spill] sm:$0xff] %v4087_v15 }
 0x11e   :  { %5136 = vst [vmem:[#allocation66_spill] sm:$0xff] %v4089_v19  ;;  %v186_v19 = vld [vmem:[%s5037_s7] sm:$0xf]  ;;  %s2641_s7 = sshll.u32 %s5275_s8, 4  ;;  %s2642_s7 = int_to_ptr.hbm [resolvable:$true] %s2641_s7 }
 0x11f   :  { %v4128_v28 = vperm.slane %v186_v19, 3  ;;  %v4138_v6 = vperm.slane %v186_v19, 2 }
 0x121   :  { %5152 = vst [vmem:[#allocation82_spill] sm:$0xff] %v4128_v28 }
 0x122   :  { %v4091_v21 = vpop.f32.mrf.mxu2  ;;  %v4095_v29 = vpop.f32.mrf.mxu0  ;;  %5154 = vst [vmem:[#allocation84_spill] sm:$0xff] %v4138_v6 }
 0x123   :  { %5137 = vst [vmem:[#allocation67_spill] sm:$0xff] %v4091_v21  ;;  %v4093_v44 = vpop.f32.mrf.mxu3  ;;  %v4097_v46 = vpop.f32.mrf.mxu1 }
 0x124   :  { %5138 = vst [vmem:[#allocation68_spill] sm:$0xff] %v4093_v44 }
 0x125   :  { %5139 = vst [vmem:[#allocation69_spill] sm:$0xff] %v4095_v29  ;;  %v4116_v29 = vperm.slane %v186_v19, 0 }
 0x126   :  { %5140 = vst [vmem:[#allocation70_spill] sm:$0xff] %v4097_v46  ;;  %v4118_v46 = vperm.slane %v186_v19, 1 }
 0x127   :  { %5148 = vst [vmem:[#allocation78_spill] sm:$0xff] %v4116_v29 }
 0x128   :  { %5149 = vst [vmem:[#allocation79_spill] sm:$0xff] %v4118_v46 }
 0x12a   :  { %v4101_v53 = vpop.f32.mrf.mxu0  ;;  %v4105_v5 = vpop.f32.mrf.mxu2 }
 0x12b   :  { %v4099_v50 = vpop.f32.mrf.mxu3  ;;  %5142 = vst [vmem:[#allocation72_spill] sm:$0xff] %v4101_v53  ;;  %v4103_v1 = vpop.f32.mrf.mxu1  ;;  %v463_v53 = vadd.f32 %v3939_v32, %v4118_v46  ;;  %v416_v32 = vadd.f32 %v3949_v36, %v4116_v29  ;;  %v563_v36 = vadd.f32 %v3971_v56, %v4128_v28 }
 0x12c   :  { %5141 = vst [vmem:[#allocation71_spill] sm:$0xff] %v4099_v50 }
 0x12d   :  { %5143 = vst [vmem:[#allocation73_spill] sm:$0xff] %v4103_v1  ;;  %v414_v1 = vadd.f32 %v3937_v31, %v4116_v29  ;;  %v561_v31 = vadd.f32 %v3947_v34, %v4128_v28 }
 0x12e   :  { %5144 = vst [vmem:[#allocation74_spill] sm:$0xff] %v4105_v5 }
 0x132   :  { %v4112_v21 = vpop.f32.mrf.mxu0  ;;  %v4120_v50 = vpop.f32.mrf.mxu2 }
 0x133   :  { %v4110_v15 = vpop.f32.mrf.mxu3  ;;  %5146 = vst [vmem:[#allocation76_spill] sm:$0xff] %v4112_v21  ;;  %v4114_v44 = vpop.f32.mrf.mxu1 }
 0x134   :  { %5145 = vst [vmem:[#allocation75_spill] sm:$0xff] %v4110_v15 }
 0x135   :  { %5147 = vst [vmem:[#allocation77_spill] sm:$0xff] %v4114_v44 }
 0x136   :  { %5150 = vst [vmem:[#allocation80_spill] sm:$0xff] %v4120_v50 }
 0x13a   :  { %v811_v7 = vpop.f32.mrf.mxu0  ;;  %v4130_v20 = vpop.f32.mrf.mxu2 }
 0x13b   :  { %v4126_v5 = vpop.f32.mrf.mxu3  ;;  %v858_v15 = vadd.f32 %v811_v7, %v414_v1  ;;  %v825_v39 = vpop.f32.mrf.mxu1  ;;  %5153 = vst [vmem:[#allocation83_spill] sm:$0xff] %v4130_v20 }
 0x13c   :  { %5151 = vst [vmem:[#allocation81_spill] sm:$0xff] %v4126_v5  ;;  %v859_v21 = vadd.f32 %v825_v39, %v463_v53  ;;  %v465_v5 = vadd.f32 %v3951_v38, %v4118_v46 }
 0x13d   :  { %v2979_v44 = vmul.f32 -1.442695, %v858_v15 }
 0x13e   :  { %v2981_v25 = vmul.f32 -1.442695, %v859_v21 }
 0x13f   :  { %3224 = vpow2.f32 %v2979_v44 }
 0x140   :  { %3226 = vpow2.f32 %v2981_v25 }
 0x142   :  { %v813_v7 = vpop.f32.mrf.mxu0  ;;  %v839_v38 = vpop.f32.mrf.mxu2 }
 0x143   :  { %v853_v1 = vpop.f32.mrf.mxu3  ;;  %v862_v53 = vadd.f32 %v813_v7, %v416_v32  ;;  %v827_v50 = vpop.f32.mrf.mxu1 }
 0x144   :  { %v861_v39 = vadd.f32 %v853_v1, %v561_v31  ;;  %v863_v15 = vadd.f32 %v827_v50, %v465_v5  ;;  %v512_v50 = vadd.f32 %v3944_v33, %v4138_v6 }
 0x145   :  { %v3225_v21 = vpop.eup %3224  ;;  %v2980_v25 = vmul.f32 -1.442695, %v862_v53 }
 0x146   :  { %v2983_v44 = vmul.f32 -1.442695, %v861_v39  ;;  %v3227_v24 = vpop.eup %3226  ;;  %v872_v20 = vadd.f32 1.0, %v3225_v21  ;;  %v2982_v12 = vmul.f32 -1.442695, %v863_v15  ;;  %v860_v1 = vadd.f32 %v839_v38, %v512_v50 }
 0x147   :  { %v910_v34 = vadd.f32 1.0, %v3227_v24 }
 0x148   :  { %3228 = vpow2.f32 %v2983_v44  ;;  %vm879_vm8 = vweird.f32 %v872_v20 }
 0x149   :  { %3230 = vrcp.f32 %v872_v20  ;;  %v923_v38 = vand.u32 2147483648, %v910_v34  ;;  %vm917_vm9 = vweird.f32 %v910_v34 }
 0x14a   :  { %3232 = vrcp.f32 %v910_v34 }
 0x14b   :  { %3234 = vpow2.f32 %v2980_v25  ;;  %v855_v31 = vpop.f32.mrf.mxu3  ;;  %v883_v25 = vand.u32 2147483647, %v872_v20 }
 0x14c   :  { %3236 = vpow2.f32 %v2982_v12  ;;  %v865_v5 = vadd.f32 %v855_v31, %v563_v36  ;;  %v885_v12 = vand.u32 2147483648, %v872_v20 }
 0x14d   :  { %vm884_vm12 = vcmp.eq.f32.partialorder %v883_v25, 8.507059e+37 }
 0x14e   :  { %v3229_v32 = vpop.eup %3228  ;;  %v2984_v19 = vmul.f32 -1.442695, %v865_v5  ;;  %v921_v5 = vand.u32 2147483647, %v910_v34 }
 0x14f   :  { %v3231_v7 = vpop.eup %3230  ;;  %v4144_v24 = vadd.f32 1.0, %v3229_v32  ;;  %v841_v32 = vpop.f32.mrf.mxu2 }
 0x150   :  { %v3233_v39 = vpop.eup %3232  ;;  %v875_v53 = vmul.f32 %v3231_v7, %v872_v20  ;;  %3238 = vpow2.f32 %v2984_v19  ;;  %vm880_vm6 = vweird.f32 %v3231_v7  ;;  %v514_v19 = vadd.f32 %v3969_v51, %v4138_v6 }
 0x151   :  { %v3235_v15 = vpop.eup %3234  ;;  %v913_v56 = vmul.f32 %v3233_v39, %v910_v34  ;;  %3240 = vtanh.f32 %v860_v1  ;;  %vm918_vm7 = vweird.f32 %v3233_v39  ;;  %vm881_vm10 = vmor %vm879_vm8, %vm880_vm6  ;;  %vm922_vm13 = vcmp.eq.f32.partialorder %v921_v5, 8.507059e+37 }
 0x152   :  { %v3237_v21 = vpop.eup %3236  ;;  %v876_v44 = vsub.f32 1.0, %v875_v53  ;;  %v4146_v11 = vadd.f32 1.0, %v3235_v15  ;;  %3242 = vrcp.f32 %v4144_v24  ;;  %v886_v15 = vor.u32 1.1754944e-38, %v885_v12  ;;  %vm919_vm11 = vmor %vm917_vm9, %vm918_vm7 }
 0x153   :  { %v914_v33 = vsub.f32 1.0, %v913_v56  ;;  %v4149_v36 = vadd.f32 1.0, %v3237_v21  ;;  %v864_v58 = vadd.f32 %v841_v32, %v514_v19 }
 0x154   :  { %v877_v31 = vmul.f32 %v3231_v7, %v876_v44  ;;  %3244 = vrcp.f32 %v4146_v11  ;;  %vm894_vm14 = vweird.f32 %v4146_v11  ;;  %v900_v32 = vand.u32 2147483648, %v4146_v11 }
 0x155   :  { %v915_v50 = vmul.f32 %v3233_v39, %v914_v33  ;;  %3246 = vrcp.f32 %v4149_v36  ;;  %v924_v33 = vor.u32 1.1754944e-38, %v923_v38  ;;  %v938_v5 = vand.u32 2147483648, %v4149_v36 }
 0x156   :  { %v3239_v1 = vpop.eup %3238  ;;  %v878_v53 = vadd.f32 %v3231_v7, %v877_v31  ;;  %vm932_vm3 = vweird.f32 %v4149_v36 }
 0x157   :  { %v916_v56 = vadd.f32 %v3233_v39, %v915_v50  ;;  %v4155_v21 = vadd.f32 1.0, %v3239_v1  ;;  %v3241_v44 = vpop.eup %3240 }
 0x158   :  { %v882_v28 = vsel %vm881_vm10, %v3231_v7, %v878_v53  ;;  %v4160_v46 = vpop.eup %3242  ;;  %vm957_vm10 = vweird.f32 %v4144_v24 }
 0x159   :  { %v887_v51 = vsel %vm884_vm12, %v886_v15, %v882_v28  ;;  %v920_v20 = vsel %vm919_vm11, %v3233_v39, %v916_v56  ;;  %3248 = vrcp.f32 %v4155_v21  ;;  %v953_v28 = vmul.f32 %v4160_v46, %v4144_v24 }
 0x15a   :  { %v3245_v34 = vpop.eup %3244  ;;  %v925_v12 = vsel %vm922_vm13, %v924_v33, %v920_v20  ;;  %v984_v31 = vmul.f32 %v3241_v44, %v887_v51  ;;  %3250 = vtanh.f32 %v864_v58  ;;  %v5155_v15 = vmov 0.0  }
 0x15b   :  { %v3247_v50 = vpop.eup %3246  ;;  %v982_v1 = vmul.f32 %v925_v12, %v132_v8  ;;  %v890_v38 = vmul.f32 %v3245_v34, %v4146_v11  ;;  %v898_v8 = vand.u32 2147483647, %v4146_v11  ;;  %vm895_vm0 = vweird.f32 %v3245_v34 }
 0x15c   :  { %v928_v6 = vmul.f32 %v3247_v50, %v4149_v36  ;;  %v2997_v58 = vsel %vm2995_vm15, 1.0, %v5155_v15  ;;  %vm933_vm2 = vweird.f32 %v3247_v50  ;;  %v936_v44 = vand.u32 2147483647, %v4149_v36  ;;  %vm896_vm4 = vmor %vm894_vm14, %vm895_vm0 }
 0x15d   :  { %v4166_v7 = vadd.f32 %v984_v31, %v982_v1  ;;  %v891_v39 = vsub.f32 1.0, %v890_v38  ;;  %v3058_v20 = vsel %vm3056_vm1, 1.0, %v5155_v15  ;;  %v901_v31 = vor.u32 1.1754944e-38, %v900_v32  ;;  %vm934_vm5 = vmor %vm932_vm3, %vm933_vm2 }
 0x15e   :  { %v929_v25 = vsub.f32 1.0, %v928_v6  ;;  %v954_v6 = vsub.f32 1.0, %v953_v28  ;;  %vm899_vm6 = vcmp.eq.f32.partialorder %v898_v8, 8.507059e+37  ;;  %vm937_vm7 = vcmp.eq.f32.partialorder %v936_v44, 8.507059e+37 }
 0x15f   :  { %v3249_v19 = vpop.eup %3248  ;;  %v892_v53 = vmul.f32 %v3245_v34, %v891_v39  ;;  %v3202_v39 = vpack.i.bf16 %v3058_v20, %v2997_v58  ;;  %3252 = vtanh.f32 %v4166_v7  ;;  %vm958_vm8 = vweird.f32 %v4160_v46 }
 0x160   :  { %v930_v56 = vmul.f32 %v3247_v50, %v929_v25  ;;  %v968_v33 = vmul.f32 %v3249_v19, %v4155_v21  ;;  %v3251_v12 = vpop.eup %3250  ;;  %v939_v25 = vor.u32 1.1754944e-38, %v938_v5  ;;  %v955_v11 = vmul.f32 %v4160_v46, %v954_v6  ;;  %vm959_vm11 = vmor %vm957_vm10, %vm958_vm8 }
 0x161   :  { %v893_v51 = vadd.f32 %v3245_v34, %v892_v53  ;;  %3203 = vperm.xlu2 %3201, %v3202_v39   ;;  %vm973_vm9 = vweird.f32 %v3249_v19  ;;  %v978_v8 = vand.u32 2147483648, %v4155_v21  ;;  %vm972_vm12 = vweird.f32 %v4155_v21 }
 0x162   :  { %v931_v1 = vadd.f32 %v3247_v50, %v930_v56  ;;  %v969_v38 = vsub.f32 1.0, %v968_v33  ;;  %v956_v5 = vadd.f32 %v4160_v46, %v955_v11  ;;  %vm974_vm13 = vmor %vm972_vm12, %vm973_vm9 }
 0x163   :  { %v897_v28 = vsel %vm896_vm4, %v3245_v34, %v893_v51  ;;  %v979_v51 = vor.u32 1.1754944e-38, %v978_v8 }
 0x164   :  { %v902_v36 = vsel %vm899_vm6, %v901_v31, %v897_v28  ;;  %v935_v53 = vsel %vm934_vm5, %v3247_v50, %v931_v1  ;;  %v970_v32 = vmul.f32 %v3249_v19, %v969_v38  ;;  %v963_v50 = vand.u32 2147483648, %v4144_v24 }
 0x165   :  { %v940_v15 = vsel %vm937_vm7, %v939_v25, %v935_v53  ;;  %v985_v43 = vmul.f32 %v3251_v12, %v902_v36  ;;  %v3253_v33 = vpop.eup %3252 }
 0x166   :  { %v983_v56 = vmul.f32 %v940_v15, %v133_v0  ;;  %v971_v34 = vadd.f32 %v3249_v19, %v970_v32  ;;  %v961_v0 = vand.u32 2147483647, %v4144_v24  ;;  %v960_v15 = vsel %vm959_vm11, %v4160_v46, %v956_v5  ;;  %v5159_v5 = vld [vmem:[#allocation28_spill] sm:$0xff] }
 0x167   :  { %v964_v6 = vor.u32 1.1754944e-38, %v963_v50  ;;  %v419_v46 = vadd.f32 %v3973_v57, %v4116_v29  ;;  %v5160_v50 = vld [vmem:[#allocation29_spill] sm:$0xff] }
 0x168   :  { %v4187_v58 = vadd.f32 %v985_v43, %v983_v56  ;;  %v976_v43 = vand.u32 2147483647, %v4155_v21  ;;  %v975_v44 = vsel %vm974_vm13, %v3249_v19, %v971_v34  ;;  %vm962_vm14 = vcmp.eq.f32.partialorder %v961_v0, 8.507059e+37  ;;  %v5156_v21 = vld [vmem:[#allocation79_spill] sm:$0xff]  ;;  %v5157_v19 = vld [vmem:[#allocation25_spill] sm:$0xff]  ;;  %v5158_v56 = vld [vmem:[#allocation82_spill] sm:$0xff] }
 0x169   :  { %v965_v12 = vsel %vm962_vm14, %v964_v6, %v960_v15  ;;  %v468_v39 = vadd.f32 %v5157_v19, %v5156_v21  ;;  %v566_v34 = vadd.f32 %v5159_v5, %v5158_v56  ;;  %v421_v8 = vadd.f32 %v5160_v50, %v4116_v29  ;;  %v5161_v0 = vld [vmem:[#allocation30_spill] sm:$0xff] }
 0x16a   :  { %3254 = vtanh.f32 %v4187_v58  ;;  %vm977_vm15 = vcmp.eq.f32.partialorder %v976_v43, 8.507059e+37  ;;  %v4199_v1 = vmul.f32 %v3253_v33, %v965_v12  ;;  %v470_v57 = vadd.f32 %v5161_v0, %v5156_v21 }
 0x16b   :  { %v980_v31 = vsel %vm977_vm15, %v979_v51, %v975_v44 }
 0x170   :  { %v3255_v20 = vpop.eup %3254 }
 0x171   :  { %v4201_v38 = vmul.f32 %v3255_v20, %v980_v31 }
 0x173   :  { %v1014_v24 = vpack.c.bf16 %v4201_v38, %v4199_v1 }
 0x175   :  { %1023 = vmatmul.bf16.vlgmr.msra.gmra.mxu0 %v1014_v24  ;;  %1037 = vmatmul.bf16.vlgmr.msra.gmra.mxu1 %v1014_v24 }
 0x176   :  { %1051 = vmatmul.bf16.vlgmr.msra.gmra.mxu2 %v1014_v24  ;;  %1065 = vmatmul.bf16.vlgmr.msra.gmra.mxu3 %v1014_v24 }
 0x177   :  { %1441 = vmatpush.bf16.msra.mxu0 %v3803_v37  ;;  %1455 = vmatpush.bf16.msra.mxu1 %v3805_v41 }
 0x178   :  { %1469 = vmatpush.bf16.msra.mxu2 %v3807_v47  ;;  %1483 = vmatpush.bf16.msra.mxu3 %v3810_v48 }
 0x17b   :  { %1442 = vmatpush.bf16.msra.mxu0 %v3812_v49  ;;  %1456 = vmatpush.bf16.msra.mxu1 %v3815_v52 }
 0x17c   :  { %1470 = vmatpush.bf16.msra.mxu2 %v3818_v55  ;;  %1484 = vmatpush.bf16.msra.mxu3 %v3822_v59 }
 0x17f   :  { %1443 = vmatpush.bf16.msra.mxu0 %v3824_v60  ;;  %1457 = vmatpush.bf16.msra.mxu1 %v3827_v63 }
 0x180   :  { %1471 = vmatpush.bf16.msra.mxu2 %v3830_v3  ;;  %1485 = vmatpush.bf16.msra.mxu3 %v3834_v4 }
 0x183   :  { %1444 = vmatpush.bf16.msra.mxu0 %v3839_v9  ;;  %1458 = vmatpush.bf16.msra.mxu1 %v3841_v13 }
 0x184   :  { %1472 = vmatpush.bf16.msra.mxu2 %v3846_v17  ;;  %1486 = vmatpush.bf16.msra.mxu3 %v3843_v14 }
 0x187   :  { %1445 = vmatpush.bf16.msra.mxu0 %v3851_v22  ;;  %1459 = vmatpush.bf16.msra.mxu1 %v3853_v26 }
 0x188   :  { %1473 = vmatpush.bf16.msra.mxu2 %v3858_v30  ;;  %1487 = vmatpush.bf16.msra.mxu3 %v3855_v27 }
 0x18b   :  { %1446 = vmatpush.bf16.msra.mxu0 %v3863_v35  ;;  %1460 = vmatpush.bf16.msra.mxu1 %v3865_v40 }
 0x18c   :  { %1474 = vmatpush.bf16.msra.mxu2 %v3870_v45  ;;  %1488 = vmatpush.bf16.msra.mxu3 %v3867_v42 }
 0x18f   :  { %1447 = vmatpush.bf16.msra.mxu0 %v3875_v54  ;;  %1461 = vmatpush.bf16.msra.mxu1 %v3877_v61 }
 0x190   :  { %1475 = vmatpush.bf16.msra.mxu2 %v3882_v2  ;;  %1489 = vmatpush.bf16.msra.mxu3 %v3879_v62 }
 0x193   :  { %1448 = vmatpush.bf16.msra.mxu0 %v3887_v10  ;;  %1462 = vmatpush.bf16.msra.mxu1 %v3889_v16 }
 0x194   :  { %1476 = vmatpush.bf16.msra.mxu2 %v3902_v23  ;;  %1490 = vmatpush.bf16.msra.mxu3 %v3891_v18 }
 0x1f2   :  { %v1024_v25 = vpop.f32.mrf.mxu0  ;;  %v1038_v28 = vpop.f32.mrf.mxu1 }
 0x1f3   :  { %v1071_v36 = vadd.f32 %v1024_v25, %v419_v46  ;;  %v1072_v53 = vadd.f32 %v1038_v28, %v468_v39  ;;  %v5162_v28 = vld [vmem:[#allocation84_spill] sm:$0xff] }
 0x1f5   :  { %v2989_v11 = vmul.f32 -1.442695, %v1071_v36  ;;  %v2991_v32 = vmul.f32 -1.442695, %v1072_v53  ;;  %v5163_v36 = vld [vmem:[#allocation27_spill] sm:$0xff] }
 0x1f6   :  { %v517_v53 = vadd.f32 %v5163_v36, %v5162_v28 }
 0x1f7   :  { %3256 = vpow2.f32 %v2989_v11  ;;  %v5164_v11 = vld [vmem:[#allocation32_spill] sm:$0xff] }
 0x1f8   :  { %3258 = vpow2.f32 %v2991_v32  ;;  %v568_v32 = vadd.f32 %v5164_v11, %v5158_v56 }
 0x1f9   :  { %v1066_v43 = vpop.f32.mrf.mxu3  ;;  %v1052_v20 = vpop.f32.mrf.mxu2 }
 0x1fa   :  { %v1074_v15 = vadd.f32 %v1066_v43, %v566_v34  ;;  %v1026_v44 = vpop.f32.mrf.mxu0  ;;  %v1040_v33 = vpop.f32.mrf.mxu1  ;;  %v1073_v34 = vadd.f32 %v1052_v20, %v517_v53 }
 0x1fb   :  { %v1075_v6 = vadd.f32 %v1026_v44, %v421_v8  ;;  %v1076_v51 = vadd.f32 %v1040_v33, %v470_v57 }
 0x1fc   :  { %v2993_v12 = vmul.f32 -1.442695, %v1074_v15 }
 0x1fd   :  { %v3257_v31 = vpop.eup %3256  ;;  %v2990_v24 = vmul.f32 -1.442695, %v1075_v6  ;;  %v2992_v39 = vmul.f32 -1.442695, %v1076_v51 }
 0x1fe   :  { %v3259_v46 = vpop.eup %3258  ;;  %v1085_v19 = vadd.f32 1.0, %v3257_v31  ;;  %3260 = vpow2.f32 %v2993_v12  ;;  %v5165_v12 = vld [vmem:[#allocation31_spill] sm:$0xff] }
 0x1ff   :  { %v1123_v25 = vadd.f32 1.0, %v3259_v46  ;;  %3262 = vpow2.f32 %v2990_v24  ;;  %v519_v31 = vadd.f32 %v5165_v12, %v5162_v28 }
 0x200   :  { %3264 = vrcp.f32 %v1085_v19  ;;  %v1096_v15 = vand.u32 2147483647, %v1085_v19  ;;  %v1098_v46 = vand.u32 2147483648, %v1085_v19  ;;  %vm1092_vm0 = vweird.f32 %v1085_v19 }
 0x201   :  { %3266 = vrcp.f32 %v1123_v25  ;;  %v1068_v5 = vpop.f32.mrf.mxu3  ;;  %v1054_v33 = vpop.f32.mrf.mxu2  ;;  %v1136_v36 = vand.u32 2147483648, %v1123_v25  ;;  %v1134_v53 = vand.u32 2147483647, %v1123_v25  ;;  %vm1130_vm1 = vweird.f32 %v1123_v25 }
 0x202   :  { %3268 = vpow2.f32 %v2992_v39  ;;  %v1078_v50 = vadd.f32 %v1068_v5, %v568_v32  ;;  %v1077_v5 = vadd.f32 %v1054_v33, %v519_v31  ;;  %vm4261_vm2 = vcmp.eq.f32.partialorder %v1096_v15, 8.507059e+37 }
 0x203   :  { %3270 = vtanh.f32 %v1073_v34  ;;  %vm4266_vm5 = vcmp.eq.f32.partialorder %v1134_v53, 8.507059e+37 }
 0x204   :  { %v3261_v8 = vpop.eup %3260  ;;  %v2994_v6 = vmul.f32 -1.442695, %v1078_v50 }
 0x205   :  { %v3263_v0 = vpop.eup %3262  ;;  %v4251_v57 = vadd.f32 1.0, %v3261_v8 }
 0x206   :  { %v3265_v43 = vpop.eup %3264  ;;  %v4253_v44 = vadd.f32 1.0, %v3263_v0  ;;  %v1099_v0 = vor.u32 1.1754944e-38, %v1098_v46  ;;  %v4274_v46 = vpop.permute.xlu1 %3192 }
 0x207   :  { %v3267_v51 = vpop.eup %3266  ;;  %v1088_v24 = vmul.f32 %v3265_v43, %v1085_v19  ;;  %3272 = vrcp.f32 %v4251_v57  ;;  %vm1093_vm3 = vweird.f32 %v3265_v43  ;;  %5170 = vst [vmem:[#allocation25_spill] sm:$0xff] %v4274_v46  ;;  %vm1170_vm9 = vweird.f32 %v4251_v57 }
 0x208   :  { %v3269_v20 = vpop.eup %3268  ;;  %v1126_v39 = vmul.f32 %v3267_v51, %v1123_v25  ;;  %3274 = vrcp.f32 %v4253_v44  ;;  %vm1131_vm4 = vweird.f32 %v3267_v51  ;;  %vm1107_vm6 = vweird.f32 %v4253_v44  ;;  %vm1094_vm7 = vmor %vm1092_vm0, %vm1093_vm3 }
 0x209   :  { %v1089_v11 = vsub.f32 1.0, %v1088_v24  ;;  %v4259_v32 = vadd.f32 1.0, %v3269_v20  ;;  %3276 = vpow2.f32 %v2994_v6  ;;  %v3271_v12 = vpop.eup %3270  ;;  %v1137_v24 = vor.u32 1.1754944e-38, %v1136_v36  ;;  %vm1132_vm8 = vmor %vm1130_vm1, %vm1131_vm4 }
 0x20a   :  { %v1127_v34 = vsub.f32 1.0, %v1126_v39  ;;  %v1111_v6 = vand.u32 2147483647, %v4253_v44  ;;  %v1113_v53 = vand.u32 2147483648, %v4253_v44  ;;  %v1176_v19 = vand.u32 2147483648, %v4251_v57 }
 0x20b   :  { %v1090_v8 = vmul.f32 %v3265_v43, %v1089_v11  ;;  %3278 = vrcp.f32 %v4259_v32  ;;  %vm1145_vm10 = vweird.f32 %v4259_v32  ;;  %v5171_v11 = vld [vmem:[#allocation24_spill] sm:$0xff]  ;;  %v1149_v20 = vand.u32 2147483647, %v4259_v32 }
 0x20c   :  { %v1128_v28 = vmul.f32 %v3267_v51, %v1127_v34  ;;  %3280 = vtanh.f32 %v1077_v5  ;;  %vm3006_vm11 = vcmp.gt.s32.totalorder %v5171_v11, 2  ;;  %vm4298_vm12 = vcmp.eq.f32.partialorder %v1111_v6, 8.507059e+37 }
 0x20d   :  { %v4270_v33 = vpop.eup %3272  ;;  %v1091_v15 = vadd.f32 %v3265_v43, %v1090_v8  ;;  %v1151_v8 = vand.u32 2147483648, %v4259_v32  ;;  %vm3016_vm15 = vcmp.gt.s32.totalorder %v5171_v11, 3  ;;  %v1177_v50 = vor.u32 1.1754944e-38, %v1176_v19 }
 0x20e   :  { %v3275_v31 = vpop.eup %3274  ;;  %v1129_v39 = vadd.f32 %v3267_v51, %v1128_v28  ;;  %v1166_v36 = vmul.f32 %v4270_v33, %v4251_v57  ;;  %vm1171_vm14 = vweird.f32 %v4270_v33 }
 0x20f   :  { %v1095_v34 = vsel %vm1094_vm7, %v3265_v43, %v1091_v15  ;;  %v1103_v5 = vmul.f32 %v3275_v31, %v4253_v44  ;;  %v3277_v28 = vpop.eup %3276  ;;  %vm1108_vm13 = vweird.f32 %v3275_v31  ;;  %vm4329_vm3 = vmor %vm1170_vm9, %vm1171_vm14 }
 0x210   :  { %v1100_v46 = vsel %vm4261_vm2, %v1099_v0, %v1095_v34  ;;  %v1133_v56 = vsel %vm1132_vm8, %v3267_v51, %v1129_v39  ;;  %v1167_v21 = vsub.f32 1.0, %v1166_v36  ;;  %v4294_v18 = vadd.f32 1.0, %v3277_v28  ;;  %vm1109_vm2 = vmor %vm1107_vm6, %vm1108_vm13  ;;  %v4319_v28 = vpop.permute.xlu1 %3197 }
 0x211   :  { %v3279_v25 = vpop.eup %3278  ;;  %v1138_v43 = vsel %vm4266_vm5, %v1137_v24, %v1133_v56  ;;  %v1197_v15 = vmul.f32 %v3271_v12, %v1100_v46  ;;  %v1104_v29 = vsub.f32 1.0, %v1103_v5  ;;  %5176 = vst [vmem:[#allocation28_spill] sm:$0xff] %v4319_v28  ;;  %vm1150_vm6 = vcmp.eq.f32.partialorder %v1149_v20, 8.507059e+37 }
 0x212   :  { %v1195_v23 = vmul.f32 %v1138_v43, %v4166_v7  ;;  %v1141_v16 = vmul.f32 %v3279_v25, %v4259_v32  ;;  %v1168_v51 = vmul.f32 %v4270_v33, %v1167_v21  ;;  %v3281_v0 = vpop.eup %3280  ;;  %3282 = vrcp.f32 %v4294_v18 }
 0x213   :  { %v1105_v39 = vmul.f32 %v3275_v31, %v1104_v29  ;;  %v5174_v7 = vmov 0.0   ;;  %v5175_v29 = vld [vmem:[#allocation26_spill] sm:$0xff]  ;;  %vm1146_vm1 = vweird.f32 %v3279_v25  ;;  %v5180_v20 = vand.u32 2147483647, %v4251_v57 }
 0x214   :  { %v4305_v56 = vadd.f32 %v1197_v15, %v1195_v23  ;;  %v1142_v12 = vsub.f32 1.0, %v1141_v16  ;;  %v3008_v24 = vsel %vm3006_vm11, 1.0, %v5174_v7  ;;  %v1169_v46 = vadd.f32 %v4270_v33, %v1168_v51  ;;  %v4323_v15 = vpop.permute.xlu2 %3203  ;;  %vm1147_vm5 = vmor %vm1145_vm10, %vm1146_vm1 }
 0x215   :  { %v1106_v6 = vadd.f32 %v3275_v31, %v1105_v39  ;;  %vm3005_vm0 = vcmp.gt.s32.totalorder %v5175_v29, 2  ;;  %v1114_v16 = vor.u32 1.1754944e-38, %v1113_v53  ;;  %v1152_v23 = vor.u32 1.1754944e-38, %v1151_v8  ;;  %5177 = vst [vmem:[#allocation29_spill] sm:$0xff] %v4323_v15 }
 0x216   :  { %3284 = vtanh.f32 %v4305_v56  ;;  %v1143_v21 = vmul.f32 %v3279_v25, %v1142_v12  ;;  %v3018_v34 = vsel %vm3016_vm15, 1.0, %v5174_v7  ;;  %v3007_v5 = vsel %vm3005_vm0, 1.0, %v5174_v7 }
 0x217   :  { %v1110_v36 = vsel %vm1109_vm2, %v3275_v31, %v1106_v6  ;;  %v3185_v31 = vpack.i.bf16 %v3018_v34, %v3008_v24  ;;  %vm3015_vm4 = vcmp.gt.s32.totalorder %v5175_v29, 3  ;;  %v1173_v8 = vsel %vm4329_vm3, %v4270_v33, %v1169_v46 }
 0x218   :  { %v1115_v11 = vsel %vm4298_vm12, %v1114_v16, %v1110_v36  ;;  %v1144_v43 = vadd.f32 %v3279_v25, %v1143_v21  ;;  %v3283_v53 = vpop.eup %3282  ;;  %v3017_v51 = vsel %vm3015_vm4, 1.0, %v5174_v7  ;;  %v3200_v29 = vunpack.i.h.bf16 %v4319_v28 }
 0x219   :  { %v1198_v12 = vmul.f32 %v3281_v0, %v1115_v11  ;;  %v1181_v6 = vmul.f32 %v3283_v53, %v4294_v18  ;;  %3186 = vperm.xlu0 %3179, %v3185_v31   ;;  %v3207_v24 = vpack.i.bf16 %v3017_v51, %v3007_v5  ;;  %v3205_v32 = vunpack.i.l.bf16 %v4323_v15 }
 0x21a   :  { %v1148_v39 = vsel %vm1147_vm5, %v3279_v25, %v1144_v43  ;;  %vm1175_vm7 = vcmp.eq.f32.partialorder %v5180_v20, 8.507059e+37  ;;  %v1009_v34 = vmul.f32 %v3200_v29, %v4199_v1  ;;  %vm1186_vm8 = vweird.f32 %v3283_v53  ;;  %v3182_v43 = vpop.permute.xlu0 %3181 }
 0x21b   :  { %v1153_v21 = vsel %vm1150_vm6, %v1152_v23, %v1148_v39  ;;  %v1182_v19 = vsub.f32 1.0, %v1181_v6  ;;  %v1178_v46 = vsel %vm1175_vm7, %v1177_v50, %v1173_v8  ;;  %3208 = vperm.xlu2 %3201, %v3207_v24   ;;  %v1191_v57 = vand.u32 2147483648, %v4294_v18 }
 0x21c   :  { %v3285_v16 = vpop.eup %3284  ;;  %v1196_v33 = vmul.f32 %v1153_v21, %v4187_v58  ;;  %vm1185_vm9 = vweird.f32 %v4294_v18  ;;  %v1189_v58 = vand.u32 2147483647, %v4294_v18  ;;  %v3184_v8 = vunpack.i.h.bf16 %v3182_v43  ;;  %v5181_v18 = vld [vmem:[#allocation21_spill] sm:$0xff]  ;;  %v5184_v21 = vld [vmem:[#allocation78_spill] sm:$0xff] }
 0x21d   :  { %v1203_v25 = vmul.f32 %v3285_v16, %v1178_v46  ;;  %v1183_v36 = vmul.f32 %v3283_v53, %v1182_v19  ;;  %vm1187_vm10 = vmor %vm1185_vm9, %vm1186_vm8  ;;  %v1192_v31 = vor.u32 1.1754944e-38, %v1191_v57  ;;  %v3183_v50 = vunpack.i.l.bf16 %v3182_v43  ;;  %v5186_v16 = vld [vmem:[#allocation79_spill] sm:$0xff]  ;;  %v5188_v57 = vld [vmem:[#allocation82_spill] sm:$0xff] }
 0x21e   :  { %v4347_v0 = vadd.f32 %v1198_v12, %v1196_v33  ;;  %vm1190_vm11 = vcmp.eq.f32.partialorder %v1189_v58, 8.507059e+37  ;;  %v5187_v33 = vld [vmem:[#allocation34_spill] sm:$0xff]  ;;  %v5189_v58 = vld [vmem:[#allocation36_spill] sm:$0xff] }
 0x21f   :  { %v1222_v5 = vmul.f32 %v3205_v32, %v1203_v25  ;;  %v1184_v23 = vadd.f32 %v3283_v53, %v1183_v36  ;;  %v1010_v12 = vmul.f32 %v3183_v50, %v4201_v38  ;;  %v5182_v38 = vld [vmem:[#allocation23_spill] sm:$0xff]  ;;  %v5185_v32 = vld [vmem:[#allocation33_spill] sm:$0xff]  ;;  %v473_v19 = vadd.f32 %v5187_v33, %v5186_v16 }
 0x220   :  { %3286 = vtanh.f32 %v4347_v0  ;;  %v424_v20 = vadd.f32 %v5185_v32, %v5184_v21  ;;  %v571_v43 = vadd.f32 %v5189_v58, %v5188_v57 }
 0x221   :  { %v4353_v11 = vadd.f32 %v1222_v5, %v1009_v34  ;;  %v1188_v44 = vsel %vm1187_vm10, %v3283_v53, %v1184_v23  ;;  %v5183_v53 = vld [vmem:[#allocation22_spill] sm:$0xff] }
 0x222   :  { %v1193_v51 = vsel %vm1190_vm11, %v1192_v31, %v1188_v44  ;;  %v5190_v44 = vld [vmem:[#allocation37_spill] sm:$0xff] }
 0x223   :  { %v426_v31 = vadd.f32 %v5190_v44, %v5184_v21 }
 0x226   :  { %v3287_v1 = vpop.eup %3286 }
 0x227   :  { %v1204_v39 = vmul.f32 %v3287_v1, %v1193_v51 }
 0x229   :  { %v1227_v6 = vpack.c.bf16 %v1204_v39, %v1203_v25  ;;  %v1223_v24 = vmul.f32 %v3184_v8, %v1204_v39  ;;  %v5191_v8 = vld [vmem:[#allocation38_spill] sm:$0xff] }
 0x22a   :  { %v475_v50 = vadd.f32 %v5191_v8, %v5186_v16 }
 0x22b   :  { %1236 = vmatmul.bf16.vlgmr.msrb.gmra.mxu0 %v1227_v6  ;;  %1250 = vmatmul.bf16.vlgmr.msrb.gmra.mxu1 %v1227_v6  ;;  %v4357_v29 = vadd.f32 %v1223_v24, %v1010_v12 }
 0x22c   :  { %1264 = vmatmul.bf16.vlgmr.msrb.gmra.mxu2 %v1227_v6  ;;  %1278 = vmatmul.bf16.vlgmr.msrb.gmra.mxu3 %v1227_v6 }
 0x22d   :  { %1654 = vmatpush.bf16.msrb.mxu0 %v3803_v37  ;;  %1668 = vmatpush.bf16.msrb.mxu1 %v3805_v41 }
 0x22e   :  { %1682 = vmatpush.bf16.msrb.mxu2 %v3807_v47  ;;  %1696 = vmatpush.bf16.msrb.mxu3 %v3810_v48 }
 0x231   :  { %1655 = vmatpush.bf16.msrb.mxu0 %v3812_v49  ;;  %1669 = vmatpush.bf16.msrb.mxu1 %v3815_v52 }
 0x232   :  { %1683 = vmatpush.bf16.msrb.mxu2 %v3818_v55  ;;  %1697 = vmatpush.bf16.msrb.mxu3 %v3822_v59 }
 0x235   :  { %1656 = vmatpush.bf16.msrb.mxu0 %v3824_v60  ;;  %1670 = vmatpush.bf16.msrb.mxu1 %v3827_v63 }
 0x236   :  { %1684 = vmatpush.bf16.msrb.mxu2 %v3830_v3  ;;  %1698 = vmatpush.bf16.msrb.mxu3 %v3834_v4 }
 0x239   :  { %1657 = vmatpush.bf16.msrb.mxu0 %v3839_v9  ;;  %1671 = vmatpush.bf16.msrb.mxu1 %v3841_v13 }
 0x23a   :  { %1685 = vmatpush.bf16.msrb.mxu2 %v3846_v17  ;;  %1699 = vmatpush.bf16.msrb.mxu3 %v3843_v14 }
 0x23d   :  { %1658 = vmatpush.bf16.msrb.mxu0 %v3851_v22  ;;  %1672 = vmatpush.bf16.msrb.mxu1 %v3853_v26 }
 0x23e   :  { %1686 = vmatpush.bf16.msrb.mxu2 %v3858_v30  ;;  %1700 = vmatpush.bf16.msrb.mxu3 %v3855_v27 }
 0x241   :  { %1659 = vmatpush.bf16.msrb.mxu0 %v3863_v35  ;;  %1673 = vmatpush.bf16.msrb.mxu1 %v3865_v40 }
 0x242   :  { %1687 = vmatpush.bf16.msrb.mxu2 %v3870_v45  ;;  %1701 = vmatpush.bf16.msrb.mxu3 %v3867_v42 }
 0x245   :  { %1660 = vmatpush.bf16.msrb.mxu0 %v3875_v54  ;;  %1674 = vmatpush.bf16.msrb.mxu1 %v3877_v61 }
 0x246   :  { %1688 = vmatpush.bf16.msrb.mxu2 %v3882_v2  ;;  %1702 = vmatpush.bf16.msrb.mxu3 %v3879_v62 }
 0x249   :  { %1661 = vmatpush.bf16.msrb.mxu0 %v3887_v10  ;;  %1675 = vmatpush.bf16.msrb.mxu1 %v5181_v18 }
 0x24a   :  { %1689 = vmatpush.bf16.msrb.mxu2 %v5182_v38  ;;  %1703 = vmatpush.bf16.msrb.mxu3 %v5183_v53 }
 0x2a8   :  { %v1237_v46 = vpop.f32.mrf.mxu0  ;;  %v1251_v25 = vpop.f32.mrf.mxu1 }
 0x2a9   :  { %v1284_v36 = vadd.f32 %v1237_v46, %v424_v20  ;;  %v1285_v34 = vadd.f32 %v1251_v25, %v473_v19 }
 0x2ab   :  { %v2999_v5 = vmul.f32 -1.442695, %v1284_v36  ;;  %v3001_v23 = vmul.f32 -1.442695, %v1285_v34 }
 0x2ad   :  { %3288 = vpow2.f32 %v2999_v5  ;;  %v5192_v5 = vld [vmem:[#allocation84_spill] sm:$0xff] }
 0x2ae   :  { %3290 = vpow2.f32 %v3001_v23  ;;  %v5193_v23 = vld [vmem:[#allocation35_spill] sm:$0xff] }
 0x2af   :  { %v1279_v1 = vpop.f32.mrf.mxu3  ;;  %v1265_v25 = vpop.f32.mrf.mxu2  ;;  %v522_v58 = vadd.f32 %v5193_v23, %v5192_v5 }
 0x2b0   :  { %v1287_v51 = vadd.f32 %v1279_v1, %v571_v43  ;;  %v1239_v39 = vpop.f32.mrf.mxu0  ;;  %v1253_v12 = vpop.f32.mrf.mxu1  ;;  %v5194_v43 = vld [vmem:[#allocation40_spill] sm:$0xff] }
 0x2b1   :  { %v1288_v6 = vadd.f32 %v1239_v39, %v426_v31  ;;  %v1289_v24 = vadd.f32 %v1253_v12, %v475_v50  ;;  %v573_v44 = vadd.f32 %v5194_v43, %v5188_v57  ;;  %v1286_v8 = vadd.f32 %v1265_v25, %v522_v58 }
 0x2b2   :  { %v3003_v32 = vmul.f32 -1.442695, %v1287_v51 }
 0x2b3   :  { %v3289_v20 = vpop.eup %3288  ;;  %v3000_v33 = vmul.f32 -1.442695, %v1288_v6  ;;  %v3002_v36 = vmul.f32 -1.442695, %v1289_v24 }
 0x2b4   :  { %v3291_v19 = vpop.eup %3290  ;;  %v1298_v46 = vadd.f32 1.0, %v3289_v20  ;;  %3292 = vpow2.f32 %v3003_v32 }
 0x2b5   :  { %v1336_v34 = vadd.f32 1.0, %v3291_v19  ;;  %3294 = vpow2.f32 %v3000_v33  ;;  %v5195_v19 = vld [vmem:[#allocation39_spill] sm:$0xff] }
 0x2b6   :  { %3296 = vrcp.f32 %v1298_v46  ;;  %v524_v23 = vadd.f32 %v5195_v19, %v5192_v5  ;;  %v1309_v43 = vand.u32 2147483647, %v1298_v46  ;;  %vm1305_vm15 = vweird.f32 %v1298_v46 }
 0x2b7   :  { %3298 = vrcp.f32 %v1336_v34  ;;  %v1281_v31 = vpop.f32.mrf.mxu3  ;;  %vm1343_vm14 = vweird.f32 %v1336_v34 }
 0x2b8   :  { %3300 = vpow2.f32 %v3002_v36  ;;  %v1291_v50 = vadd.f32 %v1281_v31, %v573_v44  ;;  %v1267_v36 = vpop.f32.mrf.mxu2  ;;  %v1311_v44 = vand.u32 2147483648, %v1298_v46  ;;  %vm1310_vm0 = vcmp.eq.f32.partialorder %v1309_v43, 8.507059e+37 }
 0x2b9   :  { %3302 = vtanh.f32 %v1286_v8  ;;  %v1290_v15 = vadd.f32 %v1267_v36, %v524_v23 }
 0x2ba   :  { %v3293_v1 = vpop.eup %3292  ;;  %v3004_v24 = vmul.f32 -1.442695, %v1291_v50  ;;  %v1347_v50 = vand.u32 2147483647, %v1336_v34 }
 0x2bb   :  { %v3295_v51 = vpop.eup %3294  ;;  %v4405_v39 = vadd.f32 1.0, %v3293_v1  ;;  %v1349_v1 = vand.u32 2147483648, %v1336_v34 }
 0x2bc   :  { %v3297_v12 = vpop.eup %3296  ;;  %v4407_v6 = vadd.f32 1.0, %v3295_v51  ;;  %vm1348_vm3 = vcmp.eq.f32.partialorder %v1347_v50, 8.507059e+37 }
 0x2bd   :  { %v3299_v32 = vpop.eup %3298  ;;  %v1301_v20 = vmul.f32 %v3297_v12, %v1298_v46  ;;  %3304 = vrcp.f32 %v4405_v39  ;;  %vm1306_vm12 = vweird.f32 %v3297_v12  ;;  %v1350_v5 = vor.u32 1.1754944e-38, %v1349_v1 }
 0x2be   :  { %v3301_v33 = vpop.eup %3300  ;;  %v1339_v25 = vmul.f32 %v3299_v32, %v1336_v34  ;;  %3306 = vrcp.f32 %v4407_v6  ;;  %vm1344_vm13 = vweird.f32 %v3299_v32  ;;  %vm1307_vm1 = vmor %vm1305_vm15, %vm1306_vm12  ;;  %v1326_v46 = vand.u32 2147483648, %v4407_v6 }
 0x2bf   :  { %v1302_v58 = vsub.f32 1.0, %v1301_v20  ;;  %v4413_v31 = vadd.f32 1.0, %v3301_v33  ;;  %3308 = vpow2.f32 %v3004_v24  ;;  %v3303_v28 = vpop.eup %3302  ;;  %vm1345_vm2 = vmor %vm1343_vm14, %vm1344_vm13  ;;  %vm1320_vm4 = vweird.f32 %v4407_v6 }
 0x2c0   :  { %v1340_v8 = vsub.f32 1.0, %v1339_v25  ;;  %v1312_v25 = vor.u32 1.1754944e-38, %v1311_v44  ;;  %vm1383_vm10 = vweird.f32 %v4405_v39 }
 0x2c1   :  { %v1303_v51 = vmul.f32 %v3297_v12, %v1302_v58  ;;  %3310 = vrcp.f32 %v4413_v31  ;;  %vm1358_vm11 = vweird.f32 %v4413_v31 }
 0x2c2   :  { %v1341_v19 = vmul.f32 %v3299_v32, %v1340_v8  ;;  %3312 = vtanh.f32 %v1290_v15 }
 0x2c3   :  { %v4416_v7 = vpop.eup %3304  ;;  %v1304_v20 = vadd.f32 %v3297_v12, %v1303_v51 }
 0x2c4   :  { %v3307_v33 = vpop.eup %3306  ;;  %v1342_v57 = vadd.f32 %v3299_v32, %v1341_v19  ;;  %v1379_v24 = vmul.f32 %v4416_v7, %v4405_v39  ;;  %vm1384_vm6 = vweird.f32 %v4416_v7 }
 0x2c5   :  { %v1308_v58 = vsel %vm1307_vm1, %v3297_v12, %v1304_v20  ;;  %v1316_v23 = vmul.f32 %v3307_v33, %v4407_v6  ;;  %v3309_v36 = vpop.eup %3308  ;;  %vm1321_vm5 = vweird.f32 %v3307_v33  ;;  %v1389_v20 = vand.u32 2147483648, %v4405_v39  ;;  %vm4446_vm12 = vmor %vm1383_vm10, %vm1384_vm6 }
 0x2c6   :  { %v1313_v8 = vsel %vm1310_vm0, %v1312_v25, %v1308_v58  ;;  %v1346_v34 = vsel %vm1345_vm2, %v3299_v32, %v1342_v57  ;;  %v1380_v51 = vsub.f32 1.0, %v1379_v24  ;;  %v4422_v19 = vadd.f32 1.0, %v3309_v36  ;;  %vm1322_vm8 = vmor %vm1320_vm4, %vm1321_vm5 }
 0x2c7   :  { %v3311_v43 = vpop.eup %3310  ;;  %v1351_v1 = vsel %vm1348_vm3, %v1350_v5, %v1346_v34  ;;  %v1410_v16 = vmul.f32 %v3303_v28, %v1313_v8  ;;  %v1317_v44 = vsub.f32 1.0, %v1316_v23  ;;  %v1324_v57 = vand.u32 2147483647, %v4407_v6 }
 0x2c8   :  { %v1408_v21 = vmul.f32 %v1351_v1, %v4305_v56  ;;  %v1354_v12 = vmul.f32 %v3311_v43, %v4413_v31  ;;  %v1381_v15 = vmul.f32 %v4416_v7, %v1380_v51  ;;  %3314 = vrcp.f32 %v4422_v19  ;;  %v3313_v56 = vpop.eup %3312  ;;  %v4444_v51 = vpop.permute.xlu2 %3208 }
 0x2c9   :  { %v1318_v50 = vmul.f32 %v3307_v33, %v1317_v44  ;;  %v1364_v5 = vand.u32 2147483648, %v4413_v31  ;;  %v1327_v24 = vor.u32 1.1754944e-38, %v1326_v46  ;;  %vm1359_vm7 = vweird.f32 %v3311_v43 }
 0x2ca   :  { %v4430_v32 = vadd.f32 %v1410_v16, %v1408_v21  ;;  %v1355_v28 = vsub.f32 1.0, %v1354_v12  ;;  %v1382_v58 = vadd.f32 %v4416_v7, %v1381_v15  ;;  %v1362_v21 = vand.u32 2147483647, %v4413_v31  ;;  %vm1360_vm13 = vmor %vm1358_vm11, %vm1359_vm7 }
 0x2cb   :  { %v1319_v25 = vadd.f32 %v3307_v33, %v1318_v50  ;;  %vm1325_vm9 = vcmp.eq.f32.partialorder %v1324_v57, 8.507059e+37  ;;  %v1387_v36 = vand.u32 2147483647, %v4405_v39  ;;  %v1365_v1 = vor.u32 1.1754944e-38, %v1364_v5 }
 0x2cc   :  { %3316 = vtanh.f32 %v4430_v32  ;;  %v1356_v23 = vmul.f32 %v3311_v43, %v1355_v28  ;;  %v1390_v44 = vor.u32 1.1754944e-38, %v1389_v20  ;;  %vm1363_vm14 = vcmp.eq.f32.partialorder %v1362_v21, 8.507059e+37 }
 0x2cd   :  { %v1323_v16 = vsel %vm1322_vm8, %v3307_v33, %v1319_v25  ;;  %v1386_v33 = vsel %vm4446_vm12, %v4416_v7, %v1382_v58  ;;  %v3210_v50 = vunpack.i.l.bf16 %v4444_v51  ;;  %vm1388_vm15 = vcmp.eq.f32.partialorder %v1387_v36, 8.507059e+37  ;;  %v4465_v58 = vpop.permute.xlu0 %3186 }
 0x2ce   :  { %v1328_v8 = vsel %vm1325_vm9, %v1327_v24, %v1323_v16  ;;  %v1357_v34 = vadd.f32 %v3311_v43, %v1356_v23  ;;  %v3315_v6 = vpop.eup %3314  ;;  %v1391_v24 = vsel %vm1388_vm15, %v1390_v44, %v1386_v33  ;;  %v1404_v20 = vand.u32 2147483648, %v4422_v19 }
 0x2cf   :  { %v1411_v39 = vmul.f32 %v3313_v56, %v1328_v8  ;;  %v1394_v31 = vmul.f32 %v3315_v6, %v4422_v19  ;;  %vm1399_vm0 = vweird.f32 %v3315_v6  ;;  %vm1398_vm1 = vweird.f32 %v4422_v19 }
 0x2d0   :  { %v1361_v12 = vsel %vm1360_vm13, %v3311_v43, %v1357_v34  ;;  %vm1400_vm2 = vmor %vm1398_vm1, %vm1399_vm0  ;;  %v1405_v36 = vor.u32 1.1754944e-38, %v1404_v20  ;;  %v3188_v8 = vunpack.i.l.bf16 %v4465_v58 }
 0x2d1   :  { %v1366_v15 = vsel %vm1363_vm14, %v1365_v1, %v1361_v12  ;;  %v1395_v25 = vsub.f32 1.0, %v1394_v31  ;;  %v5200_v12 = vld [vmem:[#allocation79_spill] sm:$0xff] }
 0x2d2   :  { %v3317_v57 = vpop.eup %3316  ;;  %v1409_v28 = vmul.f32 %v1366_v15, %v4347_v0  ;;  %v1402_v0 = vand.u32 2147483647, %v4422_v19  ;;  %v5199_v19 = vld [vmem:[#allocation41_spill] sm:$0xff] }
 0x2d3   :  { %v1416_v5 = vmul.f32 %v3317_v57, %v1391_v24  ;;  %v1396_v16 = vmul.f32 %v3315_v6, %v1395_v25 }
 0x2d4   :  { %v4456_v23 = vadd.f32 %v1411_v39, %v1409_v28  ;;  %vm1403_vm3 = vcmp.eq.f32.partialorder %v1402_v0, 8.507059e+37  ;;  %v5201_v39 = vld [vmem:[#allocation42_spill] sm:$0xff] }
 0x2d5   :  { %v1435_v7 = vmul.f32 %v3210_v50, %v1416_v5  ;;  %v1397_v43 = vadd.f32 %v3315_v6, %v1396_v16  ;;  %v478_v31 = vadd.f32 %v5201_v39, %v5200_v12  ;;  %v5203_v16 = vld [vmem:[#allocation44_spill] sm:$0xff]  ;;  %v5205_v0 = vld [vmem:[#allocation46_spill] sm:$0xff] }
 0x2d6   :  { %3318 = vtanh.f32 %v4456_v23 }
 0x2d7   :  { %v4461_v56 = vadd.f32 %v1435_v7, %v4353_v11  ;;  %v1401_v21 = vsel %vm1400_vm2, %v3315_v6, %v1397_v43  ;;  %v5204_v43 = vld [vmem:[#allocation45_spill] sm:$0xff] }
 0x2d8   :  { %v1406_v46 = vsel %vm1403_vm3, %v1405_v36, %v1401_v21  ;;  %v480_v21 = vadd.f32 %v5205_v0, %v5200_v12 }
 0x2dc   :  { %v3319_v34 = vpop.eup %3318 }
 0x2dd   :  { %v1417_v1 = vmul.f32 %v3319_v34, %v1406_v46 }
 0x2df   :  { %v1436_v33 = vmul.f32 %v3188_v8, %v1417_v1  ;;  %v1440_v44 = vpack.c.bf16 %v1417_v1, %v1416_v5  ;;  %v5202_v5 = vld [vmem:[#allocation82_spill] sm:$0xff] }
 0x2e0   :  { %v576_v7 = vadd.f32 %v5203_v16, %v5202_v5 }
 0x2e1   :  { %v4469_v11 = vadd.f32 %v1436_v33, %v4357_v29  ;;  %1449 = vmatmul.bf16.vlgmr.msra.gmra.mxu0 %v1440_v44  ;;  %1463 = vmatmul.bf16.vlgmr.msra.gmra.mxu1 %v1440_v44  ;;  %v5198_v29 = vld [vmem:[#allocation78_spill] sm:$0xff] }
 0x2e2   :  { %1477 = vmatmul.bf16.vlgmr.msra.gmra.mxu2 %v1440_v44  ;;  %1491 = vmatmul.bf16.vlgmr.msra.gmra.mxu3 %v1440_v44  ;;  %v429_v6 = vadd.f32 %v5199_v19, %v5198_v29  ;;  %v431_v20 = vadd.f32 %v5204_v43, %v5198_v29  ;;  %v5208_v43 = vld [vmem:[#allocation48_spill] sm:$0xff] }
 0x2e3   :  { %1867 = vmatpush.bf16.msra.mxu0 %v3803_v37  ;;  %1881 = vmatpush.bf16.msra.mxu1 %v3805_v41 }
 0x2e4   :  { %1895 = vmatpush.bf16.msra.mxu2 %v3807_v47  ;;  %1909 = vmatpush.bf16.msra.mxu3 %v3810_v48 }
 0x2e7   :  { %1868 = vmatpush.bf16.msra.mxu0 %v3812_v49  ;;  %1882 = vmatpush.bf16.msra.mxu1 %v3815_v52 }
 0x2e8   :  { %1896 = vmatpush.bf16.msra.mxu2 %v3818_v55  ;;  %1910 = vmatpush.bf16.msra.mxu3 %v3822_v59 }
 0x2eb   :  { %1869 = vmatpush.bf16.msra.mxu0 %v3824_v60  ;;  %1883 = vmatpush.bf16.msra.mxu1 %v3827_v63 }
 0x2ec   :  { %1897 = vmatpush.bf16.msra.mxu2 %v3830_v3  ;;  %1911 = vmatpush.bf16.msra.mxu3 %v3834_v4 }
 0x2ef   :  { %1870 = vmatpush.bf16.msra.mxu0 %v3839_v9  ;;  %1884 = vmatpush.bf16.msra.mxu1 %v3841_v13 }
 0x2f0   :  { %1898 = vmatpush.bf16.msra.mxu2 %v3846_v17  ;;  %1912 = vmatpush.bf16.msra.mxu3 %v3843_v14 }
 0x2f3   :  { %1871 = vmatpush.bf16.msra.mxu0 %v3851_v22  ;;  %1885 = vmatpush.bf16.msra.mxu1 %v3853_v26 }
 0x2f4   :  { %1899 = vmatpush.bf16.msra.mxu2 %v3858_v30  ;;  %1913 = vmatpush.bf16.msra.mxu3 %v3855_v27 }
 0x2f7   :  { %1872 = vmatpush.bf16.msra.mxu0 %v3863_v35  ;;  %1886 = vmatpush.bf16.msra.mxu1 %v3865_v40 }
 0x2f8   :  { %1900 = vmatpush.bf16.msra.mxu2 %v3870_v45  ;;  %1914 = vmatpush.bf16.msra.mxu3 %v3867_v42 }
 0x2fb   :  { %1873 = vmatpush.bf16.msra.mxu0 %v3875_v54  ;;  %1887 = vmatpush.bf16.msra.mxu1 %v3877_v61 }
 0x2fc   :  { %1901 = vmatpush.bf16.msra.mxu2 %v3882_v2  ;;  %1915 = vmatpush.bf16.msra.mxu3 %v3879_v62 }
 0x2ff   :  { %1874 = vmatpush.bf16.msra.mxu0 %v3887_v10  ;;  %1888 = vmatpush.bf16.msra.mxu1 %v5181_v18 }
 0x300   :  { %1902 = vmatpush.bf16.msra.mxu2 %v5182_v38  ;;  %1916 = vmatpush.bf16.msra.mxu3 %v5183_v53 }
 0x35e   :  { %v1450_v15 = vpop.f32.mrf.mxu0  ;;  %v1464_v50 = vpop.f32.mrf.mxu1 }
 0x35f   :  { %v1497_v57 = vadd.f32 %v1450_v15, %v429_v6  ;;  %v1498_v28 = vadd.f32 %v1464_v50, %v478_v31 }
 0x361   :  { %v3009_v25 = vmul.f32 -1.442695, %v1497_v57  ;;  %v3011_v24 = vmul.f32 -1.442695, %v1498_v28  ;;  %v5206_v28 = vld [vmem:[#allocation84_spill] sm:$0xff] }
 0x363   :  { %3320 = vpow2.f32 %v3009_v25  ;;  %v5207_v25 = vld [vmem:[#allocation43_spill] sm:$0xff] }
 0x364   :  { %3322 = vpow2.f32 %v3011_v24  ;;  %v527_v24 = vadd.f32 %v5207_v25, %v5206_v28 }
 0x365   :  { %v1492_v36 = vpop.f32.mrf.mxu3  ;;  %v1478_v6 = vpop.f32.mrf.mxu2 }
 0x366   :  { %v1500_v8 = vadd.f32 %v1492_v36, %v576_v7  ;;  %v1452_v34 = vpop.f32.mrf.mxu0  ;;  %v1466_v46 = vpop.f32.mrf.mxu1  ;;  %v1499_v16 = vadd.f32 %v1478_v6, %v527_v24 }
 0x367   :  { %v1501_v1 = vadd.f32 %v1452_v34, %v431_v20  ;;  %v1502_v33 = vadd.f32 %v1466_v46, %v480_v21  ;;  %v578_v20 = vadd.f32 %v5208_v43, %v5202_v5 }
 0x368   :  { %v3013_v44 = vmul.f32 -1.442695, %v1500_v8 }
 0x369   :  { %v3321_v19 = vpop.eup %3320  ;;  %v3010_v39 = vmul.f32 -1.442695, %v1501_v1  ;;  %v3012_v50 = vmul.f32 -1.442695, %v1502_v33  ;;  %v5209_v33 = vld [vmem:[#allocation47_spill] sm:$0xff] }
 0x36a   :  { %v3323_v31 = vpop.eup %3322  ;;  %v1511_v15 = vadd.f32 1.0, %v3321_v19  ;;  %3324 = vpow2.f32 %v3013_v44  ;;  %v529_v44 = vadd.f32 %v5209_v33, %v5206_v28 }
 0x36b   :  { %v1549_v57 = vadd.f32 1.0, %v3323_v31  ;;  %3326 = vpow2.f32 %v3010_v39 }
 0x36c   :  { %3328 = vrcp.f32 %v1511_v15  ;;  %v1522_v25 = vand.u32 2147483647, %v1511_v15  ;;  %v1524_v24 = vand.u32 2147483648, %v1511_v15  ;;  %vm1518_vm4 = vweird.f32 %v1511_v15 }
 0x36d   :  { %3330 = vrcp.f32 %v1549_v57  ;;  %v1494_v7 = vpop.f32.mrf.mxu3  ;;  %v1480_v6 = vpop.f32.mrf.mxu2  ;;  %vm1556_vm5 = vweird.f32 %v1549_v57 }
 0x36e   :  { %3332 = vpow2.f32 %v3012_v50  ;;  %v1504_v8 = vadd.f32 %v1494_v7, %v578_v20  ;;  %v1562_v50 = vand.u32 2147483648, %v1549_v57  ;;  %vm4528_vm8 = vcmp.eq.f32.partialorder %v1522_v25, 8.507059e+37 }
 0x36f   :  { %3334 = vtanh.f32 %v1499_v16 }
 0x370   :  { %v3325_v0 = vpop.eup %3324  ;;  %v3014_v16 = vmul.f32 -1.442695, %v1504_v8  ;;  %v1563_v8 = vor.u32 1.1754944e-38, %v1562_v50 }
 0x371   :  { %v3327_v21 = vpop.eup %3326  ;;  %v4517_v36 = vadd.f32 1.0, %v3325_v0  ;;  %v1560_v0 = vand.u32 2147483647, %v1549_v57 }
 0x372   :  { %v3329_v34 = vpop.eup %3328  ;;  %v4519_v46 = vadd.f32 1.0, %v3327_v21  ;;  %v1503_v21 = vadd.f32 %v1480_v6, %v529_v44  ;;  %v4537_v44 = vld [vmem:[%s5030_s0] sm:$0xff] }
 0x373   :  { %v3331_v1 = vpop.eup %3330  ;;  %v1514_v19 = vmul.f32 %v3329_v34, %v1511_v15  ;;  %3336 = vrcp.f32 %v4517_v36  ;;  %vm1519_vm6 = vweird.f32 %v3329_v34  ;;  %5212 = vst [vmem:[#allocation30_spill] sm:$0xff] %v4537_v44  ;;  %vm3025_vm9 = vcmp.gt.s32.totalorder %v4537_v44, 4 }
 0x374   :  { %v3333_v39 = vpop.eup %3332  ;;  %v1552_v31 = vmul.f32 %v3331_v1, %v1549_v57  ;;  %3338 = vrcp.f32 %v4519_v46  ;;  %vm1557_vm7 = vweird.f32 %v3331_v1  ;;  %vm1520_vm10 = vmor %vm1518_vm4, %vm1519_vm6  ;;  %vm1561_vm11 = vcmp.eq.f32.partialorder %v1560_v0, 8.507059e+37 }
 0x375   :  { %v1515_v43 = vsub.f32 1.0, %v1514_v19  ;;  %v4525_v7 = vadd.f32 1.0, %v3333_v39  ;;  %v3335_v28 = vpop.eup %3334  ;;  %v1525_v19 = vor.u32 1.1754944e-38, %v1524_v24  ;;  %vm1558_vm12 = vmor %vm1556_vm5, %vm1557_vm7  ;;  %vm3035_vm13 = vcmp.gt.s32.totalorder %v4537_v44, 5 }
 0x376   :  { %v1553_v20 = vsub.f32 1.0, %v1552_v31  ;;  %vm1533_vm14 = vweird.f32 %v4519_v46  ;;  %vm1596_vm2 = vweird.f32 %v4517_v36 }
 0x377   :  { %v1516_v33 = vmul.f32 %v3329_v34, %v1515_v43  ;;  %3340 = vrcp.f32 %v4525_v7  ;;  %v1602_v43 = vand.u32 2147483648, %v4517_v36  ;;  %vm1571_vm5 = vweird.f32 %v4525_v7 }
 0x378   :  { %v1554_v5 = vmul.f32 %v3331_v1, %v1553_v20  ;;  %3342 = vpow2.f32 %v3014_v16  ;;  %v5213_v16 = vmov 0.0  }
 0x379   :  { %v4532_v39 = vpop.eup %3336  ;;  %v1517_v31 = vadd.f32 %v3329_v34, %v1516_v33  ;;  %3344 = vtanh.f32 %v1503_v21  ;;  %v3027_v20 = vsel %vm3025_vm9, 1.0, %v5213_v16  ;;  %v3037_v57 = vsel %vm3035_vm13, 1.0, %v5213_v16 }
 0x37a   :  { %v1555_v6 = vadd.f32 %v3331_v1, %v1554_v5  ;;  %v1592_v25 = vmul.f32 %v4532_v39, %v4517_v36  ;;  %v3339_v24 = vpop.eup %3338  ;;  %vm1597_vm0 = vweird.f32 %v4532_v39 }
 0x37b   :  { %v1521_v50 = vsel %vm1520_vm10, %v3329_v34, %v1517_v31  ;;  %v1529_v33 = vmul.f32 %v3339_v24, %v4519_v46  ;;  %vm1534_vm15 = vweird.f32 %v3339_v24  ;;  %vm4569_vm4 = vmor %vm1596_vm2, %vm1597_vm0 }
 0x37c   :  { %v1526_v15 = vsel %vm4528_vm8, %v1525_v19, %v1521_v50  ;;  %v1559_v5 = vsel %vm1558_vm12, %v3331_v1, %v1555_v6  ;;  %v1593_v0 = vsub.f32 1.0, %v1592_v25  ;;  %v1577_v1 = vand.u32 2147483648, %v4525_v7  ;;  %vm1535_vm3 = vmor %vm1533_vm14, %vm1534_vm15 }
 0x37d   :  { %v3341_v29 = vpop.eup %3340  ;;  %v1564_v21 = vsel %vm1561_vm11, %v1563_v8, %v1559_v5  ;;  %v1623_v53 = vmul.f32 %v3335_v28, %v1526_v15  ;;  %v1530_v38 = vsub.f32 1.0, %v1529_v33  ;;  %v1537_v19 = vand.u32 2147483647, %v4519_v46 }
 0x37e   :  { %v1621_v34 = vmul.f32 %v1564_v21, %v4430_v32  ;;  %v1594_v31 = vmul.f32 %v4532_v39, %v1593_v0  ;;  %v1567_v44 = vmul.f32 %v3341_v29, %v4525_v7  ;;  %v3343_v12 = vpop.eup %3342  ;;  %v1539_v6 = vand.u32 2147483648, %v4519_v46 }
 0x37f   :  { %v3212_v8 = vpack.i.bf16 %v3037_v57, %v3027_v20  ;;  %v3345_v28 = vpop.eup %3344  ;;  %v1531_v15 = vmul.f32 %v3339_v24, %v1530_v38  ;;  %v1575_v5 = vand.u32 2147483647, %v4525_v7  ;;  %v1590_v0 = vadd.f32 1.0, %v3343_v12 }
 0x380   :  { %v4559_v25 = vadd.f32 %v1623_v53, %v1621_v34  ;;  %v1568_v50 = vsub.f32 1.0, %v1567_v44  ;;  %v1595_v32 = vadd.f32 %v4532_v39, %v1594_v31  ;;  %vm1572_vm1 = vweird.f32 %v3341_v29 }
 0x381   :  { %3213 = vperm.xlu1 %3190, %v3212_v8   ;;  %v1532_v21 = vadd.f32 %v3339_v24, %v1531_v15  ;;  %v1600_v53 = vand.u32 2147483647, %v4517_v36  ;;  %v1540_v38 = vor.u32 1.1754944e-38, %v1539_v6  ;;  %vm1538_vm6 = vcmp.eq.f32.partialorder %v1537_v19, 8.507059e+37  ;;  %vm1573_vm7 = vmor %vm1571_vm5, %vm1572_vm1 }
 0x382   :  { %3346 = vtanh.f32 %v4559_v25  ;;  %v1569_v33 = vmul.f32 %v3341_v29, %v1568_v50  ;;  %v1578_v34 = vor.u32 1.1754944e-38, %v1577_v1  ;;  %v1599_v36 = vsel %vm4569_vm4, %v4532_v39, %v1595_v32 }
 0x383   :  { %3348 = vrcp.f32 %v1590_v0  ;;  %v1536_v20 = vsel %vm1535_vm3, %v3339_v24, %v1532_v21  ;;  %v1603_v46 = vor.u32 1.1754944e-38, %v1602_v43  ;;  %vm1576_vm8 = vcmp.eq.f32.partialorder %v1575_v5, 8.507059e+37 }
 0x384   :  { %v1570_v57 = vadd.f32 %v3341_v29, %v1569_v33  ;;  %v1541_v31 = vsel %vm1538_vm6, %v1540_v38, %v1536_v20  ;;  %v3211_v8 = vunpack.i.h.bf16 %v4444_v51  ;;  %vm1601_vm9 = vcmp.eq.f32.partialorder %v1600_v53, 8.507059e+37 }
 0x385   :  { %v1624_v6 = vmul.f32 %v3345_v28, %v1541_v31  ;;  %v1604_v24 = vsel %vm1601_vm9, %v1603_v46, %v1599_v36  ;;  %v1615_v28 = vand.u32 2147483647, %v1590_v0  ;;  %vm1611_vm11 = vweird.f32 %v1590_v0  ;;  %v5219_v36 = vld [vmem:[#allocation49_spill] sm:$0xff] }
 0x386   :  { %v1574_v12 = vsel %vm1573_vm7, %v3341_v29, %v1570_v57  ;;  %v1617_v29 = vand.u32 2147483648, %v1590_v0  ;;  %v3189_v53 = vunpack.i.h.bf16 %v4465_v58  ;;  %v5216_v58 = vld [vmem:[#allocation23_spill] sm:$0xff] }
 0x387   :  { %v1579_v50 = vsel %vm1576_vm8, %v1578_v34, %v1574_v12  ;;  %vm1616_vm13 = vcmp.eq.f32.partialorder %v1615_v28, 8.507059e+37  ;;  %v5220_v12 = vld [vmem:[#allocation79_spill] sm:$0xff]  ;;  %v5225_v28 = vld [vmem:[#allocation54_spill] sm:$0xff] }
 0x388   :  { %v3347_v15 = vpop.eup %3346  ;;  %v1622_v7 = vmul.f32 %v1579_v50, %v4456_v23  ;;  %v1618_v23 = vor.u32 1.1754944e-38, %v1617_v29  ;;  %v5224_v29 = vld [vmem:[#allocation53_spill] sm:$0xff] }
 0x389   :  { %v3349_v19 = vpop.eup %3348  ;;  %v1629_v33 = vmul.f32 %v3347_v15, %v1604_v24 }
 0x38a   :  { %v4579_v1 = vadd.f32 %v1624_v6, %v1622_v7  ;;  %v1607_v21 = vmul.f32 %v3349_v19, %v1590_v0  ;;  %vm1612_vm10 = vweird.f32 %v3349_v19  ;;  %v5218_v0 = vld [vmem:[#allocation78_spill] sm:$0xff] }
 0x38b   :  { %v1648_v38 = vmul.f32 %v3211_v8, %v1629_v33  ;;  %vm1613_vm12 = vmor %vm1611_vm11, %vm1612_vm10  ;;  %v434_v46 = vadd.f32 %v5219_v36, %v5218_v0  ;;  %v5221_v6 = vld [vmem:[#allocation50_spill] sm:$0xff] }
 0x38c   :  { %3350 = vtanh.f32 %v4579_v1  ;;  %v1608_v39 = vsub.f32 1.0, %v1607_v21  ;;  %v483_v8 = vadd.f32 %v5221_v6, %v5220_v12  ;;  %v5222_v21 = vld [vmem:[#allocation82_spill] sm:$0xff] }
 0x38d   :  { %v4583_v43 = vadd.f32 %v1648_v38, %v4461_v56  ;;  %v5223_v38 = vld [vmem:[#allocation52_spill] sm:$0xff] }
 0x38e   :  { %v1609_v51 = vmul.f32 %v3349_v19, %v1608_v39  ;;  %v581_v39 = vadd.f32 %v5223_v38, %v5222_v21 }
 0x390   :  { %v1610_v32 = vadd.f32 %v3349_v19, %v1609_v51  ;;  %v436_v51 = vadd.f32 %v5224_v29, %v5218_v0 }
 0x392   :  { %v3351_v5 = vpop.eup %3350  ;;  %v1614_v44 = vsel %vm1613_vm12, %v3349_v19, %v1610_v32  ;;  %v485_v32 = vadd.f32 %v5225_v28, %v5220_v12 }
 0x393   :  { %v1619_v20 = vsel %vm1616_vm13, %v1618_v23, %v1614_v44 }
 0x394   :  { %v1630_v57 = vmul.f32 %v3351_v5, %v1619_v20 }
 0x396   :  { %v1653_v34 = vpack.c.bf16 %v1630_v57, %v1629_v33  ;;  %v1649_v31 = vmul.f32 %v3189_v53, %v1630_v57 }
 0x398   :  { %1662 = vmatmul.bf16.vlgmr.msrb.gmra.mxu0 %v1653_v34  ;;  %1676 = vmatmul.bf16.vlgmr.msrb.gmra.mxu1 %v1653_v34  ;;  %v4587_v56 = vadd.f32 %v1649_v31, %v4469_v11  ;;  %v5217_v11 = vld [vmem:[#allocation22_spill] sm:$0xff] }
 0x399   :  { %1690 = vmatmul.bf16.vlgmr.msrb.gmra.mxu2 %v1653_v34  ;;  %1704 = vmatmul.bf16.vlgmr.msrb.gmra.mxu3 %v1653_v34 }
 0x39a   :  { %2080 = vmatpush.bf16.msrb.mxu0 %v3803_v37  ;;  %2094 = vmatpush.bf16.msrb.mxu1 %v3805_v41 }
 0x39b   :  { %2108 = vmatpush.bf16.msrb.mxu2 %v3807_v47  ;;  %2122 = vmatpush.bf16.msrb.mxu3 %v3810_v48 }
 0x39e   :  { %2081 = vmatpush.bf16.msrb.mxu0 %v3812_v49  ;;  %2095 = vmatpush.bf16.msrb.mxu1 %v3815_v52 }
 0x39f   :  { %2109 = vmatpush.bf16.msrb.mxu2 %v3818_v55  ;;  %2123 = vmatpush.bf16.msrb.mxu3 %v3822_v59 }
 0x3a2   :  { %2082 = vmatpush.bf16.msrb.mxu0 %v3824_v60  ;;  %2096 = vmatpush.bf16.msrb.mxu1 %v3827_v63 }
 0x3a3   :  { %2110 = vmatpush.bf16.msrb.mxu2 %v3830_v3  ;;  %2124 = vmatpush.bf16.msrb.mxu3 %v3834_v4 }
 0x3a6   :  { %2083 = vmatpush.bf16.msrb.mxu0 %v3839_v9  ;;  %2097 = vmatpush.bf16.msrb.mxu1 %v3841_v13 }
 0x3a7   :  { %2111 = vmatpush.bf16.msrb.mxu2 %v3846_v17  ;;  %2125 = vmatpush.bf16.msrb.mxu3 %v3843_v14 }
 0x3aa   :  { %2084 = vmatpush.bf16.msrb.mxu0 %v3851_v22  ;;  %2098 = vmatpush.bf16.msrb.mxu1 %v3853_v26 }
 0x3ab   :  { %2112 = vmatpush.bf16.msrb.mxu2 %v3858_v30  ;;  %2126 = vmatpush.bf16.msrb.mxu3 %v3855_v27 }
 0x3ae   :  { %2085 = vmatpush.bf16.msrb.mxu0 %v3863_v35  ;;  %2099 = vmatpush.bf16.msrb.mxu1 %v3865_v40 }
 0x3af   :  { %2113 = vmatpush.bf16.msrb.mxu2 %v3870_v45  ;;  %2127 = vmatpush.bf16.msrb.mxu3 %v3867_v42 }
 0x3b2   :  { %2086 = vmatpush.bf16.msrb.mxu0 %v3875_v54  ;;  %2100 = vmatpush.bf16.msrb.mxu1 %v3877_v61 }
 0x3b3   :  { %2114 = vmatpush.bf16.msrb.mxu2 %v3882_v2  ;;  %2128 = vmatpush.bf16.msrb.mxu3 %v3879_v62 }
 0x3b6   :  { %2087 = vmatpush.bf16.msrb.mxu0 %v3887_v10  ;;  %2101 = vmatpush.bf16.msrb.mxu1 %v5181_v18 }
 0x3b7   :  { %2115 = vmatpush.bf16.msrb.mxu2 %v5216_v58  ;;  %2129 = vmatpush.bf16.msrb.mxu3 %v5217_v11 }
 0x415   :  { %v1663_v50 = vpop.f32.mrf.mxu0  ;;  %v1677_v15 = vpop.f32.mrf.mxu1 }
 0x416   :  { %v1710_v7 = vadd.f32 %v1663_v50, %v434_v46  ;;  %v1711_v24 = vadd.f32 %v1677_v15, %v483_v8 }
 0x418   :  { %v3019_v19 = vmul.f32 -1.442695, %v1710_v7  ;;  %v3021_v33 = vmul.f32 -1.442695, %v1711_v24  ;;  %v5226_v7 = vld [vmem:[#allocation84_spill] sm:$0xff]  ;;  %v5227_v24 = vld [vmem:[#allocation51_spill] sm:$0xff] }
 0x41a   :  { %3352 = vpow2.f32 %v3019_v19  ;;  %v532_v19 = vadd.f32 %v5227_v24, %v5226_v7 }
 0x41b   :  { %3354 = vpow2.f32 %v3021_v33  ;;  %v5228_v33 = vld [vmem:[#allocation56_spill] sm:$0xff] }
 0x41c   :  { %v1705_v23 = vpop.f32.mrf.mxu3  ;;  %v1691_v8 = vpop.f32.mrf.mxu2  ;;  %v583_v38 = vadd.f32 %v5228_v33, %v5222_v21 }
 0x41d   :  { %v1713_v5 = vadd.f32 %v1705_v23, %v581_v39  ;;  %v1665_v53 = vpop.f32.mrf.mxu0  ;;  %v1679_v44 = vpop.f32.mrf.mxu1  ;;  %v1712_v29 = vadd.f32 %v1691_v8, %v532_v19 }
 0x41e   :  { %v1714_v20 = vadd.f32 %v1665_v53, %v436_v51  ;;  %v1715_v57 = vadd.f32 %v1679_v44, %v485_v32 }
 0x41f   :  { %v3023_v34 = vmul.f32 -1.442695, %v1713_v5 }
 0x420   :  { %v3353_v31 = vpop.eup %3352  ;;  %v3020_v36 = vmul.f32 -1.442695, %v1714_v20  ;;  %v3022_v50 = vmul.f32 -1.442695, %v1715_v57 }
 0x421   :  { %v3355_v46 = vpop.eup %3354  ;;  %v1724_v6 = vadd.f32 1.0, %v3353_v31  ;;  %3356 = vpow2.f32 %v3023_v34  ;;  %v5229_v31 = vld [vmem:[#allocation55_spill] sm:$0xff] }
 0x422   :  { %v1762_v15 = vadd.f32 1.0, %v3355_v46  ;;  %3358 = vpow2.f32 %v3020_v36  ;;  %v534_v36 = vadd.f32 %v5229_v31, %v5226_v7 }
 0x423   :  { %3360 = vrcp.f32 %v1724_v6  ;;  %v1735_v24 = vand.u32 2147483647, %v1724_v6  ;;  %v1737_v19 = vand.u32 2147483648, %v1724_v6  ;;  %vm1731_vm1 = vweird.f32 %v1724_v6 }
 0x424   :  { %3362 = vrcp.f32 %v1762_v15  ;;  %v1707_v39 = vpop.f32.mrf.mxu3  ;;  %v1693_v8 = vpop.f32.mrf.mxu2  ;;  %vm1769_vm0 = vweird.f32 %v1762_v15 }
 0x425   :  { %3364 = vpow2.f32 %v3022_v50  ;;  %v1717_v51 = vadd.f32 %v1707_v39, %v583_v38  ;;  %v1775_v39 = vand.u32 2147483648, %v1762_v15  ;;  %vm1736_vm2 = vcmp.eq.f32.partialorder %v1735_v24, 8.507059e+37 }
 0x426   :  { %3366 = vtanh.f32 %v1712_v29  ;;  %v1773_v29 = vand.u32 2147483647, %v1762_v15 }
 0x427   :  { %v3357_v28 = vpop.eup %3356  ;;  %v3024_v44 = vmul.f32 -1.442695, %v1717_v51  ;;  %v1776_v7 = vor.u32 1.1754944e-38, %v1775_v39 }
 0x428   :  { %v3359_v32 = vpop.eup %3358  ;;  %v4635_v23 = vadd.f32 1.0, %v3357_v28  ;;  %v1716_v28 = vadd.f32 %v1693_v8, %v534_v36  ;;  %vm1774_vm5 = vcmp.eq.f32.partialorder %v1773_v29, 8.507059e+37 }
 0x429   :  { %v3361_v5 = vpop.eup %3360  ;;  %v4637_v53 = vadd.f32 1.0, %v3359_v32 }
 0x42a   :  { %v3363_v20 = vpop.eup %3362  ;;  %v1727_v57 = vmul.f32 %v3361_v5, %v1724_v6  ;;  %3368 = vrcp.f32 %v4635_v23  ;;  %vm1732_vm14 = vweird.f32 %v3361_v5  ;;  %vm1809_vm12 = vweird.f32 %v4635_v23 }
 0x42b   :  { %v3365_v34 = vpop.eup %3364  ;;  %v1765_v46 = vmul.f32 %v3363_v20, %v1762_v15  ;;  %3370 = vrcp.f32 %v4637_v53  ;;  %vm1770_vm15 = vweird.f32 %v3363_v20  ;;  %vm1733_vm3 = vmor %vm1731_vm1, %vm1732_vm14  ;;  %v1752_v6 = vand.u32 2147483648, %v4637_v53 }
 0x42c   :  { %v1728_v50 = vsub.f32 1.0, %v1727_v57  ;;  %v4643_v33 = vadd.f32 1.0, %v3365_v34  ;;  %3372 = vpow2.f32 %v3024_v44  ;;  %v3367_v32 = vpop.eup %3366  ;;  %vm1771_vm4 = vmor %vm1769_vm0, %vm1770_vm15  ;;  %vm1746_vm6 = vweird.f32 %v4637_v53 }
 0x42d   :  { %v1766_v38 = vsub.f32 1.0, %v1765_v46  ;;  %v1738_v46 = vor.u32 1.1754944e-38, %v1737_v19 }
 0x42e   :  { %v1729_v51 = vmul.f32 %v3361_v5, %v1728_v50  ;;  %3374 = vrcp.f32 %v4643_v33  ;;  %vm1784_vm13 = vweird.f32 %v4643_v33 }
 0x42f   :  { %v1767_v31 = vmul.f32 %v3363_v20, %v1766_v38  ;;  %3376 = vtanh.f32 %v1716_v28 }
 0x430   :  { %v4646_v16 = vpop.eup %3368  ;;  %v1730_v57 = vadd.f32 %v3361_v5, %v1729_v51 }
 0x431   :  { %v3371_v34 = vpop.eup %3370  ;;  %v1768_v21 = vadd.f32 %v3363_v20, %v1767_v31  ;;  %v1805_v44 = vmul.f32 %v4646_v16, %v4635_v23  ;;  %vm1810_vm8 = vweird.f32 %v4646_v16 }
 0x432   :  { %v1734_v50 = vsel %vm1733_vm3, %v3361_v5, %v1730_v57  ;;  %v1742_v36 = vmul.f32 %v3371_v34, %v4637_v53  ;;  %v3373_v8 = vpop.eup %3372  ;;  %vm1747_vm7 = vweird.f32 %v3371_v34  ;;  %v1815_v57 = vand.u32 2147483648, %v4635_v23  ;;  %vm4676_vm14 = vmor %vm1809_vm12, %vm1810_vm8 }
 0x433   :  { %v1739_v38 = vsel %vm1736_vm2, %v1738_v46, %v1734_v50  ;;  %v1772_v15 = vsel %vm1771_vm4, %v3363_v20, %v1768_v21  ;;  %v1806_v51 = vsub.f32 1.0, %v1805_v44  ;;  %v4652_v31 = vadd.f32 1.0, %v3373_v8  ;;  %vm1748_vm10 = vmor %vm1746_vm6, %vm1747_vm7 }
 0x434   :  { %v3375_v24 = vpop.eup %3374  ;;  %v1777_v39 = vsel %vm1774_vm5, %v1776_v7, %v1772_v15  ;;  %v1836_v12 = vmul.f32 %v3367_v32, %v1739_v38  ;;  %v1743_v19 = vsub.f32 1.0, %v1742_v36  ;;  %v1750_v21 = vand.u32 2147483647, %v4637_v53 }
 0x435   :  { %v1834_v0 = vmul.f32 %v1777_v39, %v4559_v25  ;;  %v1780_v5 = vmul.f32 %v3375_v24, %v4643_v33  ;;  %v1807_v29 = vmul.f32 %v4646_v16, %v1806_v51  ;;  %3378 = vrcp.f32 %v4652_v31  ;;  %v3377_v25 = vpop.eup %3376  ;;  %v4674_v51 = vpop.permute.xlu1 %3213 }
 0x436   :  { %v1744_v28 = vmul.f32 %v3371_v34, %v1743_v19  ;;  %v1790_v32 = vand.u32 2147483648, %v4643_v33  ;;  %v1753_v44 = vor.u32 1.1754944e-38, %v1752_v6  ;;  %vm1785_vm9 = vweird.f32 %v3375_v24 }
 0x437   :  { %v4660_v20 = vadd.f32 %v1836_v12, %v1834_v0  ;;  %v1781_v7 = vsub.f32 1.0, %v1780_v5  ;;  %v1808_v50 = vadd.f32 %v4646_v16, %v1807_v29  ;;  %v1788_v0 = vand.u32 2147483647, %v4643_v33  ;;  %vm1786_vm15 = vmor %vm1784_vm13, %vm1785_vm9 }
 0x438   :  { %v1745_v46 = vadd.f32 %v3371_v34, %v1744_v28  ;;  %vm1751_vm11 = vcmp.eq.f32.partialorder %v1750_v21, 8.507059e+37  ;;  %v1813_v8 = vand.u32 2147483647, %v4635_v23  ;;  %v1791_v39 = vor.u32 1.1754944e-38, %v1790_v32 }
 0x439   :  { %3380 = vtanh.f32 %v4660_v20  ;;  %v1782_v36 = vmul.f32 %v3375_v24, %v1781_v7  ;;  %vm1789_vm0 = vcmp.eq.f32.partialorder %v1788_v0, 8.507059e+37  ;;  %v1816_v33 = vor.u32 1.1754944e-38, %v1815_v57 }
 0x43a   :  { %v1749_v12 = vsel %vm1748_vm10, %v3371_v34, %v1745_v46  ;;  %v1812_v34 = vsel %vm4676_vm14, %v4646_v16, %v1808_v50  ;;  %v3215_v28 = vunpack.i.l.bf16 %v4674_v51  ;;  %vm1814_vm1 = vcmp.eq.f32.partialorder %v1813_v8, 8.507059e+37  ;;  %v5232_v8 = vld [vmem:[#allocation25_spill] sm:$0xff] }
 0x43b   :  { %v1754_v38 = vsel %vm1751_vm11, %v1753_v44, %v1749_v12  ;;  %v1783_v15 = vadd.f32 %v3375_v24, %v1782_v36  ;;  %v3379_v53 = vpop.eup %3378  ;;  %v1817_v44 = vsel %vm1814_vm1, %v1816_v33, %v1812_v34  ;;  %v1830_v57 = vand.u32 2147483648, %v4652_v31 }
 0x43c   :  { %v1837_v19 = vmul.f32 %v3377_v25, %v1754_v38  ;;  %v1820_v23 = vmul.f32 %v3379_v53, %v4652_v31  ;;  %vm1825_vm2 = vweird.f32 %v3379_v53  ;;  %vm1824_vm3 = vweird.f32 %v4652_v31 }
 0x43d   :  { %v1787_v5 = vsel %vm1786_vm15, %v3375_v24, %v1783_v15  ;;  %v1828_v50 = vand.u32 2147483647, %v4652_v31  ;;  %vm1826_vm4 = vmor %vm1824_vm3, %vm1825_vm2  ;;  %v1831_v12 = vor.u32 1.1754944e-38, %v1830_v57  ;;  %v3194_v38 = vunpack.i.l.bf16 %v5232_v8  ;;  %v5242_v31 = vld [vmem:[#allocation59_spill] sm:$0xff] }
 0x43e   :  { %v1792_v29 = vsel %vm1789_vm0, %v1791_v39, %v1787_v5  ;;  %v1821_v46 = vsub.f32 1.0, %v1820_v23 }
 0x43f   :  { %v3381_v21 = vpop.eup %3380  ;;  %v1835_v7 = vmul.f32 %v1792_v29, %v4579_v1  ;;  %vm1829_vm5 = vcmp.eq.f32.partialorder %v1828_v50, 8.507059e+37  ;;  %v5243_v29 = vld [vmem:[#allocation64_spill] sm:$0xff] }
 0x440   :  { %v1842_v32 = vmul.f32 %v3381_v21, %v1817_v44  ;;  %v1822_v36 = vmul.f32 %v3379_v53, %v1821_v46 }
 0x441   :  { %v4686_v25 = vadd.f32 %v1837_v19, %v1835_v7 }
 0x442   :  { %v1861_v16 = vmul.f32 %v3215_v28, %v1842_v32  ;;  %v1823_v24 = vadd.f32 %v3379_v53, %v1822_v36 }
 0x443   :  { %3382 = vtanh.f32 %v4686_v25 }
 0x444   :  { %v4693_v0 = vadd.f32 %v1861_v16, %v4583_v43  ;;  %v1827_v1 = vsel %vm1826_vm4, %v3379_v53, %v1823_v24  ;;  %v5244_v24 = vld [vmem:[#allocation63_spill] sm:$0xff] }
 0x445   :  { %v1832_v6 = vsel %vm1829_vm5, %v1831_v12, %v1827_v1 }
 0x449   :  { %v3383_v15 = vpop.eup %3382 }
 0x44a   :  { %v1843_v39 = vmul.f32 %v3383_v15, %v1832_v6 }
 0x44c   :  { %v1866_v19 = vpack.c.bf16 %v1843_v39, %v1842_v32  ;;  %v1862_v34 = vmul.f32 %v3194_v38, %v1843_v39 }
 0x44e   :  { %1875 = vmatmul.bf16.vlgmr.msra.gmra.mxu0 %v1866_v19  ;;  %1889 = vmatmul.bf16.vlgmr.msra.gmra.mxu1 %v1866_v19  ;;  %v4697_v5 = vadd.f32 %v1862_v34, %v4587_v56 }
 0x44f   :  { %1903 = vmatmul.bf16.vlgmr.msra.gmra.mxu2 %v1866_v19  ;;  %1917 = vmatmul.bf16.vlgmr.msra.gmra.mxu3 %v1866_v19 }
 0x450   :  { %2293 = vmatpush.bf16.msra.mxu0 %v3803_v37  ;;  %2307 = vmatpush.bf16.msra.mxu1 %v3805_v41  ;;  %v5233_v37 = vld [vmem:[#allocation78_spill] sm:$0xff]  ;;  %v5234_v41 = vld [vmem:[#allocation57_spill] sm:$0xff] }
 0x451   :  { %2321 = vmatpush.bf16.msra.mxu2 %v3807_v47  ;;  %2335 = vmatpush.bf16.msra.mxu3 %v3810_v48  ;;  %v439_v47 = vadd.f32 %v5234_v41, %v5233_v37  ;;  %v5235_v48 = vld [vmem:[#allocation79_spill] sm:$0xff] }
 0x454   :  { %2294 = vmatpush.bf16.msra.mxu0 %v3812_v49  ;;  %2308 = vmatpush.bf16.msra.mxu1 %v3815_v52  ;;  %v5236_v49 = vld [vmem:[#allocation58_spill] sm:$0xff] }
 0x455   :  { %2322 = vmatpush.bf16.msra.mxu2 %v3818_v55  ;;  %2336 = vmatpush.bf16.msra.mxu3 %v3822_v59  ;;  %v488_v52 = vadd.f32 %v5236_v49, %v5235_v48 }
 0x458   :  { %2295 = vmatpush.bf16.msra.mxu0 %v3824_v60  ;;  %2309 = vmatpush.bf16.msra.mxu1 %v3827_v63 }
 0x459   :  { %2323 = vmatpush.bf16.msra.mxu2 %v3830_v3  ;;  %2337 = vmatpush.bf16.msra.mxu3 %v3834_v4 }
 0x45c   :  { %2296 = vmatpush.bf16.msra.mxu0 %v3839_v9  ;;  %2310 = vmatpush.bf16.msra.mxu1 %v3841_v13  ;;  %v5237_v9 = vld [vmem:[#allocation82_spill] sm:$0xff]  ;;  %v5238_v13 = vld [vmem:[#allocation60_spill] sm:$0xff] }
 0x45d   :  { %2324 = vmatpush.bf16.msra.mxu2 %v3846_v17  ;;  %2338 = vmatpush.bf16.msra.mxu3 %v3843_v14  ;;  %v586_v14 = vadd.f32 %v5238_v13, %v5237_v9  ;;  %v5239_v17 = vld [vmem:[#allocation61_spill] sm:$0xff]  ;;  %v588_v28 = vadd.f32 %v5243_v29, %v5237_v9 }
 0x460   :  { %2297 = vmatpush.bf16.msra.mxu0 %v3851_v22  ;;  %2311 = vmatpush.bf16.msra.mxu1 %v3853_v26  ;;  %v441_v22 = vadd.f32 %v5239_v17, %v5233_v37  ;;  %v5240_v26 = vld [vmem:[#allocation62_spill] sm:$0xff] }
 0x461   :  { %2325 = vmatpush.bf16.msra.mxu2 %v3858_v30  ;;  %2339 = vmatpush.bf16.msra.mxu3 %v3855_v27  ;;  %v490_v27 = vadd.f32 %v5240_v26, %v5235_v48  ;;  %v5247_v17 = vld [vmem:[#allocation30_spill] sm:$0xff] }
 0x462   :  { %vm3045_vm11 = vcmp.gt.s32.totalorder %v5247_v17, 6  ;;  %vm3055_vm15 = vcmp.gt.s32.totalorder %v5247_v17, 7 }
 0x464   :  { %2298 = vmatpush.bf16.msra.mxu0 %v3863_v35  ;;  %2312 = vmatpush.bf16.msra.mxu1 %v3865_v40 }
 0x465   :  { %2326 = vmatpush.bf16.msra.mxu2 %v3870_v45  ;;  %2340 = vmatpush.bf16.msra.mxu3 %v3867_v42 }
 0x468   :  { %2299 = vmatpush.bf16.msra.mxu0 %v3875_v54  ;;  %2313 = vmatpush.bf16.msra.mxu1 %v3877_v61 }
 0x469   :  { %2327 = vmatpush.bf16.msra.mxu2 %v3882_v2  ;;  %2341 = vmatpush.bf16.msra.mxu3 %v3879_v62 }
 0x46c   :  { %2300 = vmatpush.bf16.msra.mxu0 %v3887_v10  ;;  %2314 = vmatpush.bf16.msra.mxu1 %v5181_v18 }
 0x46d   :  { %2328 = vmatpush.bf16.msra.mxu2 %v5216_v58  ;;  %2342 = vmatpush.bf16.msra.mxu3 %v5217_v11  ;;  %v5241_v11 = vld [vmem:[#allocation84_spill] sm:$0xff] }
 0x46e   :  { %v537_v53 = vadd.f32 %v5242_v31, %v5241_v11  ;;  %v539_v57 = vadd.f32 %v5244_v24, %v5241_v11 }
 0x4cb   :  { %v1876_v55 = vpop.f32.mrf.mxu0  ;;  %v1890_v59 = vpop.f32.mrf.mxu1 }
 0x4cc   :  { %v1923_v60 = vadd.f32 %v1876_v55, %v439_v47  ;;  %v1924_v63 = vadd.f32 %v1890_v59, %v488_v52 }
 0x4ce   :  { %v3029_v3 = vmul.f32 -1.442695, %v1923_v60  ;;  %v3031_v4 = vmul.f32 -1.442695, %v1924_v63 }
 0x4d0   :  { %3384 = vpow2.f32 %v3029_v3 }
 0x4d1   :  { %3386 = vpow2.f32 %v3031_v4 }
 0x4d2   :  { %v1918_v30 = vpop.f32.mrf.mxu3  ;;  %v1904_v2 = vpop.f32.mrf.mxu2 }
 0x4d3   :  { %v1926_v35 = vadd.f32 %v1918_v30, %v586_v14  ;;  %v1878_v40 = vpop.f32.mrf.mxu0  ;;  %v1892_v42 = vpop.f32.mrf.mxu1  ;;  %v1925_v23 = vadd.f32 %v1904_v2, %v537_v53 }
 0x4d4   :  { %v1927_v45 = vadd.f32 %v1878_v40, %v441_v22  ;;  %v1928_v54 = vadd.f32 %v1892_v42, %v490_v27  ;;  %v5248_v40 = vmov 0.0  }
 0x4d5   :  { %v3033_v61 = vmul.f32 -1.442695, %v1926_v35  ;;  %v3047_v42 = vsel %vm3045_vm11, 1.0, %v5248_v40 }
 0x4d6   :  { %v3385_v62 = vpop.eup %3384  ;;  %v3030_v10 = vmul.f32 -1.442695, %v1927_v45  ;;  %v3032_v56 = vmul.f32 -1.442695, %v1928_v54 }
 0x4d7   :  { %v3387_v18 = vpop.eup %3386  ;;  %v1937_v43 = vadd.f32 1.0, %v3385_v62  ;;  %3388 = vpow2.f32 %v3033_v61 }
 0x4d8   :  { %v1975_v58 = vadd.f32 1.0, %v3387_v18  ;;  %3390 = vpow2.f32 %v3030_v10 }
 0x4d9   :  { %3392 = vrcp.f32 %v1937_v43  ;;  %v1948_v6 = vand.u32 2147483647, %v1937_v43  ;;  %v1950_v39 = vand.u32 2147483648, %v1937_v43  ;;  %vm1944_vm6 = vweird.f32 %v1937_v43 }
 0x4da   :  { %3394 = vrcp.f32 %v1975_v58  ;;  %v1920_v33 = vpop.f32.mrf.mxu3  ;;  %v1906_v1 = vpop.f32.mrf.mxu2  ;;  %v1988_v15 = vand.u32 2147483648, %v1975_v58  ;;  %v1986_v49 = vand.u32 2147483647, %v1975_v58  ;;  %vm1982_vm7 = vweird.f32 %v1975_v58 }
 0x4db   :  { %3396 = vpow2.f32 %v3032_v56  ;;  %v1930_v44 = vadd.f32 %v1920_v33, %v588_v28  ;;  %v1929_v52 = vadd.f32 %v1906_v1, %v539_v57  ;;  %vm4756_vm10 = vcmp.eq.f32.partialorder %v1948_v6, 8.507059e+37 }
 0x4dc   :  { %3398 = vtanh.f32 %v1925_v23  ;;  %v1951_v3 = vor.u32 1.1754944e-38, %v1950_v39  ;;  %v1989_v13 = vor.u32 1.1754944e-38, %v1988_v15  ;;  %vm1987_vm13 = vcmp.eq.f32.partialorder %v1986_v49, 8.507059e+37 }
 0x4dd   :  { %v3389_v21 = vpop.eup %3388  ;;  %v3034_v41 = vmul.f32 -1.442695, %v1930_v44 }
 0x4de   :  { %v3391_v7 = vpop.eup %3390  ;;  %v4745_v46 = vadd.f32 1.0, %v3389_v21 }
 0x4df   :  { %v3393_v32 = vpop.eup %3392  ;;  %v4747_v36 = vadd.f32 1.0, %v3391_v7 }
 0x4e0   :  { %v3395_v16 = vpop.eup %3394  ;;  %v1940_v50 = vmul.f32 %v3393_v32, %v1937_v43  ;;  %3400 = vrcp.f32 %v4745_v46  ;;  %vm1945_vm8 = vweird.f32 %v3393_v32  ;;  %v2028_v35 = vand.u32 2147483648, %v4745_v46 }
 0x4e1   :  { %v3397_v12 = vpop.eup %3396  ;;  %v1978_v38 = vmul.f32 %v3395_v16, %v1975_v58  ;;  %3402 = vrcp.f32 %v4747_v36  ;;  %vm1983_vm9 = vweird.f32 %v3395_v16  ;;  %vm1946_vm12 = vmor %vm1944_vm6, %vm1945_vm8  ;;  %vm1959_vm0 = vweird.f32 %v4747_v36 }
 0x4e2   :  { %v1941_v19 = vsub.f32 1.0, %v1940_v50  ;;  %v4753_v34 = vadd.f32 1.0, %v3397_v12  ;;  %v3399_v59 = vpop.eup %3398  ;;  %vm1984_vm14 = vmor %vm1982_vm7, %vm1983_vm9  ;;  %v3057_v43 = vsel %vm3055_vm15, 1.0, %v5248_v40  ;;  %v1963_v29 = vand.u32 2147483647, %v4747_v36 }
 0x4e3   :  { %v1979_v47 = vsub.f32 1.0, %v1978_v38  ;;  %v1965_v28 = vand.u32 2147483648, %v4747_v36  ;;  %v3217_v21 = vpack.i.bf16 %v3057_v43, %v3047_v42  ;;  %vm2022_vm4 = vweird.f32 %v4745_v46 }
 0x4e4   :  { %v1942_v55 = vmul.f32 %v3393_v32, %v1941_v19  ;;  %3404 = vrcp.f32 %v4753_v34  ;;  %v2003_v33 = vand.u32 2147483648, %v4753_v34  ;;  %v2001_v24 = vand.u32 2147483647, %v4753_v34 }
 0x4e5   :  { %v1980_v60 = vmul.f32 %v3395_v16, %v1979_v47  ;;  %3406 = vpow2.f32 %v3034_v41  ;;  %3218 = vperm.xlu2 %3201, %v3217_v21   ;;  %v2026_v12 = vand.u32 2147483647, %v4745_v46  ;;  %v1966_v38 = vor.u32 1.1754944e-38, %v1965_v28  ;;  %v5255_v21 = vld [vmem:[#allocation70_spill] sm:$0xff] }
 0x4e6   :  { %v4760_v4 = vpop.eup %3400  ;;  %v1943_v14 = vadd.f32 %v3393_v32, %v1942_v55  ;;  %3408 = vtanh.f32 %v1929_v52  ;;  %vm1997_vm7 = vweird.f32 %v4753_v34  ;;  %vm1964_vm8 = vcmp.eq.f32.partialorder %v1963_v29, 8.507059e+37 }
 0x4e7   :  { %v1981_v22 = vadd.f32 %v3395_v16, %v1980_v60  ;;  %v2018_v26 = vmul.f32 %v4760_v4, %v4745_v46  ;;  %v3403_v27 = vpop.eup %3402  ;;  %vm2023_vm2 = vweird.f32 %v4760_v4  ;;  %v2004_v19 = vor.u32 1.1754944e-38, %v2003_v33  ;;  %v5253_v33 = vld [vmem:[#allocation68_spill] sm:$0xff] }
 0x4e8   :  { %v1947_v30 = vsel %vm1946_vm12, %v3393_v32, %v1943_v14  ;;  %v1955_v62 = vmul.f32 %v3403_v27, %v4747_v36  ;;  %vm1960_vm1 = vweird.f32 %v3403_v27  ;;  %vm4791_vm6 = vmor %vm2022_vm4, %vm2023_vm2  ;;  %v2029_v36 = vor.u32 1.1754944e-38, %v2028_v35 }
 0x4e9   :  { %v1952_v45 = vsel %vm4756_vm10, %v1951_v3, %v1947_v30  ;;  %v1985_v54 = vsel %vm1984_vm14, %v3395_v16, %v1981_v22  ;;  %v2019_v61 = vsub.f32 1.0, %v2018_v26  ;;  %vm1961_vm5 = vmor %vm1959_vm0, %vm1960_vm1  ;;  %vm2002_vm10 = vcmp.eq.f32.partialorder %v2001_v24, 8.507059e+37 }
 0x4ea   :  { %v3405_v2 = vpop.eup %3404  ;;  %v1990_v10 = vsel %vm1987_vm13, %v1989_v13, %v1985_v54  ;;  %v2049_v18 = vmul.f32 %v3399_v59, %v1952_v45  ;;  %v1956_v31 = vsub.f32 1.0, %v1955_v62  ;;  %v3216_v52 = vunpack.i.h.bf16 %v4674_v51 }
 0x4eb   :  { %v2047_v56 = vmul.f32 %v1990_v10, %v4660_v20  ;;  %v2020_v58 = vmul.f32 %v4760_v4, %v2019_v61  ;;  %v1993_v53 = vmul.f32 %v3405_v2, %v4753_v34  ;;  %v3407_v23 = vpop.eup %3406  ;;  %vm1998_vm3 = vweird.f32 %v3405_v2 }
 0x4ec   :  { %v3409_v7 = vpop.eup %3408  ;;  %v1957_v16 = vmul.f32 %v3403_v27, %v1956_v31  ;;  %v2016_v57 = vadd.f32 1.0, %v3407_v23  ;;  %vm1999_vm9 = vmor %vm1997_vm7, %vm1998_vm3  ;;  %vm2027_vm11 = vcmp.eq.f32.partialorder %v2026_v12, 8.507059e+37  ;;  %v3195_v40 = vunpack.i.h.bf16 %v5232_v8 }
 0x4ed   :  { %v4781_v44 = vadd.f32 %v2049_v18, %v2047_v56  ;;  %v1994_v32 = vsub.f32 1.0, %v1993_v53  ;;  %v2021_v20 = vadd.f32 %v4760_v4, %v2020_v58  ;;  %v5252_v18 = vld [vmem:[#allocation66_spill] sm:$0xff]  ;;  %v591_v29 = vadd.f32 %v5253_v33, %v5237_v9 }
 0x4ee   :  { %v1958_v1 = vadd.f32 %v3403_v27, %v1957_v16  ;;  %v2043_v22 = vand.u32 2147483648, %v2016_v57  ;;  %vm2037_vm13 = vweird.f32 %v2016_v57  ;;  %v493_v43 = vadd.f32 %v5252_v18, %v5235_v48 }
 0x4ef   :  { %3410 = vtanh.f32 %v4781_v44  ;;  %v1995_v50 = vmul.f32 %v3405_v2, %v1994_v32  ;;  %v2025_v46 = vsel %vm4791_vm6, %v4760_v4, %v2021_v20 }
 0x4f0   :  { %3412 = vrcp.f32 %v2016_v57  ;;  %v1962_v6 = vsel %vm1961_vm5, %v3403_v27, %v1958_v1  ;;  %v2030_v60 = vsel %vm2027_vm11, %v2029_v36, %v2025_v46  ;;  %v2041_v27 = vand.u32 2147483647, %v2016_v57  ;;  %v5256_v46 = vld [vmem:[#allocation67_spill] sm:$0xff] }
 0x4f1   :  { %v1996_v39 = vadd.f32 %v3405_v2, %v1995_v50  ;;  %v1967_v41 = vsel %vm1964_vm8, %v1966_v38, %v1962_v6  ;;  %v542_v36 = vadd.f32 %v5256_v46, %v5241_v11 }
 0x4f2   :  { %v2050_v49 = vmul.f32 %v3409_v7, %v1967_v41  ;;  %vm2042_vm15 = vcmp.eq.f32.partialorder %v2041_v27, 8.507059e+37  ;;  %v495_v7 = vadd.f32 %v5255_v21, %v5235_v48  ;;  %v5258_v27 = vld [vmem:[#allocation74_spill] sm:$0xff] }
 0x4f3   :  { %v2000_v47 = vsel %vm1999_vm9, %v3405_v2, %v1996_v39  ;;  %v5251_v2 = vld [vmem:[#allocation65_spill] sm:$0xff] }
 0x4f4   :  { %v2005_v55 = vsel %vm2002_vm10, %v2004_v19, %v2000_v47  ;;  %v444_v10 = vadd.f32 %v5251_v2, %v5233_v37  ;;  %v5257_v47 = vld [vmem:[#allocation71_spill] sm:$0xff] }
 0x4f5   :  { %v3411_v59 = vpop.eup %3410  ;;  %v2048_v34 = vmul.f32 %v2005_v55, %v4686_v25  ;;  %v2044_v25 = vor.u32 1.1754944e-38, %v2043_v22 }
 0x4f6   :  { %v3413_v63 = vpop.eup %3412  ;;  %v2055_v3 = vmul.f32 %v3411_v59, %v2030_v60 }
 0x4f7   :  { %v4801_v13 = vadd.f32 %v2050_v49, %v2048_v34  ;;  %v2033_v14 = vmul.f32 %v3413_v63, %v2016_v57  ;;  %vm2038_vm12 = vweird.f32 %v3413_v63  ;;  %v593_v49 = vadd.f32 %v5257_v47, %v5237_v9 }
 0x4f8   :  { %v2074_v17 = vmul.f32 %v3216_v52, %v2055_v3  ;;  %vm2039_vm14 = vmor %vm2037_vm13, %vm2038_vm12 }
 0x4f9   :  { %3414 = vtanh.f32 %v4801_v13  ;;  %v2034_v4 = vsub.f32 1.0, %v2033_v14 }
 0x4fa   :  { %v4805_v26 = vadd.f32 %v2074_v17, %v4693_v0 }
 0x4fb   :  { %v2035_v51 = vmul.f32 %v3413_v63, %v2034_v4 }
 0x4fd   :  { %v2036_v30 = vadd.f32 %v3413_v63, %v2035_v51 }
 0x4ff   :  { %v3415_v35 = vpop.eup %3414  ;;  %v2040_v42 = vsel %vm2039_vm14, %v3413_v63, %v2036_v30  ;;  %v544_v30 = vadd.f32 %v5258_v27, %v5241_v11 }
 0x500   :  { %v2045_v45 = vsel %vm2042_vm15, %v2044_v25, %v2040_v42 }
 0x501   :  { %v2056_v54 = vmul.f32 %v3415_v35, %v2045_v45 }
 0x503   :  { %v2079_v61 = vpack.c.bf16 %v2056_v54, %v2055_v3  ;;  %v2075_v62 = vmul.f32 %v3195_v40, %v2056_v54 }
 0x505   :  { %2088 = vmatmul.bf16.vlgmr.msrb.gmra.mxu0 %v2079_v61  ;;  %2102 = vmatmul.bf16.vlgmr.msrb.gmra.mxu1 %v2079_v61  ;;  %v4809_v0 = vadd.f32 %v2075_v62, %v4697_v5  ;;  %v5254_v5 = vld [vmem:[#allocation69_spill] sm:$0xff] }
 0x506   :  { %2116 = vmatmul.bf16.vlgmr.msrb.gmra.mxu2 %v2079_v61  ;;  %2130 = vmatmul.bf16.vlgmr.msrb.gmra.mxu3 %v2079_v61  ;;  %v446_v28 = vadd.f32 %v5254_v5, %v5233_v37 }
 0x53f   :  { %v4871_v27 = vpop.permute.xlu2 %3218 }
 0x582   :  { %v2089_v8 = vpop.f32.mrf.mxu0  ;;  %v2103_v56 = vpop.f32.mrf.mxu1 }
 0x583   :  { %v2136_v58 = vadd.f32 %v2089_v8, %v444_v10  ;;  %v2137_v31 = vadd.f32 %v2103_v56, %v493_v43  ;;  %v2514_v56 = vld [vmem:[%s5031_s1 + $0x8] sm:$0xff] }
 0x584   :  { %2522 = vperm.xlu0 %3179, %v2514_v56  }
 0x585   :  { %v3039_v53 = vmul.f32 -1.442695, %v2136_v58  ;;  %v3041_v23 = vmul.f32 -1.442695, %v2137_v31 }
 0x587   :  { %3416 = vpow2.f32 %v3039_v53 }
 0x588   :  { %3418 = vpow2.f32 %v3041_v23 }
 0x589   :  { %v2131_v32 = vpop.f32.mrf.mxu3  ;;  %v2117_v39 = vpop.f32.mrf.mxu2 }
 0x58a   :  { %v2139_v16 = vadd.f32 %v2131_v32, %v591_v29  ;;  %v2091_v20 = vpop.f32.mrf.mxu0  ;;  %v2105_v24 = vpop.f32.mrf.mxu1  ;;  %v2138_v55 = vadd.f32 %v2117_v39, %v542_v36 }
 0x58b   :  { %v2140_v57 = vadd.f32 %v2091_v20, %v446_v28  ;;  %v2141_v50 = vadd.f32 %v2105_v24, %v495_v7 }
 0x58c   :  { %v3043_v1 = vmul.f32 -1.442695, %v2139_v16 }
 0x58d   :  { %v3417_v12 = vpop.eup %3416  ;;  %v3040_v38 = vmul.f32 -1.442695, %v2140_v57  ;;  %v3042_v19 = vmul.f32 -1.442695, %v2141_v50 }
 0x58e   :  { %v3419_v15 = vpop.eup %3418  ;;  %v2150_v6 = vadd.f32 1.0, %v3417_v12  ;;  %3420 = vpow2.f32 %v3043_v1 }
 0x58f   :  { %v2188_v41 = vadd.f32 1.0, %v3419_v15  ;;  %3422 = vpow2.f32 %v3040_v38 }
 0x590   :  { %3424 = vrcp.f32 %v2150_v6  ;;  %v2161_v42 = vand.u32 2147483647, %v2150_v6  ;;  %v2163_v45 = vand.u32 2147483648, %v2150_v6  ;;  %vm2157_vm3 = vweird.f32 %v2150_v6 }
 0x591   :  { %3426 = vrcp.f32 %v2188_v41  ;;  %v2133_v52 = vpop.f32.mrf.mxu3  ;;  %v2119_v35 = vpop.f32.mrf.mxu2  ;;  %v2201_v62 = vand.u32 2147483648, %v2188_v41  ;;  %v2199_v2 = vand.u32 2147483647, %v2188_v41  ;;  %vm2195_vm2 = vweird.f32 %v2188_v41 }
 0x592   :  { %3428 = vpow2.f32 %v3042_v19  ;;  %v2143_v59 = vadd.f32 %v2133_v52, %v593_v49  ;;  %v2142_v18 = vadd.f32 %v2119_v35, %v544_v30  ;;  %vm2162_vm4 = vcmp.eq.f32.partialorder %v2161_v42, 8.507059e+37  ;;  %v2513_v19 = vld [vmem:[%s5031_s1] sm:$0xff] }
 0x593   :  { %3430 = vtanh.f32 %v2138_v55  ;;  %v2202_v23 = vor.u32 1.1754944e-38, %v2201_v62  ;;  %v2164_v33 = vor.u32 1.1754944e-38, %v2163_v45  ;;  %vm2200_vm7 = vcmp.eq.f32.partialorder %v2199_v2, 8.507059e+37  ;;  %2517 = vperm.xlu0 %3179, %v2513_v19   ;;  %v2538_v19 = vld [vmem:[#allocation9 + $0x58] sm:$0xff] }
 0x594   :  { %v3421_v34 = vpop.eup %3420  ;;  %v3044_v17 = vmul.f32 -1.442695, %v2143_v59 }
 0x595   :  { %v3423_v60 = vpop.eup %3422  ;;  %v4825_v63 = vadd.f32 1.0, %v3421_v34 }
 0x596   :  { %v3425_v3 = vpop.eup %3424  ;;  %v4827_v14 = vadd.f32 1.0, %v3423_v60 }
 0x597   :  { %v3427_v4 = vpop.eup %3426  ;;  %v2153_v22 = vmul.f32 %v3425_v3, %v2150_v6  ;;  %3432 = vrcp.f32 %v4825_v63  ;;  %vm2158_vm0 = vweird.f32 %v3425_v3  ;;  %v2241_v49 = vand.u32 2147483648, %v4825_v63 }
 0x598   :  { %v3429_v51 = vpop.eup %3428  ;;  %v2191_v25 = vmul.f32 %v3427_v4, %v2188_v41  ;;  %3434 = vrcp.f32 %v4827_v14  ;;  %vm2196_vm1 = vweird.f32 %v3427_v4  ;;  %vm2159_vm5 = vmor %vm2157_vm3, %vm2158_vm0  ;;  %v2178_v24 = vand.u32 2147483648, %v4827_v14 }
 0x599   :  { %v2154_v40 = vsub.f32 1.0, %v2153_v22  ;;  %v4833_v54 = vadd.f32 1.0, %v3429_v51  ;;  %3436 = vpow2.f32 %v3044_v17  ;;  %v3431_v43 = vpop.eup %3430  ;;  %vm2197_vm6 = vmor %vm2195_vm2, %vm2196_vm1  ;;  %vm2172_vm8 = vweird.f32 %v4827_v14 }
 0x59a   :  { %v2192_v61 = vsub.f32 1.0, %v2191_v25  ;;  %v2176_v46 = vand.u32 2147483647, %v4827_v14  ;;  %v2179_v59 = vor.u32 1.1754944e-38, %v2178_v24  ;;  %vm2235_vm14 = vweird.f32 %v4825_v63 }
 0x59b   :  { %v2155_v10 = vmul.f32 %v3425_v3, %v2154_v40  ;;  %3438 = vrcp.f32 %v4833_v54  ;;  %vm2210_vm15 = vweird.f32 %v4833_v54  ;;  %v2242_v45 = vor.u32 1.1754944e-38, %v2241_v49 }
 0x59c   :  { %v2193_v8 = vmul.f32 %v3427_v4, %v2192_v61  ;;  %3440 = vtanh.f32 %v2142_v18  ;;  %vm2177_vm13 = vcmp.eq.f32.partialorder %v2176_v46, 8.507059e+37  ;;  %v3220_v61 = vunpack.i.l.bf16 %v4871_v27 }
 0x59d   :  { %v4839_v58 = vpop.eup %3432  ;;  %v2156_v31 = vadd.f32 %v3425_v3, %v2155_v10 }
 0x59e   :  { %v3435_v53 = vpop.eup %3434  ;;  %v2194_v29 = vadd.f32 %v3427_v4, %v2193_v8  ;;  %v2231_v5 = vmul.f32 %v4839_v58, %v4825_v63  ;;  %vm2236_vm10 = vweird.f32 %v4839_v58 }
 0x59f   :  { %v2160_v28 = vsel %vm2159_vm5, %v3425_v3, %v2156_v31  ;;  %v2168_v21 = vmul.f32 %v3435_v53, %v4827_v14  ;;  %v3437_v7 = vpop.eup %3436  ;;  %vm2173_vm9 = vweird.f32 %v3435_v53  ;;  %v2214_v3 = vand.u32 2147483647, %v4833_v54  ;;  %vm4875_vm0 = vmor %vm2235_vm14, %vm2236_vm10 }
 0x5a0   :  { %v2165_v32 = vsel %vm2162_vm4, %v2164_v33, %v2160_v28  ;;  %v2198_v16 = vsel %vm2197_vm6, %v3427_v4, %v2194_v29  ;;  %v2232_v20 = vsub.f32 1.0, %v2231_v5  ;;  %v4846_v38 = vadd.f32 1.0, %v3437_v7  ;;  %vm2174_vm12 = vmor %vm2172_vm8, %vm2173_vm9  ;;  %v5261_v5 = vld [vmem:[#allocation28_spill] sm:$0xff] }
 0x5a1   :  { %v3439_v57 = vpop.eup %3438  ;;  %v2203_v50 = vsel %vm2200_vm7, %v2202_v23, %v2198_v16  ;;  %v2262_v1 = vmul.f32 %v3431_v43, %v2165_v32  ;;  %v2169_v12 = vsub.f32 1.0, %v2168_v21  ;;  %v2239_v4 = vand.u32 2147483647, %v4825_v63 }
 0x5a2   :  { %v2260_v15 = vmul.f32 %v2203_v50, %v4781_v44  ;;  %v2206_v6 = vmul.f32 %v3439_v57, %v4833_v54  ;;  %v2233_v39 = vmul.f32 %v4839_v58, %v2232_v20  ;;  %3442 = vrcp.f32 %v4846_v38  ;;  %v3441_v52 = vpop.eup %3440  ;;  %v2540_v50 = vld [vmem:[#allocation9 + $0x68] sm:$0xff] }
 0x5a3   :  { %v2170_v41 = vmul.f32 %v3435_v53, %v2169_v12  ;;  %v2216_v44 = vand.u32 2147483648, %v4833_v54  ;;  %vm2211_vm11 = vweird.f32 %v3439_v57  ;;  %vm2215_vm2 = vcmp.eq.f32.partialorder %v2214_v3, 8.507059e+37  ;;  %v5262_v12 = vld [vmem:[#allocation72_spill] sm:$0xff] }
 0x5a4   :  { %v4857_v36 = vadd.f32 %v2262_v1, %v2260_v15  ;;  %v2207_v47 = vsub.f32 1.0, %v2206_v6  ;;  %v2234_v34 = vadd.f32 %v4839_v58, %v2233_v39  ;;  %vm2212_vm1 = vmor %vm2210_vm15, %vm2211_vm11  ;;  %vm2240_vm3 = vcmp.eq.f32.partialorder %v2239_v4, 8.507059e+37  ;;  %v2539_v1 = vld [vmem:[#allocation9 + $0x60] sm:$0xff]  ;;  %v5263_v15 = vld [vmem:[#allocation73_spill] sm:$0xff] }
 0x5a5   :  { %v2171_v55 = vadd.f32 %v3435_v53, %v2170_v41  ;;  %v2217_v25 = vor.u32 1.1754944e-38, %v2216_v44  ;;  %vm2250_vm5 = vweird.f32 %v4846_v38  ;;  %v2254_v23 = vand.u32 2147483647, %v4846_v38 }
 0x5a6   :  { %3444 = vtanh.f32 %v4857_v36  ;;  %v2208_v60 = vmul.f32 %v3439_v57, %v2207_v47  ;;  %v2238_v63 = vsel %vm4875_vm0, %v4839_v58, %v2234_v34  ;;  %v3199_v28 = vunpack.i.l.bf16 %v5261_v5  ;;  %v2537_v47 = vld [vmem:[#allocation9 + $0x50] sm:$0xff]  ;;  %v2535_v34 = vld [vmem:[#allocation9 + $0x40] sm:$0xff] }
 0x5a7   :  { %v2175_v17 = vsel %vm2174_vm12, %v3435_v53, %v2171_v55  ;;  %v2243_v18 = vsel %vm2240_vm3, %v2242_v45, %v2238_v63  ;;  %v2256_v53 = vand.u32 2147483648, %v4846_v38  ;;  %vm2255_vm7 = vcmp.eq.f32.partialorder %v2254_v23, 8.507059e+37  ;;  %v5264_v55 = vld [vmem:[#allocation75_spill] sm:$0xff] }
 0x5a8   :  { %v2180_v22 = vsel %vm2177_vm13, %v2179_v59, %v2175_v17  ;;  %v2209_v51 = vadd.f32 %v3439_v57, %v2208_v60  ;;  %v3443_v14 = vpop.eup %3442  ;;  %v498_v6 = vadd.f32 %v5263_v15, %v5235_v48  ;;  %v596_v59 = vadd.f32 %v5264_v55, %v5237_v9  ;;  %v5265_v60 = vld [vmem:[#allocation76_spill] sm:$0xff]  ;;  %v5266_v17 = vld [vmem:[#allocation77_spill] sm:$0xff] }
 0x5a9   :  { %v2263_v35 = vmul.f32 %v3441_v52, %v2180_v22  ;;  %v2246_v42 = vmul.f32 %v3443_v14, %v4846_v38  ;;  %vm2251_vm4 = vweird.f32 %v3443_v14  ;;  %v2257_v29 = vor.u32 1.1754944e-38, %v2256_v53  ;;  %v2536_v52 = vld [vmem:[#allocation9 + $0x48] sm:$0xff] }
 0x5aa   :  { %v2213_v40 = vsel %vm2212_vm1, %v3439_v57, %v2209_v51  ;;  %vm2252_vm6 = vmor %vm2250_vm5, %vm2251_vm4  ;;  %v2541_v57 = vld [vmem:[#allocation9 + $0x70] sm:$0xff]  ;;  %v449_v38 = vadd.f32 %v5262_v12, %v5233_v37  ;;  %v451_v3 = vadd.f32 %v5265_v60, %v5233_v37  ;;  %v500_v4 = vadd.f32 %v5266_v17, %v5235_v48 }
 0x5ab   :  { %v2218_v54 = vsel %vm2215_vm2, %v2217_v25, %v2213_v40  ;;  %v2247_v10 = vsub.f32 1.0, %v2246_v42  ;;  %v2534_v25 = vld [vmem:[#allocation9 + $0x38] sm:$0xff]  ;;  %v2533_v42 = vld [vmem:[#allocation9 + $0x30] sm:$0xff] }
 0x5ac   :  { %v3445_v62 = vpop.eup %3444  ;;  %v2261_v2 = vmul.f32 %v2218_v54, %v4801_v13 }
 0x5ad   :  { %v2268_v43 = vmul.f32 %v3445_v62, %v2243_v18  ;;  %v2248_v56 = vmul.f32 %v3443_v14, %v2247_v10  ;;  %v5267_v18 = vld [vmem:[#allocation80_spill] sm:$0xff] }
 0x5ae   :  { %v4885_v8 = vadd.f32 %v2263_v35, %v2261_v2  ;;  %v2532_v2 = vld [vmem:[#allocation9 + $0x28] sm:$0xff] }
 0x5af   :  { %v2287_v58 = vmul.f32 %v3220_v61, %v2268_v43  ;;  %v2249_v31 = vadd.f32 %v3443_v14, %v2248_v56  ;;  %v2531_v56 = vld [vmem:[#allocation9 + $0x20] sm:$0xff] }
 0x5b0   :  { %3446 = vtanh.f32 %v4885_v8 }
 0x5b1   :  { %v4892_v33 = vadd.f32 %v2287_v58, %v4805_v26  ;;  %v2253_v13 = vsel %vm2252_vm6, %v3443_v14, %v2249_v31  ;;  %v2542_v26 = vld [vmem:[#allocation9 + $0x78] sm:$0xff]  ;;  %v5268_v58 = vld [vmem:[#allocation81_spill] sm:$0xff] }
 0x5b2   :  { %v2258_v7 = vsel %vm2255_vm7, %v2257_v29, %v2253_v13  ;;  %2547 = vmatpush.msrb.mxu0 %v2542_v26  ;;  %3131 = vmatpush.msrb.mxu2 %v2542_v26  ;;  %v598_v31 = vadd.f32 %v5268_v58, %v5237_v9  ;;  %v2530_v13 = vld [vmem:[#allocation9 + $0x18] sm:$0xff] }
 0x5b4   :  { %2548 = vmatpush.msrb.mxu0 %v2541_v57  ;;  %3132 = vmatpush.msrb.mxu2 %v2541_v57 }
 0x5b6   :  { %v3447_v21 = vpop.eup %3446  ;;  %2549 = vmatpush.msrb.mxu0 %v2540_v50  ;;  %3133 = vmatpush.msrb.mxu2 %v2540_v50 }
 0x5b7   :  { %v2269_v32 = vmul.f32 %v3447_v21, %v2258_v7 }
 0x5b8   :  { %2550 = vmatpush.msrb.mxu0 %v2539_v1  ;;  %3134 = vmatpush.msrb.mxu2 %v2539_v1  ;;  %v5269_v1 = vld [vmem:[#allocation83_spill] sm:$0xff] }
 0x5b9   :  { %v2292_v16 = vpack.c.bf16 %v2269_v32, %v2268_v43  ;;  %v2288_v20 = vmul.f32 %v3199_v28, %v2269_v32  ;;  %v547_v43 = vadd.f32 %v5267_v18, %v5241_v11  ;;  %v2529_v28 = vld [vmem:[#allocation9 + $0x10] sm:$0xff]  ;;  %v549_v12 = vadd.f32 %v5269_v1, %v5241_v11 }
 0x5ba   :  { %2551 = vmatpush.msrb.mxu0 %v2538_v19  ;;  %3135 = vmatpush.msrb.mxu2 %v2538_v19  ;;  %v2580_v1 = vld [vmem:[#allocation11 + $0x50] sm:$0xff] }
 0x5bb   :  { %2301 = vmatmul.bf16.vlgmr.msra.gmra.mxu0 %v2292_v16  ;;  %2315 = vmatmul.bf16.vlgmr.msra.gmra.mxu1 %v2292_v16  ;;  %v4896_v24 = vadd.f32 %v2288_v20, %v4809_v0  ;;  %v2528_v20 = vld [vmem:[#allocation9 + $0x8] sm:$0xff] }
 0x5bc   :  { %2329 = vmatmul.bf16.vlgmr.msra.gmra.mxu2 %v2292_v16  ;;  %2343 = vmatmul.bf16.vlgmr.msra.gmra.mxu3 %v2292_v16 }
 0x5bd   :  { %2552 = vmatpush.msrb.mxu0 %v2537_v47  ;;  %3136 = vmatpush.msrb.mxu2 %v2537_v47 }
 0x5bf   :  { %2553 = vmatpush.msrb.mxu0 %v2536_v52  ;;  %3137 = vmatpush.msrb.mxu2 %v2536_v52 }
 0x5c1   :  { %2554 = vmatpush.msrb.mxu0 %v2535_v34  ;;  %3138 = vmatpush.msrb.mxu2 %v2535_v34 }
 0x5c3   :  { %2555 = vmatpush.msrb.mxu0 %v2534_v25  ;;  %3139 = vmatpush.msrb.mxu2 %v2534_v25  ;;  %v2585_v25 = vld [vmem:[#allocation11 + $0x78] sm:$0xff] }
 0x5c4   :  { %2590 = vmatpush.msrb.mxu1 %v2585_v25  ;;  %3147 = vmatpush.msrb.mxu3 %v2585_v25  ;;  %v2575_v25 = vld [vmem:[#allocation11 + $0x28] sm:$0xff] }
 0x5c5   :  { %2556 = vmatpush.msrb.mxu0 %v2533_v42  ;;  %3140 = vmatpush.msrb.mxu2 %v2533_v42 }
 0x5c7   :  { %2557 = vmatpush.msrb.mxu0 %v2532_v2  ;;  %3141 = vmatpush.msrb.mxu2 %v2532_v2 }
 0x5c9   :  { %2558 = vmatpush.msrb.mxu0 %v2531_v56  ;;  %3142 = vmatpush.msrb.mxu2 %v2531_v56 }
 0x5cb   :  { %2559 = vmatpush.msrb.mxu0 %v2530_v13  ;;  %3143 = vmatpush.msrb.mxu2 %v2530_v13 }
 0x5cd   :  { %2560 = vmatpush.msrb.mxu0 %v2529_v28  ;;  %3144 = vmatpush.msrb.mxu2 %v2529_v28 }
 0x5cf   :  { %2561 = vmatpush.msrb.mxu0 %v2528_v20  ;;  %3145 = vmatpush.msrb.mxu2 %v2528_v20 }
 0x638   :  { %v2302_v0 = vpop.f32.mrf.mxu0  ;;  %v2316_v39 = vpop.f32.mrf.mxu1 }
 0x639   :  { %v2349_v41 = vadd.f32 %v2302_v0, %v449_v38  ;;  %v2350_v46 = vadd.f32 %v2316_v39, %v498_v6  ;;  %v2527_v6 = vld [vmem:[#allocation9] sm:$0xff] }
 0x63a   :  { %2562 = vmatpush.msrb.mxu0 %v2527_v6  ;;  %3146 = vmatpush.msrb.mxu2 %v2527_v6 }
 0x63b   :  { %v3049_v44 = vmul.f32 -1.442695, %v2349_v41  ;;  %v3051_v49 = vmul.f32 -1.442695, %v2350_v46 }
 0x63d   :  { %3448 = vpow2.f32 %v3049_v44 }
 0x63e   :  { %3450 = vpow2.f32 %v3051_v49 }
 0x63f   :  { %v2344_v22 = vpop.f32.mrf.mxu3  ;;  %v2330_v48 = vpop.f32.mrf.mxu2 }
 0x640   :  { %v2352_v51 = vadd.f32 %v2344_v22, %v596_v59  ;;  %v2304_v30 = vpop.f32.mrf.mxu0  ;;  %v2318_v14 = vpop.f32.mrf.mxu1  ;;  %v2351_v23 = vadd.f32 %v2330_v48, %v547_v43 }
 0x641   :  { %v2353_v35 = vadd.f32 %v2304_v30, %v451_v3  ;;  %v2354_v63 = vadd.f32 %v2318_v14, %v500_v4 }
 0x642   :  { %v3053_v40 = vmul.f32 -1.442695, %v2352_v51 }
 0x643   :  { %v3449_v45 = vpop.eup %3448  ;;  %v3050_v54 = vmul.f32 -1.442695, %v2353_v35  ;;  %v3052_v62 = vmul.f32 -1.442695, %v2354_v63  ;;  %v2584_v35 = vld [vmem:[#allocation11 + $0x70] sm:$0xff] }
 0x644   :  { %v3451_v37 = vpop.eup %3450  ;;  %v4908_v61 = vadd.f32 1.0, %v3449_v45  ;;  %3452 = vpow2.f32 %v3053_v40  ;;  %2591 = vmatpush.msrb.mxu1 %v2584_v35  ;;  %3148 = vmatpush.msrb.mxu3 %v2584_v35 }
 0x645   :  { %v4910_v10 = vadd.f32 1.0, %v3451_v37  ;;  %3454 = vpow2.f32 %v3050_v54 }
 0x646   :  { %3456 = vrcp.f32 %v4908_v61  ;;  %v2374_v39 = vand.u32 2147483647, %v4908_v61  ;;  %v2376_v19 = vand.u32 2147483648, %v4908_v61  ;;  %vm2370_vm11 = vweird.f32 %v4908_v61 }
 0x647   :  { %3458 = vrcp.f32 %v4910_v10  ;;  %v2346_v53 = vpop.f32.mrf.mxu3  ;;  %v2332_v15 = vpop.f32.mrf.mxu2  ;;  %v2414_v47 = vand.u32 2147483648, %v4910_v10  ;;  %v2412_v11 = vand.u32 2147483647, %v4910_v10  ;;  %vm2408_vm10 = vweird.f32 %v4910_v10 }
 0x648   :  { %3460 = vpow2.f32 %v3052_v62  ;;  %v2356_v29 = vadd.f32 %v2346_v53, %v598_v31  ;;  %v2355_v49 = vadd.f32 %v2332_v15, %v549_v12  ;;  %vm2375_vm12 = vcmp.eq.f32.partialorder %v2374_v39, 8.507059e+37  ;;  %v2582_v53 = vld [vmem:[#allocation11 + $0x60] sm:$0xff]  ;;  %v4982_v15 = vpop.permute.xlu0 %2522 }
 0x649   :  { %3462 = vtanh.f32 %v2351_v23  ;;  %v2415_v3 = vor.u32 1.1754944e-38, %v2414_v47  ;;  %v2377_v17 = vor.u32 1.1754944e-38, %v2376_v19  ;;  %vm2413_vm15 = vcmp.eq.f32.partialorder %v2412_v11, 8.507059e+37  ;;  %v2579_v19 = vld [vmem:[#allocation11 + $0x48] sm:$0xff] }
 0x64a   :  { %v3453_v5 = vpop.eup %3452  ;;  %v3054_v16 = vmul.f32 -1.442695, %v2356_v29  ;;  %v3221_v11 = vunpack.i.h.bf16 %v4871_v27  ;;  %v2576_v27 = vld [vmem:[#allocation11 + $0x30] sm:$0xff] }
 0x64b   :  { %v3455_v21 = vpop.eup %3454  ;;  %v4918_v7 = vadd.f32 1.0, %v3453_v5 }
 0x64c   :  { %v3457_v32 = vpop.eup %3456  ;;  %v4920_v9 = vadd.f32 1.0, %v3455_v21 }
 0x64d   :  { %v3459_v26 = vpop.eup %3458  ;;  %v2366_v57 = vmul.f32 %v3457_v32, %v4908_v61  ;;  %3464 = vrcp.f32 %v4918_v7  ;;  %vm2371_vm8 = vweird.f32 %v3457_v32  ;;  %v2454_v29 = vand.u32 2147483648, %v4918_v7 }
 0x64e   :  { %v3461_v50 = vpop.eup %3460  ;;  %v2404_v38 = vmul.f32 %v3459_v26, %v4910_v10  ;;  %3466 = vrcp.f32 %v4920_v9  ;;  %vm2409_vm9 = vweird.f32 %v3459_v26  ;;  %vm2372_vm13 = vmor %vm2370_vm11, %vm2371_vm8  ;;  %v2391_v54 = vand.u32 2147483648, %v4920_v9  ;;  %v2583_v10 = vld [vmem:[#allocation11 + $0x68] sm:$0xff] }
 0x64f   :  { %v2367_v0 = vsub.f32 1.0, %v2366_v57  ;;  %v4930_v41 = vadd.f32 1.0, %v3461_v50  ;;  %3468 = vpow2.f32 %v3054_v16  ;;  %v3463_v52 = vpop.eup %3462  ;;  %vm4943_vm14 = vmor %vm2408_vm10, %vm2409_vm9  ;;  %vm2385_vm0 = vweird.f32 %v4920_v9  ;;  %2592 = vmatpush.msrb.mxu1 %v2583_v10  ;;  %3149 = vmatpush.msrb.mxu3 %v2583_v10  ;;  %v2581_v16 = vld [vmem:[#allocation11 + $0x58] sm:$0xff] }
 0x650   :  { %v2405_v46 = vsub.f32 1.0, %v2404_v38  ;;  %v2389_v31 = vand.u32 2147483647, %v4920_v9  ;;  %v2392_v21 = vor.u32 1.1754944e-38, %v2391_v54  ;;  %vm2448_vm6 = vweird.f32 %v4918_v7  ;;  %v2518_v35 = vpop.permute.xlu0 %2517  ;;  %v2573_v54 = vld [vmem:[#allocation11 + $0x18] sm:$0xff] }
 0x651   :  { %v2368_v44 = vmul.f32 %v3457_v32, %v2367_v0  ;;  %3470 = vrcp.f32 %v4930_v41  ;;  %v2429_v13 = vand.u32 2147483648, %v4930_v41  ;;  %2593 = vmatpush.msrb.mxu1 %v2582_v53  ;;  %3150 = vmatpush.msrb.mxu3 %v2582_v53  ;;  %v2452_v50 = vand.u32 2147483647, %v4918_v7 }
 0x652   :  { %v2406_v55 = vmul.f32 %v3459_v26, %v2405_v46  ;;  %3472 = vtanh.f32 %v2355_v49  ;;  %vm2390_vm5 = vcmp.eq.f32.partialorder %v2389_v31, 8.507059e+37  ;;  %vm2423_vm7 = vweird.f32 %v4930_v41  ;;  %v2578_v49 = vld [vmem:[#allocation11 + $0x40] sm:$0xff] }
 0x653   :  { %v4935_v59 = vpop.eup %3464  ;;  %v2369_v34 = vadd.f32 %v3457_v32, %v2368_v44  ;;  %2594 = vmatpush.msrb.mxu1 %v2581_v16  ;;  %3151 = vmatpush.msrb.mxu3 %v2581_v16  ;;  %v2455_v47 = vor.u32 1.1754944e-38, %v2454_v29  ;;  %vm2453_vm11 = vcmp.eq.f32.partialorder %v2452_v50, 8.507059e+37  ;;  %v3222_v31 = vld [vmem:[%s5039_s9] ss:$0 sm:$0xff] }
 0x654   :  { %v4939_v60 = vpop.eup %3466  ;;  %v2407_v4 = vadd.f32 %v3459_v26, %v2406_v55  ;;  %v2444_v22 = vmul.f32 %v4935_v59, %v4918_v7  ;;  %vm2449_vm2 = vweird.f32 %v4935_v59  ;;  %v2430_v7 = vor.u32 1.1754944e-38, %v2429_v13 }
 0x655   :  { %v2373_v30 = vsel %vm2372_vm13, %v3457_v32, %v2369_v34  ;;  %v2381_v14 = vmul.f32 %v4939_v60, %v4920_v9  ;;  %v3469_v63 = vpop.eup %3468  ;;  %vm2386_vm1 = vweird.f32 %v4939_v60  ;;  %vm4986_vm8 = vmor %vm2448_vm6, %vm2449_vm2  ;;  %2595 = vmatpush.msrb.mxu1 %v2580_v1  ;;  %3152 = vmatpush.msrb.mxu3 %v2580_v1 }
 0x656   :  { %v2378_v40 = vsel %vm2375_vm12, %v2377_v17, %v2373_v30  ;;  %v2411_v42 = vsel %vm4943_vm14, %v3459_v26, %v2407_v4  ;;  %v2445_v45 = vsub.f32 1.0, %v2444_v22  ;;  %v4954_v2 = vadd.f32 1.0, %v3469_v63  ;;  %vm2387_vm4 = vmor %vm2385_vm0, %vm2386_vm1 }
 0x657   :  { %v4952_v37 = vpop.eup %3470  ;;  %v2416_v61 = vsel %vm2413_vm15, %v2415_v3, %v2411_v42  ;;  %v2475_v48 = vmul.f32 %v3463_v52, %v2378_v40  ;;  %v2382_v62 = vsub.f32 1.0, %v2381_v14  ;;  %v2427_v26 = vand.u32 2147483647, %v4930_v41  ;;  %2596 = vmatpush.msrb.mxu1 %v2579_v19  ;;  %3153 = vmatpush.msrb.mxu3 %v2579_v19  ;;  %v2577_v3 = vld [vmem:[#allocation11 + $0x38] sm:$0xff]  ;;  %v2574_v42 = vld [vmem:[#allocation11 + $0x20] sm:$0xff] }
 0x658   :  { %v2473_v18 = vmul.f32 %v2416_v61, %v4857_v36  ;;  %v2419_v43 = vmul.f32 %v4952_v37, %v4930_v41  ;;  %v2446_v56 = vmul.f32 %v4935_v59, %v2445_v45  ;;  %3474 = vrcp.f32 %v4954_v2  ;;  %v3473_v5 = vpop.eup %3472 }
 0x659   :  { %v2383_v58 = vmul.f32 %v4939_v60, %v2382_v62  ;;  %vm2424_vm3 = vweird.f32 %v4952_v37  ;;  %vm2428_vm10 = vcmp.eq.f32.partialorder %v2427_v26, 8.507059e+37  ;;  %2597 = vmatpush.msrb.mxu1 %v2578_v49  ;;  %3154 = vmatpush.msrb.mxu3 %v2578_v49  ;;  %v2469_v30 = vand.u32 2147483648, %v4954_v2 }
 0x65a   :  { %v2477_v23 = vadd.f32 %v2475_v48, %v2473_v18  ;;  %v2420_v36 = vsub.f32 1.0, %v2419_v43  ;;  %v2447_v32 = vadd.f32 %v4935_v59, %v2446_v56  ;;  %vm2425_vm9 = vmor %vm2423_vm7, %vm2424_vm3  ;;  %vm2463_vm13 = vweird.f32 %v4954_v2  ;;  %v5274_v48 = vld [vmem:[#allocation29_spill] sm:$0xff]  ;;  %v2571_v56 = vld [vmem:[#allocation11 + $0x8] sm:$0xff] }
 0x65b   :  { %v2384_v28 = vadd.f32 %v4939_v60, %v2383_v58  ;;  %2598 = vmatpush.msrb.mxu1 %v2577_v3  ;;  %3155 = vmatpush.msrb.mxu3 %v2577_v3  ;;  %v2470_v45 = vor.u32 1.1754944e-38, %v2469_v30  ;;  %v2570_v58 = vld [vmem:[#allocation11] sm:$0xff] }
 0x65c   :  { %3476 = vtanh.f32 %v2477_v23  ;;  %2506 = vst [vmem:[#allocation15] sm:$0xff] %v2477_v23  ;;  %v2421_v20 = vmul.f32 %v4952_v37, %v2420_v36  ;;  %v2451_v39 = vsel %vm4986_vm8, %v4935_v59, %v2447_v32 }
 0x65d   :  { %v2388_v57 = vsel %vm2387_vm4, %v4939_v60, %v2384_v28  ;;  %v2456_v60 = vsel %vm2453_vm11, %v2455_v47, %v2451_v39  ;;  %2599 = vmatpush.msrb.mxu1 %v2576_v27  ;;  %3156 = vmatpush.msrb.mxu3 %v2576_v27 }
 0x65e   :  { %v2393_v12 = vsel %vm2390_vm5, %v2392_v21, %v2388_v57  ;;  %v2422_v38 = vadd.f32 %v4952_v37, %v2421_v20  ;;  %v3475_v6 = vpop.eup %3474 }
 0x65f   :  { %v2476_v0 = vmul.f32 %v3473_v5, %v2393_v12  ;;  %v2459_v46 = vmul.f32 %v3475_v6, %v4954_v2  ;;  %vm2464_vm12 = vweird.f32 %v3475_v6  ;;  %2600 = vmatpush.msrb.mxu1 %v2575_v25  ;;  %3157 = vmatpush.msrb.mxu3 %v2575_v25 }
 0x660   :  { %v2426_v41 = vsel %vm2425_vm9, %v4952_v37, %v2422_v38  ;;  %vm2465_vm14 = vmor %vm2463_vm13, %vm2464_vm12 }
 0x661   :  { %v2431_v44 = vsel %vm2428_vm10, %v2430_v7, %v2426_v41  ;;  %v2460_v34 = vsub.f32 1.0, %v2459_v46  ;;  %2601 = vmatpush.msrb.mxu1 %v2574_v42  ;;  %3158 = vmatpush.msrb.mxu3 %v2574_v42 }
 0x662   :  { %v3477_v52 = vpop.eup %3476  ;;  %v2474_v55 = vmul.f32 %v2431_v44, %v4885_v8  ;;  %v2467_v8 = vand.u32 2147483647, %v4954_v2  ;;  %v2572_v2 = vld [vmem:[#allocation11 + $0x10] sm:$0xff] }
 0x663   :  { %v2481_v59 = vmul.f32 %v3477_v52, %v2456_v60  ;;  %v2461_v4 = vmul.f32 %v3475_v6, %v2460_v34  ;;  %2602 = vmatpush.msrb.mxu1 %v2573_v54  ;;  %3159 = vmatpush.msrb.mxu3 %v2573_v54 }
 0x664   :  { %v2478_v17 = vadd.f32 %v2476_v0, %v2474_v55  ;;  %vm2468_vm15 = vcmp.eq.f32.partialorder %v2467_v8, 8.507059e+37 }
 0x665   :  { %v2500_v22 = vmul.f32 %v3221_v11, %v2481_v59  ;;  %2504 = vst [vmem:[#allocation13] sm:$0xff] %v2481_v59  ;;  %v2462_v51 = vadd.f32 %v3475_v6, %v2461_v4  ;;  %2603 = vmatpush.msrb.mxu1 %v2572_v2  ;;  %3160 = vmatpush.msrb.mxu3 %v2572_v2 }
 0x666   :  { %3478 = vtanh.f32 %v2478_v17  ;;  %2507 = vst [vmem:[#allocation15 + $0x8] sm:$0xff] %v2478_v17 }
 0x667   :  { %v2502_v14 = vadd.f32 %v2500_v22, %v4892_v33  ;;  %v2466_v63 = vsel %vm2465_vm14, %v3475_v6, %v2462_v51  ;;  %v3206_v33 = vunpack.i.h.bf16 %v5274_v48  ;;  %2604 = vmatpush.msrb.mxu1 %v2571_v56  ;;  %3161 = vmatpush.msrb.mxu3 %v2571_v56 }
 0x668   :  { %v2471_v61 = vsel %vm2468_vm15, %v2470_v45, %v2466_v63 }
 0x669   :  { %v2525_v40 = vmul.f32 %v2518_v35, %v2502_v14  ;;  %2605 = vmatpush.msrb.mxu1 %v2570_v58  ;;  %3162 = vmatpush.msrb.mxu3 %v2570_v58 }
 0x66b   :  { %2563 = vmatmul.f32.vlgmr.msrb.gmra.mxu0 %v2525_v40 }
 0x66c   :  { %v3479_v37 = vpop.eup %3478 }
 0x66d   :  { %v2482_v62 = vmul.f32 %v3479_v37, %v2471_v61 }
 0x66f   :  { %v2501_v10 = vmul.f32 %v3206_v33, %v2482_v62  ;;  %2505 = vst [vmem:[#allocation13 + $0x8] sm:$0xff] %v2482_v62 }
 0x671   :  { %v2503_v18 = vadd.f32 %v2501_v10, %v4896_v24  ;;  %v3223_v24 = vld [vmem:[%s5041_s11] ss:$0 sm:$0xff]  ;;  %s2654_s11 = sshll.u32 %s5043_s13, 4  ;;  %s3706_s13 = smov [#allocation12]   ;;  %s2655_s11 = int_to_ptr.hbm [resolvable:$true] %s2654_s11 }
 0x672   :  { %2660 = dma.vmem_to_hbm [thread:$0]  %s2653_s10, 256, %s2655_s11, [#allocation14], %s3695_s25, %s3695_s25, %s3696_s26  }
 0x673   :  { %v2526_v43 = vmul.f32 %v4982_v15, %v2503_v18  ;;  %2673 = dma.vmem_to_hbm [thread:$0]  %s2666_s27, 256, %s2668_s3, [#allocation14], %s3695_s25, %s3695_s25, %s3696_s26  }
 0x674   :  { %s2639_s28 = sshll.u32 %s3706_s13, 4  ;;  %s2640_s28 = int_to_ptr.vmem [resolvable:$true] %s2639_s28 }
 0x675   :  { %2566 = vmatmul.f32.vlgmr.msrb.gmra.mxu2 %v2526_v43 }
 0x6e8   :  { %v2564_v53 = vpop.f32.mrf.mxu0 }
 0x6e9   :  { %v2565_v23 = vadd.f32 %v3222_v31, %v2564_v53 }
 0x6eb   :  { %2606 = vmatmul.f32.vlgmr.msrb.gmra.mxu1 %v2565_v23 }
 0x6f8   :  { %v2567_v36 = vpop.f32.mrf.mxu2 }
 0x6f9   :  { %v2568_v13 = vadd.f32 %v3222_v31, %v2567_v36 }
 0x6fb   :  { %2609 = vmatmul.f32.vlgmr.msrb.gmra.mxu3 %v2568_v13 }
 0x768   :  { %v2607_v29 = vpop.f32.mrf.mxu1 }
 0x769   :  { %v2608_v5 = vadd.f32 %v3223_v24, %v2607_v29 }
 0x76b   :  { %2613 = vmax.xlane.f32.xlu1 %v2608_v5 }
 0x77e   :  { %v2610_v28 = vpop.f32.mrf.mxu3 }
 0x77f   :  { %v2611_v21 = vadd.f32 %v3223_v24, %v2610_v28 }
 0x781   :  { %2615 = vmax.xlane.f32.xlu2 %v2611_v21 }
 0x7de   :  { %v2614_v32 = vpop.xlane.xlu1 %2613 }
 0x7df   :  { %v2617_v16 = vsub.f32 %v2608_v5, %v2614_v32 }
 0x7e1   :  { %v2619_v20 = vmul.f32 1.442695, %v2617_v16 }
 0x7e3   :  { %3480 = vpow2.f32 %v2619_v20 }
 0x7e9   :  { %v3481_v26 = vpop.eup %3480 }
 0x7ea   :  { %2623 = vadd.xlane.f32.xlu0 %v3481_v26 }
 0x7f4   :  { %v2616_v57 = vpop.xlane.xlu2 %2615 }
 0x7f5   :  { %v2618_v50 = vsub.f32 %v2611_v21, %v2616_v57 }
 0x7f7   :  { %v2621_v1 = vmul.f32 1.442695, %v2618_v50 }
 0x7f9   :  { %3482 = vpow2.f32 %v2621_v1 }
 0x7ff   :  { %v3483_v12 = vpop.eup %3482 }
 0x800   :  { %2625 = vadd.xlane.f32.xlu2 %v3483_v12 }
 0x85d   :  { %v2624_v38 = vpop.xlane.xlu0 %2623 }
 0x85e   :  { %3484 = vlog2.f32 %v2624_v38 }
 0x864   :  { %v3485_v15 = vpop.eup %3484 }
 0x865   :  { %v2628_v9 = vmul.f32 0.6931472, %v3485_v15 }
 0x867   :  { %v2631_v6 = vsub.f32 %v2617_v16, %v2628_v9 }
 0x869   :  { %2633 = vst [vmem:[#allocation12] sm:$0xff] %v2631_v6 }
 0x873   :  { %v2626_v7 = vpop.xlane.xlu2 %2625 }
 0x874   :  { %3486 = vlog2.f32 %v2626_v7 }
 0x87a   :  { %v3487_v0 = vpop.eup %3486 }
 0x87b   :  { %v2630_v39 = vmul.f32 0.6931472, %v3487_v0 }
 0x87d   :  { %v2632_v19 = vsub.f32 %v2618_v50, %v2630_v39 }
 0x87f   :  { %2634 = vst [vmem:[#allocation12 + $0x8] sm:$0xff] %v2632_v19 }
 0x880   :  { %2647 = dma.vmem_to_hbm [thread:$0]  %s2640_s28, 256, %s2642_s7, [#allocation5], %s3695_s25, %s3695_s25, %s3696_s26  }
 0x881   :  { %3687 = dma.done.wait [#allocation5], 256  }
 0x882   :  { %3688 = vsyncadd [#allocation5], 4294967040 }
 0x883   :  { %3689 = dma.done.wait [#allocation14], 512  }
 0x884   :  { %3690 = vsyncadd [#allocation14], 4294966784 }
 0x885   :  { %2686 = vsyncpa [#allocation4], 1 }
 0x886   :  { %2687 = vsyncpa [#allocation7], 1 }
 0x887   :  { %2688 = vsyncpa [#allocation10], 1 }
 0x888   :  { %2689 = vsyncpa [#allocation5], 1 }
 0x889   :  { %2690 = vsyncpa [#allocation14], 1 }

// kernel: tpu_custom_call.1
= control target key start
LH: loop header
LB: loop body
LE: loop exit
PB: predicated region body
PF: predicated region fallthrough
CT: control target
= control target key end

     0   :  { %s5030_s0 = inlined_call_operand.vmem [shape: s32[16,1], index: 0, kind: input, shape index: {}]   ;;  %s5031_s1 = inlined_call_operand.vmem [shape: f32[16,1], index: 1, kind: input, shape index: {}]   ;;  %s5032_s2 = inlined_call_operand.hbm [shape: bf16[8,16,128], index: 2, kind: input, shape index: {}]   ;;  %s5033_s3 = inlined_call_operand.vmem [shape: f32[16,128], index: 3, kind: input, shape index: {}]   ;;  %s5034_s4 = inlined_call_operand.vmem [shape: f32[16,128], index: 4, kind: input, shape index: {}]   ;;  %s5035_s5 = inlined_call_operand.hbm [shape: bf16[128,512], index: 5, kind: input, shape index: {}]   ;;  %s5036_s6 = inlined_call_operand.hbm [shape: bf16[128,512], index: 6, kind: input, shape index: {}]   ;;  %s5037_s7 = inlined_call_operand.vmem [shape: f32[1,512], index: 7, kind: input, shape index: {}]   ;;  %s5038_s8 = inlined_call_operand.hbm [shape: f32[128,128], index: 8, kind: input, shape index: {}]   ;;  %s5039_s9 = inlined_call_operand.vmem [shape: f32[1,128], index: 9, kind: input, shape index: {}]   ;;  %s5040_s10 = inlined_call_operand.hbm [shape: f32[128,128], index: 10, kind: input, shape index: {}]   ;;  %s5041_s11 = inlined_call_operand.vmem [shape: f32[1,128], index: 11, kind: input, shape index: {}]   ;;  %s5042_s12 = inlined_call_operand.hbm [shape: f32[16,128], index: 12, kind: output, shape index: {0}]   ;;  %s5043_s13 = inlined_call_operand.hbm [shape: f32[16,128], index: 13, kind: output, shape index: {1}]   ;;  %s5044_s14 = inlined_call_operand.hbm [shape: f32[16,128], index: 14, kind: output, shape index: {2}]  }
   0x1   :  { %5090 = sst [smem:[#allocation85_spill]] %s5042_s12 }
   0x2   :  { %20 = vsyncpa [#allocation4], 0 }
   0x3   :  { %21 = vsyncpa [#allocation7], 0 }
   0x4   :  { %22 = vsyncpa [#allocation10], 0 }
   0x5   :  { %23 = vsyncpa [#allocation5], 0  ;;  %s50_s15 = sshll.u32 %s5035_s5, 4  ;;  %s51_s15 = int_to_ptr.hbm [resolvable:$true] %s50_s15 }
   0x6   :  { %24 = vsyncpa [#allocation14], 0  ;;  %s3691_s16 = smov [#allocation6]   ;;  %s78_s20 = sshll.u32 %s5038_s8, 4  ;;  %s79_s20 = int_to_ptr.hbm [resolvable:$true] %s78_s20 }
   0x7   :  { %s52_s17 = sshll.u32 %s3691_s16, 4  ;;  %s3692_s21 = smov 256   ;;  %s53_s17 = int_to_ptr.vmem [resolvable:$true] %s52_s17 }
   0x8   :  { %s3693_s22 = smov 16   ;;  %s3694_s23 = smov [#allocation9]  }
   0x9   :  { %58 = dma.hbm_to_vmem [thread:$0]  %s51_s15, 4096, %s53_s17, [#allocation7], %s3692_s21, %s3692_s21, %s3693_s22  }
   0xa   :  { %s80_s24 = sshll.u32 %s3694_s23, 4  ;;  %s3695_s25 = smov 128   ;;  %s81_s24 = int_to_ptr.vmem [resolvable:$true] %s80_s24 }
   0xb   :  { %s3696_s26 = smov 8   ;;  %s33_s28 = sshll.u32 %s5032_s2, 4  ;;  %s34_s28 = int_to_ptr.hbm [resolvable:$true] %s33_s28 }
   0xc   :  { %86 = dma.hbm_to_vmem [thread:$0]  %s79_s20, 2048, %s81_s24, [#allocation10], %s3695_s25, %s3695_s25, %s3696_s26  }
   0xd   :  { %s3697_s29 = smov [#allocation3]   ;;  %s63_s16 = sshll.u32 %s5036_s6, 4  ;;  %s64_s16 = int_to_ptr.hbm [resolvable:$true] %s63_s16 }
   0xe   :  { %s35_s8 = sshll.u32 %s3697_s29, 4  ;;  %s3698_s17 = smov 64   ;;  %s36_s8 = int_to_ptr.vmem [resolvable:$true] %s35_s8 }
   0xf   :  { %s3699_s18 = smov 4   ;;  %s3700_s19 = smov [#allocation8]  }
  0x10   :  { %41 = dma.hbm_to_vmem [thread:$0]  %s34_s28, 1024, %s36_s8, [#allocation4], %s3698_s17, %s3698_s17, %s3699_s18  }
  0x11   :  { %s65_s23 = sshll.u32 %s3700_s19, 4  ;;  %s93_s24 = sshll.u32 %s5040_s10, 4  ;;  %s66_s23 = int_to_ptr.vmem [resolvable:$true] %s65_s23  ;;  %s94_s24 = int_to_ptr.hbm [resolvable:$true] %s93_s24 }
  0x12   :  { %71 = dma.hbm_to_vmem [thread:$0]  %s64_s16, 4096, %s66_s23, [#allocation7], %s3692_s21, %s3692_s21, %s3693_s22  }
  0x13   :  { %s3701_s2 = smov [#allocation11]  }
  0x14   :  { %s95_s5 = sshll.u32 %s3701_s2, 4  ;;  %s96_s5 = int_to_ptr.vmem [resolvable:$true] %s95_s5 }
  0x15   :  { %101 = dma.hbm_to_vmem [thread:$0]  %s94_s24, 2048, %s96_s5, [#allocation10], %s3695_s25, %s3695_s25, %s3696_s26  }
  0x16   :  { %3681 = dma.done.wait [#allocation4], 1024  }
  0x17   :  { %3682 = vsyncadd [#allocation4], 4294966272 }
  0x18   :  { %3683 = dma.done.wait [#allocation7], 8192  }
  0x19   :  { %3684 = vsyncadd [#allocation7], 4294959104 }
  0x1a   :  { %3685 = dma.done.wait [#allocation10], 4096  }
  0x1b   :  { %3686 = vsyncadd [#allocation10], 4294963200  ;;  %v2837_v0 = vld [vmem:[#allocation6 + $0xe0] sm:$0xf]  ;;  %v3097_v1 = vld [vmem:[#allocation6 + $0xec] sm:$0xf0] }
  0x1c   :  { %v3095_v2 = vld [vmem:[#allocation6 + $0xe4] sm:$0xf]  ;;  %v2838_v3 = vor.u32 %v3097_v1, %v2837_v0  ;;  %v2839_v4 = vld [vmem:[#allocation6 + $0xf0] sm:$0xf0]  ;;  %v2845_v5 = vld [vmem:[#allocation6 + $0xe8] sm:$0xf] }
  0x1d   :  { %v3098_v6 = vld [vmem:[#allocation6 + $0xf4] sm:$0xf0]  ;;  %v2842_v7 = vor.u32 %v3095_v2, %v2839_v4  ;;  %v3096_v9 = vld [vmem:[#allocation6 + $0xec] sm:$0xf]  ;;  %v2847_v10 = vld [vmem:[#allocation6 + $0xf8] sm:$0xf0] }
  0x1e   :  { %v2846_v8 = vor.u32 %v3098_v6, %v2845_v5  ;;  %v2821_v11 = vld [vmem:[#allocation6 + $0xc0] sm:$0xf]  ;;  %404 = vmatpush.bf16.msra.mxu0 %v2838_v3  ;;  %v2850_v12 = vor.u32 %v3096_v9, %v2847_v10  ;;  %v3093_v13 = vld [vmem:[#allocation6 + $0xcc] sm:$0xf0]  ;;  %v3091_v14 = vld [vmem:[#allocation6 + $0xc4] sm:$0xf] }
  0x1f   :  { %v2823_v15 = vld [vmem:[#allocation6 + $0xd0] sm:$0xf0]  ;;  %453 = vmatpush.bf16.msra.mxu1 %v2842_v7  ;;  %v2822_v16 = vor.u32 %v3093_v13, %v2821_v11  ;;  %v2829_v18 = vld [vmem:[#allocation6 + $0xc8] sm:$0xf]  ;;  %v3094_v19 = vld [vmem:[#allocation6 + $0xd4] sm:$0xf0] }
  0x20   :  { %502 = vmatpush.bf16.msra.mxu2 %v2846_v8  ;;  %v2826_v17 = vor.u32 %v3091_v14, %v2823_v15  ;;  %v3092_v20 = vld [vmem:[#allocation6 + $0xcc] sm:$0xf]  ;;  %551 = vmatpush.bf16.msra.mxu3 %v2850_v12  ;;  %v2830_v21 = vor.u32 %v3094_v19, %v2829_v18  ;;  %v2831_v22 = vld [vmem:[#allocation6 + $0xd8] sm:$0xf0]  ;;  %v2805_v23 = vld [vmem:[#allocation6 + $0xa0] sm:$0xf] }
  0x21   :  { %v3089_v24 = vld [vmem:[#allocation6 + $0xac] sm:$0xf0]  ;;  %v2834_v25 = vor.u32 %v3092_v20, %v2831_v22  ;;  %v3087_v26 = vld [vmem:[#allocation6 + $0xa4] sm:$0xf]  ;;  %v2807_v27 = vld [vmem:[#allocation6 + $0xb0] sm:$0xf0] }
  0x22   :  { %v2813_v28 = vld [vmem:[#allocation6 + $0xa8] sm:$0xf]  ;;  %405 = vmatpush.bf16.msra.mxu0 %v2822_v16  ;;  %v2806_v29 = vor.u32 %v3089_v24, %v2805_v23  ;;  %v3090_v30 = vld [vmem:[#allocation6 + $0xb4] sm:$0xf0]  ;;  %v3088_v31 = vld [vmem:[#allocation6 + $0xac] sm:$0xf]  ;;  %v2810_v33 = vor.u32 %v3087_v26, %v2807_v27 }
  0x23   :  { %v2815_v32 = vld [vmem:[#allocation6 + $0xb8] sm:$0xf0]  ;;  %454 = vmatpush.bf16.msra.mxu1 %v2826_v17  ;;  %v2814_v34 = vor.u32 %v3090_v30, %v2813_v28  ;;  %v2789_v35 = vld [vmem:[#allocation6 + $0x80] sm:$0xf]  ;;  %v3085_v36 = vld [vmem:[#allocation6 + $0x8c] sm:$0xf0] }
  0x24   :  { %503 = vmatpush.bf16.msra.mxu2 %v2830_v21  ;;  %v3083_v37 = vld [vmem:[#allocation6 + $0x84] sm:$0xf]  ;;  %552 = vmatpush.bf16.msra.mxu3 %v2834_v25  ;;  %v2818_v38 = vor.u32 %v3088_v31, %v2815_v32  ;;  %v2791_v39 = vld [vmem:[#allocation6 + $0x90] sm:$0xf0]  ;;  %v2797_v40 = vld [vmem:[#allocation6 + $0x88] sm:$0xf]  ;;  %v2790_v44 = vor.u32 %v3085_v36, %v2789_v35 }
  0x25   :  { %v3086_v41 = vld [vmem:[#allocation6 + $0x94] sm:$0xf0]  ;;  %v3084_v42 = vld [vmem:[#allocation6 + $0x8c] sm:$0xf]  ;;  %v2799_v43 = vld [vmem:[#allocation6 + $0x98] sm:$0xf0]  ;;  %v2794_v45 = vor.u32 %v3083_v37, %v2791_v39 }
  0x26   :  { %406 = vmatpush.bf16.msra.mxu0 %v2806_v29  ;;  %v2798_v46 = vor.u32 %v3086_v41, %v2797_v40  ;;  %v2773_v47 = vld [vmem:[#allocation6 + $0x60] sm:$0xf]  ;;  %v3081_v48 = vld [vmem:[#allocation6 + $0x6c] sm:$0xf0]  ;;  %v3079_v49 = vld [vmem:[#allocation6 + $0x64] sm:$0xf]  ;;  %v2802_v50 = vor.u32 %v3084_v42, %v2799_v43 }
  0x27   :  { %455 = vmatpush.bf16.msra.mxu1 %v2810_v33  ;;  %v2775_v51 = vld [vmem:[#allocation6 + $0x70] sm:$0xf0]  ;;  %v2781_v52 = vld [vmem:[#allocation6 + $0x68] sm:$0xf]  ;;  %v3082_v53 = vld [vmem:[#allocation6 + $0x74] sm:$0xf0]  ;;  %v2774_v56 = vor.u32 %v3081_v48, %v2773_v47 }
  0x28   :  { %504 = vmatpush.bf16.msra.mxu2 %v2814_v34  ;;  %553 = vmatpush.bf16.msra.mxu3 %v2818_v38  ;;  %v3080_v54 = vld [vmem:[#allocation6 + $0x6c] sm:$0xf]  ;;  %v2783_v55 = vld [vmem:[#allocation6 + $0x78] sm:$0xf0]  ;;  %v2778_v57 = vor.u32 %v3079_v49, %v2775_v51  ;;  %v2782_v58 = vor.u32 %v3082_v53, %v2781_v52  ;;  %v2757_v59 = vld [vmem:[#allocation6 + $0x40] sm:$0xf] }
  0x29   :  { %v3077_v60 = vld [vmem:[#allocation6 + $0x4c] sm:$0xf0]  ;;  %v3075_v61 = vld [vmem:[#allocation6 + $0x44] sm:$0xf]  ;;  %v2786_v62 = vor.u32 %v3080_v54, %v2783_v55  ;;  %v2759_v63 = vld [vmem:[#allocation6 + $0x50] sm:$0xf0] }
  0x2a   :  { %407 = vmatpush.bf16.msra.mxu0 %v2790_v44  ;;  %v2765_v0 = vld [vmem:[#allocation6 + $0x48] sm:$0xf]  ;;  %v3078_v1 = vld [vmem:[#allocation6 + $0x54] sm:$0xf0]  ;;  %v3076_v2 = vld [vmem:[#allocation6 + $0x4c] sm:$0xf]  ;;  %v2758_v4 = vor.u32 %v3077_v60, %v2757_v59  ;;  %v2762_v5 = vor.u32 %v3075_v61, %v2759_v63 }
  0x2b   :  { %456 = vmatpush.bf16.msra.mxu1 %v2794_v45  ;;  %v2767_v3 = vld [vmem:[#allocation6 + $0x58] sm:$0xf0]  ;;  %v2766_v6 = vor.u32 %v3078_v1, %v2765_v0  ;;  %v2741_v7 = vld [vmem:[#allocation6 + $0x20] sm:$0xf]  ;;  %v3073_v8 = vld [vmem:[#allocation6 + $0x2c] sm:$0xf0] }
  0x2c   :  { %505 = vmatpush.bf16.msra.mxu2 %v2798_v46  ;;  %554 = vmatpush.bf16.msra.mxu3 %v2802_v50  ;;  %v3071_v9 = vld [vmem:[#allocation6 + $0x24] sm:$0xf]  ;;  %v2770_v10 = vor.u32 %v3076_v2, %v2767_v3  ;;  %v2743_v11 = vld [vmem:[#allocation6 + $0x30] sm:$0xf0]  ;;  %v2749_v12 = vld [vmem:[#allocation6 + $0x28] sm:$0xf]  ;;  %v2742_v16 = vor.u32 %v3073_v8, %v2741_v7 }
  0x2d   :  { %v3074_v13 = vld [vmem:[#allocation6 + $0x34] sm:$0xf0]  ;;  %v3072_v14 = vld [vmem:[#allocation6 + $0x2c] sm:$0xf]  ;;  %v2751_v15 = vld [vmem:[#allocation6 + $0x38] sm:$0xf0]  ;;  %v2746_v18 = vor.u32 %v3071_v9, %v2743_v11 }
  0x2e   :  { %408 = vmatpush.bf16.msra.mxu0 %v2774_v56  ;;  %v2725_v17 = vld [vmem:[#allocation6] sm:$0xf]  ;;  %v2750_v19 = vor.u32 %v3074_v13, %v2749_v12  ;;  %v3069_v20 = vld [vmem:[#allocation6 + $0xc] sm:$0xf0]  ;;  %v3067_v21 = vld [vmem:[#allocation6 + $0x4] sm:$0xf]  ;;  %v2754_v23 = vor.u32 %v3072_v14, %v2751_v15 }
  0x2f   :  { %457 = vmatpush.bf16.msra.mxu1 %v2778_v57  ;;  %v2727_v22 = vld [vmem:[#allocation6 + $0x10] sm:$0xf0]  ;;  %v2733_v24 = vld [vmem:[#allocation6 + $0x8] sm:$0xf]  ;;  %v3070_v25 = vld [vmem:[#allocation6 + $0x14] sm:$0xf0]  ;;  %v2726_v30 = vor.u32 %v3069_v20, %v2725_v17 }
  0x30   :  { %506 = vmatpush.bf16.msra.mxu2 %v2782_v58  ;;  %555 = vmatpush.bf16.msra.mxu3 %v2786_v62  ;;  %v3068_v26 = vld [vmem:[#allocation6 + $0xc] sm:$0xf]  ;;  %v2735_v27 = vld [vmem:[#allocation6 + $0x18] sm:$0xf0]  ;;  %v2965_v28 = vld [vmem:[#allocation8 + $0xe0] sm:$0xf]  ;;  %v2730_v33 = vor.u32 %v3067_v21, %v2727_v22  ;;  %v2734_v34 = vor.u32 %v3070_v25, %v2733_v24 }
  0x31   :  { %v3129_v29 = vld [vmem:[#allocation8 + $0xec] sm:$0xf0]  ;;  %v3127_v31 = vld [vmem:[#allocation8 + $0xe4] sm:$0xf]  ;;  %v2967_v32 = vld [vmem:[#allocation8 + $0xf0] sm:$0xf0]  ;;  %v2738_v36 = vor.u32 %v3068_v26, %v2735_v27 }
  0x32   :  { %409 = vmatpush.bf16.msra.mxu0 %v2758_v4  ;;  %v3059_v35 = vld [vmem:[#allocation3] sm:$0xff]  ;;  %v3803_v37 = vor.u32 %v3129_v29, %v2965_v28  ;;  %v3128_v38 = vld [vmem:[#allocation8 + $0xec] sm:$0xf]  ;;  %v2973_v39 = vld [vmem:[#allocation8 + $0xe8] sm:$0xf]  ;;  %v3805_v41 = vor.u32 %v3127_v31, %v2967_v32  ;;  %s3704_s6 = smov [#allocation13]  }
  0x33   :  { %458 = vmatpush.bf16.msra.mxu1 %v2762_v5  ;;  %v3130_v40 = vld [vmem:[#allocation8 + $0xf4] sm:$0xf0]  ;;  %v2975_v42 = vld [vmem:[#allocation8 + $0xf8] sm:$0xf0]  ;;  %v2949_v43 = vld [vmem:[#allocation8 + $0xc0] sm:$0xf] }
  0x34   :  { %507 = vmatpush.bf16.msra.mxu2 %v2766_v6  ;;  %556 = vmatpush.bf16.msra.mxu3 %v2770_v10  ;;  %v3125_v44 = vld [vmem:[#allocation8 + $0xcc] sm:$0xf0]  ;;  %v3123_v45 = vld [vmem:[#allocation8 + $0xc4] sm:$0xf]  ;;  %v2951_v46 = vld [vmem:[#allocation8 + $0xd0] sm:$0xf0]  ;;  %v3807_v47 = vor.u32 %v3130_v40, %v2973_v39  ;;  %v3810_v48 = vor.u32 %v3128_v38, %v2975_v42 }
  0x35   :  { %v3812_v49 = vor.u32 %v3125_v44, %v2949_v43  ;;  %v2957_v50 = vld [vmem:[#allocation8 + $0xc8] sm:$0xf]  ;;  %v3126_v51 = vld [vmem:[#allocation8 + $0xd4] sm:$0xf0]  ;;  %v3815_v52 = vor.u32 %v3123_v45, %v2951_v46  ;;  %v3124_v53 = vld [vmem:[#allocation8 + $0xcc] sm:$0xf] }
  0x36   :  { %410 = vmatpush.bf16.msra.mxu0 %v2742_v16  ;;  %v2959_v54 = vld [vmem:[#allocation8 + $0xd8] sm:$0xf0]  ;;  %v3818_v55 = vor.u32 %v3126_v51, %v2957_v50  ;;  %v2933_v56 = vld [vmem:[#allocation8 + $0xa0] sm:$0xf]  ;;  %v3121_v57 = vld [vmem:[#allocation8 + $0xac] sm:$0xf0] }
  0x37   :  { %459 = vmatpush.bf16.msra.mxu1 %v2746_v18  ;;  %v3119_v58 = vld [vmem:[#allocation8 + $0xa4] sm:$0xf]  ;;  %v3822_v59 = vor.u32 %v3124_v53, %v2959_v54  ;;  %v3824_v60 = vor.u32 %v3121_v57, %v2933_v56  ;;  %v2935_v61 = vld [vmem:[#allocation8 + $0xb0] sm:$0xf0]  ;;  %v3120_v62 = vld [vmem:[#allocation8 + $0xac] sm:$0xf] }
  0x38   :  { %508 = vmatpush.bf16.msra.mxu2 %v2750_v19  ;;  %557 = vmatpush.bf16.msra.mxu3 %v2754_v23  ;;  %v3827_v63 = vor.u32 %v3119_v58, %v2935_v61  ;;  %v2943_v0 = vld [vmem:[#allocation8 + $0xb8] sm:$0xf0]  ;;  %v2941_v1 = vld [vmem:[#allocation8 + $0xa8] sm:$0xf]  ;;  %v3122_v2 = vld [vmem:[#allocation8 + $0xb4] sm:$0xf0] }
  0x39   :  { %v3830_v3 = vor.u32 %v3122_v2, %v2941_v1  ;;  %v3834_v4 = vor.u32 %v3120_v62, %v2943_v0  ;;  %v3060_v5 = vld [vmem:[#allocation3 + $0x8] sm:$0xff]  ;;  %v2917_v6 = vld [vmem:[#allocation8 + $0x80] sm:$0xf]  ;;  %v3117_v7 = vld [vmem:[#allocation8 + $0x8c] sm:$0xf0]  ;;  %s2652_s10 = sshll.u32 %s3704_s6, 4  ;;  %s2653_s10 = int_to_ptr.vmem [resolvable:$true] %s2652_s10 }
  0x3a   :  { %411 = vmatpush.bf16.msra.mxu0 %v2726_v30  ;;  %v3115_v8 = vld [vmem:[#allocation8 + $0x84] sm:$0xf]  ;;  %v3839_v9 = vor.u32 %v3117_v7, %v2917_v6  ;;  %v2919_v10 = vld [vmem:[#allocation8 + $0x90] sm:$0xf0]  ;;  %v3116_v11 = vld [vmem:[#allocation8 + $0x8c] sm:$0xf] }
  0x3b   :  { %460 = vmatpush.bf16.msra.mxu1 %v2730_v33  ;;  %v2927_v12 = vld [vmem:[#allocation8 + $0x98] sm:$0xf0]  ;;  %v3841_v13 = vor.u32 %v3115_v8, %v2919_v10  ;;  %v2925_v15 = vld [vmem:[#allocation8 + $0x88] sm:$0xf]  ;;  %v3118_v16 = vld [vmem:[#allocation8 + $0x94] sm:$0xf0] }
  0x3c   :  { %509 = vmatpush.bf16.msra.mxu2 %v2734_v34  ;;  %558 = vmatpush.bf16.msra.mxu3 %v2738_v36  ;;  %v3843_v14 = vor.u32 %v3116_v11, %v2927_v12  ;;  %v3846_v17 = vor.u32 %v3118_v16, %v2925_v15  ;;  %v3061_v18 = vld [vmem:[#allocation3 + $0x10] sm:$0xff]  ;;  %v2901_v19 = vld [vmem:[#allocation8 + $0x60] sm:$0xf]  ;;  %v3111_v21 = vld [vmem:[#allocation8 + $0x64] sm:$0xf]  ;;  %s3705_s22 = smov [#allocation15]  }
  0x3d   :  { %412 = vmatmul.bf16.vlgmr.msra.gmra.mxu0 %v3059_v35  ;;  %v3113_v20 = vld [vmem:[#allocation8 + $0x6c] sm:$0xf0]  ;;  %v2903_v23 = vld [vmem:[#allocation8 + $0x70] sm:$0xf0]  ;;  %v3112_v24 = vld [vmem:[#allocation8 + $0x6c] sm:$0xf] }
  0x3e   :  { %802 = vmatpush.bf16.msrb.mxu0 %v3803_v37  ;;  %461 = vmatmul.bf16.vlgmr.msra.gmra.mxu1 %v3059_v35  ;;  %v3851_v22 = vor.u32 %v3113_v20, %v2901_v19  ;;  %v2911_v25 = vld [vmem:[#allocation8 + $0x78] sm:$0xf0]  ;;  %v3853_v26 = vor.u32 %v3111_v21, %v2903_v23  ;;  %v2909_v28 = vld [vmem:[#allocation8 + $0x68] sm:$0xf]  ;;  %v3114_v29 = vld [vmem:[#allocation8 + $0x74] sm:$0xf0] }
  0x3f   :  { %816 = vmatpush.bf16.msrb.mxu1 %v3805_v41  ;;  %510 = vmatmul.bf16.vlgmr.msra.gmra.mxu2 %v3059_v35  ;;  %v3855_v27 = vor.u32 %v3112_v24, %v2911_v25  ;;  %v3858_v30 = vor.u32 %v3114_v29, %v2909_v28  ;;  %v3062_v31 = vld [vmem:[#allocation3 + $0x18] sm:$0xff]  ;;  %v2885_v32 = vld [vmem:[#allocation8 + $0x40] sm:$0xf]  ;;  %v3109_v33 = vld [vmem:[#allocation8 + $0x4c] sm:$0xf0]  ;;  %s2665_s27 = sshll.u32 %s3705_s22, 4  ;;  %s2666_s27 = int_to_ptr.vmem [resolvable:$true] %s2665_s27 }
  0x40   :  { %559 = vmatmul.bf16.vlgmr.msra.gmra.mxu3 %v3059_v35  ;;  %830 = vmatpush.bf16.msrb.mxu2 %v3807_v47  ;;  %v3107_v34 = vld [vmem:[#allocation8 + $0x44] sm:$0xf]  ;;  %v3863_v35 = vor.u32 %v3109_v33, %v2885_v32  ;;  %v2887_v36 = vld [vmem:[#allocation8 + $0x50] sm:$0xf0]  ;;  %v3108_v38 = vld [vmem:[#allocation8 + $0x4c] sm:$0xf] }
  0x41   :  { %844 = vmatpush.bf16.msrb.mxu3 %v3810_v48  ;;  %v2895_v39 = vld [vmem:[#allocation8 + $0x58] sm:$0xf0]  ;;  %v3865_v40 = vor.u32 %v3107_v34, %v2887_v36  ;;  %v2893_v43 = vld [vmem:[#allocation8 + $0x48] sm:$0xf]  ;;  %v3110_v44 = vld [vmem:[#allocation8 + $0x54] sm:$0xf0] }
  0x42   :  { %803 = vmatpush.bf16.msrb.mxu0 %v3812_v49  ;;  %v3867_v42 = vor.u32 %v3108_v38, %v2895_v39  ;;  %v3870_v45 = vor.u32 %v3110_v44, %v2893_v43  ;;  %v3063_v46 = vld [vmem:[#allocation3 + $0x20] sm:$0xff]  ;;  %v3105_v51 = vld [vmem:[#allocation8 + $0x2c] sm:$0xf0]  ;;  %v2871_v56 = vld [vmem:[#allocation8 + $0x30] sm:$0xf0]  ;;  %v3702_v39 = vmov 0  }
  0x43   :  { %817 = vmatpush.bf16.msrb.mxu1 %v3815_v52  ;;  %v2869_v50 = vld [vmem:[#allocation8 + $0x20] sm:$0xf]  ;;  %v3103_v53 = vld [vmem:[#allocation8 + $0x24] sm:$0xf]  ;;  %v3104_v57 = vld [vmem:[#allocation8 + $0x2c] sm:$0xf]  ;;  %3190 = vset.pattern.permute.xlu1 %v3702_v39 }
  0x44   :  { %831 = vmatpush.bf16.msrb.mxu2 %v3818_v55  ;;  %v3875_v54 = vor.u32 %v3105_v51, %v2869_v50  ;;  %v2879_v58 = vld [vmem:[#allocation8 + $0x38] sm:$0xf0]  ;;  %v3877_v61 = vor.u32 %v3103_v53, %v2871_v56  ;;  %v2877_v0 = vld [vmem:[#allocation8 + $0x28] sm:$0xf]  ;;  %v3106_v1 = vld [vmem:[#allocation8 + $0x34] sm:$0xf0]  ;;  %3179 = vset.pattern.permute.xlu0 %v3702_v39 }
  0x45   :  { %845 = vmatpush.bf16.msrb.mxu3 %v3822_v59  ;;  %v3879_v62 = vor.u32 %v3104_v57, %v2879_v58  ;;  %v3882_v2 = vor.u32 %v3106_v1, %v2877_v0  ;;  %v2853_v6 = vld [vmem:[#allocation8] sm:$0xf]  ;;  %v3101_v7 = vld [vmem:[#allocation8 + $0xc] sm:$0xf0]  ;;  %v3099_v8 = vld [vmem:[#allocation8 + $0x4] sm:$0xf]  ;;  %3201 = vset.pattern.permute.xlu2 %v3702_v39 }
  0x46   :  { %804 = vmatpush.bf16.msrb.mxu0 %v3824_v60  ;;  %v3887_v10 = vor.u32 %v3101_v7, %v2853_v6  ;;  %v2855_v11 = vld [vmem:[#allocation8 + $0x10] sm:$0xf0]  ;;  %v3100_v12 = vld [vmem:[#allocation8 + $0xc] sm:$0xf]  ;;  %v2863_v15 = vld [vmem:[#allocation8 + $0x18] sm:$0xf0] }
  0x47   :  { %818 = vmatpush.bf16.msrb.mxu1 %v3827_v63  ;;  %v3889_v16 = vor.u32 %v3099_v8, %v2855_v11  ;;  %v3065_v19 = vld [vmem:[#allocation3 + $0x30] sm:$0xff]  ;;  %v2861_v20 = vld [vmem:[#allocation8 + $0x8] sm:$0xf]  ;;  %v3102_v21 = vld [vmem:[#allocation8 + $0x14] sm:$0xf0]  ;;  %v5045_v44 = vmov 0.0  }
  0x48   :  { %832 = vmatpush.bf16.msrb.mxu2 %v3830_v3  ;;  %v3902_v23 = vor.u32 %v3102_v21, %v2861_v20  ;;  %v3066_v24 = vld [vmem:[#allocation3 + $0x38] sm:$0xff]  ;;  %v128_v25 = vld [vmem:[%s5033_s3] sm:$0xff]  ;;  %v129_v28 = vld [vmem:[%s5033_s3 + $0x8] sm:$0xff]  ;;  %s2667_s3 = sshll.u32 %s5044_s14, 4  ;;  %s5275_s8 = sld [smem:[#allocation85_spill]]  ;;  %s2668_s3 = int_to_ptr.hbm [resolvable:$true] %s2667_s3 }
  0x49   :  { %846 = vmatpush.bf16.msrb.mxu3 %v3834_v4  ;;  %5091 = vst [vmem:[#allocation21_spill] sm:$0xff] %v3889_v16  ;;  %v641_v29 = vpack.c.bf16 %v129_v28, %v128_v25  ;;  %v3959_v43 = vld [vmem:[%s5030_s0 + $0x8] sm:$0xff]  ;;  %v3984_v0 = vld [vmem:[%s5030_s0] sm:$0xff] }
  0x4a   :  { %805 = vmatpush.bf16.msrb.mxu0 %v3839_v9  ;;  %5093 = vst [vmem:[#allocation23_spill] sm:$0xff] %v3902_v23  ;;  %vm3026_vm0 = vcmp.gt.s32.totalorder %v3959_v43, 4  ;;  %vm3036_vm1 = vcmp.gt.s32.totalorder %v3959_v43, 5  ;;  %vm2985_vm2 = vcmp.gt.s32.totalorder %v3984_v0, 0  ;;  %vm3046_vm3 = vcmp.gt.s32.totalorder %v3959_v43, 6 }
  0x4b   :  { %819 = vmatpush.bf16.msrb.mxu1 %v3841_v13  ;;  %5094 = vst [vmem:[#allocation24_spill] sm:$0xff] %v3959_v43  ;;  %v3038_v50 = vsel %vm3036_vm1, 1.0, %v5045_v44  ;;  %v2987_v1 = vsel %vm2985_vm2, 1.0, %v5045_v44  ;;  %vm2986_vm4 = vcmp.gt.s32.totalorder %v3959_v43, 0  ;;  %vm2996_vm5 = vcmp.gt.s32.totalorder %v3959_v43, 1 }
  0x4c   :  { %833 = vmatpush.bf16.msrb.mxu2 %v3846_v17  ;;  %5096 = vst [vmem:[#allocation26_spill] sm:$0xff] %v3984_v0  ;;  %vm2995_vm15 = vcmp.gt.s32.totalorder %v3984_v0, 1  ;;  %vm3056_vm1 = vcmp.gt.s32.totalorder %v3959_v43, 7  ;;  %v133_v0 = vld [vmem:[%s5034_s4 + $0x8] sm:$0xff] }
  0x4d   :  { %417 = vmatmul.bf16.gmra.mxu0 %v3060_v5  ;;  %847 = vmatpush.bf16.msrb.mxu3 %v3843_v14 }
  0x4e   :  { %466 = vmatmul.bf16.gmra.mxu1 %v3060_v5  ;;  %806 = vmatpush.bf16.msrb.mxu0 %v3851_v22 }
  0x4f   :  { %515 = vmatmul.bf16.gmra.mxu2 %v3060_v5  ;;  %820 = vmatpush.bf16.msrb.mxu1 %v3853_v26 }
  0x50   :  { %564 = vmatmul.bf16.gmra.mxu3 %v3060_v5  ;;  %834 = vmatpush.bf16.msrb.mxu2 %v3858_v30  ;;  %v3064_v5 = vld [vmem:[#allocation3 + $0x28] sm:$0xff] }
  0x51   :  { %848 = vmatpush.bf16.msrb.mxu3 %v3855_v27 }
  0x52   :  { %807 = vmatpush.bf16.msrb.mxu0 %v3863_v35 }
  0x53   :  { %821 = vmatpush.bf16.msrb.mxu1 %v3865_v40 }
  0x54   :  { %835 = vmatpush.bf16.msrb.mxu2 %v3870_v45 }
  0x55   :  { %849 = vmatpush.bf16.msrb.mxu3 %v3867_v42 }
  0x56   :  { %808 = vmatpush.bf16.msrb.mxu0 %v3875_v54 }
  0x57   :  { %822 = vmatpush.bf16.msrb.mxu1 %v3877_v61 }
  0x58   :  { %836 = vmatpush.bf16.msrb.mxu2 %v3882_v2 }
  0x59   :  { %850 = vmatpush.bf16.msrb.mxu3 %v3879_v62 }
  0x5a   :  { %809 = vmatpush.bf16.msrb.mxu0 %v3887_v10 }
  0x5b   :  { %823 = vmatpush.bf16.msrb.mxu1 %v3889_v16 }
  0x5c   :  { %837 = vmatpush.bf16.msrb.mxu2 %v3902_v23 }
  0x5d   :  { %422 = vmatmul.bf16.gmra.mxu0 %v3061_v18 }
  0x5e   :  { %471 = vmatmul.bf16.gmra.mxu1 %v3061_v18  ;;  %1015 = vmatpush.bf16.msra.mxu0 %v3803_v37 }
  0x5f   :  { %520 = vmatmul.bf16.gmra.mxu2 %v3061_v18  ;;  %1029 = vmatpush.bf16.msra.mxu1 %v3805_v41 }
  0x60   :  { %569 = vmatmul.bf16.gmra.mxu3 %v3061_v18  ;;  %v3891_v18 = vor.u32 %v3100_v12, %v2863_v15  ;;  %1043 = vmatpush.bf16.msra.mxu2 %v3807_v47  ;;  %v2988_v15 = vsel %vm2986_vm4, 1.0, %v5045_v44 }
  0x62   :  { %5092 = vst [vmem:[#allocation22_spill] sm:$0xff] %v3891_v18  ;;  %851 = vmatpush.bf16.msrb.mxu3 %v3891_v18  ;;  %1016 = vmatpush.bf16.msra.mxu0 %v3812_v49 }
  0x63   :  { %1030 = vmatpush.bf16.msra.mxu1 %v3815_v52 }
  0x64   :  { %1044 = vmatpush.bf16.msra.mxu2 %v3818_v55 }
  0x66   :  { %1057 = vmatpush.bf16.msra.mxu3 %v3810_v48  ;;  %1017 = vmatpush.bf16.msra.mxu0 %v3824_v60 }
  0x67   :  { %1031 = vmatpush.bf16.msra.mxu1 %v3827_v63 }
  0x68   :  { %1045 = vmatpush.bf16.msra.mxu2 %v3830_v3 }
  0x6a   :  { %1058 = vmatpush.bf16.msra.mxu3 %v3822_v59  ;;  %1018 = vmatpush.bf16.msra.mxu0 %v3839_v9 }
  0x6b   :  { %1032 = vmatpush.bf16.msra.mxu1 %v3841_v13 }
  0x6c   :  { %1046 = vmatpush.bf16.msra.mxu2 %v3846_v17 }
  0x6d   :  { %427 = vmatmul.bf16.gmra.mxu0 %v3062_v31 }
  0x6e   :  { %476 = vmatmul.bf16.gmra.mxu1 %v3062_v31  ;;  %1059 = vmatpush.bf16.msra.mxu3 %v3834_v4 }
  0x6f   :  { %525 = vmatmul.bf16.gmra.mxu2 %v3062_v31  ;;  %1019 = vmatpush.bf16.msra.mxu0 %v3851_v22 }
  0x70   :  { %574 = vmatmul.bf16.gmra.mxu3 %v3062_v31  ;;  %1033 = vmatpush.bf16.msra.mxu1 %v3853_v26 }
  0x71   :  { %1047 = vmatpush.bf16.msra.mxu2 %v3858_v30 }
  0x72   :  { %1060 = vmatpush.bf16.msra.mxu3 %v3843_v14 }
  0x73   :  { %1020 = vmatpush.bf16.msra.mxu0 %v3863_v35 }
  0x74   :  { %1034 = vmatpush.bf16.msra.mxu1 %v3865_v40 }
  0x75   :  { %1048 = vmatpush.bf16.msra.mxu2 %v3870_v45 }
  0x76   :  { %1061 = vmatpush.bf16.msra.mxu3 %v3855_v27 }
  0x77   :  { %1021 = vmatpush.bf16.msra.mxu0 %v3875_v54 }
  0x78   :  { %1035 = vmatpush.bf16.msra.mxu1 %v3877_v61 }
  0x79   :  { %1049 = vmatpush.bf16.msra.mxu2 %v3882_v2 }
  0x7a   :  { %1062 = vmatpush.bf16.msra.mxu3 %v3867_v42 }
  0x7b   :  { %1022 = vmatpush.bf16.msra.mxu0 %v3887_v10 }
  0x7c   :  { %1036 = vmatpush.bf16.msra.mxu1 %v3889_v16 }
  0x7d   :  { %432 = vmatmul.bf16.gmra.mxu0 %v3063_v46  ;;  %1050 = vmatpush.bf16.msra.mxu2 %v3902_v23 }
  0x7e   :  { %481 = vmatmul.bf16.gmra.mxu1 %v3063_v46  ;;  %1063 = vmatpush.bf16.msra.mxu3 %v3879_v62 }
  0x7f   :  { %530 = vmatmul.bf16.gmra.mxu2 %v3063_v46 }
  0x80   :  { %579 = vmatmul.bf16.gmra.mxu3 %v3063_v46  ;;  %v3028_v46 = vsel %vm3026_vm0, 1.0, %v5045_v44 }
  0x81   :  { %v3191_v53 = vpack.i.bf16 %v3038_v50, %v3028_v46 }
  0x82   :  { %1064 = vmatpush.bf16.msra.mxu3 %v3891_v18 }
  0x83   :  { %3192 = vperm.xlu1 %3190, %v3191_v53  }
  0x8d   :  { %437 = vmatmul.bf16.gmra.mxu0 %v3064_v5 }
  0x8e   :  { %486 = vmatmul.bf16.gmra.mxu1 %v3064_v5 }
  0x8f   :  { %535 = vmatmul.bf16.gmra.mxu2 %v3064_v5 }
  0x90   :  { %584 = vmatmul.bf16.gmra.mxu3 %v3064_v5  ;;  %v3048_v5 = vsel %vm3046_vm3, 1.0, %v5045_v44 }
  0x91   :  { %v3196_v7 = vpack.i.bf16 %v2987_v1, %v3048_v5 }
  0x93   :  { %3197 = vperm.xlu1 %3190, %v3196_v7  }
  0x9d   :  { %442 = vmatmul.bf16.gmra.mxu0 %v3065_v19 }
  0x9e   :  { %491 = vmatmul.bf16.gmra.mxu1 %v3065_v19 }
  0x9f   :  { %540 = vmatmul.bf16.gmra.mxu2 %v3065_v19 }
  0xa0   :  { %589 = vmatmul.bf16.gmra.mxu3 %v3065_v19  ;;  %v2998_v19 = vsel %vm2996_vm5, 1.0, %v5045_v44 }
  0xa1   :  { %v3180_v21 = vpack.i.bf16 %v2998_v19, %v2988_v15 }
  0xa3   :  { %3181 = vperm.xlu0 %3179, %v3180_v21  }
  0xad   :  { %447 = vmatmul.bf16.gmra.mxu0 %v3066_v24 }
  0xae   :  { %496 = vmatmul.bf16.gmra.mxu1 %v3066_v24 }
  0xaf   :  { %545 = vmatmul.bf16.gmra.mxu2 %v3066_v24 }
  0xb0   :  { %594 = vmatmul.bf16.gmra.mxu3 %v3066_v24 }
  0xba   :  { %v3937_v31 = vpop.f32.mrf.mxu0 }
  0xbb   :  { %v3939_v32 = vpop.f32.mrf.mxu1 }
  0xbd   :  { %810 = vmatmul.bf16.vlgmr.msrb.gmra.mxu0 %v641_v29 }
  0xbe   :  { %824 = vmatmul.bf16.vlgmr.msrb.gmra.mxu1 %v641_v29  ;;  %1228 = vmatpush.bf16.msrb.mxu0 %v3803_v37 }
  0xbf   :  { %838 = vmatmul.bf16.vlgmr.msrb.gmra.mxu2 %v641_v29  ;;  %1242 = vmatpush.bf16.msrb.mxu1 %v3805_v41 }
  0xc0   :  { %852 = vmatmul.bf16.vlgmr.msrb.gmra.mxu3 %v641_v29  ;;  %1256 = vmatpush.bf16.msrb.mxu2 %v3807_v47 }
  0xc1   :  { %1270 = vmatpush.bf16.msrb.mxu3 %v3810_v48 }
  0xc2   :  { %v3944_v33 = vpop.f32.mrf.mxu2  ;;  %v3949_v36 = vpop.f32.mrf.mxu0  ;;  %1229 = vmatpush.bf16.msrb.mxu0 %v3812_v49 }
  0xc3   :  { %v3947_v34 = vpop.f32.mrf.mxu3  ;;  %v3951_v38 = vpop.f32.mrf.mxu1  ;;  %1243 = vmatpush.bf16.msrb.mxu1 %v3815_v52 }
  0xc4   :  { %1257 = vmatpush.bf16.msrb.mxu2 %v3818_v55 }
  0xc5   :  { %1271 = vmatpush.bf16.msrb.mxu3 %v3822_v59 }
  0xc6   :  { %1230 = vmatpush.bf16.msrb.mxu0 %v3824_v60 }
  0xc7   :  { %1244 = vmatpush.bf16.msrb.mxu1 %v3827_v63 }
  0xc8   :  { %1258 = vmatpush.bf16.msrb.mxu2 %v3830_v3 }
  0xc9   :  { %1272 = vmatpush.bf16.msrb.mxu3 %v3834_v4 }
  0xca   :  { %v3969_v51 = vpop.f32.mrf.mxu2  ;;  %v3973_v57 = vpop.f32.mrf.mxu0  ;;  %1231 = vmatpush.bf16.msrb.mxu0 %v3839_v9 }
  0xcb   :  { %v3971_v56 = vpop.f32.mrf.mxu3  ;;  %v3976_v58 = vpop.f32.mrf.mxu1  ;;  %1245 = vmatpush.bf16.msrb.mxu1 %v3841_v13 }
  0xcc   :  { %5095 = vst [vmem:[#allocation25_spill] sm:$0xff] %v3976_v58  ;;  %1259 = vmatpush.bf16.msrb.mxu2 %v3846_v17 }
  0xcd   :  { %1273 = vmatpush.bf16.msrb.mxu3 %v3843_v14 }
  0xce   :  { %1232 = vmatpush.bf16.msrb.mxu0 %v3851_v22 }
  0xcf   :  { %1246 = vmatpush.bf16.msrb.mxu1 %v3853_v26 }
  0xd0   :  { %1260 = vmatpush.bf16.msrb.mxu2 %v3858_v30 }
  0xd1   :  { %1274 = vmatpush.bf16.msrb.mxu3 %v3855_v27 }
  0xd2   :  { %v3994_v6 = vpop.f32.mrf.mxu2  ;;  %v3998_v11 = vpop.f32.mrf.mxu0  ;;  %1233 = vmatpush.bf16.msrb.mxu0 %v3863_v35 }
  0xd3   :  { %5097 = vst [vmem:[#allocation27_spill] sm:$0xff] %v3994_v6  ;;  %v3996_v8 = vpop.f32.mrf.mxu3  ;;  %v4001_v12 = vpop.f32.mrf.mxu1  ;;  %1247 = vmatpush.bf16.msrb.mxu1 %v3865_v40 }
  0xd4   :  { %5098 = vst [vmem:[#allocation28_spill] sm:$0xff] %v3996_v8  ;;  %1261 = vmatpush.bf16.msrb.mxu2 %v3870_v45  ;;  %v132_v8 = vld [vmem:[%s5034_s4] sm:$0xff] }
  0xd5   :  { %5099 = vst [vmem:[#allocation29_spill] sm:$0xff] %v3998_v11  ;;  %1275 = vmatpush.bf16.msrb.mxu3 %v3867_v42 }
  0xd6   :  { %5100 = vst [vmem:[#allocation30_spill] sm:$0xff] %v4001_v12  ;;  %1234 = vmatpush.bf16.msrb.mxu0 %v3875_v54 }
  0xd7   :  { %1248 = vmatpush.bf16.msrb.mxu1 %v3877_v61 }
  0xd8   :  { %1262 = vmatpush.bf16.msrb.mxu2 %v3882_v2 }
  0xd9   :  { %1276 = vmatpush.bf16.msrb.mxu3 %v3879_v62 }
  0xda   :  { %v4014_v20 = vpop.f32.mrf.mxu2  ;;  %v4018_v25 = vpop.f32.mrf.mxu0  ;;  %1235 = vmatpush.bf16.msrb.mxu0 %v3887_v10 }
  0xdb   :  { %5101 = vst [vmem:[#allocation31_spill] sm:$0xff] %v4014_v20  ;;  %v4016_v24 = vpop.f32.mrf.mxu3  ;;  %v4021_v28 = vpop.f32.mrf.mxu1  ;;  %1249 = vmatpush.bf16.msrb.mxu1 %v3889_v16 }
  0xdc   :  { %5102 = vst [vmem:[#allocation32_spill] sm:$0xff] %v4016_v24  ;;  %1263 = vmatpush.bf16.msrb.mxu2 %v3902_v23 }
  0xdd   :  { %5103 = vst [vmem:[#allocation33_spill] sm:$0xff] %v4018_v25  ;;  %1277 = vmatpush.bf16.msrb.mxu3 %v3891_v18 }
  0xde   :  { %5104 = vst [vmem:[#allocation34_spill] sm:$0xff] %v4021_v28 }
  0xe2   :  { %v4027_v29 = vpop.f32.mrf.mxu2  ;;  %v4031_v46 = vpop.f32.mrf.mxu0 }
  0xe3   :  { %5105 = vst [vmem:[#allocation35_spill] sm:$0xff] %v4027_v29  ;;  %v4029_v39 = vpop.f32.mrf.mxu3  ;;  %v4033_v50 = vpop.f32.mrf.mxu1 }
  0xe4   :  { %5106 = vst [vmem:[#allocation36_spill] sm:$0xff] %v4029_v39 }
  0xe5   :  { %5107 = vst [vmem:[#allocation37_spill] sm:$0xff] %v4031_v46 }
  0xe6   :  { %5108 = vst [vmem:[#allocation38_spill] sm:$0xff] %v4033_v50 }
  0xea   :  { %v4035_v53 = vpop.f32.mrf.mxu2  ;;  %v4039_v5 = vpop.f32.mrf.mxu0 }
  0xeb   :  { %5109 = vst [vmem:[#allocation39_spill] sm:$0xff] %v4035_v53  ;;  %v4037_v1 = vpop.f32.mrf.mxu3  ;;  %v4041_v7 = vpop.f32.mrf.mxu1 }
  0xec   :  { %5110 = vst [vmem:[#allocation40_spill] sm:$0xff] %v4037_v1 }
  0xed   :  { %5111 = vst [vmem:[#allocation41_spill] sm:$0xff] %v4039_v5 }
  0xee   :  { %5112 = vst [vmem:[#allocation42_spill] sm:$0xff] %v4041_v7 }
  0xf2   :  { %v4043_v15 = vpop.f32.mrf.mxu2  ;;  %v4047_v21 = vpop.f32.mrf.mxu0 }
  0xf3   :  { %5113 = vst [vmem:[#allocation43_spill] sm:$0xff] %v4043_v15  ;;  %v4045_v19 = vpop.f32.mrf.mxu3  ;;  %v4049_v44 = vpop.f32.mrf.mxu1 }
  0xf4   :  { %5114 = vst [vmem:[#allocation44_spill] sm:$0xff] %v4045_v19 }
  0xf5   :  { %5115 = vst [vmem:[#allocation45_spill] sm:$0xff] %v4047_v21 }
  0xf6   :  { %5116 = vst [vmem:[#allocation46_spill] sm:$0xff] %v4049_v44 }
  0xfa   :  { %v4051_v29 = vpop.f32.mrf.mxu2  ;;  %v4055_v50 = vpop.f32.mrf.mxu0 }
  0xfb   :  { %5117 = vst [vmem:[#allocation47_spill] sm:$0xff] %v4051_v29  ;;  %v4053_v46 = vpop.f32.mrf.mxu3  ;;  %v4057_v53 = vpop.f32.mrf.mxu1 }
  0xfc   :  { %5118 = vst [vmem:[#allocation48_spill] sm:$0xff] %v4053_v46 }
  0xfd   :  { %5119 = vst [vmem:[#allocation49_spill] sm:$0xff] %v4055_v50 }
  0xfe   :  { %5120 = vst [vmem:[#allocation50_spill] sm:$0xff] %v4057_v53 }
 0x102   :  { %v4059_v1 = vpop.f32.mrf.mxu2  ;;  %v4063_v7 = vpop.f32.mrf.mxu0 }
 0x103   :  { %5121 = vst [vmem:[#allocation51_spill] sm:$0xff] %v4059_v1  ;;  %v4061_v5 = vpop.f32.mrf.mxu3  ;;  %v4065_v15 = vpop.f32.mrf.mxu1 }
 0x104   :  { %5122 = vst [vmem:[#allocation52_spill] sm:$0xff] %v4061_v5 }
 0x105   :  { %5123 = vst [vmem:[#allocation53_spill] sm:$0xff] %v4063_v7 }
 0x106   :  { %5124 = vst [vmem:[#allocation54_spill] sm:$0xff] %v4065_v15 }
 0x10a   :  { %v4067_v19 = vpop.f32.mrf.mxu2  ;;  %v4071_v44 = vpop.f32.mrf.mxu0 }
 0x10b   :  { %5125 = vst [vmem:[#allocation55_spill] sm:$0xff] %v4067_v19  ;;  %v4069_v21 = vpop.f32.mrf.mxu3  ;;  %v4073_v29 = vpop.f32.mrf.mxu1 }
 0x10c   :  { %5126 = vst [vmem:[#allocation56_spill] sm:$0xff] %v4069_v21 }
 0x10d   :  { %5127 = vst [vmem:[#allocation57_spill] sm:$0xff] %v4071_v44 }
 0x10e   :  { %5128 = vst [vmem:[#allocation58_spill] sm:$0xff] %v4073_v29 }
 0x112   :  { %v4075_v46 = vpop.f32.mrf.mxu2  ;;  %v4079_v53 = vpop.f32.mrf.mxu0 }
 0x113   :  { %5129 = vst [vmem:[#allocation59_spill] sm:$0xff] %v4075_v46  ;;  %v4077_v50 = vpop.f32.mrf.mxu3  ;;  %v4081_v1 = vpop.f32.mrf.mxu1 }
 0x114   :  { %5130 = vst [vmem:[#allocation60_spill] sm:$0xff] %v4077_v50 }
 0x115   :  { %5131 = vst [vmem:[#allocation61_spill] sm:$0xff] %v4079_v53 }
 0x116   :  { %5132 = vst [vmem:[#allocation62_spill] sm:$0xff] %v4081_v1 }
 0x11a   :  { %v4083_v5 = vpop.f32.mrf.mxu2  ;;  %v4087_v15 = vpop.f32.mrf.mxu0 }
 0x11b   :  { %5133 = vst [vmem:[#allocation63_spill] sm:$0xff] %v4083_v5  ;;  %v4085_v7 = vpop.f32.mrf.mxu3  ;;  %v4089_v19 = vpop.f32.mrf.mxu1 }
 0x11c   :  { %5134 = vst [vmem:[#allocation64_spill] sm:$0xff] %v4085_v7 }
 0x11d   :  { %5135 = vst [vmem:[#allocation65_spill] sm:$0xff] %v4087_v15 }
 0x11e   :  { %5136 = vst [vmem:[#allocation66_spill] sm:$0xff] %v4089_v19  ;;  %v186_v19 = vld [vmem:[%s5037_s7] sm:$0xf]  ;;  %s2641_s7 = sshll.u32 %s5275_s8, 4  ;;  %s2642_s7 = int_to_ptr.hbm [resolvable:$true] %s2641_s7 }
 0x11f   :  { %v4128_v28 = vperm.slane %v186_v19, 3  ;;  %v4138_v6 = vperm.slane %v186_v19, 2 }
 0x121   :  { %5152 = vst [vmem:[#allocation82_spill] sm:$0xff] %v4128_v28 }
 0x122   :  { %v4091_v21 = vpop.f32.mrf.mxu2  ;;  %v4095_v29 = vpop.f32.mrf.mxu0  ;;  %5154 = vst [vmem:[#allocation84_spill] sm:$0xff] %v4138_v6 }
 0x123   :  { %5137 = vst [vmem:[#allocation67_spill] sm:$0xff] %v4091_v21  ;;  %v4093_v44 = vpop.f32.mrf.mxu3  ;;  %v4097_v46 = vpop.f32.mrf.mxu1 }
 0x124   :  { %5138 = vst [vmem:[#allocation68_spill] sm:$0xff] %v4093_v44 }
 0x125   :  { %5139 = vst [vmem:[#allocation69_spill] sm:$0xff] %v4095_v29  ;;  %v4116_v29 = vperm.slane %v186_v19, 0 }
 0x126   :  { %5140 = vst [vmem:[#allocation70_spill] sm:$0xff] %v4097_v46  ;;  %v4118_v46 = vperm.slane %v186_v19, 1 }
 0x127   :  { %5148 = vst [vmem:[#allocation78_spill] sm:$0xff] %v4116_v29 }
 0x128   :  { %5149 = vst [vmem:[#allocation79_spill] sm:$0xff] %v4118_v46 }
 0x12a   :  { %v4101_v53 = vpop.f32.mrf.mxu0  ;;  %v4105_v5 = vpop.f32.mrf.mxu2 }
 0x12b   :  { %v4099_v50 = vpop.f32.mrf.mxu3  ;;  %5142 = vst [vmem:[#allocation72_spill] sm:$0xff] %v4101_v53  ;;  %v4103_v1 = vpop.f32.mrf.mxu1  ;;  %v463_v53 = vadd.f32 %v3939_v32, %v4118_v46  ;;  %v416_v32 = vadd.f32 %v3949_v36, %v4116_v29  ;;  %v563_v36 = vadd.f32 %v3971_v56, %v4128_v28 }
 0x12c   :  { %5141 = vst [vmem:[#allocation71_spill] sm:$0xff] %v4099_v50 }
 0x12d   :  { %5143 = vst [vmem:[#allocation73_spill] sm:$0xff] %v4103_v1  ;;  %v414_v1 = vadd.f32 %v3937_v31, %v4116_v29  ;;  %v561_v31 = vadd.f32 %v3947_v34, %v4128_v28 }
 0x12e   :  { %5144 = vst [vmem:[#allocation74_spill] sm:$0xff] %v4105_v5 }
 0x132   :  { %v4112_v21 = vpop.f32.mrf.mxu0  ;;  %v4120_v50 = vpop.f32.mrf.mxu2 }
 0x133   :  { %v4110_v15 = vpop.f32.mrf.mxu3  ;;  %5146 = vst [vmem:[#allocation76_spill] sm:$0xff] %v4112_v21  ;;  %v4114_v44 = vpop.f32.mrf.mxu1 }
 0x134   :  { %5145 = vst [vmem:[#allocation75_spill] sm:$0xff] %v4110_v15 }
 0x135   :  { %5147 = vst [vmem:[#allocation77_spill] sm:$0xff] %v4114_v44 }
 0x136   :  { %5150 = vst [vmem:[#allocation80_spill] sm:$0xff] %v4120_v50 }
 0x13a   :  { %v811_v7 = vpop.f32.mrf.mxu0  ;;  %v4130_v20 = vpop.f32.mrf.mxu2 }
 0x13b   :  { %v4126_v5 = vpop.f32.mrf.mxu3  ;;  %v858_v15 = vadd.f32 %v811_v7, %v414_v1  ;;  %v825_v39 = vpop.f32.mrf.mxu1  ;;  %5153 = vst [vmem:[#allocation83_spill] sm:$0xff] %v4130_v20 }
 0x13c   :  { %5151 = vst [vmem:[#allocation81_spill] sm:$0xff] %v4126_v5  ;;  %v859_v21 = vadd.f32 %v825_v39, %v463_v53  ;;  %v465_v5 = vadd.f32 %v3951_v38, %v4118_v46 }
 0x13d   :  { %v2979_v44 = vmul.f32 -1.442695, %v858_v15 }
 0x13e   :  { %v2981_v25 = vmul.f32 -1.442695, %v859_v21 }
 0x13f   :  { %3224 = vpow2.f32 %v2979_v44 }
 0x140   :  { %3226 = vpow2.f32 %v2981_v25 }
 0x142   :  { %v813_v7 = vpop.f32.mrf.mxu0  ;;  %v839_v38 = vpop.f32.mrf.mxu2 }
 0x143   :  { %v853_v1 = vpop.f32.mrf.mxu3  ;;  %v862_v53 = vadd.f32 %v813_v7, %v416_v32  ;;  %v827_v50 = vpop.f32.mrf.mxu1 }
 0x144   :  { %v861_v39 = vadd.f32 %v853_v1, %v561_v31  ;;  %v863_v15 = vadd.f32 %v827_v50, %v465_v5  ;;  %v512_v50 = vadd.f32 %v3944_v33, %v4138_v6 }
 0x145   :  { %v3225_v21 = vpop.eup %3224  ;;  %v2980_v25 = vmul.f32 -1.442695, %v862_v53 }
 0x146   :  { %v2983_v44 = vmul.f32 -1.442695, %v861_v39  ;;  %v3227_v24 = vpop.eup %3226  ;;  %v872_v20 = vadd.f32 1.0, %v3225_v21  ;;  %v2982_v12 = vmul.f32 -1.442695, %v863_v15  ;;  %v860_v1 = vadd.f32 %v839_v38, %v512_v50 }
 0x147   :  { %v910_v34 = vadd.f32 1.0, %v3227_v24 }
 0x148   :  { %3228 = vpow2.f32 %v2983_v44  ;;  %vm879_vm8 = vweird.f32 %v872_v20 }
 0x149   :  { %3230 = vrcp.f32 %v872_v20  ;;  %v923_v38 = vand.u32 2147483648, %v910_v34  ;;  %vm917_vm9 = vweird.f32 %v910_v34 }
 0x14a   :  { %3232 = vrcp.f32 %v910_v34 }
 0x14b   :  { %3234 = vpow2.f32 %v2980_v25  ;;  %v855_v31 = vpop.f32.mrf.mxu3  ;;  %v883_v25 = vand.u32 2147483647, %v872_v20 }
 0x14c   :  { %3236 = vpow2.f32 %v2982_v12  ;;  %v865_v5 = vadd.f32 %v855_v31, %v563_v36  ;;  %v885_v12 = vand.u32 2147483648, %v872_v20 }
 0x14d   :  { %vm884_vm12 = vcmp.eq.f32.partialorder %v883_v25, 8.507059e+37 }
 0x14e   :  { %v3229_v32 = vpop.eup %3228  ;;  %v2984_v19 = vmul.f32 -1.442695, %v865_v5  ;;  %v921_v5 = vand.u32 2147483647, %v910_v34 }
 0x14f   :  { %v3231_v7 = vpop.eup %3230  ;;  %v4144_v24 = vadd.f32 1.0, %v3229_v32  ;;  %v841_v32 = vpop.f32.mrf.mxu2 }
 0x150   :  { %v3233_v39 = vpop.eup %3232  ;;  %v875_v53 = vmul.f32 %v3231_v7, %v872_v20  ;;  %3238 = vpow2.f32 %v2984_v19  ;;  %vm880_vm6 = vweird.f32 %v3231_v7  ;;  %v514_v19 = vadd.f32 %v3969_v51, %v4138_v6 }
 0x151   :  { %v3235_v15 = vpop.eup %3234  ;;  %v913_v56 = vmul.f32 %v3233_v39, %v910_v34  ;;  %3240 = vtanh.f32 %v860_v1  ;;  %vm918_vm7 = vweird.f32 %v3233_v39  ;;  %vm881_vm10 = vmor %vm879_vm8, %vm880_vm6  ;;  %vm922_vm13 = vcmp.eq.f32.partialorder %v921_v5, 8.507059e+37 }
 0x152   :  { %v3237_v21 = vpop.eup %3236  ;;  %v876_v44 = vsub.f32 1.0, %v875_v53  ;;  %v4146_v11 = vadd.f32 1.0, %v3235_v15  ;;  %3242 = vrcp.f32 %v4144_v24  ;;  %v886_v15 = vor.u32 1.1754944e-38, %v885_v12  ;;  %vm919_vm11 = vmor %vm917_vm9, %vm918_vm7 }
 0x153   :  { %v914_v33 = vsub.f32 1.0, %v913_v56  ;;  %v4149_v36 = vadd.f32 1.0, %v3237_v21  ;;  %v864_v58 = vadd.f32 %v841_v32, %v514_v19 }
 0x154   :  { %v877_v31 = vmul.f32 %v3231_v7, %v876_v44  ;;  %3244 = vrcp.f32 %v4146_v11  ;;  %vm894_vm14 = vweird.f32 %v4146_v11  ;;  %v900_v32 = vand.u32 2147483648, %v4146_v11 }
 0x155   :  { %v915_v50 = vmul.f32 %v3233_v39, %v914_v33  ;;  %3246 = vrcp.f32 %v4149_v36  ;;  %v924_v33 = vor.u32 1.1754944e-38, %v923_v38  ;;  %v938_v5 = vand.u32 2147483648, %v4149_v36 }
 0x156   :  { %v3239_v1 = vpop.eup %3238  ;;  %v878_v53 = vadd.f32 %v3231_v7, %v877_v31  ;;  %vm932_vm3 = vweird.f32 %v4149_v36 }
 0x157   :  { %v916_v56 = vadd.f32 %v3233_v39, %v915_v50  ;;  %v4155_v21 = vadd.f32 1.0, %v3239_v1  ;;  %v3241_v44 = vpop.eup %3240 }
 0x158   :  { %v882_v28 = vsel %vm881_vm10, %v3231_v7, %v878_v53  ;;  %v4160_v46 = vpop.eup %3242  ;;  %vm957_vm10 = vweird.f32 %v4144_v24 }
 0x159   :  { %v887_v51 = vsel %vm884_vm12, %v886_v15, %v882_v28  ;;  %v920_v20 = vsel %vm919_vm11, %v3233_v39, %v916_v56  ;;  %3248 = vrcp.f32 %v4155_v21  ;;  %v953_v28 = vmul.f32 %v4160_v46, %v4144_v24 }
 0x15a   :  { %v3245_v34 = vpop.eup %3244  ;;  %v925_v12 = vsel %vm922_vm13, %v924_v33, %v920_v20  ;;  %v984_v31 = vmul.f32 %v3241_v44, %v887_v51  ;;  %3250 = vtanh.f32 %v864_v58  ;;  %v5155_v15 = vmov 0.0  }
 0x15b   :  { %v3247_v50 = vpop.eup %3246  ;;  %v982_v1 = vmul.f32 %v925_v12, %v132_v8  ;;  %v890_v38 = vmul.f32 %v3245_v34, %v4146_v11  ;;  %v898_v8 = vand.u32 2147483647, %v4146_v11  ;;  %vm895_vm0 = vweird.f32 %v3245_v34 }
 0x15c   :  { %v928_v6 = vmul.f32 %v3247_v50, %v4149_v36  ;;  %v2997_v58 = vsel %vm2995_vm15, 1.0, %v5155_v15  ;;  %vm933_vm2 = vweird.f32 %v3247_v50  ;;  %v936_v44 = vand.u32 2147483647, %v4149_v36  ;;  %vm896_vm4 = vmor %vm894_vm14, %vm895_vm0 }
 0x15d   :  { %v4166_v7 = vadd.f32 %v984_v31, %v982_v1  ;;  %v891_v39 = vsub.f32 1.0, %v890_v38  ;;  %v3058_v20 = vsel %vm3056_vm1, 1.0, %v5155_v15  ;;  %v901_v31 = vor.u32 1.1754944e-38, %v900_v32  ;;  %vm934_vm5 = vmor %vm932_vm3, %vm933_vm2 }
 0x15e   :  { %v929_v25 = vsub.f32 1.0, %v928_v6  ;;  %v954_v6 = vsub.f32 1.0, %v953_v28  ;;  %vm899_vm6 = vcmp.eq.f32.partialorder %v898_v8, 8.507059e+37  ;;  %vm937_vm7 = vcmp.eq.f32.partialorder %v936_v44, 8.507059e+37 }
 0x15f   :  { %v3249_v19 = vpop.eup %3248  ;;  %v892_v53 = vmul.f32 %v3245_v34, %v891_v39  ;;  %v3202_v39 = vpack.i.bf16 %v3058_v20, %v2997_v58  ;;  %3252 = vtanh.f32 %v4166_v7  ;;  %vm958_vm8 = vweird.f32 %v4160_v46 }
 0x160   :  { %v930_v56 = vmul.f32 %v3247_v50, %v929_v25  ;;  %v968_v33 = vmul.f32 %v3249_v19, %v4155_v21  ;;  %v3251_v12 = vpop.eup %3250  ;;  %v939_v25 = vor.u32 1.1754944e-38, %v938_v5  ;;  %v955_v11 = vmul.f32 %v4160_v46, %v954_v6  ;;  %vm959_vm11 = vmor %vm957_vm10, %vm958_vm8 }
 0x161   :  { %v893_v51 = vadd.f32 %v3245_v34, %v892_v53  ;;  %3203 = vperm.xlu2 %3201, %v3202_v39   ;;  %vm973_vm9 = vweird.f32 %v3249_v19  ;;  %v978_v8 = vand.u32 2147483648, %v4155_v21  ;;  %vm972_vm12 = vweird.f32 %v4155_v21 }
 0x162   :  { %v931_v1 = vadd.f32 %v3247_v50, %v930_v56  ;;  %v969_v38 = vsub.f32 1.0, %v968_v33  ;;  %v956_v5 = vadd.f32 %v4160_v46, %v955_v11  ;;  %vm974_vm13 = vmor %vm972_vm12, %vm973_vm9 }
 0x163   :  { %v897_v28 = vsel %vm896_vm4, %v3245_v34, %v893_v51  ;;  %v979_v51 = vor.u32 1.1754944e-38, %v978_v8 }
 0x164   :  { %v902_v36 = vsel %vm899_vm6, %v901_v31, %v897_v28  ;;  %v935_v53 = vsel %vm934_vm5, %v3247_v50, %v931_v1  ;;  %v970_v32 = vmul.f32 %v3249_v19, %v969_v38  ;;  %v963_v50 = vand.u32 2147483648, %v4144_v24 }
 0x165   :  { %v940_v15 = vsel %vm937_vm7, %v939_v25, %v935_v53  ;;  %v985_v43 = vmul.f32 %v3251_v12, %v902_v36  ;;  %v3253_v33 = vpop.eup %3252 }
 0x166   :  { %v983_v56 = vmul.f32 %v940_v15, %v133_v0  ;;  %v971_v34 = vadd.f32 %v3249_v19, %v970_v32  ;;  %v961_v0 = vand.u32 2147483647, %v4144_v24  ;;  %v960_v15 = vsel %vm959_vm11, %v4160_v46, %v956_v5  ;;  %v5159_v5 = vld [vmem:[#allocation28_spill] sm:$0xff] }
 0x167   :  { %v964_v6 = vor.u32 1.1754944e-38, %v963_v50  ;;  %v419_v46 = vadd.f32 %v3973_v57, %v4116_v29  ;;  %v5160_v50 = vld [vmem:[#allocation29_spill] sm:$0xff] }
 0x168   :  { %v4187_v58 = vadd.f32 %v985_v43, %v983_v56  ;;  %v976_v43 = vand.u32 2147483647, %v4155_v21  ;;  %v975_v44 = vsel %vm974_vm13, %v3249_v19, %v971_v34  ;;  %vm962_vm14 = vcmp.eq.f32.partialorder %v961_v0, 8.507059e+37  ;;  %v5156_v21 = vld [vmem:[#allocation79_spill] sm:$0xff]  ;;  %v5157_v19 = vld [vmem:[#allocation25_spill] sm:$0xff]  ;;  %v5158_v56 = vld [vmem:[#allocation82_spill] sm:$0xff] }
 0x169   :  { %v965_v12 = vsel %vm962_vm14, %v964_v6, %v960_v15  ;;  %v468_v39 = vadd.f32 %v5157_v19, %v5156_v21  ;;  %v566_v34 = vadd.f32 %v5159_v5, %v5158_v56  ;;  %v421_v8 = vadd.f32 %v5160_v50, %v4116_v29  ;;  %v5161_v0 = vld [vmem:[#allocation30_spill] sm:$0xff] }
 0x16a   :  { %3254 = vtanh.f32 %v4187_v58  ;;  %vm977_vm15 = vcmp.eq.f32.partialorder %v976_v43, 8.507059e+37  ;;  %v4199_v1 = vmul.f32 %v3253_v33, %v965_v12  ;;  %v470_v57 = vadd.f32 %v5161_v0, %v5156_v21 }
 0x16b   :  { %v980_v31 = vsel %vm977_vm15, %v979_v51, %v975_v44 }
 0x170   :  { %v3255_v20 = vpop.eup %3254 }
 0x171   :  { %v4201_v38 = vmul.f32 %v3255_v20, %v980_v31 }
 0x173   :  { %v1014_v24 = vpack.c.bf16 %v4201_v38, %v4199_v1 }
 0x175   :  { %1023 = vmatmul.bf16.vlgmr.msra.gmra.mxu0 %v1014_v24  ;;  %1037 = vmatmul.bf16.vlgmr.msra.gmra.mxu1 %v1014_v24 }
 0x176   :  { %1051 = vmatmul.bf16.vlgmr.msra.gmra.mxu2 %v1014_v24  ;;  %1065 = vmatmul.bf16.vlgmr.msra.gmra.mxu3 %v1014_v24 }
 0x177   :  { %1441 = vmatpush.bf16.msra.mxu0 %v3803_v37  ;;  %1455 = vmatpush.bf16.msra.mxu1 %v3805_v41 }
 0x178   :  { %1469 = vmatpush.bf16.msra.mxu2 %v3807_v47  ;;  %1483 = vmatpush.bf16.msra.mxu3 %v3810_v48 }
 0x17b   :  { %1442 = vmatpush.bf16.msra.mxu0 %v3812_v49  ;;  %1456 = vmatpush.bf16.msra.mxu1 %v3815_v52 }
 0x17c   :  { %1470 = vmatpush.bf16.msra.mxu2 %v3818_v55  ;;  %1484 = vmatpush.bf16.msra.mxu3 %v3822_v59 }
 0x17f   :  { %1443 = vmatpush.bf16.msra.mxu0 %v3824_v60  ;;  %1457 = vmatpush.bf16.msra.mxu1 %v3827_v63 }
 0x180   :  { %1471 = vmatpush.bf16.msra.mxu2 %v3830_v3  ;;  %1485 = vmatpush.bf16.msra.mxu3 %v3834_v4 }
 0x183   :  { %1444 = vmatpush.bf16.msra.mxu0 %v3839_v9  ;;  %1458 = vmatpush.bf16.msra.mxu1 %v3841_v13 }
 0x184   :  { %1472 = vmatpush.bf16.msra.mxu2 %v3846_v17  ;;  %1486 = vmatpush.bf16.msra.mxu3 %v3843_v14 }
 0x187   :  { %1445 = vmatpush.bf16.msra.mxu0 %v3851_v22  ;;  %1459 = vmatpush.bf16.msra.mxu1 %v3853_v26 }
 0x188   :  { %1473 = vmatpush.bf16.msra.mxu2 %v3858_v30  ;;  %1487 = vmatpush.bf16.msra.mxu3 %v3855_v27 }
 0x18b   :  { %1446 = vmatpush.bf16.msra.mxu0 %v3863_v35  ;;  %1460 = vmatpush.bf16.msra.mxu1 %v3865_v40 }
 0x18c   :  { %1474 = vmatpush.bf16.msra.mxu2 %v3870_v45  ;;  %1488 = vmatpush.bf16.msra.mxu3 %v3867_v42 }
 0x18f   :  { %1447 = vmatpush.bf16.msra.mxu0 %v3875_v54  ;;  %1461 = vmatpush.bf16.msra.mxu1 %v3877_v61 }
 0x190   :  { %1475 = vmatpush.bf16.msra.mxu2 %v3882_v2  ;;  %1489 = vmatpush.bf16.msra.mxu3 %v3879_v62 }
 0x193   :  { %1448 = vmatpush.bf16.msra.mxu0 %v3887_v10  ;;  %1462 = vmatpush.bf16.msra.mxu1 %v3889_v16 }
 0x194   :  { %1476 = vmatpush.bf16.msra.mxu2 %v3902_v23  ;;  %1490 = vmatpush.bf16.msra.mxu3 %v3891_v18 }
 0x1f2   :  { %v1024_v25 = vpop.f32.mrf.mxu0  ;;  %v1038_v28 = vpop.f32.mrf.mxu1 }
 0x1f3   :  { %v1071_v36 = vadd.f32 %v1024_v25, %v419_v46  ;;  %v1072_v53 = vadd.f32 %v1038_v28, %v468_v39  ;;  %v5162_v28 = vld [vmem:[#allocation84_spill] sm:$0xff] }
 0x1f5   :  { %v2989_v11 = vmul.f32 -1.442695, %v1071_v36  ;;  %v2991_v32 = vmul.f32 -1.442695, %v1072_v53  ;;  %v5163_v36 = vld [vmem:[#allocation27_spill] sm:$0xff] }
 0x1f6   :  { %v517_v53 = vadd.f32 %v5163_v36, %v5162_v28 }
 0x1f7   :  { %3256 = vpow2.f32 %v2989_v11  ;;  %v5164_v11 = vld [vmem:[#allocation32_spill] sm:$0xff] }
 0x1f8   :  { %3258 = vpow2.f32 %v2991_v32  ;;  %v568_v32 = vadd.f32 %v5164_v11, %v5158_v56 }
 0x1f9   :  { %v1066_v43 = vpop.f32.mrf.mxu3  ;;  %v1052_v20 = vpop.f32.mrf.mxu2 }
 0x1fa   :  { %v1074_v15 = vadd.f32 %v1066_v43, %v566_v34  ;;  %v1026_v44 = vpop.f32.mrf.mxu0  ;;  %v1040_v33 = vpop.f32.mrf.mxu1  ;;  %v1073_v34 = vadd.f32 %v1052_v20, %v517_v53 }
 0x1fb   :  { %v1075_v6 = vadd.f32 %v1026_v44, %v421_v8  ;;  %v1076_v51 = vadd.f32 %v1040_v33, %v470_v57 }
 0x1fc   :  { %v2993_v12 = vmul.f32 -1.442695, %v1074_v15 }
 0x1fd   :  { %v3257_v31 = vpop.eup %3256  ;;  %v2990_v24 = vmul.f32 -1.442695, %v1075_v6  ;;  %v2992_v39 = vmul.f32 -1.442695, %v1076_v51 }
 0x1fe   :  { %v3259_v46 = vpop.eup %3258  ;;  %v1085_v19 = vadd.f32 1.0, %v3257_v31  ;;  %3260 = vpow2.f32 %v2993_v12  ;;  %v5165_v12 = vld [vmem:[#allocation31_spill] sm:$0xff] }
 0x1ff   :  { %v1123_v25 = vadd.f32 1.0, %v3259_v46  ;;  %3262 = vpow2.f32 %v2990_v24  ;;  %v519_v31 = vadd.f32 %v5165_v12, %v5162_v28 }
 0x200   :  { %3264 = vrcp.f32 %v1085_v19  ;;  %v1096_v15 = vand.u32 2147483647, %v1085_v19  ;;  %v1098_v46 = vand.u32 2147483648, %v1085_v19  ;;  %vm1092_vm0 = vweird.f32 %v1085_v19 }
 0x201   :  { %3266 = vrcp.f32 %v1123_v25  ;;  %v1068_v5 = vpop.f32.mrf.mxu3  ;;  %v1054_v33 = vpop.f32.mrf.mxu2  ;;  %v1136_v36 = vand.u32 2147483648, %v1123_v25  ;;  %v1134_v53 = vand.u32 2147483647, %v1123_v25  ;;  %vm1130_vm1 = vweird.f32 %v1123_v25 }
 0x202   :  { %3268 = vpow2.f32 %v2992_v39  ;;  %v1078_v50 = vadd.f32 %v1068_v5, %v568_v32  ;;  %v1077_v5 = vadd.f32 %v1054_v33, %v519_v31  ;;  %vm4261_vm2 = vcmp.eq.f32.partialorder %v1096_v15, 8.507059e+37 }
 0x203   :  { %3270 = vtanh.f32 %v1073_v34  ;;  %vm4266_vm5 = vcmp.eq.f32.partialorder %v1134_v53, 8.507059e+37 }
 0x204   :  { %v3261_v8 = vpop.eup %3260  ;;  %v2994_v6 = vmul.f32 -1.442695, %v1078_v50 }
 0x205   :  { %v3263_v0 = vpop.eup %3262  ;;  %v4251_v57 = vadd.f32 1.0, %v3261_v8 }
 0x206   :  { %v3265_v43 = vpop.eup %3264  ;;  %v4253_v44 = vadd.f32 1.0, %v3263_v0  ;;  %v1099_v0 = vor.u32 1.1754944e-38, %v1098_v46  ;;  %v4274_v46 = vpop.permute.xlu1 %3192 }
 0x207   :  { %v3267_v51 = vpop.eup %3266  ;;  %v1088_v24 = vmul.f32 %v3265_v43, %v1085_v19  ;;  %3272 = vrcp.f32 %v4251_v57  ;;  %vm1093_vm3 = vweird.f32 %v3265_v43  ;;  %5170 = vst [vmem:[#allocation25_spill] sm:$0xff] %v4274_v46  ;;  %vm1170_vm9 = vweird.f32 %v4251_v57 }
 0x208   :  { %v3269_v20 = vpop.eup %3268  ;;  %v1126_v39 = vmul.f32 %v3267_v51, %v1123_v25  ;;  %3274 = vrcp.f32 %v4253_v44  ;;  %vm1131_vm4 = vweird.f32 %v3267_v51  ;;  %vm1107_vm6 = vweird.f32 %v4253_v44  ;;  %vm1094_vm7 = vmor %vm1092_vm0, %vm1093_vm3 }
 0x209   :  { %v1089_v11 = vsub.f32 1.0, %v1088_v24  ;;  %v4259_v32 = vadd.f32 1.0, %v3269_v20  ;;  %3276 = vpow2.f32 %v2994_v6  ;;  %v3271_v12 = vpop.eup %3270  ;;  %v1137_v24 = vor.u32 1.1754944e-38, %v1136_v36  ;;  %vm1132_vm8 = vmor %vm1130_vm1, %vm1131_vm4 }
 0x20a   :  { %v1127_v34 = vsub.f32 1.0, %v1126_v39  ;;  %v1111_v6 = vand.u32 2147483647, %v4253_v44  ;;  %v1113_v53 = vand.u32 2147483648, %v4253_v44  ;;  %v1176_v19 = vand.u32 2147483648, %v4251_v57 }
 0x20b   :  { %v1090_v8 = vmul.f32 %v3265_v43, %v1089_v11  ;;  %3278 = vrcp.f32 %v4259_v32  ;;  %vm1145_vm10 = vweird.f32 %v4259_v32  ;;  %v5171_v11 = vld [vmem:[#allocation24_spill] sm:$0xff]  ;;  %v1149_v20 = vand.u32 2147483647, %v4259_v32 }
 0x20c   :  { %v1128_v28 = vmul.f32 %v3267_v51, %v1127_v34  ;;  %3280 = vtanh.f32 %v1077_v5  ;;  %vm3006_vm11 = vcmp.gt.s32.totalorder %v5171_v11, 2  ;;  %vm4298_vm12 = vcmp.eq.f32.partialorder %v1111_v6, 8.507059e+37 }
 0x20d   :  { %v4270_v33 = vpop.eup %3272  ;;  %v1091_v15 = vadd.f32 %v3265_v43, %v1090_v8  ;;  %v1151_v8 = vand.u32 2147483648, %v4259_v32  ;;  %vm3016_vm15 = vcmp.gt.s32.totalorder %v5171_v11, 3  ;;  %v1177_v50 = vor.u32 1.1754944e-38, %v1176_v19 }
 0x20e   :  { %v3275_v31 = vpop.eup %3274  ;;  %v1129_v39 = vadd.f32 %v3267_v51, %v1128_v28  ;;  %v1166_v36 = vmul.f32 %v4270_v33, %v4251_v57  ;;  %vm1171_vm14 = vweird.f32 %v4270_v33 }
 0x20f   :  { %v1095_v34 = vsel %vm1094_vm7, %v3265_v43, %v1091_v15  ;;  %v1103_v5 = vmul.f32 %v3275_v31, %v4253_v44  ;;  %v3277_v28 = vpop.eup %3276  ;;  %vm1108_vm13 = vweird.f32 %v3275_v31  ;;  %vm4329_vm3 = vmor %vm1170_vm9, %vm1171_vm14 }
 0x210   :  { %v1100_v46 = vsel %vm4261_vm2, %v1099_v0, %v1095_v34  ;;  %v1133_v56 = vsel %vm1132_vm8, %v3267_v51, %v1129_v39  ;;  %v1167_v21 = vsub.f32 1.0, %v1166_v36  ;;  %v4294_v18 = vadd.f32 1.0, %v3277_v28  ;;  %vm1109_vm2 = vmor %vm1107_vm6, %vm1108_vm13  ;;  %v4319_v28 = vpop.permute.xlu1 %3197 }
 0x211   :  { %v3279_v25 = vpop.eup %3278  ;;  %v1138_v43 = vsel %vm4266_vm5, %v1137_v24, %v1133_v56  ;;  %v1197_v15 = vmul.f32 %v3271_v12, %v1100_v46  ;;  %v1104_v29 = vsub.f32 1.0, %v1103_v5  ;;  %5176 = vst [vmem:[#allocation28_spill] sm:$0xff] %v4319_v28  ;;  %vm1150_vm6 = vcmp.eq.f32.partialorder %v1149_v20, 8.507059e+37 }
 0x212   :  { %v1195_v23 = vmul.f32 %v1138_v43, %v4166_v7  ;;  %v1141_v16 = vmul.f32 %v3279_v25, %v4259_v32  ;;  %v1168_v51 = vmul.f32 %v4270_v33, %v1167_v21  ;;  %v3281_v0 = vpop.eup %3280  ;;  %3282 = vrcp.f32 %v4294_v18 }
 0x213   :  { %v1105_v39 = vmul.f32 %v3275_v31, %v1104_v29  ;;  %v5174_v7 = vmov 0.0   ;;  %v5175_v29 = vld [vmem:[#allocation26_spill] sm:$0xff]  ;;  %vm1146_vm1 = vweird.f32 %v3279_v25  ;;  %v5180_v20 = vand.u32 2147483647, %v4251_v57 }
 0x214   :  { %v4305_v56 = vadd.f32 %v1197_v15, %v1195_v23  ;;  %v1142_v12 = vsub.f32 1.0, %v1141_v16  ;;  %v3008_v24 = vsel %vm3006_vm11, 1.0, %v5174_v7  ;;  %v1169_v46 = vadd.f32 %v4270_v33, %v1168_v51  ;;  %v4323_v15 = vpop.permute.xlu2 %3203  ;;  %vm1147_vm5 = vmor %vm1145_vm10, %vm1146_vm1 }
 0x215   :  { %v1106_v6 = vadd.f32 %v3275_v31, %v1105_v39  ;;  %vm3005_vm0 = vcmp.gt.s32.totalorder %v5175_v29, 2  ;;  %v1114_v16 = vor.u32 1.1754944e-38, %v1113_v53  ;;  %v1152_v23 = vor.u32 1.1754944e-38, %v1151_v8  ;;  %5177 = vst [vmem:[#allocation29_spill] sm:$0xff] %v4323_v15 }
 0x216   :  { %3284 = vtanh.f32 %v4305_v56  ;;  %v1143_v21 = vmul.f32 %v3279_v25, %v1142_v12  ;;  %v3018_v34 = vsel %vm3016_vm15, 1.0, %v5174_v7  ;;  %v3007_v5 = vsel %vm3005_vm0, 1.0, %v5174_v7 }
 0x217   :  { %v1110_v36 = vsel %vm1109_vm2, %v3275_v31, %v1106_v6  ;;  %v3185_v31 = vpack.i.bf16 %v3018_v34, %v3008_v24  ;;  %vm3015_vm4 = vcmp.gt.s32.totalorder %v5175_v29, 3  ;;  %v1173_v8 = vsel %vm4329_vm3, %v4270_v33, %v1169_v46 }
 0x218   :  { %v1115_v11 = vsel %vm4298_vm12, %v1114_v16, %v1110_v36  ;;  %v1144_v43 = vadd.f32 %v3279_v25, %v1143_v21  ;;  %v3283_v53 = vpop.eup %3282  ;;  %v3017_v51 = vsel %vm3015_vm4, 1.0, %v5174_v7  ;;  %v3200_v29 = vunpack.i.h.bf16 %v4319_v28 }
 0x219   :  { %v1198_v12 = vmul.f32 %v3281_v0, %v1115_v11  ;;  %v1181_v6 = vmul.f32 %v3283_v53, %v4294_v18  ;;  %3186 = vperm.xlu0 %3179, %v3185_v31   ;;  %v3207_v24 = vpack.i.bf16 %v3017_v51, %v3007_v5  ;;  %v3205_v32 = vunpack.i.l.bf16 %v4323_v15 }
 0x21a   :  { %v1148_v39 = vsel %vm1147_vm5, %v3279_v25, %v1144_v43  ;;  %vm1175_vm7 = vcmp.eq.f32.partialorder %v5180_v20, 8.507059e+37  ;;  %v1009_v34 = vmul.f32 %v3200_v29, %v4199_v1  ;;  %vm1186_vm8 = vweird.f32 %v3283_v53  ;;  %v3182_v43 = vpop.permute.xlu0 %3181 }
 0x21b   :  { %v1153_v21 = vsel %vm1150_vm6, %v1152_v23, %v1148_v39  ;;  %v1182_v19 = vsub.f32 1.0, %v1181_v6  ;;  %v1178_v46 = vsel %vm1175_vm7, %v1177_v50, %v1173_v8  ;;  %3208 = vperm.xlu2 %3201, %v3207_v24   ;;  %v1191_v57 = vand.u32 2147483648, %v4294_v18 }
 0x21c   :  { %v3285_v16 = vpop.eup %3284  ;;  %v1196_v33 = vmul.f32 %v1153_v21, %v4187_v58  ;;  %vm1185_vm9 = vweird.f32 %v4294_v18  ;;  %v1189_v58 = vand.u32 2147483647, %v4294_v18  ;;  %v3184_v8 = vunpack.i.h.bf16 %v3182_v43  ;;  %v5181_v18 = vld [vmem:[#allocation21_spill] sm:$0xff]  ;;  %v5184_v21 = vld [vmem:[#allocation78_spill] sm:$0xff] }
 0x21d   :  { %v1203_v25 = vmul.f32 %v3285_v16, %v1178_v46  ;;  %v1183_v36 = vmul.f32 %v3283_v53, %v1182_v19  ;;  %vm1187_vm10 = vmor %vm1185_vm9, %vm1186_vm8  ;;  %v1192_v31 = vor.u32 1.1754944e-38, %v1191_v57  ;;  %v3183_v50 = vunpack.i.l.bf16 %v3182_v43  ;;  %v5186_v16 = vld [vmem:[#allocation79_spill] sm:$0xff]  ;;  %v5188_v57 = vld [vmem:[#allocation82_spill] sm:$0xff] }
 0x21e   :  { %v4347_v0 = vadd.f32 %v1198_v12, %v1196_v33  ;;  %vm1190_vm11 = vcmp.eq.f32.partialorder %v1189_v58, 8.507059e+37  ;;  %v5187_v33 = vld [vmem:[#allocation34_spill] sm:$0xff]  ;;  %v5189_v58 = vld [vmem:[#allocation36_spill] sm:$0xff] }
 0x21f   :  { %v1222_v5 = vmul.f32 %v3205_v32, %v1203_v25  ;;  %v1184_v23 = vadd.f32 %v3283_v53, %v1183_v36  ;;  %v1010_v12 = vmul.f32 %v3183_v50, %v4201_v38  ;;  %v5182_v38 = vld [vmem:[#allocation23_spill] sm:$0xff]  ;;  %v5185_v32 = vld [vmem:[#allocation33_spill] sm:$0xff]  ;;  %v473_v19 = vadd.f32 %v5187_v33, %v5186_v16 }
 0x220   :  { %3286 = vtanh.f32 %v4347_v0  ;;  %v424_v20 = vadd.f32 %v5185_v32, %v5184_v21  ;;  %v571_v43 = vadd.f32 %v5189_v58, %v5188_v57 }
 0x221   :  { %v4353_v11 = vadd.f32 %v1222_v5, %v1009_v34  ;;  %v1188_v44 = vsel %vm1187_vm10, %v3283_v53, %v1184_v23  ;;  %v5183_v53 = vld [vmem:[#allocation22_spill] sm:$0xff] }
 0x222   :  { %v1193_v51 = vsel %vm1190_vm11, %v1192_v31, %v1188_v44  ;;  %v5190_v44 = vld [vmem:[#allocation37_spill] sm:$0xff] }
 0x223   :  { %v426_v31 = vadd.f32 %v5190_v44, %v5184_v21 }
 0x226   :  { %v3287_v1 = vpop.eup %3286 }
 0x227   :  { %v1204_v39 = vmul.f32 %v3287_v1, %v1193_v51 }
 0x229   :  { %v1227_v6 = vpack.c.bf16 %v1204_v39, %v1203_v25  ;;  %v1223_v24 = vmul.f32 %v3184_v8, %v1204_v39  ;;  %v5191_v8 = vld [vmem:[#allocation38_spill] sm:$0xff] }
 0x22a   :  { %v475_v50 = vadd.f32 %v5191_v8, %v5186_v16 }
 0x22b   :  { %1236 = vmatmul.bf16.vlgmr.msrb.gmra.mxu0 %v1227_v6  ;;  %1250 = vmatmul.bf16.vlgmr.msrb.gmra.mxu1 %v1227_v6  ;;  %v4357_v29 = vadd.f32 %v1223_v24, %v1010_v12 }
 0x22c   :  { %1264 = vmatmul.bf16.vlgmr.msrb.gmra.mxu2 %v1227_v6  ;;  %1278 = vmatmul.bf16.vlgmr.msrb.gmra.mxu3 %v1227_v6 }
 0x22d   :  { %1654 = vmatpush.bf16.msrb.mxu0 %v3803_v37  ;;  %1668 = vmatpush.bf16.msrb.mxu1 %v3805_v41 }
 0x22e   :  { %1682 = vmatpush.bf16.msrb.mxu2 %v3807_v47  ;;  %1696 = vmatpush.bf16.msrb.mxu3 %v3810_v48 }
 0x231   :  { %1655 = vmatpush.bf16.msrb.mxu0 %v3812_v49  ;;  %1669 = vmatpush.bf16.msrb.mxu1 %v3815_v52 }
 0x232   :  { %1683 = vmatpush.bf16.msrb.mxu2 %v3818_v55  ;;  %1697 = vmatpush.bf16.msrb.mxu3 %v3822_v59 }
 0x235   :  { %1656 = vmatpush.bf16.msrb.mxu0 %v3824_v60  ;;  %1670 = vmatpush.bf16.msrb.mxu1 %v3827_v63 }
 0x236   :  { %1684 = vmatpush.bf16.msrb.mxu2 %v3830_v3  ;;  %1698 = vmatpush.bf16.msrb.mxu3 %v3834_v4 }
 0x239   :  { %1657 = vmatpush.bf16.msrb.mxu0 %v3839_v9  ;;  %1671 = vmatpush.bf16.msrb.mxu1 %v3841_v13 }
 0x23a   :  { %1685 = vmatpush.bf16.msrb.mxu2 %v3846_v17  ;;  %1699 = vmatpush.bf16.msrb.mxu3 %v3843_v14 }
 0x23d   :  { %1658 = vmatpush.bf16.msrb.mxu0 %v3851_v22  ;;  %1672 = vmatpush.bf16.msrb.mxu1 %v3853_v26 }
 0x23e   :  { %1686 = vmatpush.bf16.msrb.mxu2 %v3858_v30  ;;  %1700 = vmatpush.bf16.msrb.mxu3 %v3855_v27 }
 0x241   :  { %1659 = vmatpush.bf16.msrb.mxu0 %v3863_v35  ;;  %1673 = vmatpush.bf16.msrb.mxu1 %v3865_v40 }
 0x242   :  { %1687 = vmatpush.bf16.msrb.mxu2 %v3870_v45  ;;  %1701 = vmatpush.bf16.msrb.mxu3 %v3867_v42 }
 0x245   :  { %1660 = vmatpush.bf16.msrb.mxu0 %v3875_v54  ;;  %1674 = vmatpush.bf16.msrb.mxu1 %v3877_v61 }
 0x246   :  { %1688 = vmatpush.bf16.msrb.mxu2 %v3882_v2  ;;  %1702 = vmatpush.bf16.msrb.mxu3 %v3879_v62 }
 0x249   :  { %1661 = vmatpush.bf16.msrb.mxu0 %v3887_v10  ;;  %1675 = vmatpush.bf16.msrb.mxu1 %v5181_v18 }
 0x24a   :  { %1689 = vmatpush.bf16.msrb.mxu2 %v5182_v38  ;;  %1703 = vmatpush.bf16.msrb.mxu3 %v5183_v53 }
 0x2a8   :  { %v1237_v46 = vpop.f32.mrf.mxu0  ;;  %v1251_v25 = vpop.f32.mrf.mxu1 }
 0x2a9   :  { %v1284_v36 = vadd.f32 %v1237_v46, %v424_v20  ;;  %v1285_v34 = vadd.f32 %v1251_v25, %v473_v19 }
 0x2ab   :  { %v2999_v5 = vmul.f32 -1.442695, %v1284_v36  ;;  %v3001_v23 = vmul.f32 -1.442695, %v1285_v34 }
 0x2ad   :  { %3288 = vpow2.f32 %v2999_v5  ;;  %v5192_v5 = vld [vmem:[#allocation84_spill] sm:$0xff] }
 0x2ae   :  { %3290 = vpow2.f32 %v3001_v23  ;;  %v5193_v23 = vld [vmem:[#allocation35_spill] sm:$0xff] }
 0x2af   :  { %v1279_v1 = vpop.f32.mrf.mxu3  ;;  %v1265_v25 = vpop.f32.mrf.mxu2  ;;  %v522_v58 = vadd.f32 %v5193_v23, %v5192_v5 }
 0x2b0   :  { %v1287_v51 = vadd.f32 %v1279_v1, %v571_v43  ;;  %v1239_v39 = vpop.f32.mrf.mxu0  ;;  %v1253_v12 = vpop.f32.mrf.mxu1  ;;  %v5194_v43 = vld [vmem:[#allocation40_spill] sm:$0xff] }
 0x2b1   :  { %v1288_v6 = vadd.f32 %v1239_v39, %v426_v31  ;;  %v1289_v24 = vadd.f32 %v1253_v12, %v475_v50  ;;  %v573_v44 = vadd.f32 %v5194_v43, %v5188_v57  ;;  %v1286_v8 = vadd.f32 %v1265_v25, %v522_v58 }
 0x2b2   :  { %v3003_v32 = vmul.f32 -1.442695, %v1287_v51 }
 0x2b3   :  { %v3289_v20 = vpop.eup %3288  ;;  %v3000_v33 = vmul.f32 -1.442695, %v1288_v6  ;;  %v3002_v36 = vmul.f32 -1.442695, %v1289_v24 }
 0x2b4   :  { %v3291_v19 = vpop.eup %3290  ;;  %v1298_v46 = vadd.f32 1.0, %v3289_v20  ;;  %3292 = vpow2.f32 %v3003_v32 }
 0x2b5   :  { %v1336_v34 = vadd.f32 1.0, %v3291_v19  ;;  %3294 = vpow2.f32 %v3000_v33  ;;  %v5195_v19 = vld [vmem:[#allocation39_spill] sm:$0xff] }
 0x2b6   :  { %3296 = vrcp.f32 %v1298_v46  ;;  %v524_v23 = vadd.f32 %v5195_v19, %v5192_v5  ;;  %v1309_v43 = vand.u32 2147483647, %v1298_v46  ;;  %vm1305_vm15 = vweird.f32 %v1298_v46 }
 0x2b7   :  { %3298 = vrcp.f32 %v1336_v34  ;;  %v1281_v31 = vpop.f32.mrf.mxu3  ;;  %vm1343_vm14 = vweird.f32 %v1336_v34 }
 0x2b8   :  { %3300 = vpow2.f32 %v3002_v36  ;;  %v1291_v50 = vadd.f32 %v1281_v31, %v573_v44  ;;  %v1267_v36 = vpop.f32.mrf.mxu2  ;;  %v1311_v44 = vand.u32 2147483648, %v1298_v46  ;;  %vm1310_vm0 = vcmp.eq.f32.partialorder %v1309_v43, 8.507059e+37 }
 0x2b9   :  { %3302 = vtanh.f32 %v1286_v8  ;;  %v1290_v15 = vadd.f32 %v1267_v36, %v524_v23 }
 0x2ba   :  { %v3293_v1 = vpop.eup %3292  ;;  %v3004_v24 = vmul.f32 -1.442695, %v1291_v50  ;;  %v1347_v50 = vand.u32 2147483647, %v1336_v34 }
 0x2bb   :  { %v3295_v51 = vpop.eup %3294  ;;  %v4405_v39 = vadd.f32 1.0, %v3293_v1  ;;  %v1349_v1 = vand.u32 2147483648, %v1336_v34 }
 0x2bc   :  { %v3297_v12 = vpop.eup %3296  ;;  %v4407_v6 = vadd.f32 1.0, %v3295_v51  ;;  %vm1348_vm3 = vcmp.eq.f32.partialorder %v1347_v50, 8.507059e+37 }
 0x2bd   :  { %v3299_v32 = vpop.eup %3298  ;;  %v1301_v20 = vmul.f32 %v3297_v12, %v1298_v46  ;;  %3304 = vrcp.f32 %v4405_v39  ;;  %vm1306_vm12 = vweird.f32 %v3297_v12  ;;  %v1350_v5 = vor.u32 1.1754944e-38, %v1349_v1 }
 0x2be   :  { %v3301_v33 = vpop.eup %3300  ;;  %v1339_v25 = vmul.f32 %v3299_v32, %v1336_v34  ;;  %3306 = vrcp.f32 %v4407_v6  ;;  %vm1344_vm13 = vweird.f32 %v3299_v32  ;;  %vm1307_vm1 = vmor %vm1305_vm15, %vm1306_vm12  ;;  %v1326_v46 = vand.u32 2147483648, %v4407_v6 }
 0x2bf   :  { %v1302_v58 = vsub.f32 1.0, %v1301_v20  ;;  %v4413_v31 = vadd.f32 1.0, %v3301_v33  ;;  %3308 = vpow2.f32 %v3004_v24  ;;  %v3303_v28 = vpop.eup %3302  ;;  %vm1345_vm2 = vmor %vm1343_vm14, %vm1344_vm13  ;;  %vm1320_vm4 = vweird.f32 %v4407_v6 }
 0x2c0   :  { %v1340_v8 = vsub.f32 1.0, %v1339_v25  ;;  %v1312_v25 = vor.u32 1.1754944e-38, %v1311_v44  ;;  %vm1383_vm10 = vweird.f32 %v4405_v39 }
 0x2c1   :  { %v1303_v51 = vmul.f32 %v3297_v12, %v1302_v58  ;;  %3310 = vrcp.f32 %v4413_v31  ;;  %vm1358_vm11 = vweird.f32 %v4413_v31 }
 0x2c2   :  { %v1341_v19 = vmul.f32 %v3299_v32, %v1340_v8  ;;  %3312 = vtanh.f32 %v1290_v15 }
 0x2c3   :  { %v4416_v7 = vpop.eup %3304  ;;  %v1304_v20 = vadd.f32 %v3297_v12, %v1303_v51 }
 0x2c4   :  { %v3307_v33 = vpop.eup %3306  ;;  %v1342_v57 = vadd.f32 %v3299_v32, %v1341_v19  ;;  %v1379_v24 = vmul.f32 %v4416_v7, %v4405_v39  ;;  %vm1384_vm6 = vweird.f32 %v4416_v7 }
 0x2c5   :  { %v1308_v58 = vsel %vm1307_vm1, %v3297_v12, %v1304_v20  ;;  %v1316_v23 = vmul.f32 %v3307_v33, %v4407_v6  ;;  %v3309_v36 = vpop.eup %3308  ;;  %vm1321_vm5 = vweird.f32 %v3307_v33  ;;  %v1389_v20 = vand.u32 2147483648, %v4405_v39  ;;  %vm4446_vm12 = vmor %vm1383_vm10, %vm1384_vm6 }
 0x2c6   :  { %v1313_v8 = vsel %vm1310_vm0, %v1312_v25, %v1308_v58  ;;  %v1346_v34 = vsel %vm1345_vm2, %v3299_v32, %v1342_v57  ;;  %v1380_v51 = vsub.f32 1.0, %v1379_v24  ;;  %v4422_v19 = vadd.f32 1.0, %v3309_v36  ;;  %vm1322_vm8 = vmor %vm1320_vm4, %vm1321_vm5 }
 0x2c7   :  { %v3311_v43 = vpop.eup %3310  ;;  %v1351_v1 = vsel %vm1348_vm3, %v1350_v5, %v1346_v34  ;;  %v1410_v16 = vmul.f32 %v3303_v28, %v1313_v8  ;;  %v1317_v44 = vsub.f32 1.0, %v1316_v23  ;;  %v1324_v57 = vand.u32 2147483647, %v4407_v6 }
 0x2c8   :  { %v1408_v21 = vmul.f32 %v1351_v1, %v4305_v56  ;;  %v1354_v12 = vmul.f32 %v3311_v43, %v4413_v31  ;;  %v1381_v15 = vmul.f32 %v4416_v7, %v1380_v51  ;;  %3314 = vrcp.f32 %v4422_v19  ;;  %v3313_v56 = vpop.eup %3312  ;;  %v4444_v51 = vpop.permute.xlu2 %3208 }
 0x2c9   :  { %v1318_v50 = vmul.f32 %v3307_v33, %v1317_v44  ;;  %v1364_v5 = vand.u32 2147483648, %v4413_v31  ;;  %v1327_v24 = vor.u32 1.1754944e-38, %v1326_v46  ;;  %vm1359_vm7 = vweird.f32 %v3311_v43 }
 0x2ca   :  { %v4430_v32 = vadd.f32 %v1410_v16, %v1408_v21  ;;  %v1355_v28 = vsub.f32 1.0, %v1354_v12  ;;  %v1382_v58 = vadd.f32 %v4416_v7, %v1381_v15  ;;  %v1362_v21 = vand.u32 2147483647, %v4413_v31  ;;  %vm1360_vm13 = vmor %vm1358_vm11, %vm1359_vm7 }
 0x2cb   :  { %v1319_v25 = vadd.f32 %v3307_v33, %v1318_v50  ;;  %vm1325_vm9 = vcmp.eq.f32.partialorder %v1324_v57, 8.507059e+37  ;;  %v1387_v36 = vand.u32 2147483647, %v4405_v39  ;;  %v1365_v1 = vor.u32 1.1754944e-38, %v1364_v5 }
 0x2cc   :  { %3316 = vtanh.f32 %v4430_v32  ;;  %v1356_v23 = vmul.f32 %v3311_v43, %v1355_v28  ;;  %v1390_v44 = vor.u32 1.1754944e-38, %v1389_v20  ;;  %vm1363_vm14 = vcmp.eq.f32.partialorder %v1362_v21, 8.507059e+37 }
 0x2cd   :  { %v1323_v16 = vsel %vm1322_vm8, %v3307_v33, %v1319_v25  ;;  %v1386_v33 = vsel %vm4446_vm12, %v4416_v7, %v1382_v58  ;;  %v3210_v50 = vunpack.i.l.bf16 %v4444_v51  ;;  %vm1388_vm15 = vcmp.eq.f32.partialorder %v1387_v36, 8.507059e+37  ;;  %v4465_v58 = vpop.permute.xlu0 %3186 }
 0x2ce   :  { %v1328_v8 = vsel %vm1325_vm9, %v1327_v24, %v1323_v16  ;;  %v1357_v34 = vadd.f32 %v3311_v43, %v1356_v23  ;;  %v3315_v6 = vpop.eup %3314  ;;  %v1391_v24 = vsel %vm1388_vm15, %v1390_v44, %v1386_v33  ;;  %v1404_v20 = vand.u32 2147483648, %v4422_v19 }
 0x2cf   :  { %v1411_v39 = vmul.f32 %v3313_v56, %v1328_v8  ;;  %v1394_v31 = vmul.f32 %v3315_v6, %v4422_v19  ;;  %vm1399_vm0 = vweird.f32 %v3315_v6  ;;  %vm1398_vm1 = vweird.f32 %v4422_v19 }
 0x2d0   :  { %v1361_v12 = vsel %vm1360_vm13, %v3311_v43, %v1357_v34  ;;  %vm1400_vm2 = vmor %vm1398_vm1, %vm1399_vm0  ;;  %v1405_v36 = vor.u32 1.1754944e-38, %v1404_v20  ;;  %v3188_v8 = vunpack.i.l.bf16 %v4465_v58 }
 0x2d1   :  { %v1366_v15 = vsel %vm1363_vm14, %v1365_v1, %v1361_v12  ;;  %v1395_v25 = vsub.f32 1.0, %v1394_v31  ;;  %v5200_v12 = vld [vmem:[#allocation79_spill] sm:$0xff] }
 0x2d2   :  { %v3317_v57 = vpop.eup %3316  ;;  %v1409_v28 = vmul.f32 %v1366_v15, %v4347_v0  ;;  %v1402_v0 = vand.u32 2147483647, %v4422_v19  ;;  %v5199_v19 = vld [vmem:[#allocation41_spill] sm:$0xff] }
 0x2d3   :  { %v1416_v5 = vmul.f32 %v3317_v57, %v1391_v24  ;;  %v1396_v16 = vmul.f32 %v3315_v6, %v1395_v25 }
 0x2d4   :  { %v4456_v23 = vadd.f32 %v1411_v39, %v1409_v28  ;;  %vm1403_vm3 = vcmp.eq.f32.partialorder %v1402_v0, 8.507059e+37  ;;  %v5201_v39 = vld [vmem:[#allocation42_spill] sm:$0xff] }
 0x2d5   :  { %v1435_v7 = vmul.f32 %v3210_v50, %v1416_v5  ;;  %v1397_v43 = vadd.f32 %v3315_v6, %v1396_v16  ;;  %v478_v31 = vadd.f32 %v5201_v39, %v5200_v12  ;;  %v5203_v16 = vld [vmem:[#allocation44_spill] sm:$0xff]  ;;  %v5205_v0 = vld [vmem:[#allocation46_spill] sm:$0xff] }
 0x2d6   :  { %3318 = vtanh.f32 %v4456_v23 }
 0x2d7   :  { %v4461_v56 = vadd.f32 %v1435_v7, %v4353_v11  ;;  %v1401_v21 = vsel %vm1400_vm2, %v3315_v6, %v1397_v43  ;;  %v5204_v43 = vld [vmem:[#allocation45_spill] sm:$0xff] }
 0x2d8   :  { %v1406_v46 = vsel %vm1403_vm3, %v1405_v36, %v1401_v21  ;;  %v480_v21 = vadd.f32 %v5205_v0, %v5200_v12 }
 0x2dc   :  { %v3319_v34 = vpop.eup %3318 }
 0x2dd   :  { %v1417_v1 = vmul.f32 %v3319_v34, %v1406_v46 }
 0x2df   :  { %v1436_v33 = vmul.f32 %v3188_v8, %v1417_v1  ;;  %v1440_v44 = vpack.c.bf16 %v1417_v1, %v1416_v5  ;;  %v5202_v5 = vld [vmem:[#allocation82_spill] sm:$0xff] }
 0x2e0   :  { %v576_v7 = vadd.f32 %v5203_v16, %v5202_v5 }
 0x2e1   :  { %v4469_v11 = vadd.f32 %v1436_v33, %v4357_v29  ;;  %1449 = vmatmul.bf16.vlgmr.msra.gmra.mxu0 %v1440_v44  ;;  %1463 = vmatmul.bf16.vlgmr.msra.gmra.mxu1 %v1440_v44  ;;  %v5198_v29 = vld [vmem:[#allocation78_spill] sm:$0xff] }
 0x2e2   :  { %1477 = vmatmul.bf16.vlgmr.msra.gmra.mxu2 %v1440_v44  ;;  %1491 = vmatmul.bf16.vlgmr.msra.gmra.mxu3 %v1440_v44  ;;  %v429_v6 = vadd.f32 %v5199_v19, %v5198_v29  ;;  %v431_v20 = vadd.f32 %v5204_v43, %v5198_v29  ;;  %v5208_v43 = vld [vmem:[#allocation48_spill] sm:$0xff] }
 0x2e3   :  { %1867 = vmatpush.bf16.msra.mxu0 %v3803_v37  ;;  %1881 = vmatpush.bf16.msra.mxu1 %v3805_v41 }
 0x2e4   :  { %1895 = vmatpush.bf16.msra.mxu2 %v3807_v47  ;;  %1909 = vmatpush.bf16.msra.mxu3 %v3810_v48 }
 0x2e7   :  { %1868 = vmatpush.bf16.msra.mxu0 %v3812_v49  ;;  %1882 = vmatpush.bf16.msra.mxu1 %v3815_v52 }
 0x2e8   :  { %1896 = vmatpush.bf16.msra.mxu2 %v3818_v55  ;;  %1910 = vmatpush.bf16.msra.mxu3 %v3822_v59 }
 0x2eb   :  { %1869 = vmatpush.bf16.msra.mxu0 %v3824_v60  ;;  %1883 = vmatpush.bf16.msra.mxu1 %v3827_v63 }
 0x2ec   :  { %1897 = vmatpush.bf16.msra.mxu2 %v3830_v3  ;;  %1911 = vmatpush.bf16.msra.mxu3 %v3834_v4 }
 0x2ef   :  { %1870 = vmatpush.bf16.msra.mxu0 %v3839_v9  ;;  %1884 = vmatpush.bf16.msra.mxu1 %v3841_v13 }
 0x2f0   :  { %1898 = vmatpush.bf16.msra.mxu2 %v3846_v17  ;;  %1912 = vmatpush.bf16.msra.mxu3 %v3843_v14 }
 0x2f3   :  { %1871 = vmatpush.bf16.msra.mxu0 %v3851_v22  ;;  %1885 = vmatpush.bf16.msra.mxu1 %v3853_v26 }
 0x2f4   :  { %1899 = vmatpush.bf16.msra.mxu2 %v3858_v30  ;;  %1913 = vmatpush.bf16.msra.mxu3 %v3855_v27 }
 0x2f7   :  { %1872 = vmatpush.bf16.msra.mxu0 %v3863_v35  ;;  %1886 = vmatpush.bf16.msra.mxu1 %v3865_v40 }
 0x2f8   :  { %1900 = vmatpush.bf16.msra.mxu2 %v3870_v45  ;;  %1914 = vmatpush.bf16.msra.mxu3 %v3867_v42 }
 0x2fb   :  { %1873 = vmatpush.bf16.msra.mxu0 %v3875_v54  ;;  %1887 = vmatpush.bf16.msra.mxu1 %v3877_v61 }
 0x2fc   :  { %1901 = vmatpush.bf16.msra.mxu2 %v3882_v2  ;;  %1915 = vmatpush.bf16.msra.mxu3 %v3879_v62 }
 0x2ff   :  { %1874 = vmatpush.bf16.msra.mxu0 %v3887_v10  ;;  %1888 = vmatpush.bf16.msra.mxu1 %v5181_v18 }
 0x300   :  { %1902 = vmatpush.bf16.msra.mxu2 %v5182_v38  ;;  %1916 = vmatpush.bf16.msra.mxu3 %v5183_v53 }
 0x35e   :  { %v1450_v15 = vpop.f32.mrf.mxu0  ;;  %v1464_v50 = vpop.f32.mrf.mxu1 }
 0x35f   :  { %v1497_v57 = vadd.f32 %v1450_v15, %v429_v6  ;;  %v1498_v28 = vadd.f32 %v1464_v50, %v478_v31 }
 0x361   :  { %v3009_v25 = vmul.f32 -1.442695, %v1497_v57  ;;  %v3011_v24 = vmul.f32 -1.442695, %v1498_v28  ;;  %v5206_v28 = vld [vmem:[#allocation84_spill] sm:$0xff] }
 0x363   :  { %3320 = vpow2.f32 %v3009_v25  ;;  %v5207_v25 = vld [vmem:[#allocation43_spill] sm:$0xff] }
 0x364   :  { %3322 = vpow2.f32 %v3011_v24  ;;  %v527_v24 = vadd.f32 %v5207_v25, %v5206_v28 }
 0x365   :  { %v1492_v36 = vpop.f32.mrf.mxu3  ;;  %v1478_v6 = vpop.f32.mrf.mxu2 }
 0x366   :  { %v1500_v8 = vadd.f32 %v1492_v36, %v576_v7  ;;  %v1452_v34 = vpop.f32.mrf.mxu0  ;;  %v1466_v46 = vpop.f32.mrf.mxu1  ;;  %v1499_v16 = vadd.f32 %v1478_v6, %v527_v24 }
 0x367   :  { %v1501_v1 = vadd.f32 %v1452_v34, %v431_v20  ;;  %v1502_v33 = vadd.f32 %v1466_v46, %v480_v21  ;;  %v578_v20 = vadd.f32 %v5208_v43, %v5202_v5 }
 0x368   :  { %v3013_v44 = vmul.f32 -1.442695, %v1500_v8 }
 0x369   :  { %v3321_v19 = vpop.eup %3320  ;;  %v3010_v39 = vmul.f32 -1.442695, %v1501_v1  ;;  %v3012_v50 = vmul.f32 -1.442695, %v1502_v33  ;;  %v5209_v33 = vld [vmem:[#allocation47_spill] sm:$0xff] }
 0x36a   :  { %v3323_v31 = vpop.eup %3322  ;;  %v1511_v15 = vadd.f32 1.0, %v3321_v19  ;;  %3324 = vpow2.f32 %v3013_v44  ;;  %v529_v44 = vadd.f32 %v5209_v33, %v5206_v28 }
 0x36b   :  { %v1549_v57 = vadd.f32 1.0, %v3323_v31  ;;  %3326 = vpow2.f32 %v3010_v39 }
 0x36c   :  { %3328 = vrcp.f32 %v1511_v15  ;;  %v1522_v25 = vand.u32 2147483647, %v1511_v15  ;;  %v1524_v24 = vand.u32 2147483648, %v1511_v15  ;;  %vm1518_vm4 = vweird.f32 %v1511_v15 }
 0x36d   :  { %3330 = vrcp.f32 %v1549_v57  ;;  %v1494_v7 = vpop.f32.mrf.mxu3  ;;  %v1480_v6 = vpop.f32.mrf.mxu2  ;;  %vm1556_vm5 = vweird.f32 %v1549_v57 }
 0x36e   :  { %3332 = vpow2.f32 %v3012_v50  ;;  %v1504_v8 = vadd.f32 %v1494_v7, %v578_v20  ;;  %v1562_v50 = vand.u32 2147483648, %v1549_v57  ;;  %vm4528_vm8 = vcmp.eq.f32.partialorder %v1522_v25, 8.507059e+37 }
 0x36f   :  { %3334 = vtanh.f32 %v1499_v16 }
 0x370   :  { %v3325_v0 = vpop.eup %3324  ;;  %v3014_v16 = vmul.f32 -1.442695, %v1504_v8  ;;  %v1563_v8 = vor.u32 1.1754944e-38, %v1562_v50 }
 0x371   :  { %v3327_v21 = vpop.eup %3326  ;;  %v4517_v36 = vadd.f32 1.0, %v3325_v0  ;;  %v1560_v0 = vand.u32 2147483647, %v1549_v57 }
 0x372   :  { %v3329_v34 = vpop.eup %3328  ;;  %v4519_v46 = vadd.f32 1.0, %v3327_v21  ;;  %v1503_v21 = vadd.f32 %v1480_v6, %v529_v44  ;;  %v4537_v44 = vld [vmem:[%s5030_s0] sm:$0xff] }
 0x373   :  { %v3331_v1 = vpop.eup %3330  ;;  %v1514_v19 = vmul.f32 %v3329_v34, %v1511_v15  ;;  %3336 = vrcp.f32 %v4517_v36  ;;  %vm1519_vm6 = vweird.f32 %v3329_v34  ;;  %5212 = vst [vmem:[#allocation30_spill] sm:$0xff] %v4537_v44  ;;  %vm3025_vm9 = vcmp.gt.s32.totalorder %v4537_v44, 4 }
 0x374   :  { %v3333_v39 = vpop.eup %3332  ;;  %v1552_v31 = vmul.f32 %v3331_v1, %v1549_v57  ;;  %3338 = vrcp.f32 %v4519_v46  ;;  %vm1557_vm7 = vweird.f32 %v3331_v1  ;;  %vm1520_vm10 = vmor %vm1518_vm4, %vm1519_vm6  ;;  %vm1561_vm11 = vcmp.eq.f32.partialorder %v1560_v0, 8.507059e+37 }
 0x375   :  { %v1515_v43 = vsub.f32 1.0, %v1514_v19  ;;  %v4525_v7 = vadd.f32 1.0, %v3333_v39  ;;  %v3335_v28 = vpop.eup %3334  ;;  %v1525_v19 = vor.u32 1.1754944e-38, %v1524_v24  ;;  %vm1558_vm12 = vmor %vm1556_vm5, %vm1557_vm7  ;;  %vm3035_vm13 = vcmp.gt.s32.totalorder %v4537_v44, 5 }
 0x376   :  { %v1553_v20 = vsub.f32 1.0, %v1552_v31  ;;  %vm1533_vm14 = vweird.f32 %v4519_v46  ;;  %vm1596_vm2 = vweird.f32 %v4517_v36 }
 0x377   :  { %v1516_v33 = vmul.f32 %v3329_v34, %v1515_v43  ;;  %3340 = vrcp.f32 %v4525_v7  ;;  %v1602_v43 = vand.u32 2147483648, %v4517_v36  ;;  %vm1571_vm5 = vweird.f32 %v4525_v7 }
 0x378   :  { %v1554_v5 = vmul.f32 %v3331_v1, %v1553_v20  ;;  %3342 = vpow2.f32 %v3014_v16  ;;  %v5213_v16 = vmov 0.0  }
 0x379   :  { %v4532_v39 = vpop.eup %3336  ;;  %v1517_v31 = vadd.f32 %v3329_v34, %v1516_v33  ;;  %3344 = vtanh.f32 %v1503_v21  ;;  %v3027_v20 = vsel %vm3025_vm9, 1.0, %v5213_v16  ;;  %v3037_v57 = vsel %vm3035_vm13, 1.0, %v5213_v16 }
 0x37a   :  { %v1555_v6 = vadd.f32 %v3331_v1, %v1554_v5  ;;  %v1592_v25 = vmul.f32 %v4532_v39, %v4517_v36  ;;  %v3339_v24 = vpop.eup %3338  ;;  %vm1597_vm0 = vweird.f32 %v4532_v39 }
 0x37b   :  { %v1521_v50 = vsel %vm1520_vm10, %v3329_v34, %v1517_v31  ;;  %v1529_v33 = vmul.f32 %v3339_v24, %v4519_v46  ;;  %vm1534_vm15 = vweird.f32 %v3339_v24  ;;  %vm4569_vm4 = vmor %vm1596_vm2, %vm1597_vm0 }
 0x37c   :  { %v1526_v15 = vsel %vm4528_vm8, %v1525_v19, %v1521_v50  ;;  %v1559_v5 = vsel %vm1558_vm12, %v3331_v1, %v1555_v6  ;;  %v1593_v0 = vsub.f32 1.0, %v1592_v25  ;;  %v1577_v1 = vand.u32 2147483648, %v4525_v7  ;;  %vm1535_vm3 = vmor %vm1533_vm14, %vm1534_vm15 }
 0x37d   :  { %v3341_v29 = vpop.eup %3340  ;;  %v1564_v21 = vsel %vm1561_vm11, %v1563_v8, %v1559_v5  ;;  %v1623_v53 = vmul.f32 %v3335_v28, %v1526_v15  ;;  %v1530_v38 = vsub.f32 1.0, %v1529_v33  ;;  %v1537_v19 = vand.u32 2147483647, %v4519_v46 }
 0x37e   :  { %v1621_v34 = vmul.f32 %v1564_v21, %v4430_v32  ;;  %v1594_v31 = vmul.f32 %v4532_v39, %v1593_v0  ;;  %v1567_v44 = vmul.f32 %v3341_v29, %v4525_v7  ;;  %v3343_v12 = vpop.eup %3342  ;;  %v1539_v6 = vand.u32 2147483648, %v4519_v46 }
 0x37f   :  { %v3212_v8 = vpack.i.bf16 %v3037_v57, %v3027_v20  ;;  %v3345_v28 = vpop.eup %3344  ;;  %v1531_v15 = vmul.f32 %v3339_v24, %v1530_v38  ;;  %v1575_v5 = vand.u32 2147483647, %v4525_v7  ;;  %v1590_v0 = vadd.f32 1.0, %v3343_v12 }
 0x380   :  { %v4559_v25 = vadd.f32 %v1623_v53, %v1621_v34  ;;  %v1568_v50 = vsub.f32 1.0, %v1567_v44  ;;  %v1595_v32 = vadd.f32 %v4532_v39, %v1594_v31  ;;  %vm1572_vm1 = vweird.f32 %v3341_v29 }
 0x381   :  { %3213 = vperm.xlu1 %3190, %v3212_v8   ;;  %v1532_v21 = vadd.f32 %v3339_v24, %v1531_v15  ;;  %v1600_v53 = vand.u32 2147483647, %v4517_v36  ;;  %v1540_v38 = vor.u32 1.1754944e-38, %v1539_v6  ;;  %vm1538_vm6 = vcmp.eq.f32.partialorder %v1537_v19, 8.507059e+37  ;;  %vm1573_vm7 = vmor %vm1571_vm5, %vm1572_vm1 }
 0x382   :  { %3346 = vtanh.f32 %v4559_v25  ;;  %v1569_v33 = vmul.f32 %v3341_v29, %v1568_v50  ;;  %v1578_v34 = vor.u32 1.1754944e-38, %v1577_v1  ;;  %v1599_v36 = vsel %vm4569_vm4, %v4532_v39, %v1595_v32 }
 0x383   :  { %3348 = vrcp.f32 %v1590_v0  ;;  %v1536_v20 = vsel %vm1535_vm3, %v3339_v24, %v1532_v21  ;;  %v1603_v46 = vor.u32 1.1754944e-38, %v1602_v43  ;;  %vm1576_vm8 = vcmp.eq.f32.partialorder %v1575_v5, 8.507059e+37 }
 0x384   :  { %v1570_v57 = vadd.f32 %v3341_v29, %v1569_v33  ;;  %v1541_v31 = vsel %vm1538_vm6, %v1540_v38, %v1536_v20  ;;  %v3211_v8 = vunpack.i.h.bf16 %v4444_v51  ;;  %vm1601_vm9 = vcmp.eq.f32.partialorder %v1600_v53, 8.507059e+37 }
 0x385   :  { %v1624_v6 = vmul.f32 %v3345_v28, %v1541_v31  ;;  %v1604_v24 = vsel %vm1601_vm9, %v1603_v46, %v1599_v36  ;;  %v1615_v28 = vand.u32 2147483647, %v1590_v0  ;;  %vm1611_vm11 = vweird.f32 %v1590_v0  ;;  %v5219_v36 = vld [vmem:[#allocation49_spill] sm:$0xff] }
 0x386   :  { %v1574_v12 = vsel %vm1573_vm7, %v3341_v29, %v1570_v57  ;;  %v1617_v29 = vand.u32 2147483648, %v1590_v0  ;;  %v3189_v53 = vunpack.i.h.bf16 %v4465_v58  ;;  %v5216_v58 = vld [vmem:[#allocation23_spill] sm:$0xff] }
 0x387   :  { %v1579_v50 = vsel %vm1576_vm8, %v1578_v34, %v1574_v12  ;;  %vm1616_vm13 = vcmp.eq.f32.partialorder %v1615_v28, 8.507059e+37  ;;  %v5220_v12 = vld [vmem:[#allocation79_spill] sm:$0xff]  ;;  %v5225_v28 = vld [vmem:[#allocation54_spill] sm:$0xff] }
 0x388   :  { %v3347_v15 = vpop.eup %3346  ;;  %v1622_v7 = vmul.f32 %v1579_v50, %v4456_v23  ;;  %v1618_v23 = vor.u32 1.1754944e-38, %v1617_v29  ;;  %v5224_v29 = vld [vmem:[#allocation53_spill] sm:$0xff] }
 0x389   :  { %v3349_v19 = vpop.eup %3348  ;;  %v1629_v33 = vmul.f32 %v3347_v15, %v1604_v24 }
 0x38a   :  { %v4579_v1 = vadd.f32 %v1624_v6, %v1622_v7  ;;  %v1607_v21 = vmul.f32 %v3349_v19, %v1590_v0  ;;  %vm1612_vm10 = vweird.f32 %v3349_v19  ;;  %v5218_v0 = vld [vmem:[#allocation78_spill] sm:$0xff] }
 0x38b   :  { %v1648_v38 = vmul.f32 %v3211_v8, %v1629_v33  ;;  %vm1613_vm12 = vmor %vm1611_vm11, %vm1612_vm10  ;;  %v434_v46 = vadd.f32 %v5219_v36, %v5218_v0  ;;  %v5221_v6 = vld [vmem:[#allocation50_spill] sm:$0xff] }
 0x38c   :  { %3350 = vtanh.f32 %v4579_v1  ;;  %v1608_v39 = vsub.f32 1.0, %v1607_v21  ;;  %v483_v8 = vadd.f32 %v5221_v6, %v5220_v12  ;;  %v5222_v21 = vld [vmem:[#allocation82_spill] sm:$0xff] }
 0x38d   :  { %v4583_v43 = vadd.f32 %v1648_v38, %v4461_v56  ;;  %v5223_v38 = vld [vmem:[#allocation52_spill] sm:$0xff] }
 0x38e   :  { %v1609_v51 = vmul.f32 %v3349_v19, %v1608_v39  ;;  %v581_v39 = vadd.f32 %v5223_v38, %v5222_v21 }
 0x390   :  { %v1610_v32 = vadd.f32 %v3349_v19, %v1609_v51  ;;  %v436_v51 = vadd.f32 %v5224_v29, %v5218_v0 }
 0x392   :  { %v3351_v5 = vpop.eup %3350  ;;  %v1614_v44 = vsel %vm1613_vm12, %v3349_v19, %v1610_v32  ;;  %v485_v32 = vadd.f32 %v5225_v28, %v5220_v12 }
 0x393   :  { %v1619_v20 = vsel %vm1616_vm13, %v1618_v23, %v1614_v44 }
 0x394   :  { %v1630_v57 = vmul.f32 %v3351_v5, %v1619_v20 }
 0x396   :  { %v1653_v34 = vpack.c.bf16 %v1630_v57, %v1629_v33  ;;  %v1649_v31 = vmul.f32 %v3189_v53, %v1630_v57 }
 0x398   :  { %1662 = vmatmul.bf16.vlgmr.msrb.gmra.mxu0 %v1653_v34  ;;  %1676 = vmatmul.bf16.vlgmr.msrb.gmra.mxu1 %v1653_v34  ;;  %v4587_v56 = vadd.f32 %v1649_v31, %v4469_v11  ;;  %v5217_v11 = vld [vmem:[#allocation22_spill] sm:$0xff] }
 0x399   :  { %1690 = vmatmul.bf16.vlgmr.msrb.gmra.mxu2 %v1653_v34  ;;  %1704 = vmatmul.bf16.vlgmr.msrb.gmra.mxu3 %v1653_v34 }
 0x39a   :  { %2080 = vmatpush.bf16.msrb.mxu0 %v3803_v37  ;;  %2094 = vmatpush.bf16.msrb.mxu1 %v3805_v41 }
 0x39b   :  { %2108 = vmatpush.bf16.msrb.mxu2 %v3807_v47  ;;  %2122 = vmatpush.bf16.msrb.mxu3 %v3810_v48 }
 0x39e   :  { %2081 = vmatpush.bf16.msrb.mxu0 %v3812_v49  ;;  %2095 = vmatpush.bf16.msrb.mxu1 %v3815_v52 }
 0x39f   :  { %2109 = vmatpush.bf16.msrb.mxu2 %v3818_v55  ;;  %2123 = vmatpush.bf16.msrb.mxu3 %v3822_v59 }
 0x3a2   :  { %2082 = vmatpush.bf16.msrb.mxu0 %v3824_v60  ;;  %2096 = vmatpush.bf16.msrb.mxu1 %v3827_v63 }
 0x3a3   :  { %2110 = vmatpush.bf16.msrb.mxu2 %v3830_v3  ;;  %2124 = vmatpush.bf16.msrb.mxu3 %v3834_v4 }
 0x3a6   :  { %2083 = vmatpush.bf16.msrb.mxu0 %v3839_v9  ;;  %2097 = vmatpush.bf16.msrb.mxu1 %v3841_v13 }
 0x3a7   :  { %2111 = vmatpush.bf16.msrb.mxu2 %v3846_v17  ;;  %2125 = vmatpush.bf16.msrb.mxu3 %v3843_v14 }
 0x3aa   :  { %2084 = vmatpush.bf16.msrb.mxu0 %v3851_v22  ;;  %2098 = vmatpush.bf16.msrb.mxu1 %v3853_v26 }
 0x3ab   :  { %2112 = vmatpush.bf16.msrb.mxu2 %v3858_v30  ;;  %2126 = vmatpush.bf16.msrb.mxu3 %v3855_v27 }
 0x3ae   :  { %2085 = vmatpush.bf16.msrb.mxu0 %v3863_v35  ;;  %2099 = vmatpush.bf16.msrb.mxu1 %v3865_v40 }
 0x3af   :  { %2113 = vmatpush.bf16.msrb.mxu2 %v3870_v45  ;;  %2127 = vmatpush.bf16.msrb.mxu3 %v3867_v42 }
 0x3b2   :  { %2086 = vmatpush.bf16.msrb.mxu0 %v3875_v54  ;;  %2100 = vmatpush.bf16.msrb.mxu1 %v3877_v61 }
 0x3b3   :  { %2114 = vmatpush.bf16.msrb.mxu2 %v3882_v2  ;;  %2128 = vmatpush.bf16.msrb.mxu3 %v3879_v62 }
 0x3b6   :  { %2087 = vmatpush.bf16.msrb.mxu0 %v3887_v10  ;;  %2101 = vmatpush.bf16.msrb.mxu1 %v5181_v18 }
 0x3b7   :  { %2115 = vmatpush.bf16.msrb.mxu2 %v5216_v58  ;;  %2129 = vmatpush.bf16.msrb.mxu3 %v5217_v11 }
 0x415   :  { %v1663_v50 = vpop.f32.mrf.mxu0  ;;  %v1677_v15 = vpop.f32.mrf.mxu1 }
 0x416   :  { %v1710_v7 = vadd.f32 %v1663_v50, %v434_v46  ;;  %v1711_v24 = vadd.f32 %v1677_v15, %v483_v8 }
 0x418   :  { %v3019_v19 = vmul.f32 -1.442695, %v1710_v7  ;;  %v3021_v33 = vmul.f32 -1.442695, %v1711_v24  ;;  %v5226_v7 = vld [vmem:[#allocation84_spill] sm:$0xff]  ;;  %v5227_v24 = vld [vmem:[#allocation51_spill] sm:$0xff] }
 0x41a   :  { %3352 = vpow2.f32 %v3019_v19  ;;  %v532_v19 = vadd.f32 %v5227_v24, %v5226_v7 }
 0x41b   :  { %3354 = vpow2.f32 %v3021_v33  ;;  %v5228_v33 = vld [vmem:[#allocation56_spill] sm:$0xff] }
 0x41c   :  { %v1705_v23 = vpop.f32.mrf.mxu3  ;;  %v1691_v8 = vpop.f32.mrf.mxu2  ;;  %v583_v38 = vadd.f32 %v5228_v33, %v5222_v21 }
 0x41d   :  { %v1713_v5 = vadd.f32 %v1705_v23, %v581_v39  ;;  %v1665_v53 = vpop.f32.mrf.mxu0  ;;  %v1679_v44 = vpop.f32.mrf.mxu1  ;;  %v1712_v29 = vadd.f32 %v1691_v8, %v532_v19 }
 0x41e   :  { %v1714_v20 = vadd.f32 %v1665_v53, %v436_v51  ;;  %v1715_v57 = vadd.f32 %v1679_v44, %v485_v32 }
 0x41f   :  { %v3023_v34 = vmul.f32 -1.442695, %v1713_v5 }
 0x420   :  { %v3353_v31 = vpop.eup %3352  ;;  %v3020_v36 = vmul.f32 -1.442695, %v1714_v20  ;;  %v3022_v50 = vmul.f32 -1.442695, %v1715_v57 }
 0x421   :  { %v3355_v46 = vpop.eup %3354  ;;  %v1724_v6 = vadd.f32 1.0, %v3353_v31  ;;  %3356 = vpow2.f32 %v3023_v34  ;;  %v5229_v31 = vld [vmem:[#allocation55_spill] sm:$0xff] }
 0x422   :  { %v1762_v15 = vadd.f32 1.0, %v3355_v46  ;;  %3358 = vpow2.f32 %v3020_v36  ;;  %v534_v36 = vadd.f32 %v5229_v31, %v5226_v7 }
 0x423   :  { %3360 = vrcp.f32 %v1724_v6  ;;  %v1735_v24 = vand.u32 2147483647, %v1724_v6  ;;  %v1737_v19 = vand.u32 2147483648, %v1724_v6  ;;  %vm1731_vm1 = vweird.f32 %v1724_v6 }
 0x424   :  { %3362 = vrcp.f32 %v1762_v15  ;;  %v1707_v39 = vpop.f32.mrf.mxu3  ;;  %v1693_v8 = vpop.f32.mrf.mxu2  ;;  %vm1769_vm0 = vweird.f32 %v1762_v15 }
 0x425   :  { %3364 = vpow2.f32 %v3022_v50  ;;  %v1717_v51 = vadd.f32 %v1707_v39, %v583_v38  ;;  %v1775_v39 = vand.u32 2147483648, %v1762_v15  ;;  %vm1736_vm2 = vcmp.eq.f32.partialorder %v1735_v24, 8.507059e+37 }
 0x426   :  { %3366 = vtanh.f32 %v1712_v29  ;;  %v1773_v29 = vand.u32 2147483647, %v1762_v15 }
 0x427   :  { %v3357_v28 = vpop.eup %3356  ;;  %v3024_v44 = vmul.f32 -1.442695, %v1717_v51  ;;  %v1776_v7 = vor.u32 1.1754944e-38, %v1775_v39 }
 0x428   :  { %v3359_v32 = vpop.eup %3358  ;;  %v4635_v23 = vadd.f32 1.0, %v3357_v28  ;;  %v1716_v28 = vadd.f32 %v1693_v8, %v534_v36  ;;  %vm1774_vm5 = vcmp.eq.f32.partialorder %v1773_v29, 8.507059e+37 }
 0x429   :  { %v3361_v5 = vpop.eup %3360  ;;  %v4637_v53 = vadd.f32 1.0, %v3359_v32 }
 0x42a   :  { %v3363_v20 = vpop.eup %3362  ;;  %v1727_v57 = vmul.f32 %v3361_v5, %v1724_v6  ;;  %3368 = vrcp.f32 %v4635_v23  ;;  %vm1732_vm14 = vweird.f32 %v3361_v5  ;;  %vm1809_vm12 = vweird.f32 %v4635_v23 }
 0x42b   :  { %v3365_v34 = vpop.eup %3364  ;;  %v1765_v46 = vmul.f32 %v3363_v20, %v1762_v15  ;;  %3370 = vrcp.f32 %v4637_v53  ;;  %vm1770_vm15 = vweird.f32 %v3363_v20  ;;  %vm1733_vm3 = vmor %vm1731_vm1, %vm1732_vm14  ;;  %v1752_v6 = vand.u32 2147483648, %v4637_v53 }
 0x42c   :  { %v1728_v50 = vsub.f32 1.0, %v1727_v57  ;;  %v4643_v33 = vadd.f32 1.0, %v3365_v34  ;;  %3372 = vpow2.f32 %v3024_v44  ;;  %v3367_v32 = vpop.eup %3366  ;;  %vm1771_vm4 = vmor %vm1769_vm0, %vm1770_vm15  ;;  %vm1746_vm6 = vweird.f32 %v4637_v53 }
 0x42d   :  { %v1766_v38 = vsub.f32 1.0, %v1765_v46  ;;  %v1738_v46 = vor.u32 1.1754944e-38, %v1737_v19 }
 0x42e   :  { %v1729_v51 = vmul.f32 %v3361_v5, %v1728_v50  ;;  %3374 = vrcp.f32 %v4643_v33  ;;  %vm1784_vm13 = vweird.f32 %v4643_v33 }
 0x42f   :  { %v1767_v31 = vmul.f32 %v3363_v20, %v1766_v38  ;;  %3376 = vtanh.f32 %v1716_v28 }
 0x430   :  { %v4646_v16 = vpop.eup %3368  ;;  %v1730_v57 = vadd.f32 %v3361_v5, %v1729_v51 }
 0x431   :  { %v3371_v34 = vpop.eup %3370  ;;  %v1768_v21 = vadd.f32 %v3363_v20, %v1767_v31  ;;  %v1805_v44 = vmul.f32 %v4646_v16, %v4635_v23  ;;  %vm1810_vm8 = vweird.f32 %v4646_v16 }
 0x432   :  { %v1734_v50 = vsel %vm1733_vm3, %v3361_v5, %v1730_v57  ;;  %v1742_v36 = vmul.f32 %v3371_v34, %v4637_v53  ;;  %v3373_v8 = vpop.eup %3372  ;;  %vm1747_vm7 = vweird.f32 %v3371_v34  ;;  %v1815_v57 = vand.u32 2147483648, %v4635_v23  ;;  %vm4676_vm14 = vmor %vm1809_vm12, %vm1810_vm8 }
 0x433   :  { %v1739_v38 = vsel %vm1736_vm2, %v1738_v46, %v1734_v50  ;;  %v1772_v15 = vsel %vm1771_vm4, %v3363_v20, %v1768_v21  ;;  %v1806_v51 = vsub.f32 1.0, %v1805_v44  ;;  %v4652_v31 = vadd.f32 1.0, %v3373_v8  ;;  %vm1748_vm10 = vmor %vm1746_vm6, %vm1747_vm7 }
 0x434   :  { %v3375_v24 = vpop.eup %3374  ;;  %v1777_v39 = vsel %vm1774_vm5, %v1776_v7, %v1772_v15  ;;  %v1836_v12 = vmul.f32 %v3367_v32, %v1739_v38  ;;  %v1743_v19 = vsub.f32 1.0, %v1742_v36  ;;  %v1750_v21 = vand.u32 2147483647, %v4637_v53 }
 0x435   :  { %v1834_v0 = vmul.f32 %v1777_v39, %v4559_v25  ;;  %v1780_v5 = vmul.f32 %v3375_v24, %v4643_v33  ;;  %v1807_v29 = vmul.f32 %v4646_v16, %v1806_v51  ;;  %3378 = vrcp.f32 %v4652_v31  ;;  %v3377_v25 = vpop.eup %3376  ;;  %v4674_v51 = vpop.permute.xlu1 %3213 }
 0x436   :  { %v1744_v28 = vmul.f32 %v3371_v34, %v1743_v19  ;;  %v1790_v32 = vand.u32 2147483648, %v4643_v33  ;;  %v1753_v44 = vor.u32 1.1754944e-38, %v1752_v6  ;;  %vm1785_vm9 = vweird.f32 %v3375_v24 }
 0x437   :  { %v4660_v20 = vadd.f32 %v1836_v12, %v1834_v0  ;;  %v1781_v7 = vsub.f32 1.0, %v1780_v5  ;;  %v1808_v50 = vadd.f32 %v4646_v16, %v1807_v29  ;;  %v1788_v0 = vand.u32 2147483647, %v4643_v33  ;;  %vm1786_vm15 = vmor %vm1784_vm13, %vm1785_vm9 }
 0x438   :  { %v1745_v46 = vadd.f32 %v3371_v34, %v1744_v28  ;;  %vm1751_vm11 = vcmp.eq.f32.partialorder %v1750_v21, 8.507059e+37  ;;  %v1813_v8 = vand.u32 2147483647, %v4635_v23  ;;  %v1791_v39 = vor.u32 1.1754944e-38, %v1790_v32 }
 0x439   :  { %3380 = vtanh.f32 %v4660_v20  ;;  %v1782_v36 = vmul.f32 %v3375_v24, %v1781_v7  ;;  %vm1789_vm0 = vcmp.eq.f32.partialorder %v1788_v0, 8.507059e+37  ;;  %v1816_v33 = vor.u32 1.1754944e-38, %v1815_v57 }
 0x43a   :  { %v1749_v12 = vsel %vm1748_vm10, %v3371_v34, %v1745_v46  ;;  %v1812_v34 = vsel %vm4676_vm14, %v4646_v16, %v1808_v50  ;;  %v3215_v28 = vunpack.i.l.bf16 %v4674_v51  ;;  %vm1814_vm1 = vcmp.eq.f32.partialorder %v1813_v8, 8.507059e+37  ;;  %v5232_v8 = vld [vmem:[#allocation25_spill] sm:$0xff] }
 0x43b   :  { %v1754_v38 = vsel %vm1751_vm11, %v1753_v44, %v1749_v12  ;;  %v1783_v15 = vadd.f32 %v3375_v24, %v1782_v36  ;;  %v3379_v53 = vpop.eup %3378  ;;  %v1817_v44 = vsel %vm1814_vm1, %v1816_v33, %v1812_v34  ;;  %v1830_v57 = vand.u32 2147483648, %v4652_v31 }
 0x43c   :  { %v1837_v19 = vmul.f32 %v3377_v25, %v1754_v38  ;;  %v1820_v23 = vmul.f32 %v3379_v53, %v4652_v31  ;;  %vm1825_vm2 = vweird.f32 %v3379_v53  ;;  %vm1824_vm3 = vweird.f32 %v4652_v31 }
 0x43d   :  { %v1787_v5 = vsel %vm1786_vm15, %v3375_v24, %v1783_v15  ;;  %v1828_v50 = vand.u32 2147483647, %v4652_v31  ;;  %vm1826_vm4 = vmor %vm1824_vm3, %vm1825_vm2  ;;  %v1831_v12 = vor.u32 1.1754944e-38, %v1830_v57  ;;  %v3194_v38 = vunpack.i.l.bf16 %v5232_v8  ;;  %v5242_v31 = vld [vmem:[#allocation59_spill] sm:$0xff] }
 0x43e   :  { %v1792_v29 = vsel %vm1789_vm0, %v1791_v39, %v1787_v5  ;;  %v1821_v46 = vsub.f32 1.0, %v1820_v23 }
 0x43f   :  { %v3381_v21 = vpop.eup %3380  ;;  %v1835_v7 = vmul.f32 %v1792_v29, %v4579_v1  ;;  %vm1829_vm5 = vcmp.eq.f32.partialorder %v1828_v50, 8.507059e+37  ;;  %v5243_v29 = vld [vmem:[#allocation64_spill] sm:$0xff] }
 0x440   :  { %v1842_v32 = vmul.f32 %v3381_v21, %v1817_v44  ;;  %v1822_v36 = vmul.f32 %v3379_v53, %v1821_v46 }
 0x441   :  { %v4686_v25 = vadd.f32 %v1837_v19, %v1835_v7 }
 0x442   :  { %v1861_v16 = vmul.f32 %v3215_v28, %v1842_v32  ;;  %v1823_v24 = vadd.f32 %v3379_v53, %v1822_v36 }
 0x443   :  { %3382 = vtanh.f32 %v4686_v25 }
 0x444   :  { %v4693_v0 = vadd.f32 %v1861_v16, %v4583_v43  ;;  %v1827_v1 = vsel %vm1826_vm4, %v3379_v53, %v1823_v24  ;;  %v5244_v24 = vld [vmem:[#allocation63_spill] sm:$0xff] }
 0x445   :  { %v1832_v6 = vsel %vm1829_vm5, %v1831_v12, %v1827_v1 }
 0x449   :  { %v3383_v15 = vpop.eup %3382 }
 0x44a   :  { %v1843_v39 = vmul.f32 %v3383_v15, %v1832_v6 }
 0x44c   :  { %v1866_v19 = vpack.c.bf16 %v1843_v39, %v1842_v32  ;;  %v1862_v34 = vmul.f32 %v3194_v38, %v1843_v39 }
 0x44e   :  { %1875 = vmatmul.bf16.vlgmr.msra.gmra.mxu0 %v1866_v19  ;;  %1889 = vmatmul.bf16.vlgmr.msra.gmra.mxu1 %v1866_v19  ;;  %v4697_v5 = vadd.f32 %v1862_v34, %v4587_v56 }
 0x44f   :  { %1903 = vmatmul.bf16.vlgmr.msra.gmra.mxu2 %v1866_v19  ;;  %1917 = vmatmul.bf16.vlgmr.msra.gmra.mxu3 %v1866_v19 }
 0x450   :  { %2293 = vmatpush.bf16.msra.mxu0 %v3803_v37  ;;  %2307 = vmatpush.bf16.msra.mxu1 %v3805_v41  ;;  %v5233_v37 = vld [vmem:[#allocation78_spill] sm:$0xff]  ;;  %v5234_v41 = vld [vmem:[#allocation57_spill] sm:$0xff] }
 0x451   :  { %2321 = vmatpush.bf16.msra.mxu2 %v3807_v47  ;;  %2335 = vmatpush.bf16.msra.mxu3 %v3810_v48  ;;  %v439_v47 = vadd.f32 %v5234_v41, %v5233_v37  ;;  %v5235_v48 = vld [vmem:[#allocation79_spill] sm:$0xff] }
 0x454   :  { %2294 = vmatpush.bf16.msra.mxu0 %v3812_v49  ;;  %2308 = vmatpush.bf16.msra.mxu1 %v3815_v52  ;;  %v5236_v49 = vld [vmem:[#allocation58_spill] sm:$0xff] }
 0x455   :  { %2322 = vmatpush.bf16.msra.mxu2 %v3818_v55  ;;  %2336 = vmatpush.bf16.msra.mxu3 %v3822_v59  ;;  %v488_v52 = vadd.f32 %v5236_v49, %v5235_v48 }
 0x458   :  { %2295 = vmatpush.bf16.msra.mxu0 %v3824_v60  ;;  %2309 = vmatpush.bf16.msra.mxu1 %v3827_v63 }
 0x459   :  { %2323 = vmatpush.bf16.msra.mxu2 %v3830_v3  ;;  %2337 = vmatpush.bf16.msra.mxu3 %v3834_v4 }
 0x45c   :  { %2296 = vmatpush.bf16.msra.mxu0 %v3839_v9  ;;  %2310 = vmatpush.bf16.msra.mxu1 %v3841_v13  ;;  %v5237_v9 = vld [vmem:[#allocation82_spill] sm:$0xff]  ;;  %v5238_v13 = vld [vmem:[#allocation60_spill] sm:$0xff] }
 0x45d   :  { %2324 = vmatpush.bf16.msra.mxu2 %v3846_v17  ;;  %2338 = vmatpush.bf16.msra.mxu3 %v3843_v14  ;;  %v586_v14 = vadd.f32 %v5238_v13, %v5237_v9  ;;  %v5239_v17 = vld [vmem:[#allocation61_spill] sm:$0xff]  ;;  %v588_v28 = vadd.f32 %v5243_v29, %v5237_v9 }
 0x460   :  { %2297 = vmatpush.bf16.msra.mxu0 %v3851_v22  ;;  %2311 = vmatpush.bf16.msra.mxu1 %v3853_v26  ;;  %v441_v22 = vadd.f32 %v5239_v17, %v5233_v37  ;;  %v5240_v26 = vld [vmem:[#allocation62_spill] sm:$0xff] }
 0x461   :  { %2325 = vmatpush.bf16.msra.mxu2 %v3858_v30  ;;  %2339 = vmatpush.bf16.msra.mxu3 %v3855_v27  ;;  %v490_v27 = vadd.f32 %v5240_v26, %v5235_v48  ;;  %v5247_v17 = vld [vmem:[#allocation30_spill] sm:$0xff] }
 0x462   :  { %vm3045_vm11 = vcmp.gt.s32.totalorder %v5247_v17, 6  ;;  %vm3055_vm15 = vcmp.gt.s32.totalorder %v5247_v17, 7 }
 0x464   :  { %2298 = vmatpush.bf16.msra.mxu0 %v3863_v35  ;;  %2312 = vmatpush.bf16.msra.mxu1 %v3865_v40 }
 0x465   :  { %2326 = vmatpush.bf16.msra.mxu2 %v3870_v45  ;;  %2340 = vmatpush.bf16.msra.mxu3 %v3867_v42 }
 0x468   :  { %2299 = vmatpush.bf16.msra.mxu0 %v3875_v54  ;;  %2313 = vmatpush.bf16.msra.mxu1 %v3877_v61 }
 0x469   :  { %2327 = vmatpush.bf16.msra.mxu2 %v3882_v2  ;;  %2341 = vmatpush.bf16.msra.mxu3 %v3879_v62 }
 0x46c   :  { %2300 = vmatpush.bf16.msra.mxu0 %v3887_v10  ;;  %2314 = vmatpush.bf16.msra.mxu1 %v5181_v18 }
 0x46d   :  { %2328 = vmatpush.bf16.msra.mxu2 %v5216_v58  ;;  %2342 = vmatpush.bf16.msra.mxu3 %v5217_v11  ;;  %v5241_v11 = vld [vmem:[#allocation84_spill] sm:$0xff] }
 0x46e   :  { %v537_v53 = vadd.f32 %v5242_v31, %v5241_v11  ;;  %v539_v57 = vadd.f32 %v5244_v24, %v5241_v11 }
 0x4cb   :  { %v1876_v55 = vpop.f32.mrf.mxu0  ;;  %v1890_v59 = vpop.f32.mrf.mxu1 }
 0x4cc   :  { %v1923_v60 = vadd.f32 %v1876_v55, %v439_v47  ;;  %v1924_v63 = vadd.f32 %v1890_v59, %v488_v52 }
 0x4ce   :  { %v3029_v3 = vmul.f32 -1.442695, %v1923_v60  ;;  %v3031_v4 = vmul.f32 -1.442695, %v1924_v63 }
 0x4d0   :  { %3384 = vpow2.f32 %v3029_v3 }
 0x4d1   :  { %3386 = vpow2.f32 %v3031_v4 }
 0x4d2   :  { %v1918_v30 = vpop.f32.mrf.mxu3  ;;  %v1904_v2 = vpop.f32.mrf.mxu2 }
 0x4d3   :  { %v1926_v35 = vadd.f32 %v1918_v30, %v586_v14  ;;  %v1878_v40 = vpop.f32.mrf.mxu0  ;;  %v1892_v42 = vpop.f32.mrf.mxu1  ;;  %v1925_v23 = vadd.f32 %v1904_v2, %v537_v53 }
 0x4d4   :  { %v1927_v45 = vadd.f32 %v1878_v40, %v441_v22  ;;  %v1928_v54 = vadd.f32 %v1892_v42, %v490_v27  ;;  %v5248_v40 = vmov 0.0  }
 0x4d5   :  { %v3033_v61 = vmul.f32 -1.442695, %v1926_v35  ;;  %v3047_v42 = vsel %vm3045_vm11, 1.0, %v5248_v40 }
 0x4d6   :  { %v3385_v62 = vpop.eup %3384  ;;  %v3030_v10 = vmul.f32 -1.442695, %v1927_v45  ;;  %v3032_v56 = vmul.f32 -1.442695, %v1928_v54 }
 0x4d7   :  { %v3387_v18 = vpop.eup %3386  ;;  %v1937_v43 = vadd.f32 1.0, %v3385_v62  ;;  %3388 = vpow2.f32 %v3033_v61 }
 0x4d8   :  { %v1975_v58 = vadd.f32 1.0, %v3387_v18  ;;  %3390 = vpow2.f32 %v3030_v10 }
 0x4d9   :  { %3392 = vrcp.f32 %v1937_v43  ;;  %v1948_v6 = vand.u32 2147483647, %v1937_v43  ;;  %v1950_v39 = vand.u32 2147483648, %v1937_v43  ;;  %vm1944_vm6 = vweird.f32 %v1937_v43 }
 0x4da   :  { %3394 = vrcp.f32 %v1975_v58  ;;  %v1920_v33 = vpop.f32.mrf.mxu3  ;;  %v1906_v1 = vpop.f32.mrf.mxu2  ;;  %v1988_v15 = vand.u32 2147483648, %v1975_v58  ;;  %v1986_v49 = vand.u32 2147483647, %v1975_v58  ;;  %vm1982_vm7 = vweird.f32 %v1975_v58 }
 0x4db   :  { %3396 = vpow2.f32 %v3032_v56  ;;  %v1930_v44 = vadd.f32 %v1920_v33, %v588_v28  ;;  %v1929_v52 = vadd.f32 %v1906_v1, %v539_v57  ;;  %vm4756_vm10 = vcmp.eq.f32.partialorder %v1948_v6, 8.507059e+37 }
 0x4dc   :  { %3398 = vtanh.f32 %v1925_v23  ;;  %v1951_v3 = vor.u32 1.1754944e-38, %v1950_v39  ;;  %v1989_v13 = vor.u32 1.1754944e-38, %v1988_v15  ;;  %vm1987_vm13 = vcmp.eq.f32.partialorder %v1986_v49, 8.507059e+37 }
 0x4dd   :  { %v3389_v21 = vpop.eup %3388  ;;  %v3034_v41 = vmul.f32 -1.442695, %v1930_v44 }
 0x4de   :  { %v3391_v7 = vpop.eup %3390  ;;  %v4745_v46 = vadd.f32 1.0, %v3389_v21 }
 0x4df   :  { %v3393_v32 = vpop.eup %3392  ;;  %v4747_v36 = vadd.f32 1.0, %v3391_v7 }
 0x4e0   :  { %v3395_v16 = vpop.eup %3394  ;;  %v1940_v50 = vmul.f32 %v3393_v32, %v1937_v43  ;;  %3400 = vrcp.f32 %v4745_v46  ;;  %vm1945_vm8 = vweird.f32 %v3393_v32  ;;  %v2028_v35 = vand.u32 2147483648, %v4745_v46 }
 0x4e1   :  { %v3397_v12 = vpop.eup %3396  ;;  %v1978_v38 = vmul.f32 %v3395_v16, %v1975_v58  ;;  %3402 = vrcp.f32 %v4747_v36  ;;  %vm1983_vm9 = vweird.f32 %v3395_v16  ;;  %vm1946_vm12 = vmor %vm1944_vm6, %vm1945_vm8  ;;  %vm1959_vm0 = vweird.f32 %v4747_v36 }
 0x4e2   :  { %v1941_v19 = vsub.f32 1.0, %v1940_v50  ;;  %v4753_v34 = vadd.f32 1.0, %v3397_v12  ;;  %v3399_v59 = vpop.eup %3398  ;;  %vm1984_vm14 = vmor %vm1982_vm7, %vm1983_vm9  ;;  %v3057_v43 = vsel %vm3055_vm15, 1.0, %v5248_v40  ;;  %v1963_v29 = vand.u32 2147483647, %v4747_v36 }
 0x4e3   :  { %v1979_v47 = vsub.f32 1.0, %v1978_v38  ;;  %v1965_v28 = vand.u32 2147483648, %v4747_v36  ;;  %v3217_v21 = vpack.i.bf16 %v3057_v43, %v3047_v42  ;;  %vm2022_vm4 = vweird.f32 %v4745_v46 }
 0x4e4   :  { %v1942_v55 = vmul.f32 %v3393_v32, %v1941_v19  ;;  %3404 = vrcp.f32 %v4753_v34  ;;  %v2003_v33 = vand.u32 2147483648, %v4753_v34  ;;  %v2001_v24 = vand.u32 2147483647, %v4753_v34 }
 0x4e5   :  { %v1980_v60 = vmul.f32 %v3395_v16, %v1979_v47  ;;  %3406 = vpow2.f32 %v3034_v41  ;;  %3218 = vperm.xlu2 %3201, %v3217_v21   ;;  %v2026_v12 = vand.u32 2147483647, %v4745_v46  ;;  %v1966_v38 = vor.u32 1.1754944e-38, %v1965_v28  ;;  %v5255_v21 = vld [vmem:[#allocation70_spill] sm:$0xff] }
 0x4e6   :  { %v4760_v4 = vpop.eup %3400  ;;  %v1943_v14 = vadd.f32 %v3393_v32, %v1942_v55  ;;  %3408 = vtanh.f32 %v1929_v52  ;;  %vm1997_vm7 = vweird.f32 %v4753_v34  ;;  %vm1964_vm8 = vcmp.eq.f32.partialorder %v1963_v29, 8.507059e+37 }
 0x4e7   :  { %v1981_v22 = vadd.f32 %v3395_v16, %v1980_v60  ;;  %v2018_v26 = vmul.f32 %v4760_v4, %v4745_v46  ;;  %v3403_v27 = vpop.eup %3402  ;;  %vm2023_vm2 = vweird.f32 %v4760_v4  ;;  %v2004_v19 = vor.u32 1.1754944e-38, %v2003_v33  ;;  %v5253_v33 = vld [vmem:[#allocation68_spill] sm:$0xff] }
 0x4e8   :  { %v1947_v30 = vsel %vm1946_vm12, %v3393_v32, %v1943_v14  ;;  %v1955_v62 = vmul.f32 %v3403_v27, %v4747_v36  ;;  %vm1960_vm1 = vweird.f32 %v3403_v27  ;;  %vm4791_vm6 = vmor %vm2022_vm4, %vm2023_vm2  ;;  %v2029_v36 = vor.u32 1.1754944e-38, %v2028_v35 }
 0x4e9   :  { %v1952_v45 = vsel %vm4756_vm10, %v1951_v3, %v1947_v30  ;;  %v1985_v54 = vsel %vm1984_vm14, %v3395_v16, %v1981_v22  ;;  %v2019_v61 = vsub.f32 1.0, %v2018_v26  ;;  %vm1961_vm5 = vmor %vm1959_vm0, %vm1960_vm1  ;;  %vm2002_vm10 = vcmp.eq.f32.partialorder %v2001_v24, 8.507059e+37 }
 0x4ea   :  { %v3405_v2 = vpop.eup %3404  ;;  %v1990_v10 = vsel %vm1987_vm13, %v1989_v13, %v1985_v54  ;;  %v2049_v18 = vmul.f32 %v3399_v59, %v1952_v45  ;;  %v1956_v31 = vsub.f32 1.0, %v1955_v62  ;;  %v3216_v52 = vunpack.i.h.bf16 %v4674_v51 }
 0x4eb   :  { %v2047_v56 = vmul.f32 %v1990_v10, %v4660_v20  ;;  %v2020_v58 = vmul.f32 %v4760_v4, %v2019_v61  ;;  %v1993_v53 = vmul.f32 %v3405_v2, %v4753_v34  ;;  %v3407_v23 = vpop.eup %3406  ;;  %vm1998_vm3 = vweird.f32 %v3405_v2 }
 0x4ec   :  { %v3409_v7 = vpop.eup %3408  ;;  %v1957_v16 = vmul.f32 %v3403_v27, %v1956_v31  ;;  %v2016_v57 = vadd.f32 1.0, %v3407_v23  ;;  %vm1999_vm9 = vmor %vm1997_vm7, %vm1998_vm3  ;;  %vm2027_vm11 = vcmp.eq.f32.partialorder %v2026_v12, 8.507059e+37  ;;  %v3195_v40 = vunpack.i.h.bf16 %v5232_v8 }
 0x4ed   :  { %v4781_v44 = vadd.f32 %v2049_v18, %v2047_v56  ;;  %v1994_v32 = vsub.f32 1.0, %v1993_v53  ;;  %v2021_v20 = vadd.f32 %v4760_v4, %v2020_v58  ;;  %v5252_v18 = vld [vmem:[#allocation66_spill] sm:$0xff]  ;;  %v591_v29 = vadd.f32 %v5253_v33, %v5237_v9 }
 0x4ee   :  { %v1958_v1 = vadd.f32 %v3403_v27, %v1957_v16  ;;  %v2043_v22 = vand.u32 2147483648, %v2016_v57  ;;  %vm2037_vm13 = vweird.f32 %v2016_v57  ;;  %v493_v43 = vadd.f32 %v5252_v18, %v5235_v48 }
 0x4ef   :  { %3410 = vtanh.f32 %v4781_v44  ;;  %v1995_v50 = vmul.f32 %v3405_v2, %v1994_v32  ;;  %v2025_v46 = vsel %vm4791_vm6, %v4760_v4, %v2021_v20 }
 0x4f0   :  { %3412 = vrcp.f32 %v2016_v57  ;;  %v1962_v6 = vsel %vm1961_vm5, %v3403_v27, %v1958_v1  ;;  %v2030_v60 = vsel %vm2027_vm11, %v2029_v36, %v2025_v46  ;;  %v2041_v27 = vand.u32 2147483647, %v2016_v57  ;;  %v5256_v46 = vld [vmem:[#allocation67_spill] sm:$0xff] }
 0x4f1   :  { %v1996_v39 = vadd.f32 %v3405_v2, %v1995_v50  ;;  %v1967_v41 = vsel %vm1964_vm8, %v1966_v38, %v1962_v6  ;;  %v542_v36 = vadd.f32 %v5256_v46, %v5241_v11 }
 0x4f2   :  { %v2050_v49 = vmul.f32 %v3409_v7, %v1967_v41  ;;  %vm2042_vm15 = vcmp.eq.f32.partialorder %v2041_v27, 8.507059e+37  ;;  %v495_v7 = vadd.f32 %v5255_v21, %v5235_v48  ;;  %v5258_v27 = vld [vmem:[#allocation74_spill] sm:$0xff] }
 0x4f3   :  { %v2000_v47 = vsel %vm1999_vm9, %v3405_v2, %v1996_v39  ;;  %v5251_v2 = vld [vmem:[#allocation65_spill] sm:$0xff] }
 0x4f4   :  { %v2005_v55 = vsel %vm2002_vm10, %v2004_v19, %v2000_v47  ;;  %v444_v10 = vadd.f32 %v5251_v2, %v5233_v37  ;;  %v5257_v47 = vld [vmem:[#allocation71_spill] sm:$0xff] }
 0x4f5   :  { %v3411_v59 = vpop.eup %3410  ;;  %v2048_v34 = vmul.f32 %v2005_v55, %v4686_v25  ;;  %v2044_v25 = vor.u32 1.1754944e-38, %v2043_v22 }
 0x4f6   :  { %v3413_v63 = vpop.eup %3412  ;;  %v2055_v3 = vmul.f32 %v3411_v59, %v2030_v60 }
 0x4f7   :  { %v4801_v13 = vadd.f32 %v2050_v49, %v2048_v34  ;;  %v2033_v14 = vmul.f32 %v3413_v63, %v2016_v57  ;;  %vm2038_vm12 = vweird.f32 %v3413_v63  ;;  %v593_v49 = vadd.f32 %v5257_v47, %v5237_v9 }
 0x4f8   :  { %v2074_v17 = vmul.f32 %v3216_v52, %v2055_v3  ;;  %vm2039_vm14 = vmor %vm2037_vm13, %vm2038_vm12 }
 0x4f9   :  { %3414 = vtanh.f32 %v4801_v13  ;;  %v2034_v4 = vsub.f32 1.0, %v2033_v14 }
 0x4fa   :  { %v4805_v26 = vadd.f32 %v2074_v17, %v4693_v0 }
 0x4fb   :  { %v2035_v51 = vmul.f32 %v3413_v63, %v2034_v4 }
 0x4fd   :  { %v2036_v30 = vadd.f32 %v3413_v63, %v2035_v51 }
 0x4ff   :  { %v3415_v35 = vpop.eup %3414  ;;  %v2040_v42 = vsel %vm2039_vm14, %v3413_v63, %v2036_v30  ;;  %v544_v30 = vadd.f32 %v5258_v27, %v5241_v11 }
 0x500   :  { %v2045_v45 = vsel %vm2042_vm15, %v2044_v25, %v2040_v42 }
 0x501   :  { %v2056_v54 = vmul.f32 %v3415_v35, %v2045_v45 }
 0x503   :  { %v2079_v61 = vpack.c.bf16 %v2056_v54, %v2055_v3  ;;  %v2075_v62 = vmul.f32 %v3195_v40, %v2056_v54 }
 0x505   :  { %2088 = vmatmul.bf16.vlgmr.msrb.gmra.mxu0 %v2079_v61  ;;  %2102 = vmatmul.bf16.vlgmr.msrb.gmra.mxu1 %v2079_v61  ;;  %v4809_v0 = vadd.f32 %v2075_v62, %v4697_v5  ;;  %v5254_v5 = vld [vmem:[#allocation69_spill] sm:$0xff] }
 0x506   :  { %2116 = vmatmul.bf16.vlgmr.msrb.gmra.mxu2 %v2079_v61  ;;  %2130 = vmatmul.bf16.vlgmr.msrb.gmra.mxu3 %v2079_v61  ;;  %v446_v28 = vadd.f32 %v5254_v5, %v5233_v37 }
 0x53f   :  { %v4871_v27 = vpop.permute.xlu2 %3218 }
 0x582   :  { %v2089_v8 = vpop.f32.mrf.mxu0  ;;  %v2103_v56 = vpop.f32.mrf.mxu1 }
 0x583   :  { %v2136_v58 = vadd.f32 %v2089_v8, %v444_v10  ;;  %v2137_v31 = vadd.f32 %v2103_v56, %v493_v43  ;;  %v2514_v56 = vld [vmem:[%s5031_s1 + $0x8] sm:$0xff] }
 0x584   :  { %2522 = vperm.xlu0 %3179, %v2514_v56  }
 0x585   :  { %v3039_v53 = vmul.f32 -1.442695, %v2136_v58  ;;  %v3041_v23 = vmul.f32 -1.442695, %v2137_v31 }
 0x587   :  { %3416 = vpow2.f32 %v3039_v53 }
 0x588   :  { %3418 = vpow2.f32 %v3041_v23 }
 0x589   :  { %v2131_v32 = vpop.f32.mrf.mxu3  ;;  %v2117_v39 = vpop.f32.mrf.mxu2 }
 0x58a   :  { %v2139_v16 = vadd.f32 %v2131_v32, %v591_v29  ;;  %v2091_v20 = vpop.f32.mrf.mxu0  ;;  %v2105_v24 = vpop.f32.mrf.mxu1  ;;  %v2138_v55 = vadd.f32 %v2117_v39, %v542_v36 }
 0x58b   :  { %v2140_v57 = vadd.f32 %v2091_v20, %v446_v28  ;;  %v2141_v50 = vadd.f32 %v2105_v24, %v495_v7 }
 0x58c   :  { %v3043_v1 = vmul.f32 -1.442695, %v2139_v16 }
 0x58d   :  { %v3417_v12 = vpop.eup %3416  ;;  %v3040_v38 = vmul.f32 -1.442695, %v2140_v57  ;;  %v3042_v19 = vmul.f32 -1.442695, %v2141_v50 }
 0x58e   :  { %v3419_v15 = vpop.eup %3418  ;;  %v2150_v6 = vadd.f32 1.0, %v3417_v12  ;;  %3420 = vpow2.f32 %v3043_v1 }
 0x58f   :  { %v2188_v41 = vadd.f32 1.0, %v3419_v15  ;;  %3422 = vpow2.f32 %v3040_v38 }
 0x590   :  { %3424 = vrcp.f32 %v2150_v6  ;;  %v2161_v42 = vand.u32 2147483647, %v2150_v6  ;;  %v2163_v45 = vand.u32 2147483648, %v2150_v6  ;;  %vm2157_vm3 = vweird.f32 %v2150_v6 }
 0x591   :  { %3426 = vrcp.f32 %v2188_v41  ;;  %v2133_v52 = vpop.f32.mrf.mxu3  ;;  %v2119_v35 = vpop.f32.mrf.mxu2  ;;  %v2201_v62 = vand.u32 2147483648, %v2188_v41  ;;  %v2199_v2 = vand.u32 2147483647, %v2188_v41  ;;  %vm2195_vm2 = vweird.f32 %v2188_v41 }
 0x592   :  { %3428 = vpow2.f32 %v3042_v19  ;;  %v2143_v59 = vadd.f32 %v2133_v52, %v593_v49  ;;  %v2142_v18 = vadd.f32 %v2119_v35, %v544_v30  ;;  %vm2162_vm4 = vcmp.eq.f32.partialorder %v2161_v42, 8.507059e+37  ;;  %v2513_v19 = vld [vmem:[%s5031_s1] sm:$0xff] }
 0x593   :  { %3430 = vtanh.f32 %v2138_v55  ;;  %v2202_v23 = vor.u32 1.1754944e-38, %v2201_v62  ;;  %v2164_v33 = vor.u32 1.1754944e-38, %v2163_v45  ;;  %vm2200_vm7 = vcmp.eq.f32.partialorder %v2199_v2, 8.507059e+37  ;;  %2517 = vperm.xlu0 %3179, %v2513_v19   ;;  %v2538_v19 = vld [vmem:[#allocation9 + $0x58] sm:$0xff] }
 0x594   :  { %v3421_v34 = vpop.eup %3420  ;;  %v3044_v17 = vmul.f32 -1.442695, %v2143_v59 }
 0x595   :  { %v3423_v60 = vpop.eup %3422  ;;  %v4825_v63 = vadd.f32 1.0, %v3421_v34 }
 0x596   :  { %v3425_v3 = vpop.eup %3424  ;;  %v4827_v14 = vadd.f32 1.0, %v3423_v60 }
 0x597   :  { %v3427_v4 = vpop.eup %3426  ;;  %v2153_v22 = vmul.f32 %v3425_v3, %v2150_v6  ;;  %3432 = vrcp.f32 %v4825_v63  ;;  %vm2158_vm0 = vweird.f32 %v3425_v3  ;;  %v2241_v49 = vand.u32 2147483648, %v4825_v63 }
 0x598   :  { %v3429_v51 = vpop.eup %3428  ;;  %v2191_v25 = vmul.f32 %v3427_v4, %v2188_v41  ;;  %3434 = vrcp.f32 %v4827_v14  ;;  %vm2196_vm1 = vweird.f32 %v3427_v4  ;;  %vm2159_vm5 = vmor %vm2157_vm3, %vm2158_vm0  ;;  %v2178_v24 = vand.u32 2147483648, %v4827_v14 }
 0x599   :  { %v2154_v40 = vsub.f32 1.0, %v2153_v22  ;;  %v4833_v54 = vadd.f32 1.0, %v3429_v51  ;;  %3436 = vpow2.f32 %v3044_v17  ;;  %v3431_v43 = vpop.eup %3430  ;;  %vm2197_vm6 = vmor %vm2195_vm2, %vm2196_vm1  ;;  %vm2172_vm8 = vweird.f32 %v4827_v14 }
 0x59a   :  { %v2192_v61 = vsub.f32 1.0, %v2191_v25  ;;  %v2176_v46 = vand.u32 2147483647, %v4827_v14  ;;  %v2179_v59 = vor.u32 1.1754944e-38, %v2178_v24  ;;  %vm2235_vm14 = vweird.f32 %v4825_v63 }
 0x59b   :  { %v2155_v10 = vmul.f32 %v3425_v3, %v2154_v40  ;;  %3438 = vrcp.f32 %v4833_v54  ;;  %vm2210_vm15 = vweird.f32 %v4833_v54  ;;  %v2242_v45 = vor.u32 1.1754944e-38, %v2241_v49 }
 0x59c   :  { %v2193_v8 = vmul.f32 %v3427_v4, %v2192_v61  ;;  %3440 = vtanh.f32 %v2142_v18  ;;  %vm2177_vm13 = vcmp.eq.f32.partialorder %v2176_v46, 8.507059e+37  ;;  %v3220_v61 = vunpack.i.l.bf16 %v4871_v27 }
 0x59d   :  { %v4839_v58 = vpop.eup %3432  ;;  %v2156_v31 = vadd.f32 %v3425_v3, %v2155_v10 }
 0x59e   :  { %v3435_v53 = vpop.eup %3434  ;;  %v2194_v29 = vadd.f32 %v3427_v4, %v2193_v8  ;;  %v2231_v5 = vmul.f32 %v4839_v58, %v4825_v63  ;;  %vm2236_vm10 = vweird.f32 %v4839_v58 }
 0x59f   :  { %v2160_v28 = vsel %vm2159_vm5, %v3425_v3, %v2156_v31  ;;  %v2168_v21 = vmul.f32 %v3435_v53, %v4827_v14  ;;  %v3437_v7 = vpop.eup %3436  ;;  %vm2173_vm9 = vweird.f32 %v3435_v53  ;;  %v2214_v3 = vand.u32 2147483647, %v4833_v54  ;;  %vm4875_vm0 = vmor %vm2235_vm14, %vm2236_vm10 }
 0x5a0   :  { %v2165_v32 = vsel %vm2162_vm4, %v2164_v33, %v2160_v28  ;;  %v2198_v16 = vsel %vm2197_vm6, %v3427_v4, %v2194_v29  ;;  %v2232_v20 = vsub.f32 1.0, %v2231_v5  ;;  %v4846_v38 = vadd.f32 1.0, %v3437_v7  ;;  %vm2174_vm12 = vmor %vm2172_vm8, %vm2173_vm9  ;;  %v5261_v5 = vld [vmem:[#allocation28_spill] sm:$0xff] }
 0x5a1   :  { %v3439_v57 = vpop.eup %3438  ;;  %v2203_v50 = vsel %vm2200_vm7, %v2202_v23, %v2198_v16  ;;  %v2262_v1 = vmul.f32 %v3431_v43, %v2165_v32  ;;  %v2169_v12 = vsub.f32 1.0, %v2168_v21  ;;  %v2239_v4 = vand.u32 2147483647, %v4825_v63 }
 0x5a2   :  { %v2260_v15 = vmul.f32 %v2203_v50, %v4781_v44  ;;  %v2206_v6 = vmul.f32 %v3439_v57, %v4833_v54  ;;  %v2233_v39 = vmul.f32 %v4839_v58, %v2232_v20  ;;  %3442 = vrcp.f32 %v4846_v38  ;;  %v3441_v52 = vpop.eup %3440  ;;  %v2540_v50 = vld [vmem:[#allocation9 + $0x68] sm:$0xff] }
 0x5a3   :  { %v2170_v41 = vmul.f32 %v3435_v53, %v2169_v12  ;;  %v2216_v44 = vand.u32 2147483648, %v4833_v54  ;;  %vm2211_vm11 = vweird.f32 %v3439_v57  ;;  %vm2215_vm2 = vcmp.eq.f32.partialorder %v2214_v3, 8.507059e+37  ;;  %v5262_v12 = vld [vmem:[#allocation72_spill] sm:$0xff] }
 0x5a4   :  { %v4857_v36 = vadd.f32 %v2262_v1, %v2260_v15  ;;  %v2207_v47 = vsub.f32 1.0, %v2206_v6  ;;  %v2234_v34 = vadd.f32 %v4839_v58, %v2233_v39  ;;  %vm2212_vm1 = vmor %vm2210_vm15, %vm2211_vm11  ;;  %vm2240_vm3 = vcmp.eq.f32.partialorder %v2239_v4, 8.507059e+37  ;;  %v2539_v1 = vld [vmem:[#allocation9 + $0x60] sm:$0xff]  ;;  %v5263_v15 = vld [vmem:[#allocation73_spill] sm:$0xff] }
 0x5a5   :  { %v2171_v55 = vadd.f32 %v3435_v53, %v2170_v41  ;;  %v2217_v25 = vor.u32 1.1754944e-38, %v2216_v44  ;;  %vm2250_vm5 = vweird.f32 %v4846_v38  ;;  %v2254_v23 = vand.u32 2147483647, %v4846_v38 }
 0x5a6   :  { %3444 = vtanh.f32 %v4857_v36  ;;  %v2208_v60 = vmul.f32 %v3439_v57, %v2207_v47  ;;  %v2238_v63 = vsel %vm4875_vm0, %v4839_v58, %v2234_v34  ;;  %v3199_v28 = vunpack.i.l.bf16 %v5261_v5  ;;  %v2537_v47 = vld [vmem:[#allocation9 + $0x50] sm:$0xff]  ;;  %v2535_v34 = vld [vmem:[#allocation9 + $0x40] sm:$0xff] }
 0x5a7   :  { %v2175_v17 = vsel %vm2174_vm12, %v3435_v53, %v2171_v55  ;;  %v2243_v18 = vsel %vm2240_vm3, %v2242_v45, %v2238_v63  ;;  %v2256_v53 = vand.u32 2147483648, %v4846_v38  ;;  %vm2255_vm7 = vcmp.eq.f32.partialorder %v2254_v23, 8.507059e+37  ;;  %v5264_v55 = vld [vmem:[#allocation75_spill] sm:$0xff] }
 0x5a8   :  { %v2180_v22 = vsel %vm2177_vm13, %v2179_v59, %v2175_v17  ;;  %v2209_v51 = vadd.f32 %v3439_v57, %v2208_v60  ;;  %v3443_v14 = vpop.eup %3442  ;;  %v498_v6 = vadd.f32 %v5263_v15, %v5235_v48  ;;  %v596_v59 = vadd.f32 %v5264_v55, %v5237_v9  ;;  %v5265_v60 = vld [vmem:[#allocation76_spill] sm:$0xff]  ;;  %v5266_v17 = vld [vmem:[#allocation77_spill] sm:$0xff] }
 0x5a9   :  { %v2263_v35 = vmul.f32 %v3441_v52, %v2180_v22  ;;  %v2246_v42 = vmul.f32 %v3443_v14, %v4846_v38  ;;  %vm2251_vm4 = vweird.f32 %v3443_v14  ;;  %v2257_v29 = vor.u32 1.1754944e-38, %v2256_v53  ;;  %v2536_v52 = vld [vmem:[#allocation9 + $0x48] sm:$0xff] }
 0x5aa   :  { %v2213_v40 = vsel %vm2212_vm1, %v3439_v57, %v2209_v51  ;;  %vm2252_vm6 = vmor %vm2250_vm5, %vm2251_vm4  ;;  %v2541_v57 = vld [vmem:[#allocation9 + $0x70] sm:$0xff]  ;;  %v449_v38 = vadd.f32 %v5262_v12, %v5233_v37  ;;  %v451_v3 = vadd.f32 %v5265_v60, %v5233_v37  ;;  %v500_v4 = vadd.f32 %v5266_v17, %v5235_v48 }
 0x5ab   :  { %v2218_v54 = vsel %vm2215_vm2, %v2217_v25, %v2213_v40  ;;  %v2247_v10 = vsub.f32 1.0, %v2246_v42  ;;  %v2534_v25 = vld [vmem:[#allocation9 + $0x38] sm:$0xff]  ;;  %v2533_v42 = vld [vmem:[#allocation9 + $0x30] sm:$0xff] }
 0x5ac   :  { %v3445_v62 = vpop.eup %3444  ;;  %v2261_v2 = vmul.f32 %v2218_v54, %v4801_v13 }
 0x5ad   :  { %v2268_v43 = vmul.f32 %v3445_v62, %v2243_v18  ;;  %v2248_v56 = vmul.f32 %v3443_v14, %v2247_v10  ;;  %v5267_v18 = vld [vmem:[#allocation80_spill] sm:$0xff] }
 0x5ae   :  { %v4885_v8 = vadd.f32 %v2263_v35, %v2261_v2  ;;  %v2532_v2 = vld [vmem:[#allocation9 + $0x28] sm:$0xff] }
 0x5af   :  { %v2287_v58 = vmul.f32 %v3220_v61, %v2268_v43  ;;  %v2249_v31 = vadd.f32 %v3443_v14, %v2248_v56  ;;  %v2531_v56 = vld [vmem:[#allocation9 + $0x20] sm:$0xff] }
 0x5b0   :  { %3446 = vtanh.f32 %v4885_v8 }
 0x5b1   :  { %v4892_v33 = vadd.f32 %v2287_v58, %v4805_v26  ;;  %v2253_v13 = vsel %vm2252_vm6, %v3443_v14, %v2249_v31  ;;  %v2542_v26 = vld [vmem:[#allocation9 + $0x78] sm:$0xff]  ;;  %v5268_v58 = vld [vmem:[#allocation81_spill] sm:$0xff] }
 0x5b2   :  { %v2258_v7 = vsel %vm2255_vm7, %v2257_v29, %v2253_v13  ;;  %2547 = vmatpush.msrb.mxu0 %v2542_v26  ;;  %3131 = vmatpush.msrb.mxu2 %v2542_v26  ;;  %v598_v31 = vadd.f32 %v5268_v58, %v5237_v9  ;;  %v2530_v13 = vld [vmem:[#allocation9 + $0x18] sm:$0xff] }
 0x5b4   :  { %2548 = vmatpush.msrb.mxu0 %v2541_v57  ;;  %3132 = vmatpush.msrb.mxu2 %v2541_v57 }
 0x5b6   :  { %v3447_v21 = vpop.eup %3446  ;;  %2549 = vmatpush.msrb.mxu0 %v2540_v50  ;;  %3133 = vmatpush.msrb.mxu2 %v2540_v50 }
 0x5b7   :  { %v2269_v32 = vmul.f32 %v3447_v21, %v2258_v7 }
 0x5b8   :  { %2550 = vmatpush.msrb.mxu0 %v2539_v1  ;;  %3134 = vmatpush.msrb.mxu2 %v2539_v1  ;;  %v5269_v1 = vld [vmem:[#allocation83_spill] sm:$0xff] }
 0x5b9   :  { %v2292_v16 = vpack.c.bf16 %v2269_v32, %v2268_v43  ;;  %v2288_v20 = vmul.f32 %v3199_v28, %v2269_v32  ;;  %v547_v43 = vadd.f32 %v5267_v18, %v5241_v11  ;;  %v2529_v28 = vld [vmem:[#allocation9 + $0x10] sm:$0xff]  ;;  %v549_v12 = vadd.f32 %v5269_v1, %v5241_v11 }
 0x5ba   :  { %2551 = vmatpush.msrb.mxu0 %v2538_v19  ;;  %3135 = vmatpush.msrb.mxu2 %v2538_v19  ;;  %v2580_v1 = vld [vmem:[#allocation11 + $0x50] sm:$0xff] }
 0x5bb   :  { %2301 = vmatmul.bf16.vlgmr.msra.gmra.mxu0 %v2292_v16  ;;  %2315 = vmatmul.bf16.vlgmr.msra.gmra.mxu1 %v2292_v16  ;;  %v4896_v24 = vadd.f32 %v2288_v20, %v4809_v0  ;;  %v2528_v20 = vld [vmem:[#allocation9 + $0x8] sm:$0xff] }
 0x5bc   :  { %2329 = vmatmul.bf16.vlgmr.msra.gmra.mxu2 %v2292_v16  ;;  %2343 = vmatmul.bf16.vlgmr.msra.gmra.mxu3 %v2292_v16 }
 0x5bd   :  { %2552 = vmatpush.msrb.mxu0 %v2537_v47  ;;  %3136 = vmatpush.msrb.mxu2 %v2537_v47 }
 0x5bf   :  { %2553 = vmatpush.msrb.mxu0 %v2536_v52  ;;  %3137 = vmatpush.msrb.mxu2 %v2536_v52 }
 0x5c1   :  { %2554 = vmatpush.msrb.mxu0 %v2535_v34  ;;  %3138 = vmatpush.msrb.mxu2 %v2535_v34 }
 0x5c3   :  { %2555 = vmatpush.msrb.mxu0 %v2534_v25  ;;  %3139 = vmatpush.msrb.mxu2 %v2534_v25  ;;  %v2585_v25 = vld [vmem:[#allocation11 + $0x78] sm:$0xff] }
 0x5c4   :  { %2590 = vmatpush.msrb.mxu1 %v2585_v25  ;;  %3147 = vmatpush.msrb.mxu3 %v2585_v25  ;;  %v2575_v25 = vld [vmem:[#allocation11 + $0x28] sm:$0xff] }
 0x5c5   :  { %2556 = vmatpush.msrb.mxu0 %v2533_v42  ;;  %3140 = vmatpush.msrb.mxu2 %v2533_v42 }
 0x5c7   :  { %2557 = vmatpush.msrb.mxu0 %v2532_v2  ;;  %3141 = vmatpush.msrb.mxu2 %v2532_v2 }
 0x5c9   :  { %2558 = vmatpush.msrb.mxu0 %v2531_v56  ;;  %3142 = vmatpush.msrb.mxu2 %v2531_v56 }
 0x5cb   :  { %2559 = vmatpush.msrb.mxu0 %v2530_v13  ;;  %3143 = vmatpush.msrb.mxu2 %v2530_v13 }
 0x5cd   :  { %2560 = vmatpush.msrb.mxu0 %v2529_v28  ;;  %3144 = vmatpush.msrb.mxu2 %v2529_v28 }
 0x5cf   :  { %2561 = vmatpush.msrb.mxu0 %v2528_v20  ;;  %3145 = vmatpush.msrb.mxu2 %v2528_v20 }
 0x638   :  { %v2302_v0 = vpop.f32.mrf.mxu0  ;;  %v2316_v39 = vpop.f32.mrf.mxu1 }
 0x639   :  { %v2349_v41 = vadd.f32 %v2302_v0, %v449_v38  ;;  %v2350_v46 = vadd.f32 %v2316_v39, %v498_v6  ;;  %v2527_v6 = vld [vmem:[#allocation9] sm:$0xff] }
 0x63a   :  { %2562 = vmatpush.msrb.mxu0 %v2527_v6  ;;  %3146 = vmatpush.msrb.mxu2 %v2527_v6 }
 0x63b   :  { %v3049_v44 = vmul.f32 -1.442695, %v2349_v41  ;;  %v3051_v49 = vmul.f32 -1.442695, %v2350_v46 }
 0x63d   :  { %3448 = vpow2.f32 %v3049_v44 }
 0x63e   :  { %3450 = vpow2.f32 %v3051_v49 }
 0x63f   :  { %v2344_v22 = vpop.f32.mrf.mxu3  ;;  %v2330_v48 = vpop.f32.mrf.mxu2 }
 0x640   :  { %v2352_v51 = vadd.f32 %v2344_v22, %v596_v59  ;;  %v2304_v30 = vpop.f32.mrf.mxu0  ;;  %v2318_v14 = vpop.f32.mrf.mxu1  ;;  %v2351_v23 = vadd.f32 %v2330_v48, %v547_v43 }
 0x641   :  { %v2353_v35 = vadd.f32 %v2304_v30, %v451_v3  ;;  %v2354_v63 = vadd.f32 %v2318_v14, %v500_v4 }
 0x642   :  { %v3053_v40 = vmul.f32 -1.442695, %v2352_v51 }
 0x643   :  { %v3449_v45 = vpop.eup %3448  ;;  %v3050_v54 = vmul.f32 -1.442695, %v2353_v35  ;;  %v3052_v62 = vmul.f32 -1.442695, %v2354_v63  ;;  %v2584_v35 = vld [vmem:[#allocation11 + $0x70] sm:$0xff] }
 0x644   :  { %v3451_v37 = vpop.eup %3450  ;;  %v4908_v61 = vadd.f32 1.0, %v3449_v45  ;;  %3452 = vpow2.f32 %v3053_v40  ;;  %2591 = vmatpush.msrb.mxu1 %v2584_v35  ;;  %3148 = vmatpush.msrb.mxu3 %v2584_v35 }
 0x645   :  { %v4910_v10 = vadd.f32 1.0, %v3451_v37  ;;  %3454 = vpow2.f32 %v3050_v54 }
 0x646   :  { %3456 = vrcp.f32 %v4908_v61  ;;  %v2374_v39 = vand.u32 2147483647, %v4908_v61  ;;  %v2376_v19 = vand.u32 2147483648, %v4908_v61  ;;  %vm2370_vm11 = vweird.f32 %v4908_v61 }
 0x647   :  { %3458 = vrcp.f32 %v4910_v10  ;;  %v2346_v53 = vpop.f32.mrf.mxu3  ;;  %v2332_v15 = vpop.f32.mrf.mxu2  ;;  %v2414_v47 = vand.u32 2147483648, %v4910_v10  ;;  %v2412_v11 = vand.u32 2147483647, %v4910_v10  ;;  %vm2408_vm10 = vweird.f32 %v4910_v10 }
 0x648   :  { %3460 = vpow2.f32 %v3052_v62  ;;  %v2356_v29 = vadd.f32 %v2346_v53, %v598_v31  ;;  %v2355_v49 = vadd.f32 %v2332_v15, %v549_v12  ;;  %vm2375_vm12 = vcmp.eq.f32.partialorder %v2374_v39, 8.507059e+37  ;;  %v2582_v53 = vld [vmem:[#allocation11 + $0x60] sm:$0xff]  ;;  %v4982_v15 = vpop.permute.xlu0 %2522 }
 0x649   :  { %3462 = vtanh.f32 %v2351_v23  ;;  %v2415_v3 = vor.u32 1.1754944e-38, %v2414_v47  ;;  %v2377_v17 = vor.u32 1.1754944e-38, %v2376_v19  ;;  %vm2413_vm15 = vcmp.eq.f32.partialorder %v2412_v11, 8.507059e+37  ;;  %v2579_v19 = vld [vmem:[#allocation11 + $0x48] sm:$0xff] }
 0x64a   :  { %v3453_v5 = vpop.eup %3452  ;;  %v3054_v16 = vmul.f32 -1.442695, %v2356_v29  ;;  %v3221_v11 = vunpack.i.h.bf16 %v4871_v27  ;;  %v2576_v27 = vld [vmem:[#allocation11 + $0x30] sm:$0xff] }
 0x64b   :  { %v3455_v21 = vpop.eup %3454  ;;  %v4918_v7 = vadd.f32 1.0, %v3453_v5 }
 0x64c   :  { %v3457_v32 = vpop.eup %3456  ;;  %v4920_v9 = vadd.f32 1.0, %v3455_v21 }
 0x64d   :  { %v3459_v26 = vpop.eup %3458  ;;  %v2366_v57 = vmul.f32 %v3457_v32, %v4908_v61  ;;  %3464 = vrcp.f32 %v4918_v7  ;;  %vm2371_vm8 = vweird.f32 %v3457_v32  ;;  %v2454_v29 = vand.u32 2147483648, %v4918_v7 }
 0x64e   :  { %v3461_v50 = vpop.eup %3460  ;;  %v2404_v38 = vmul.f32 %v3459_v26, %v4910_v10  ;;  %3466 = vrcp.f32 %v4920_v9  ;;  %vm2409_vm9 = vweird.f32 %v3459_v26  ;;  %vm2372_vm13 = vmor %vm2370_vm11, %vm2371_vm8  ;;  %v2391_v54 = vand.u32 2147483648, %v4920_v9  ;;  %v2583_v10 = vld [vmem:[#allocation11 + $0x68] sm:$0xff] }
 0x64f   :  { %v2367_v0 = vsub.f32 1.0, %v2366_v57  ;;  %v4930_v41 = vadd.f32 1.0, %v3461_v50  ;;  %3468 = vpow2.f32 %v3054_v16  ;;  %v3463_v52 = vpop.eup %3462  ;;  %vm4943_vm14 = vmor %vm2408_vm10, %vm2409_vm9  ;;  %vm2385_vm0 = vweird.f32 %v4920_v9  ;;  %2592 = vmatpush.msrb.mxu1 %v2583_v10  ;;  %3149 = vmatpush.msrb.mxu3 %v2583_v10  ;;  %v2581_v16 = vld [vmem:[#allocation11 + $0x58] sm:$0xff] }
 0x650   :  { %v2405_v46 = vsub.f32 1.0, %v2404_v38  ;;  %v2389_v31 = vand.u32 2147483647, %v4920_v9  ;;  %v2392_v21 = vor.u32 1.1754944e-38, %v2391_v54  ;;  %vm2448_vm6 = vweird.f32 %v4918_v7  ;;  %v2518_v35 = vpop.permute.xlu0 %2517  ;;  %v2573_v54 = vld [vmem:[#allocation11 + $0x18] sm:$0xff] }
 0x651   :  { %v2368_v44 = vmul.f32 %v3457_v32, %v2367_v0  ;;  %3470 = vrcp.f32 %v4930_v41  ;;  %v2429_v13 = vand.u32 2147483648, %v4930_v41  ;;  %2593 = vmatpush.msrb.mxu1 %v2582_v53  ;;  %3150 = vmatpush.msrb.mxu3 %v2582_v53  ;;  %v2452_v50 = vand.u32 2147483647, %v4918_v7 }
 0x652   :  { %v2406_v55 = vmul.f32 %v3459_v26, %v2405_v46  ;;  %3472 = vtanh.f32 %v2355_v49  ;;  %vm2390_vm5 = vcmp.eq.f32.partialorder %v2389_v31, 8.507059e+37  ;;  %vm2423_vm7 = vweird.f32 %v4930_v41  ;;  %v2578_v49 = vld [vmem:[#allocation11 + $0x40] sm:$0xff] }
 0x653   :  { %v4935_v59 = vpop.eup %3464  ;;  %v2369_v34 = vadd.f32 %v3457_v32, %v2368_v44  ;;  %2594 = vmatpush.msrb.mxu1 %v2581_v16  ;;  %3151 = vmatpush.msrb.mxu3 %v2581_v16  ;;  %v2455_v47 = vor.u32 1.1754944e-38, %v2454_v29  ;;  %vm2453_vm11 = vcmp.eq.f32.partialorder %v2452_v50, 8.507059e+37  ;;  %v3222_v31 = vld [vmem:[%s5039_s9] ss:$0 sm:$0xff] }
 0x654   :  { %v4939_v60 = vpop.eup %3466  ;;  %v2407_v4 = vadd.f32 %v3459_v26, %v2406_v55  ;;  %v2444_v22 = vmul.f32 %v4935_v59, %v4918_v7  ;;  %vm2449_vm2 = vweird.f32 %v4935_v59  ;;  %v2430_v7 = vor.u32 1.1754944e-38, %v2429_v13 }
 0x655   :  { %v2373_v30 = vsel %vm2372_vm13, %v3457_v32, %v2369_v34  ;;  %v2381_v14 = vmul.f32 %v4939_v60, %v4920_v9  ;;  %v3469_v63 = vpop.eup %3468  ;;  %vm2386_vm1 = vweird.f32 %v4939_v60  ;;  %vm4986_vm8 = vmor %vm2448_vm6, %vm2449_vm2  ;;  %2595 = vmatpush.msrb.mxu1 %v2580_v1  ;;  %3152 = vmatpush.msrb.mxu3 %v2580_v1 }
 0x656   :  { %v2378_v40 = vsel %vm2375_vm12, %v2377_v17, %v2373_v30  ;;  %v2411_v42 = vsel %vm4943_vm14, %v3459_v26, %v2407_v4  ;;  %v2445_v45 = vsub.f32 1.0, %v2444_v22  ;;  %v4954_v2 = vadd.f32 1.0, %v3469_v63  ;;  %vm2387_vm4 = vmor %vm2385_vm0, %vm2386_vm1 }
 0x657   :  { %v4952_v37 = vpop.eup %3470  ;;  %v2416_v61 = vsel %vm2413_vm15, %v2415_v3, %v2411_v42  ;;  %v2475_v48 = vmul.f32 %v3463_v52, %v2378_v40  ;;  %v2382_v62 = vsub.f32 1.0, %v2381_v14  ;;  %v2427_v26 = vand.u32 2147483647, %v4930_v41  ;;  %2596 = vmatpush.msrb.mxu1 %v2579_v19  ;;  %3153 = vmatpush.msrb.mxu3 %v2579_v19  ;;  %v2577_v3 = vld [vmem:[#allocation11 + $0x38] sm:$0xff]  ;;  %v2574_v42 = vld [vmem:[#allocation11 + $0x20] sm:$0xff] }
 0x658   :  { %v2473_v18 = vmul.f32 %v2416_v61, %v4857_v36  ;;  %v2419_v43 = vmul.f32 %v4952_v37, %v4930_v41  ;;  %v2446_v56 = vmul.f32 %v4935_v59, %v2445_v45  ;;  %3474 = vrcp.f32 %v4954_v2  ;;  %v3473_v5 = vpop.eup %3472 }
 0x659   :  { %v2383_v58 = vmul.f32 %v4939_v60, %v2382_v62  ;;  %vm2424_vm3 = vweird.f32 %v4952_v37  ;;  %vm2428_vm10 = vcmp.eq.f32.partialorder %v2427_v26, 8.507059e+37  ;;  %2597 = vmatpush.msrb.mxu1 %v2578_v49  ;;  %3154 = vmatpush.msrb.mxu3 %v2578_v49  ;;  %v2469_v30 = vand.u32 2147483648, %v4954_v2 }
 0x65a   :  { %v2477_v23 = vadd.f32 %v2475_v48, %v2473_v18  ;;  %v2420_v36 = vsub.f32 1.0, %v2419_v43  ;;  %v2447_v32 = vadd.f32 %v4935_v59, %v2446_v56  ;;  %vm2425_vm9 = vmor %vm2423_vm7, %vm2424_vm3  ;;  %vm2463_vm13 = vweird.f32 %v4954_v2  ;;  %v5274_v48 = vld [vmem:[#allocation29_spill] sm:$0xff]  ;;  %v2571_v56 = vld [vmem:[#allocation11 + $0x8] sm:$0xff] }
 0x65b   :  { %v2384_v28 = vadd.f32 %v4939_v60, %v2383_v58  ;;  %2598 = vmatpush.msrb.mxu1 %v2577_v3  ;;  %3155 = vmatpush.msrb.mxu3 %v2577_v3  ;;  %v2470_v45 = vor.u32 1.1754944e-38, %v2469_v30  ;;  %v2570_v58 = vld [vmem:[#allocation11] sm:$0xff] }
 0x65c   :  { %3476 = vtanh.f32 %v2477_v23  ;;  %2506 = vst [vmem:[#allocation15] sm:$0xff] %v2477_v23  ;;  %v2421_v20 = vmul.f32 %v4952_v37, %v2420_v36  ;;  %v2451_v39 = vsel %vm4986_vm8, %v4935_v59, %v2447_v32 }
 0x65d   :  { %v2388_v57 = vsel %vm2387_vm4, %v4939_v60, %v2384_v28  ;;  %v2456_v60 = vsel %vm2453_vm11, %v2455_v47, %v2451_v39  ;;  %2599 = vmatpush.msrb.mxu1 %v2576_v27  ;;  %3156 = vmatpush.msrb.mxu3 %v2576_v27 }
 0x65e   :  { %v2393_v12 = vsel %vm2390_vm5, %v2392_v21, %v2388_v57  ;;  %v2422_v38 = vadd.f32 %v4952_v37, %v2421_v20  ;;  %v3475_v6 = vpop.eup %3474 }
 0x65f   :  { %v2476_v0 = vmul.f32 %v3473_v5, %v2393_v12  ;;  %v2459_v46 = vmul.f32 %v3475_v6, %v4954_v2  ;;  %vm2464_vm12 = vweird.f32 %v3475_v6  ;;  %2600 = vmatpush.msrb.mxu1 %v2575_v25  ;;  %3157 = vmatpush.msrb.mxu3 %v2575_v25 }
 0x660   :  { %v2426_v41 = vsel %vm2425_vm9, %v4952_v37, %v2422_v38  ;;  %vm2465_vm14 = vmor %vm2463_vm13, %vm2464_vm12 }
 0x661   :  { %v2431_v44 = vsel %vm2428_vm10, %v2430_v7, %v2426_v41  ;;  %v2460_v34 = vsub.f32 1.0, %v2459_v46  ;;  %2601 = vmatpush.msrb.mxu1 %v2574_v42  ;;  %3158 = vmatpush.msrb.mxu3 %v2574_v42 }
 0x662   :  { %v3477_v52 = vpop.eup %3476  ;;  %v2474_v55 = vmul.f32 %v2431_v44, %v4885_v8  ;;  %v2467_v8 = vand.u32 2147483647, %v4954_v2  ;;  %v2572_v2 = vld [vmem:[#allocation11 + $0x10] sm:$0xff] }
 0x663   :  { %v2481_v59 = vmul.f32 %v3477_v52, %v2456_v60  ;;  %v2461_v4 = vmul.f32 %v3475_v6, %v2460_v34  ;;  %2602 = vmatpush.msrb.mxu1 %v2573_v54  ;;  %3159 = vmatpush.msrb.mxu3 %v2573_v54 }
 0x664   :  { %v2478_v17 = vadd.f32 %v2476_v0, %v2474_v55  ;;  %vm2468_vm15 = vcmp.eq.f32.partialorder %v2467_v8, 8.507059e+37 }
 0x665   :  { %v2500_v22 = vmul.f32 %v3221_v11, %v2481_v59  ;;  %2504 = vst [vmem:[#allocation13] sm:$0xff] %v2481_v59  ;;  %v2462_v51 = vadd.f32 %v3475_v6, %v2461_v4  ;;  %2603 = vmatpush.msrb.mxu1 %v2572_v2  ;;  %3160 = vmatpush.msrb.mxu3 %v2572_v2 }
 0x666   :  { %3478 = vtanh.f32 %v2478_v17  ;;  %2507 = vst [vmem:[#allocation15 + $0x8] sm:$0xff] %v2478_v17 }
 0x667   :  { %v2502_v14 = vadd.f32 %v2500_v22, %v4892_v33  ;;  %v2466_v63 = vsel %vm2465_vm14, %v3475_v6, %v2462_v51  ;;  %v3206_v33 = vunpack.i.h.bf16 %v5274_v48  ;;  %2604 = vmatpush.msrb.mxu1 %v2571_v56  ;;  %3161 = vmatpush.msrb.mxu3 %v2571_v56 }
 0x668   :  { %v2471_v61 = vsel %vm2468_vm15, %v2470_v45, %v2466_v63 }
 0x669   :  { %v2525_v40 = vmul.f32 %v2518_v35, %v2502_v14  ;;  %2605 = vmatpush.msrb.mxu1 %v2570_v58  ;;  %3162 = vmatpush.msrb.mxu3 %v2570_v58 }
 0x66b   :  { %2563 = vmatmul.f32.vlgmr.msrb.gmra.mxu0 %v2525_v40 }
 0x66c   :  { %v3479_v37 = vpop.eup %3478 }
 0x66d   :  { %v2482_v62 = vmul.f32 %v3479_v37, %v2471_v61 }
 0x66f   :  { %v2501_v10 = vmul.f32 %v3206_v33, %v2482_v62  ;;  %2505 = vst [vmem:[#allocation13 + $0x8] sm:$0xff] %v2482_v62 }
 0x671   :  { %v2503_v18 = vadd.f32 %v2501_v10, %v4896_v24  ;;  %v3223_v24 = vld [vmem:[%s5041_s11] ss:$0 sm:$0xff]  ;;  %s2654_s11 = sshll.u32 %s5043_s13, 4  ;;  %s3706_s13 = smov [#allocation12]   ;;  %s2655_s11 = int_to_ptr.hbm [resolvable:$true] %s2654_s11 }
 0x672   :  { %2660 = dma.vmem_to_hbm [thread:$0]  %s2653_s10, 256, %s2655_s11, [#allocation14], %s3695_s25, %s3695_s25, %s3696_s26  }
 0x673   :  { %v2526_v43 = vmul.f32 %v4982_v15, %v2503_v18  ;;  %2673 = dma.vmem_to_hbm [thread:$0]  %s2666_s27, 256, %s2668_s3, [#allocation14], %s3695_s25, %s3695_s25, %s3696_s26  }
 0x674   :  { %s2639_s28 = sshll.u32 %s3706_s13, 4  ;;  %s2640_s28 = int_to_ptr.vmem [resolvable:$true] %s2639_s28 }
 0x675   :  { %2566 = vmatmul.f32.vlgmr.msrb.gmra.mxu2 %v2526_v43 }
 0x6e8   :  { %v2564_v53 = vpop.f32.mrf.mxu0 }
 0x6e9   :  { %v2565_v23 = vadd.f32 %v3222_v31, %v2564_v53 }
 0x6eb   :  { %2606 = vmatmul.f32.vlgmr.msrb.gmra.mxu1 %v2565_v23 }
 0x6f8   :  { %v2567_v36 = vpop.f32.mrf.mxu2 }
 0x6f9   :  { %v2568_v13 = vadd.f32 %v3222_v31, %v2567_v36 }
 0x6fb   :  { %2609 = vmatmul.f32.vlgmr.msrb.gmra.mxu3 %v2568_v13 }
 0x768   :  { %v2607_v29 = vpop.f32.mrf.mxu1 }
 0x769   :  { %v2608_v5 = vadd.f32 %v3223_v24, %v2607_v29 }
 0x76b   :  { %2613 = vmax.xlane.f32.xlu1 %v2608_v5 }
 0x77e   :  { %v2610_v28 = vpop.f32.mrf.mxu3 }
 0x77f   :  { %v2611_v21 = vadd.f32 %v3223_v24, %v2610_v28 }
 0x781   :  { %2615 = vmax.xlane.f32.xlu2 %v2611_v21 }
 0x7de   :  { %v2614_v32 = vpop.xlane.xlu1 %2613 }
 0x7df   :  { %v2617_v16 = vsub.f32 %v2608_v5, %v2614_v32 }
 0x7e1   :  { %v2619_v20 = vmul.f32 1.442695, %v2617_v16 }
 0x7e3   :  { %3480 = vpow2.f32 %v2619_v20 }
 0x7e9   :  { %v3481_v26 = vpop.eup %3480 }
 0x7ea   :  { %2623 = vadd.xlane.f32.xlu0 %v3481_v26 }
 0x7f4   :  { %v2616_v57 = vpop.xlane.xlu2 %2615 }
 0x7f5   :  { %v2618_v50 = vsub.f32 %v2611_v21, %v2616_v57 }
 0x7f7   :  { %v2621_v1 = vmul.f32 1.442695, %v2618_v50 }
 0x7f9   :  { %3482 = vpow2.f32 %v2621_v1 }
 0x7ff   :  { %v3483_v12 = vpop.eup %3482 }
 0x800   :  { %2625 = vadd.xlane.f32.xlu2 %v3483_v12 }
 0x85d   :  { %v2624_v38 = vpop.xlane.xlu0 %2623 }
 0x85e   :  { %3484 = vlog2.f32 %v2624_v38 }
 0x864   :  { %v3485_v15 = vpop.eup %3484 }
 0x865   :  { %v2628_v9 = vmul.f32 0.6931472, %v3485_v15 }
 0x867   :  { %v2631_v6 = vsub.f32 %v2617_v16, %v2628_v9 }
 0x869   :  { %2633 = vst [vmem:[#allocation12] sm:$0xff] %v2631_v6 }
 0x873   :  { %v2626_v7 = vpop.xlane.xlu2 %2625 }
 0x874   :  { %3486 = vlog2.f32 %v2626_v7 }
 0x87a   :  { %v3487_v0 = vpop.eup %3486 }
 0x87b   :  { %v2630_v39 = vmul.f32 0.6931472, %v3487_v0 }
 0x87d   :  { %v2632_v19 = vsub.f32 %v2618_v50, %v2630_v39 }
 0x87f   :  { %2634 = vst [vmem:[#allocation12 + $0x8] sm:$0xff] %v2632_v19 }
 0x880   :  { %2647 = dma.vmem_to_hbm [thread:$0]  %s2640_s28, 256, %s2642_s7, [#allocation5], %s3695_s25, %s3695_s25, %s3696_s26  }
 0x881   :  { %3687 = dma.done.wait [#allocation5], 256  }
 0x882   :  { %3688 = vsyncadd [#allocation5], 4294967040 }
 0x883   :  { %3689 = dma.done.wait [#allocation14], 512  }
 0x884   :  { %3690 = vsyncadd [#allocation14], 4294966784 }
 0x885   :  { %2686 = vsyncpa [#allocation4], 1 }
 0x886   :  { %2687 = vsyncpa [#allocation7], 1 }
 0x887   :  { %2688 = vsyncpa [#allocation10], 1 }
 0x888   :  { %2689 = vsyncpa [#allocation5], 1 }
 0x889   :  { %2690 = vsyncpa [#allocation14], 1 }

</bundles_post_ra>
